<compile_context>
chip_gen: v7x
topology: tpu7x:2x2x1
jax: 0.10.0
libtpu: 0.0.40
codegen_flags: <defaults>
</compile_context>

<pallas_src>
import functools

import jax
import jax.numpy as jnp
from jax.experimental import pallas as pl
from jax.experimental.pallas import tpu as pltpu

LN_EPS = 1e-6
# 64 MiB scoped VMEM: above v5e's 16 MiB default, <= physical on v5e/v6e/v7x.
VMEM_LIMIT = 64 * 1024 * 1024


def _pick_tm(rows, cap=512):
    """Largest row tile in {512, 256, 128} dividing `rows` (falls back to rows)."""
    for t in (512, 256, 128):
        if t <= cap and rows % t == 0:
            return t
    return rows


# ---------------------------------------------------------------------------
# Shared math helpers: used both inside the Pallas kernels and by the plain-JAX
# reference so both paths follow the exact same numerics recipe
# (bf16 matmul operands, f32 accumulate, f32 elementwise).
# ---------------------------------------------------------------------------
def layer_norm(x, g, b):
    mu = jnp.mean(x, axis=-1, keepdims=True)
    xc = x - mu
    var = jnp.mean(xc * xc, axis=-1, keepdims=True)
    return xc * jax.lax.rsqrt(var + LN_EPS) * g + b


def gelu_tanh(x):
    c = 0.7978845608028654  # sqrt(2/pi)
    return 0.5 * x * (1.0 + jnp.tanh(c * (x + 0.044715 * x * x * x)))


def sinusoid_table(n_position, d_hid, base):
    pos = jnp.arange(n_position, dtype=jnp.float32)[:, None]
    j = jnp.arange(d_hid)
    expo = (2.0 * (j // 2).astype(jnp.float32)) / float(d_hid)
    angle = pos / (jnp.asarray(base, jnp.float32) ** expo)[None, :]
    even = (j % 2 == 0)[None, :]
    return jnp.where(even, jnp.sin(angle), jnp.cos(angle)).astype(jnp.float32)


def unpatchify(y, hp, wp, P, cout):
    bn = y.shape[0]
    y = y.reshape(bn, hp, wp, P, P, cout)
    y = y.transpose(0, 1, 3, 2, 4, 5)  # nhwpqc -> nhpwqc
    return y.reshape(bn, hp * P, wp * P, cout)


# ---------------------------------------------------------------------------
# Kernel 1: patch embedding (conv k=P,s=P as im2col matmul) + bias + pos-enc.
# ---------------------------------------------------------------------------
def patch_embed_kernel(xp_ref, pe_ref, w_ref, b_ref, o_ref):
    xb = xp_ref[...].astype(jnp.bfloat16)
    y = jnp.dot(xb, w_ref[...], preferred_element_type=jnp.float32)
    o_ref[...] = y + b_ref[...] + pe_ref[...]


def patch_embed_pallas(xp, pe, w, b, S):
    R, K = xp.shape
    D = w.shape[1]
    # tile must divide S so the PE block index can wrap around once per batch
    TM = _pick_tm(S)
    n_pe_blocks = S // TM
    return pl.pallas_call(
        patch_embed_kernel,
        out_shape=jax.ShapeDtypeStruct((R, D), jnp.float32),
        grid=(R // TM,),
        in_specs=[pl.BlockSpec((TM, K), lambda i: (i, 0)),
                  pl.BlockSpec((TM, D), lambda i: (i % n_pe_blocks, 0)),
                  pl.BlockSpec((K, D), lambda i: (0, 0)),
                  pl.BlockSpec((1, D), lambda i: (0, 0))],
        out_specs=pl.BlockSpec((TM, D), lambda i: (i, 0)),
        compiler_params=pltpu.CompilerParams(
            dimension_semantics=("parallel",), vmem_limit_bytes=VMEM_LIMIT),
    )(xp, pe, w, b)


# ---------------------------------------------------------------------------
# Kernel 2: fully fused DiTBlock for one batch element:
#   x = x + Attn(LN1(x));  x = x + MLP(LN2(x))
# QKV is a single (S,D)x(D,3D) matmul (scale folded into wq/bq); per-head
# softmax keeps p unnormalized and rescales with an approx reciprocal; head
# outputs are lane-concatenated so the output projection is one full (D,D)
# matmul; the MLP follows in the same body so the residual never leaves VMEM.
# ---------------------------------------------------------------------------
def dit_block_kernel(x_ref, g1_ref, s1_ref, wqkv_ref, bqkv_ref, wo_ref, bo_ref,
                     g2_ref, s2_ref, w1_ref, b1_ref, w2_ref, b2_ref, o_ref,
                     *, num_heads, head_dim):
    D = num_heads * head_dim
    x = x_ref[0]                                            # (S, D) f32

    # --- attention ---------------------------------------------------------
    y = layer_norm(x, g1_ref[...], s1_ref[...])
    yb = y.astype(jnp.bfloat16)
    qkv = jnp.dot(yb, wqkv_ref[...],
                  preferred_element_type=jnp.float32) + bqkv_ref[...]   # (S, 3D)

    heads = []
    for h in range(num_heads):                              # static unroll
        lo = h * head_dim
        hi = lo + head_dim
        qh = qkv[:, lo:hi].astype(jnp.bfloat16)             # already pre-scaled
        kh = qkv[:, D + lo:D + hi].astype(jnp.bfloat16)
        vh = qkv[:, 2 * D + lo:2 * D + hi].astype(jnp.bfloat16)
        s = jax.lax.dot_general(qh, kh, (((1,), (1,)), ((), ())),
                                preferred_element_type=jnp.float32)     # (S, S)
        s = s - jnp.max(s, axis=-1, keepdims=True)
        p = jnp.exp(s)                                      # unnormalized
        inv = pl.reciprocal(jnp.sum(p, axis=-1, keepdims=True), approx=True)
        oh = jnp.dot(p.astype(jnp.bfloat16), vh,
                     preferred_element_type=jnp.float32)    # (S, dh)
        heads.append(oh * inv)
    o_cat = jnp.concatenate(heads, axis=-1).astype(jnp.bfloat16)        # (S, D)
    attn = jnp.dot(o_cat, wo_ref[...], preferred_element_type=jnp.float32)
    x = x + attn + bo_ref[...]

    # --- mlp ----------------------------------------------------------------
    y2 = layer_norm(x, g2_ref[...], s2_ref[...])
    hdd = jnp.dot(y2.astype(jnp.bfloat16), w1_ref[...],
                  preferred_element_type=jnp.float32) + b1_ref[...]
    hdd = gelu_tanh(hdd)
    z = jnp.dot(hdd.astype(jnp.bfloat16), w2_ref[...],
                preferred_element_type=jnp.float32) + b2_ref[...]
    o_ref[0] = x + z


def dit_block_pallas(x, blk, nh):
    B, S, D = x.shape
    dh = D // nh
    DM = blk['w1'].shape[1]
    scale = dh ** -0.5

    # fold 1/sqrt(dh) into wq / bq (constant-folded by XLA, exact for pow-2 dh),
    # and fuse the three projections into one (D, 3D) weight.
    wq_s = (blk['wq'].astype(jnp.float32) * scale).astype(jnp.bfloat16)
    wqkv = jnp.concatenate([wq_s, blk['wk'], blk['wv']], axis=1)        # (D, 3D)
    bqkv = jnp.concatenate([blk['bq'] * scale, blk['bk'], blk['bv']], axis=1)

    kernel = functools.partial(dit_block_kernel, num_heads=nh, head_dim=dh)
    row = lambda n: pl.BlockSpec((1, n), lambda b: (0, 0))
    mat = lambda m, n: pl.BlockSpec((m, n), lambda b: (0, 0))
    cost = pl.CostEstimate(
        flops=int(B * S * (2 * D * 3 * D + nh * 4 * S * dh + 2 * D * D + 4 * D * DM)),
        transcendentals=int(B * (nh * S * S + S * DM)),
        bytes_accessed=int(2 * (4 * D * D + 2 * D * DM) + 2 * B * S * D * 4))
    return pl.pallas_call(
        kernel,
        out_shape=jax.ShapeDtypeStruct((B, S, D), jnp.float32),
        grid=(B,),
        in_specs=[pl.BlockSpec((1, S, D), lambda b: (b, 0, 0)),
                  row(D), row(D),
                  mat(D, 3 * D), row(3 * D),
                  mat(D, D), row(D),
                  row(D), row(D),
                  mat(D, DM), row(DM),
                  mat(DM, D), row(D)],
        out_specs=pl.BlockSpec((1, S, D), lambda b: (b, 0, 0)),
        compiler_params=pltpu.CompilerParams(
            dimension_semantics=("parallel",), vmem_limit_bytes=VMEM_LIMIT),
        cost_estimate=cost,
    )(x, blk['ln1_g'], blk['ln1_b'], wqkv, bqkv, blk['wo'], blk['bo'],
      blk['ln2_g'], blk['ln2_b'], blk['w1'], blk['b1'], blk['w2'], blk['b2'])


# ---------------------------------------------------------------------------
# Kernel 3: FinalLayer = LayerNorm + Linear(hidden -> P*P*ray_dim), token-tiled.
# Output is padded to a 128-wide lane-dense store (unmasked vst) and sliced
# back to P*P*ray_dim in the wrapper.
# ---------------------------------------------------------------------------
def final_layer_kernel(x_ref, g_ref, b_ref, w_ref, bias_ref, o_ref):
    y = layer_norm(x_ref[...], g_ref[...], b_ref[...])
    o_ref[...] = jnp.dot(y.astype(jnp.bfloat16), w_ref[...],
                         preferred_element_type=jnp.float32) + bias_ref[...]


def final_layer_pallas(x, g, b, w, bias):
    R, D = x.shape
    Dout = w.shape[1]
    Dpad = ((Dout + 127) // 128) * 128
    w_p = jnp.zeros((D, Dpad), jnp.bfloat16).at[:, :Dout].set(w)
    b_p = jnp.zeros((1, Dpad), jnp.float32).at[:, :Dout].set(bias)
    TM = _pick_tm(R)
    out = pl.pallas_call(
        final_layer_kernel,
        out_shape=jax.ShapeDtypeStruct((R, Dpad), jnp.float32),
        grid=(R // TM,),
        in_specs=[pl.BlockSpec((TM, D), lambda i: (i, 0)),
                  pl.BlockSpec((1, D), lambda i: (0, 0)),
                  pl.BlockSpec((1, D), lambda i: (0, 0)),
                  pl.BlockSpec((D, Dpad), lambda i: (0, 0)),
                  pl.BlockSpec((1, Dpad), lambda i: (0, 0))],
        out_specs=pl.BlockSpec((TM, Dpad), lambda i: (i, 0)),
        compiler_params=pltpu.CompilerParams(
            dimension_semantics=("parallel",), vmem_limit_bytes=VMEM_LIMIT),
    )(x, g, b, w_p, b_p)
    return out[:, :Dout]


# ---------------------------------------------------------------------------
# Full DiT forward, Pallas version.
# ---------------------------------------------------------------------------
def dit_forward_pallas(x, params, cfg):
    B, N, C, H, W = x.shape
    P = cfg['P']
    D = cfg['hidden_size']
    nh = cfg['num_heads']
    cout = cfg['ray_dim']
    hp, wp = H // P, W // P
    T = hp * wp
    S = N * T
    R = B * S
    K = C * P * P

    # patch im2col (pure layout) -> rows ordered (b, n, hp, wp), cols (c, ph, pw)
    xp = x.reshape(B * N, C, hp, P, wp, P).transpose(0, 2, 4, 1, 3, 5)
    xp = xp.reshape(R, K).astype(jnp.float32)

    # positional encoding rows (image pos + token pos); identical for every b ->
    # pass (S, D) once and wrap the block index per batch inside the BlockSpec.
    pe_rows = (params['pe1'][:N, None, :] + params['pe2'][None, :, :]).reshape(S, D)

    tok = patch_embed_pallas(xp, pe_rows, params['w_embed'], params['b_embed'], S)

    seq = tok.reshape(B, S, D)
    for blk in params['blocks']:
        seq = dit_block_pallas(seq, blk, nh)        # x + attn(ln1(x)); x + mlp(ln2(x))

    y = final_layer_pallas(seq.reshape(R, D), params['lnf_g'], params['lnf_b'],
                           params['w_final'], params['b_final'])   # (R, P*P*cout)
    y = y.reshape(B * N, T, P * P * cout)
    imgs = unpatchify(y, hp, wp, P, cout)                          # (B*N, H, W, cout)
    return imgs.reshape(B, N, H, W, cout).transpose(0, 1, 4, 2, 3)


# ---------------------------------------------------------------------------
# Plain-JAX reference (same bf16-operand / f32-accumulate recipe; uses
# lax.conv for the patch embed so the im2col path is verified independently).
# ---------------------------------------------------------------------------
def dit_forward_reference(x, params, cfg):
    B, N, C, H, W = x.shape
    P, D, nh, cout = cfg['P'], cfg['hidden_size'], cfg['num_heads'], cfg['ray_dim']
    hp, wp = H // P, W // P
    T = hp * wp
    S = N * T
    dh = D // nh

    xi = x.reshape(B * N, C, H, W).astype(jnp.bfloat16)
    w_conv = params['w_embed'].T.reshape(D, C, P, P)                   # bf16
    tok = jax.lax.conv_general_dilated(
        xi, w_conv, window_strides=(P, P), padding='VALID',
        dimension_numbers=('NCHW', 'OIHW', 'NCHW'),
        preferred_element_type=jnp.float32)
    tok = tok + params['b_embed'].reshape(1, D, 1, 1)
    tok = tok.transpose(0, 2, 3, 1).reshape(B, N, T, D)
    tok = tok + params['pe1'][None, :N, None, :] + params['pe2'][None, None, :, :]
    seq = tok.reshape(B, S, D)

    for blk in params['blocks']:
        y = layer_norm(seq, blk['ln1_g'], blk['ln1_b'])
        yb = y.astype(jnp.bfloat16)
        q = jnp.dot(yb, blk['wq'], preferred_element_type=jnp.float32) + blk['bq']
        k = jnp.dot(yb, blk['wk'], preferred_element_type=jnp.float32) + blk['bk']
        v = jnp.dot(yb, blk['wv'], preferred_element_type=jnp.float32) + blk['bv']
        qh = (q.reshape(B, S, nh, dh) * (dh ** -0.5)).transpose(0, 2, 1, 3)
        kh = k.reshape(B, S, nh, dh).transpose(0, 2, 1, 3)
        vh = v.reshape(B, S, nh, dh).transpose(0, 2, 1, 3)
        s = jnp.einsum('bhqd,bhkd->bhqk', qh.astype(jnp.bfloat16),
                       kh.astype(jnp.bfloat16), preferred_element_type=jnp.float32)
        s = s - jnp.max(s, axis=-1, keepdims=True)
        p = jnp.exp(s)
        p = p / jnp.sum(p, axis=-1, keepdims=True)
        o = jnp.einsum('bhqk,bhkd->bhqd', p.astype(jnp.bfloat16),
                       vh.astype(jnp.bfloat16), preferred_element_type=jnp.float32)
        o = o.transpose(0, 2, 1, 3).reshape(B, S, D)
        seq = seq + jnp.dot(o.astype(jnp.bfloat16), blk['wo'],
                            preferred_element_type=jnp.float32) + blk['bo']

        y2 = layer_norm(seq, blk['ln2_g'], blk['ln2_b'])
        hdd = jnp.dot(y2.astype(jnp.bfloat16), blk['w1'],
                      preferred_element_type=jnp.float32) + blk['b1']
        hdd = gelu_tanh(hdd)
        seq = seq + jnp.dot(hdd.astype(jnp.bfloat16), blk['w2'],
                            preferred_element_type=jnp.float32) + blk['b2']

    y = layer_norm(seq, params['lnf_g'], params['lnf_b'])
    y = jnp.dot(y.astype(jnp.bfloat16), params['w_final'],
                preferred_element_type=jnp.float32) + params['b_final']
    y = y.reshape(B * N, T, cout * P * P)
    imgs = unpatchify(y, hp, wp, P, cout)
    return imgs.reshape(B, N, H, W, cout).transpose(0, 1, 4, 2, 3)


# ---------------------------------------------------------------------------
# Deterministic synthetic parameters (weights in (in, out) layout, stored bf16).
# ---------------------------------------------------------------------------
def make_params(key, cfg, T):
    D = cfg['hidden_size']
    C = cfg['in_channels']
    P = cfg['P']
    depth = cfg['depth']
    DM = int(D * cfg['mlp_ratio'])
    K = C * P * P
    Dout = P * P * cfg['ray_dim']
    ks = iter(jax.random.split(key, 8 + 16 * depth))

    def w(shape, scale=0.02):
        return (scale * jax.random.normal(next(ks), shape, jnp.float32)).astype(jnp.bfloat16)

    def bias(n, scale=0.02):
        return scale * jax.random.normal(next(ks), (1, n), jnp.float32)

    def ln(n):
        g = 1.0 + 0.05 * jax.random.normal(next(ks), (1, n), jnp.float32)
        b = 0.02 * jax.random.normal(next(ks), (1, n), jnp.float32)
        return g, b

    params = {
        'w_embed': w((K, D)),
        'b_embed': bias(D),
        'pe1': sinusoid_table(cfg['max_num_images'], D, 10000.0),
        'pe2': sinusoid_table(T, D, 70007.0),
        'blocks': [],
    }
    for _ in range(depth):
        ln1_g, ln1_b = ln(D)
        ln2_g, ln2_b = ln(D)
        params['blocks'].append(dict(
            ln1_g=ln1_g, ln1_b=ln1_b,
            wq=w((D, D)), bq=bias(D), wk=w((D, D)), bk=bias(D),
            wv=w((D, D)), bv=bias(D), wo=w((D, D)), bo=bias(D),
            ln2_g=ln2_g, ln2_b=ln2_b,
            w1=w((D, DM)), b1=bias(DM), w2=w((DM, D)), b2=bias(D)))
    lnf_g, lnf_b = ln(D)
    params['lnf_g'] = lnf_g
    params['lnf_b'] = lnf_b
    params['w_final'] = w((D, Dout))
    params['b_final'] = bias(Dout)
    return params


if __name__ == "__main__":
    cfg = dict(in_channels=4, ray_dim=6, width=16, depth=2, hidden_size=128,
               max_num_images=8, P=2, num_heads=2, mlp_ratio=4.0)
    B, N = 2, 2
    H = W = cfg['width']
    T = (H // cfg['P']) * (W // cfg['P'])

    key = jax.random.PRNGKey(0)
    kx, kp = jax.random.split(key)
    x = jax.random.normal(kx, (B, N, cfg['in_channels'], H, W), jnp.float32)
    params = make_params(kp, cfg, T)

    fwd = jax.jit(lambda xx, pp: dit_forward_pallas(xx, pp, cfg))
    out = fwd(x, params)
    jax.block_until_ready(out)

    ref = dit_forward_reference(x, params, cfg)
    assert out.shape == (B, N, cfg['ray_dim'], H, W), out.shape
    max_err = float(jnp.max(jnp.abs(out - ref)))
    assert jnp.allclose(out, ref, atol=2e-3, rtol=2e-2), f"max abs err {max_err}"

    print("KERNEL_OK")
</pallas_src>

<mosaic_0001>
module attributes {stable_mosaic.version = 11 : i64} {
  func.func @patch_embed_kernel(%arg0: i32, %arg1: memref<128x16xf32, #tpu.memory_space<vmem>>, %arg2: memref<128x128xf32, #tpu.memory_space<vmem>>, %arg3: memref<16x128xbf16, #tpu.memory_space<vmem>>, %arg4: memref<1x128xf32, #tpu.memory_space<vmem>>, %arg5: memref<128x128xf32, #tpu.memory_space<vmem>>) attributes {dimension_semantics = [#tpu.dimension_semantics<parallel>], iteration_bounds = array<i64: 2>, scalar_prefetch = 0 : i64, scratch_operands = 0 : i64, tpu.core_type = #tpu.core_type<tc>, window_params = [{transform_indices = @transform_0, window_bounds = array<i64: 128, 16>}, {transform_indices = @transform_1, window_bounds = array<i64: 128, 128>}, {pipeline_mode = #tpu.pipeline_mode<synchronous>, transform_indices = @transform_2, window_bounds = array<i64: 16, 128>}, {pipeline_mode = #tpu.pipeline_mode<synchronous>, transform_indices = @transform_3, window_bounds = array<i64: 1, 128>}, {transform_indices = @transform_4, window_bounds = array<i64: 128, 128>}]} {
    %c0 = arith.constant 0 : index
    %c0_0 = arith.constant 0 : index
    %0 = vector.load %arg1[%c0, %c0_0] : memref<128x16xf32, #tpu.memory_space<vmem>>, vector<128x16xf32>
    %1 = arith.truncf %0 : vector<128x16xf32> to vector<128x16xbf16>
    %c0_1 = arith.constant 0 : index
    %c0_2 = arith.constant 0 : index
    %2 = vector.load %arg3[%c0_1, %c0_2] : memref<16x128xbf16, #tpu.memory_space<vmem>>, vector<16x128xbf16>
    %cst = arith.constant dense<0.000000e+00> : vector<128x128xf32>
    %3 = tpu.matmul %1, %2, %cst {dimension_numbers = #tpu.dot_dimension_numbers<[1], [0], [0], [1], [0, 0, 1, 1], [], []>} : vector<128x16xbf16>, vector<16x128xbf16>, vector<128x128xf32> -> vector<128x128xf32>
    %c0_3 = arith.constant 0 : index
    %c0_4 = arith.constant 0 : index
    %4 = vector.load %arg4[%c0_3, %c0_4] : memref<1x128xf32, #tpu.memory_space<vmem>>, vector<1x128xf32>
    %5 = vector.broadcast %4 : vector<1x128xf32> to vector<128x128xf32>
    %6 = arith.addf %3, %5 : vector<128x128xf32>
    %c0_5 = arith.constant 0 : index
    %c0_6 = arith.constant 0 : index
    %7 = vector.load %arg2[%c0_5, %c0_6] : memref<128x128xf32, #tpu.memory_space<vmem>>, vector<128x128xf32>
    %8 = arith.addf %6, %7 : vector<128x128xf32>
    %c0_7 = arith.constant 0 : index
    %c0_8 = arith.constant 0 : index
    %9 = vector.load %arg5[%c0_7, %c0_8] : memref<128x128xf32, #tpu.memory_space<vmem>>, vector<128x128xf32>
    tpu.vector_store %arg5[%c0_7, %c0_8], %8 {strides = array<i32>} : memref<128x128xf32, #tpu.memory_space<vmem>>, vector<128x128xf32>,
    return
  }
  func.func @transform_0(%arg0: i32) -> (i32, i32) {
    %c0_i32 = arith.constant 0 : i32
    %c0_i32_0 = arith.constant 0 : i32
    return %arg0, %c0_i32 : i32, i32
  }
  func.func @transform_1(%arg0: i32) -> (i32, i32) {
    %c1_i32 = arith.constant 1 : i32
    %c0_i32 = arith.constant 0 : i32
    %0 = arith.cmpi eq, %c1_i32, %c0_i32 : i32
    %c1_i32_0 = arith.constant 1 : i32
    %1 = arith.select %0, %c1_i32_0, %c1_i32 : i32
    %2 = arith.remsi %arg0, %1 : i32
    %c0_i32_1 = arith.constant 0 : i32
    %3 = arith.cmpi ne, %2, %c0_i32_1 : i32
    %c0_i32_2 = arith.constant 0 : i32
    %4 = arith.cmpi slt, %2, %c0_i32_2 : i32
    %c0_i32_3 = arith.constant 0 : i32
    %5 = arith.cmpi slt, %1, %c0_i32_3 : i32
    %6 = arith.xori %4, %5 : i1
    %7 = arith.andi %6, %3 : i1
    %8 = arith.addi %2, %1 : i32
    %9 = arith.select %7, %8, %2 : i32
    %c0_i32_4 = arith.constant 0 : i32
    %c0_i32_5 = arith.constant 0 : i32
    return %9, %c0_i32_4 : i32, i32
  }
  func.func @transform_2(%arg0: i32) -> (i32, i32) {
    %c0_i32 = arith.constant 0 : i32
    %c0_i32_0 = arith.constant 0 : i32
    %c0_i32_1 = arith.constant 0 : i32
    return %c0_i32, %c0_i32_0 : i32, i32
  }
  func.func @transform_3(%arg0: i32) -> (i32, i32) {
    %c0_i32 = arith.constant 0 : i32
    %c0_i32_0 = arith.constant 0 : i32
    %c0_i32_1 = arith.constant 0 : i32
    return %c0_i32, %c0_i32_0 : i32, i32
  }
  func.func @transform_4(%arg0: i32) -> (i32, i32) {
    %c0_i32 = arith.constant 0 : i32
    %c0_i32_0 = arith.constant 0 : i32
    return %arg0, %c0_i32 : i32, i32
  }
}

module attributes {stable_mosaic.version = 11 : i64} {
  func.func @final_layer_kernel(%arg0: i32, %arg1: memref<256x128xf32, #tpu.memory_space<vmem>>, %arg2: memref<1x128xf32, #tpu.memory_space<vmem>>, %arg3: memref<1x128xf32, #tpu.memory_space<vmem>>, %arg4: memref<128x128xbf16, #tpu.memory_space<vmem>>, %arg5: memref<1x128xf32, #tpu.memory_space<vmem>>, %arg6: memref<256x128xf32, #tpu.memory_space<vmem>>) attributes {dimension_semantics = [#tpu.dimension_semantics<parallel>], iteration_bounds = array<i64: 1>, scalar_prefetch = 0 : i64, scratch_operands = 0 : i64, tpu.core_type = #tpu.core_type<tc>, window_params = [{transform_indices = @transform_0, window_bounds = array<i64: 256, 128>}, {pipeline_mode = #tpu.pipeline_mode<synchronous>, transform_indices = @transform_1, window_bounds = array<i64: 1, 128>}, {pipeline_mode = #tpu.pipeline_mode<synchronous>, transform_indices = @transform_2, window_bounds = array<i64: 1, 128>}, {pipeline_mode = #tpu.pipeline_mode<synchronous>, transform_indices = @transform_3, window_bounds = array<i64: 128, 128>}, {pipeline_mode = #tpu.pipeline_mode<synchronous>, transform_indices = @transform_4, window_bounds = array<i64: 1, 128>}, {transform_indices = @transform_5, window_bounds = array<i64: 256, 128>}]} {
    %c0 = arith.constant 0 : index
    %c0_0 = arith.constant 0 : index
    %0 = vector.load %arg1[%c0, %c0_0] : memref<256x128xf32, #tpu.memory_space<vmem>>, vector<256x128xf32>
    %c0_1 = arith.constant 0 : index
    %c0_2 = arith.constant 0 : index
    %1 = vector.load %arg2[%c0_1, %c0_2] : memref<1x128xf32, #tpu.memory_space<vmem>>, vector<1x128xf32>
    %c0_3 = arith.constant 0 : index
    %c0_4 = arith.constant 0 : index
    %2 = vector.load %arg3[%c0_3, %c0_4] : memref<1x128xf32, #tpu.memory_space<vmem>>, vector<1x128xf32>
    %cst = arith.constant dense<0.000000e+00> : vector<256xf32>
    %3 = vector.multi_reduction <add>, %0, %cst [1] : vector<256x128xf32> to vector<256xf32>
    %4 = vector.shape_cast %3 : vector<256xf32> to vector<256x1xf32>
    %cst_5 = arith.constant 1.280000e+02 : f32
    %5 = vector.broadcast %cst_5 : f32 to vector<256x1xf32>
    %6 = arith.divf %4, %5 : vector<256x1xf32>
    %7 = vector.broadcast %6 : vector<256x1xf32> to vector<256x128xf32>
    %8 = arith.subf %0, %7 : vector<256x128xf32>
    %9 = arith.mulf %8, %8 : vector<256x128xf32>
    %cst_6 = arith.constant dense<0.000000e+00> : vector<256xf32>
    %10 = vector.multi_reduction <add>, %9, %cst_6 [1] : vector<256x128xf32> to vector<256xf32>
    %11 = vector.shape_cast %10 : vector<256xf32> to vector<256x1xf32>
    %cst_7 = arith.constant 1.280000e+02 : f32
    %12 = vector.broadcast %cst_7 : f32 to vector<256x1xf32>
    %13 = arith.divf %11, %12 : vector<256x1xf32>
    %cst_8 = arith.constant 9.99999997E-7 : f32
    %14 = vector.broadcast %cst_8 : f32 to vector<256x1xf32>
    %15 = arith.addf %13, %14 : vector<256x1xf32>
    %16 = math.rsqrt %15 : vector<256x1xf32>
    %17 = vector.broadcast %16 : vector<256x1xf32> to vector<256x128xf32>
    %18 = arith.mulf %8, %17 : vector<256x128xf32>
    %19 = vector.broadcast %1 : vector<1x128xf32> to vector<256x128xf32>
    %20 = arith.mulf %18, %19 : vector<256x128xf32>
    %21 = vector.broadcast %2 : vector<1x128xf32> to vector<256x128xf32>
    %22 = arith.addf %20, %21 : vector<256x128xf32>
    %23 = arith.truncf %22 : vector<256x128xf32> to vector<256x128xbf16>
    %c0_9 = arith.constant 0 : index
    %c0_10 = arith.constant 0 : index
    %24 = vector.load %arg4[%c0_9, %c0_10] : memref<128x128xbf16, #tpu.memory_space<vmem>>, vector<128x128xbf16>
    %cst_11 = arith.constant dense<0.000000e+00> : vector<256x128xf32>
    %25 = tpu.matmul %23, %24, %cst_11 {dimension_numbers = #tpu.dot_dimension_numbers<[1], [0], [0], [1], [0, 0, 1, 1], [], []>} : vector<256x128xbf16>, vector<128x128xbf16>, vector<256x128xf32> -> vector<256x128xf32>
    %c0_12 = arith.constant 0 : index
    %c0_13 = arith.constant 0 : index
    %26 = vector.load %arg5[%c0_12, %c0_13] : memref<1x128xf32, #tpu.memory_space<vmem>>, vector<1x128xf32>
    %27 = vector.broadcast %26 : vector<1x128xf32> to vector<256x128xf32>
    %28 = arith.addf %25, %27 : vector<256x128xf32>
    %c0_14 = arith.constant 0 : index
    %c0_15 = arith.constant 0 : index
    %29 = vector.load %arg6[%c0_14, %c0_15] : memref<256x128xf32, #tpu.memory_space<vmem>>, vector<256x128xf32>
    tpu.vector_store %arg6[%c0_14, %c0_15], %28 {strides = array<i32>} : memref<256x128xf32, #tpu.memory_space<vmem>>, vector<256x128xf32>,
    return
  }
  func.func @transform_0(%arg0: i32) -> (i32, i32) {
    %c0_i32 = arith.constant 0 : i32
    %c0_i32_0 = arith.constant 0 : i32
    return %arg0, %c0_i32 : i32, i32
  }
  func.func @transform_1(%arg0: i32) -> (i32, i32) {
    %c0_i32 = arith.constant 0 : i32
    %c0_i32_0 = arith.constant 0 : i32
    %c0_i32_1 = arith.constant 0 : i32
    return %c0_i32, %c0_i32_0 : i32, i32
  }
  func.func @transform_2(%arg0: i32) -> (i32, i32) {
    %c0_i32 = arith.constant 0 : i32
    %c0_i32_0 = arith.constant 0 : i32
    %c0_i32_1 = arith.constant 0 : i32
    return %c0_i32, %c0_i32_0 : i32, i32
  }
  func.func @transform_3(%arg0: i32) -> (i32, i32) {
    %c0_i32 = arith.constant 0 : i32
    %c0_i32_0 = arith.constant 0 : i32
    %c0_i32_1 = arith.constant 0 : i32
    return %c0_i32, %c0_i32_0 : i32, i32
  }
  func.func @transform_4(%arg0: i32) -> (i32, i32) {
    %c0_i32 = arith.constant 0 : i32
    %c0_i32_0 = arith.constant 0 : i32
    %c0_i32_1 = arith.constant 0 : i32
    return %c0_i32, %c0_i32_0 : i32, i32
  }
  func.func @transform_5(%arg0: i32) -> (i32, i32) {
    %c0_i32 = arith.constant 0 : i32
    %c0_i32_0 = arith.constant 0 : i32
    return %arg0, %c0_i32 : i32, i32
  }
}

module attributes {stable_mosaic.version = 11 : i64} {
  func.func @dit_block_kernel(%arg0: i32, %arg1: memref<1x128x128xf32, #tpu.memory_space<vmem>>, %arg2: memref<1x128xf32, #tpu.memory_space<vmem>>, %arg3: memref<1x128xf32, #tpu.memory_space<vmem>>, %arg4: memref<128x384xbf16, #tpu.memory_space<vmem>>, %arg5: memref<1x384xf32, #tpu.memory_space<vmem>>, %arg6: memref<128x128xbf16, #tpu.memory_space<vmem>>, %arg7: memref<1x128xf32, #tpu.memory_space<vmem>>, %arg8: memref<1x128xf32, #tpu.memory_space<vmem>>, %arg9: memref<1x128xf32, #tpu.memory_space<vmem>>, %arg10: memref<128x512xbf16, #tpu.memory_space<vmem>>, %arg11: memref<1x512xf32, #tpu.memory_space<vmem>>, %arg12: memref<512x128xbf16, #tpu.memory_space<vmem>>, %arg13: memref<1x128xf32, #tpu.memory_space<vmem>>, %arg14: memref<1x128x128xf32, #tpu.memory_space<vmem>>) attributes {dimension_semantics = [#tpu.dimension_semantics<parallel>], iteration_bounds = array<i64: 2>, scalar_prefetch = 0 : i64, scratch_operands = 0 : i64, tpu.core_type = #tpu.core_type<tc>, window_params = [{transform_indices = @transform_0, window_bounds = array<i64: 1, 128, 128>}, {pipeline_mode = #tpu.pipeline_mode<synchronous>, transform_indices = @transform_1, window_bounds = array<i64: 1, 128>}, {pipeline_mode = #tpu.pipeline_mode<synchronous>, transform_indices = @transform_2, window_bounds = array<i64: 1, 128>}, {pipeline_mode = #tpu.pipeline_mode<synchronous>, transform_indices = @transform_3, window_bounds = array<i64: 128, 384>}, {pipeline_mode = #tpu.pipeline_mode<synchronous>, transform_indices = @transform_4, window_bounds = array<i64: 1, 384>}, {pipeline_mode = #tpu.pipeline_mode<synchronous>, transform_indices = @transform_5, window_bounds = array<i64: 128, 128>}, {pipeline_mode = #tpu.pipeline_mode<synchronous>, transform_indices = @transform_6, window_bounds = array<i64: 1, 128>}, {pipeline_mode = #tpu.pipeline_mode<synchronous>, transform_indices = @transform_7, window_bounds = array<i64: 1, 128>}, {pipeline_mode = #tpu.pipeline_mode<synchronous>, transform_indices = @transform_8, window_bounds = array<i64: 1, 128>}, {pipeline_mode = #tpu.pipeline_mode<synchronous>, transform_indices = @transform_9, window_bounds = array<i64: 128, 512>}, {pipeline_mode = #tpu.pipeline_mode<synchronous>, transform_indices = @transform_10, window_bounds = array<i64: 1, 512>}, {pipeline_mode = #tpu.pipeline_mode<synchronous>, transform_indices = @transform_11, window_bounds = array<i64: 512, 128>}, {pipeline_mode = #tpu.pipeline_mode<synchronous>, transform_indices = @transform_12, window_bounds = array<i64: 1, 128>}, {transform_indices = @transform_13, window_bounds = array<i64: 1, 128, 128>}]} {
    %c0 = arith.constant 0 : index
    %c0_0 = arith.constant 0 : index
    %c0_1 = arith.constant 0 : index
    %0 = vector.load %arg1[%c0, %c0_0, %c0_1] : memref<1x128x128xf32, #tpu.memory_space<vmem>>, vector<1x128x128xf32>
    %1 = vector.shape_cast %0 : vector<1x128x128xf32> to vector<128x128xf32>
    %c0_2 = arith.constant 0 : index
    %c0_3 = arith.constant 0 : index
    %2 = vector.load %arg2[%c0_2, %c0_3] : memref<1x128xf32, #tpu.memory_space<vmem>>, vector<1x128xf32>
    %c0_4 = arith.constant 0 : index
    %c0_5 = arith.constant 0 : index
    %3 = vector.load %arg3[%c0_4, %c0_5] : memref<1x128xf32, #tpu.memory_space<vmem>>, vector<1x128xf32>
    %cst = arith.constant dense<0.000000e+00> : vector<128xf32>
    %4 = vector.multi_reduction <add>, %1, %cst [1] : vector<128x128xf32> to vector<128xf32>
    %5 = vector.shape_cast %4 : vector<128xf32> to vector<128x1xf32>
    %cst_6 = arith.constant 1.280000e+02 : f32
    %6 = vector.broadcast %cst_6 : f32 to vector<128x1xf32>
    %7 = arith.divf %5, %6 : vector<128x1xf32>
    %8 = vector.broadcast %7 : vector<128x1xf32> to vector<128x128xf32>
    %9 = arith.subf %1, %8 : vector<128x128xf32>
    %10 = arith.mulf %9, %9 : vector<128x128xf32>
    %cst_7 = arith.constant dense<0.000000e+00> : vector<128xf32>
    %11 = vector.multi_reduction <add>, %10, %cst_7 [1] : vector<128x128xf32> to vector<128xf32>
    %12 = vector.shape_cast %11 : vector<128xf32> to vector<128x1xf32>
    %cst_8 = arith.constant 1.280000e+02 : f32
    %13 = vector.broadcast %cst_8 : f32 to vector<128x1xf32>
    %14 = arith.divf %12, %13 : vector<128x1xf32>
    %cst_9 = arith.constant 9.99999997E-7 : f32
    %15 = vector.broadcast %cst_9 : f32 to vector<128x1xf32>
    %16 = arith.addf %14, %15 : vector<128x1xf32>
    %17 = math.rsqrt %16 : vector<128x1xf32>
    %18 = vector.broadcast %17 : vector<128x1xf32> to vector<128x128xf32>
    %19 = arith.mulf %9, %18 : vector<128x128xf32>
    %20 = vector.broadcast %2 : vector<1x128xf32> to vector<128x128xf32>
    %21 = arith.mulf %19, %20 : vector<128x128xf32>
    %22 = vector.broadcast %3 : vector<1x128xf32> to vector<128x128xf32>
    %23 = arith.addf %21, %22 : vector<128x128xf32>
    %24 = arith.truncf %23 : vector<128x128xf32> to vector<128x128xbf16>
    %c0_10 = arith.constant 0 : index
    %c0_11 = arith.constant 0 : index
    %25 = vector.load %arg4[%c0_10, %c0_11] : memref<128x384xbf16, #tpu.memory_space<vmem>>, vector<128x384xbf16>
    %cst_12 = arith.constant dense<0.000000e+00> : vector<128x384xf32>
    %26 = tpu.matmul %24, %25, %cst_12 {dimension_numbers = #tpu.dot_dimension_numbers<[1], [0], [0], [1], [0, 0, 1, 1], [], []>} : vector<128x128xbf16>, vector<128x384xbf16>, vector<128x384xf32> -> vector<128x384xf32>
    %c0_13 = arith.constant 0 : index
    %c0_14 = arith.constant 0 : index
    %27 = vector.load %arg5[%c0_13, %c0_14] : memref<1x384xf32, #tpu.memory_space<vmem>>, vector<1x384xf32>
    %28 = vector.broadcast %27 : vector<1x384xf32> to vector<128x384xf32>
    %29 = arith.addf %26, %28 : vector<128x384xf32>
    %30 = vector.extract_strided_slice %29 {offsets = [0, 0], sizes = [128, 64], strides = [1, 1]} : vector<128x384xf32> to vector<128x64xf32>
    %31 = arith.truncf %30 : vector<128x64xf32> to vector<128x64xbf16>
    %32 = vector.extract_strided_slice %29 {offsets = [0, 128], sizes = [128, 64], strides = [1, 1]} : vector<128x384xf32> to vector<128x64xf32>
    %33 = arith.truncf %32 : vector<128x64xf32> to vector<128x64xbf16>
    %34 = vector.extract_strided_slice %29 {offsets = [0, 256], sizes = [128, 64], strides = [1, 1]} : vector<128x384xf32> to vector<128x64xf32>
    %35 = arith.truncf %34 : vector<128x64xf32> to vector<128x64xbf16>
    %cst_15 = arith.constant dense<0.000000e+00> : vector<128x128xf32>
    %36 = tpu.matmul %31, %33, %cst_15 {dimension_numbers = #tpu.dot_dimension_numbers<[1], [1], [0], [0], [0, 0, 1, 0], [], []>} : vector<128x64xbf16>, vector<128x64xbf16>, vector<128x128xf32> -> vector<128x128xf32>
    %cst_16 = arith.constant dense<0xFF800000> : vector<128xf32>
    %37 = vector.multi_reduction <maximumf>, %36, %cst_16 [1] : vector<128x128xf32> to vector<128xf32>
    %38 = vector.shape_cast %37 : vector<128xf32> to vector<128x1xf32>
    %39 = vector.broadcast %38 : vector<128x1xf32> to vector<128x128xf32>
    %40 = arith.subf %36, %39 : vector<128x128xf32>
    %41 = math.exp %40 : vector<128x128xf32>
    %cst_17 = arith.constant dense<0.000000e+00> : vector<128xf32>
    %42 = vector.multi_reduction <add>, %41, %cst_17 [1] : vector<128x128xf32> to vector<128xf32>
    %43 = vector.shape_cast %42 : vector<128xf32> to vector<128x1xf32>
    %44 = tpu.reciprocal %43 {approx = true} : vector<128x1xf32> -> vector<128x1xf32>
    %45 = arith.truncf %41 : vector<128x128xf32> to vector<128x128xbf16>
    %cst_18 = arith.constant dense<0.000000e+00> : vector<128x64xf32>
    %46 = tpu.matmul %45, %35, %cst_18 {dimension_numbers = #tpu.dot_dimension_numbers<[1], [0], [0], [1], [0, 0, 1, 1], [], []>} : vector<128x128xbf16>, vector<128x64xbf16>, vector<128x64xf32> -> vector<128x64xf32>
    %47 = vector.broadcast %44 : vector<128x1xf32> to vector<128x64xf32>
    %48 = arith.mulf %46, %47 : vector<128x64xf32>
    %49 = vector.extract_strided_slice %29 {offsets = [0, 64], sizes = [128, 64], strides = [1, 1]} : vector<128x384xf32> to vector<128x64xf32>
    %50 = arith.truncf %49 : vector<128x64xf32> to vector<128x64xbf16>
    %51 = vector.extract_strided_slice %29 {offsets = [0, 192], sizes = [128, 64], strides = [1, 1]} : vector<128x384xf32> to vector<128x64xf32>
    %52 = arith.truncf %51 : vector<128x64xf32> to vector<128x64xbf16>
    %53 = vector.extract_strided_slice %29 {offsets = [0, 320], sizes = [128, 64], strides = [1, 1]} : vector<128x384xf32> to vector<128x64xf32>
    %54 = arith.truncf %53 : vector<128x64xf32> to vector<128x64xbf16>
    %cst_19 = arith.constant dense<0.000000e+00> : vector<128x128xf32>
    %55 = tpu.matmul %50, %52, %cst_19 {dimension_numbers = #tpu.dot_dimension_numbers<[1], [1], [0], [0], [0, 0, 1, 0], [], []>} : vector<128x64xbf16>, vector<128x64xbf16>, vector<128x128xf32> -> vector<128x128xf32>
    %cst_20 = arith.constant dense<0xFF800000> : vector<128xf32>
    %56 = vector.multi_reduction <maximumf>, %55, %cst_20 [1] : vector<128x128xf32> to vector<128xf32>
    %57 = vector.shape_cast %56 : vector<128xf32> to vector<128x1xf32>
    %58 = vector.broadcast %57 : vector<128x1xf32> to vector<128x128xf32>
    %59 = arith.subf %55, %58 : vector<128x128xf32>
    %60 = math.exp %59 : vector<128x128xf32>
    %cst_21 = arith.constant dense<0.000000e+00> : vector<128xf32>
    %61 = vector.multi_reduction <add>, %60, %cst_21 [1] : vector<128x128xf32> to vector<128xf32>
    %62 = vector.shape_cast %61 : vector<128xf32> to vector<128x1xf32>
    %63 = tpu.reciprocal %62 {approx = true} : vector<128x1xf32> -> vector<128x1xf32>
    %64 = arith.truncf %60 : vector<128x128xf32> to vector<128x128xbf16>
    %cst_22 = arith.constant dense<0.000000e+00> : vector<128x64xf32>
    %65 = tpu.matmul %64, %54, %cst_22 {dimension_numbers = #tpu.dot_dimension_numbers<[1], [0], [0], [1], [0, 0, 1, 1], [], []>} : vector<128x128xbf16>, vector<128x64xbf16>, vector<128x64xf32> -> vector<128x64xf32>
    %66 = vector.broadcast %63 : vector<128x1xf32> to vector<128x64xf32>
    %67 = arith.mulf %65, %66 : vector<128x64xf32>
    %68 = tpu.concatenate %48, %67 in 1 : vector<128x64xf32>, vector<128x64xf32> -> vector<128x128xf32>
    %69 = arith.truncf %68 : vector<128x128xf32> to vector<128x128xbf16>
    %c0_23 = arith.constant 0 : index
    %c0_24 = arith.constant 0 : index
    %70 = vector.load %arg6[%c0_23, %c0_24] : memref<128x128xbf16, #tpu.memory_space<vmem>>, vector<128x128xbf16>
    %cst_25 = arith.constant dense<0.000000e+00> : vector<128x128xf32>
    %71 = tpu.matmul %69, %70, %cst_25 {dimension_numbers = #tpu.dot_dimension_numbers<[1], [0], [0], [1], [0, 0, 1, 1], [], []>} : vector<128x128xbf16>, vector<128x128xbf16>, vector<128x128xf32> -> vector<128x128xf32>
    %72 = arith.addf %1, %71 : vector<128x128xf32>
    %c0_26 = arith.constant 0 : index
    %c0_27 = arith.constant 0 : index
    %73 = vector.load %arg7[%c0_26, %c0_27] : memref<1x128xf32, #tpu.memory_space<vmem>>, vector<1x128xf32>
    %74 = vector.broadcast %73 : vector<1x128xf32> to vector<128x128xf32>
    %75 = arith.addf %72, %74 : vector<128x128xf32>
    %c0_28 = arith.constant 0 : index
    %c0_29 = arith.constant 0 : index
    %76 = vector.load %arg8[%c0_28, %c0_29] : memref<1x128xf32, #tpu.memory_space<vmem>>, vector<1x128xf32>
    %c0_30 = arith.constant 0 : index
    %c0_31 = arith.constant 0 : index
    %77 = vector.load %arg9[%c0_30, %c0_31] : memref<1x128xf32, #tpu.memory_space<vmem>>, vector<1x128xf32>
    %cst_32 = arith.constant dense<0.000000e+00> : vector<128xf32>
    %78 = vector.multi_reduction <add>, %75, %cst_32 [1] : vector<128x128xf32> to vector<128xf32>
    %79 = vector.shape_cast %78 : vector<128xf32> to vector<128x1xf32>
    %cst_33 = arith.constant 1.280000e+02 : f32
    %80 = vector.broadcast %cst_33 : f32 to vector<128x1xf32>
    %81 = arith.divf %79, %80 : vector<128x1xf32>
    %82 = vector.broadcast %81 : vector<128x1xf32> to vector<128x128xf32>
    %83 = arith.subf %75, %82 : vector<128x128xf32>
    %84 = arith.mulf %83, %83 : vector<128x128xf32>
    %cst_34 = arith.constant dense<0.000000e+00> : vector<128xf32>
    %85 = vector.multi_reduction <add>, %84, %cst_34 [1] : vector<128x128xf32> to vector<128xf32>
    %86 = vector.shape_cast %85 : vector<128xf32> to vector<128x1xf32>
    %cst_35 = arith.constant 1.280000e+02 : f32
    %87 = vector.broadcast %cst_35 : f32 to vector<128x1xf32>
    %88 = arith.divf %86, %87 : vector<128x1xf32>
    %cst_36 = arith.constant 9.99999997E-7 : f32
    %89 = vector.broadcast %cst_36 : f32 to vector<128x1xf32>
    %90 = arith.addf %88, %89 : vector<128x1xf32>
    %91 = math.rsqrt %90 : vector<128x1xf32>
    %92 = vector.broadcast %91 : vector<128x1xf32> to vector<128x128xf32>
    %93 = arith.mulf %83, %92 : vector<128x128xf32>
    %94 = vector.broadcast %76 : vector<1x128xf32> to vector<128x128xf32>
    %95 = arith.mulf %93, %94 : vector<128x128xf32>
    %96 = vector.broadcast %77 : vector<1x128xf32> to vector<128x128xf32>
    %97 = arith.addf %95, %96 : vector<128x128xf32>
    %98 = arith.truncf %97 : vector<128x128xf32> to vector<128x128xbf16>
    %c0_37 = arith.constant 0 : index
    %c0_38 = arith.constant 0 : index
    %99 = vector.load %arg10[%c0_37, %c0_38] : memref<128x512xbf16, #tpu.memory_space<vmem>>, vector<128x512xbf16>
    %cst_39 = arith.constant dense<0.000000e+00> : vector<128x512xf32>
    %100 = tpu.matmul %98, %99, %cst_39 {dimension_numbers = #tpu.dot_dimension_numbers<[1], [0], [0], [1], [0, 0, 1, 1], [], []>} : vector<128x128xbf16>, vector<128x512xbf16>, vector<128x512xf32> -> vector<128x512xf32>
    %c0_40 = arith.constant 0 : index
    %c0_41 = arith.constant 0 : index
    %101 = vector.load %arg11[%c0_40, %c0_41] : memref<1x512xf32, #tpu.memory_space<vmem>>, vector<1x512xf32>
    %102 = vector.broadcast %101 : vector<1x512xf32> to vector<128x512xf32>
    %103 = arith.addf %100, %102 : vector<128x512xf32>
    %cst_42 = arith.constant 5.000000e-01 : f32
    %104 = vector.broadcast %cst_42 : f32 to vector<128x512xf32>
    %105 = arith.mulf %104, %103 : vector<128x512xf32>
    %cst_43 = arith.constant 4.471500e-02 : f32
    %106 = vector.broadcast %cst_43 : f32 to vector<128x512xf32>
    %107 = arith.mulf %106, %103 : vector<128x512xf32>
    %108 = arith.mulf %107, %103 : vector<128x512xf32>
    %109 = arith.mulf %108, %103 : vector<128x512xf32>
    %110 = arith.addf %103, %109 : vector<128x512xf32>
    %cst_44 = arith.constant 0.797884583 : f32
    %111 = vector.broadcast %cst_44 : f32 to vector<128x512xf32>
    %112 = arith.mulf %111, %110 : vector<128x512xf32>
    %113 = math.tanh %112 : vector<128x512xf32>
    %cst_45 = arith.constant 1.000000e+00 : f32
    %114 = vector.broadcast %cst_45 : f32 to vector<128x512xf32>
    %115 = arith.addf %114, %113 : vector<128x512xf32>
    %116 = arith.mulf %105, %115 : vector<128x512xf32>
    %117 = arith.truncf %116 : vector<128x512xf32> to vector<128x512xbf16>
    %c0_46 = arith.constant 0 : index
    %c0_47 = arith.constant 0 : index
    %118 = vector.load %arg12[%c0_46, %c0_47] : memref<512x128xbf16, #tpu.memory_space<vmem>>, vector<512x128xbf16>
    %cst_48 = arith.constant dense<0.000000e+00> : vector<128x128xf32>
    %119 = tpu.matmul %117, %118, %cst_48 {dimension_numbers = #tpu.dot_dimension_numbers<[1], [0], [0], [1], [0, 0, 1, 1], [], []>} : vector<128x512xbf16>, vector<512x128xbf16>, vector<128x128xf32> -> vector<128x128xf32>
    %c0_49 = arith.constant 0 : index
    %c0_50 = arith.constant 0 : index
    %120 = vector.load %arg13[%c0_49, %c0_50] : memref<1x128xf32, #tpu.memory_space<vmem>>, vector<1x128xf32>
    %121 = vector.broadcast %120 : vector<1x128xf32> to vector<128x128xf32>
    %122 = arith.addf %119, %121 : vector<128x128xf32>
    %123 = arith.addf %75, %122 : vector<128x128xf32>
    %c0_51 = arith.constant 0 : index
    %c0_52 = arith.constant 0 : index
    %c0_53 = arith.constant 0 : index
    %124 = vector.load %arg14[%c0_51, %c0_52, %c0_53] : memref<1x128x128xf32, #tpu.memory_space<vmem>>, vector<1x128x128xf32>
    %125 = vector.shape_cast %124 : vector<1x128x128xf32> to vector<128x128xf32>
    %126 = vector.shape_cast %123 : vector<128x128xf32> to vector<1x128x128xf32>
    tpu.vector_store %arg14[%c0_51, %c0_52, %c0_53], %126 {strides = array<i32>} : memref<1x128x128xf32, #tpu.memory_space<vmem>>, vector<1x128x128xf32>,
    return
  }
  func.func @transform_0(%arg0: i32) -> (i32, i32, i32) {
    %c0_i32 = arith.constant 0 : i32
    %c0_i32_0 = arith.constant 0 : i32
    %c0_i32_1 = arith.constant 0 : i32
    return %arg0, %c0_i32, %c0_i32_0 : i32, i32, i32
  }
  func.func @transform_1(%arg0: i32) -> (i32, i32) {
    %c0_i32 = arith.constant 0 : i32
    %c0_i32_0 = arith.constant 0 : i32
    %c0_i32_1 = arith.constant 0 : i32
    return %c0_i32, %c0_i32_0 : i32, i32
  }
  func.func @transform_2(%arg0: i32) -> (i32, i32) {
    %c0_i32 = arith.constant 0 : i32
    %c0_i32_0 = arith.constant 0 : i32
    %c0_i32_1 = arith.constant 0 : i32
    return %c0_i32, %c0_i32_0 : i32, i32
  }
  func.func @transform_3(%arg0: i32) -> (i32, i32) {
    %c0_i32 = arith.constant 0 : i32
    %c0_i32_0 = arith.constant 0 : i32
    %c0_i32_1 = arith.constant 0 : i32
    return %c0_i32, %c0_i32_0 : i32, i32
  }
  func.func @transform_4(%arg0: i32) -> (i32, i32) {
    %c0_i32 = arith.constant 0 : i32
    %c0_i32_0 = arith.constant 0 : i32
    %c0_i32_1 = arith.constant 0 : i32
    return %c0_i32, %c0_i32_0 : i32, i32
  }
  func.func @transform_5(%arg0: i32) -> (i32, i32) {
    %c0_i32 = arith.constant 0 : i32
    %c0_i32_0 = arith.constant 0 : i32
    %c0_i32_1 = arith.constant 0 : i32
    return %c0_i32, %c0_i32_0 : i32, i32
  }
  func.func @transform_6(%arg0: i32) -> (i32, i32) {
    %c0_i32 = arith.constant 0 : i32
    %c0_i32_0 = arith.constant 0 : i32
    %c0_i32_1 = arith.constant 0 : i32
    return %c0_i32, %c0_i32_0 : i32, i32
  }
  func.func @transform_7(%arg0: i32) -> (i32, i32) {
    %c0_i32 = arith.constant 0 : i32
    %c0_i32_0 = arith.constant 0 : i32
    %c0_i32_1 = arith.constant 0 : i32
    return %c0_i32, %c0_i32_0 : i32, i32
  }
  func.func @transform_8(%arg0: i32) -> (i32, i32) {
    %c0_i32 = arith.constant 0 : i32
    %c0_i32_0 = arith.constant 0 : i32
    %c0_i32_1 = arith.constant 0 : i32
    return %c0_i32, %c0_i32_0 : i32, i32
  }
  func.func @transform_9(%arg0: i32) -> (i32, i32) {
    %c0_i32 = arith.constant 0 : i32
    %c0_i32_0 = arith.constant 0 : i32
    %c0_i32_1 = arith.constant 0 : i32
    return %c0_i32, %c0_i32_0 : i32, i32
  }
  func.func @transform_10(%arg0: i32) -> (i32, i32) {
    %c0_i32 = arith.constant 0 : i32
    %c0_i32_0 = arith.constant 0 : i32
    %c0_i32_1 = arith.constant 0 : i32
    return %c0_i32, %c0_i32_0 : i32, i32
  }
  func.func @transform_11(%arg0: i32) -> (i32, i32) {
    %c0_i32 = arith.constant 0 : i32
    %c0_i32_0 = arith.constant 0 : i32
    %c0_i32_1 = arith.constant 0 : i32
    return %c0_i32, %c0_i32_0 : i32, i32
  }
  func.func @transform_12(%arg0: i32) -> (i32, i32) {
    %c0_i32 = arith.constant 0 : i32
    %c0_i32_0 = arith.constant 0 : i32
    %c0_i32_1 = arith.constant 0 : i32
    return %c0_i32, %c0_i32_0 : i32, i32
  }
  func.func @transform_13(%arg0: i32) -> (i32, i32, i32) {
    %c0_i32 = arith.constant 0 : i32
    %c0_i32_0 = arith.constant 0 : i32
    %c0_i32_1 = arith.constant 0 : i32
    return %arg0, %c0_i32, %c0_i32_0 : i32, i32, i32
  }
}

</mosaic_0001>

<bundles_post_ra>
// kernel: _lambda_.4
= control target key start
LH: loop header
LB: loop body
LE: loop exit
PB: predicated region body
PF: predicated region fallthrough
CT: control target
= control target key end

     0   :  { %9 = vsyncpa [#allocation3], 0  ;;  %s1286_s0 = inlined_call_operand.hbm [shape: f32[256,16], index: 0, kind: input, shape index: {}]   ;;  %s1287_s1 = inlined_call_operand.hbm [shape: f32[128,128], index: 1, kind: input, shape index: {}]   ;;  %s1288_s2 = inlined_call_operand.hbm [shape: bf16[16,128], index: 2, kind: input, shape index: {}]   ;;  %s1289_s3 = inlined_call_operand.hbm [shape: f32[1,128], index: 3, kind: input, shape index: {}]   ;;  %s1290_s4 = inlined_call_operand.hbm [shape: f32[256,128], index: 4, kind: output, shape index: {}]  }
   0x1   :  { %11 = vsyncpa [#allocation3 + $0x1], 0 }
   0x2   :  { %12 = vsyncpa [#allocation6], 0 }
   0x3   :  { %13 = vsyncpa [#allocation9], 0 }
   0x4   :  { %14 = vsyncpa [#allocation4], 0 }
   0x5   :  { %16 = vsyncpa [#allocation4 + $0x1], 0  ;;  %s957_s15 = smov 0   ;;  %s959_s16 = smov 0  }
   0x6   :  { %s961_s17 = smov 0   ;;  %s963_s18 = smov 0  }
   0x7 LB: > { %s978_s19 = sadd.s32 4294967295, %s919_s18   ;;  %s586_s20 = sadd.s32 4294967294, %s919_s18   ;;  %s919_s18 = sphi %s963_s18, %s1315_s18   ;;  %s915_s17 = sphi %s961_s17, %s1314_s17   ;;  %s911_s16 = sphi %s959_s16, %s1313_s16   ;;  %s907_s15 = sphi %s957_s15, %s1312_s15  }
   0x8   : > { %p42_p0 = scmp.ne.s32.totalorder %s911_s16, %s907_s15  ;;  %p1291_p1 = scmp.eq.s32.totalorder %s978_s19, 0 }
   0x9   : > { %p135_p3 = scmp.eq.s32.totalorder %s586_s20, 1  ;;  %p587_p5 = scmp.ge.s32.totalorder %s919_s18, 1 }
   0xa   : > { %p987_p4 = por %p1291_p1, %p42_p0  ;;  %p142_p7 = scmp.lt.s32.totalorder %s919_s18, 3 }
   0xb   : > { %p992_p6 = por %p135_p3, %p42_p0  ;;  %s921_s24 = smov [#allocation5]  }
   0xc   : > { %s1295_s21 = scalar_select %p987_p4, 1, 0 }
   0xd   : > { %s1296_s22 = scalar_select %p992_p6, 1, 0 }
   0xe   : > { %p997_p8 = pnand %p587_p5, %p142_p7  ;;  %s154_s25 = sshll.u32 %s921_s24, 4  ;;  %s1001_s25 = int_to_ptr.vmem [resolvable:$true] %s154_s25 }
   0xf   : > { %s922_s27 = smov [#allocation7]   ;;  %s731_s5 = scalar_lea.hbm %s1287_s1, 2048 }
  0x10   : > { %s1297_s23 = scalar_select %p997_p8, 1, 0 }
  0x11   : > { %p663_p9 = pneg %p997_p8  ;;  %s167_s28 = sshll.u32 %s922_s27, 4  ;;  %s1012_s28 = int_to_ptr.vmem [resolvable:$true] %s167_s28 }
  0x12   : > { %p732_p12 = scmp.ne.s32.totalorder %s1287_s1, %s731_s5  ;;  %p738_p5 = scmp.lt.u32.totalorder %s731_s5, %s1287_s1 }
  0x13   : > { %p1008_p11 = pnand %p663_p9, %p1291_p1 }
  0x15   : > { %p1022_p13 = pneg %p1008_p11 }
  0x17   : > { %p734_p0 = pnand %p1022_p13, %p732_p12 }
  0x19   : > { %p735_p3 = pneg %p734_p0 }
  0x1b   : > { %p740_p7 = pnand %p738_p5, %p735_p3 }
  0x1d   : > { %743 = shalt.err (!%p740_p7)
}
  0x1e   : > { %s744_s11 = scalar_lea.vmem %s1001_s25, 2048  ;;  %p752_p2 = scmp.lt.s32.totalorder %s1001_s25, %s1001_s25 }
  0x1f   : > { %p745_p9 = scmp.ne.s32.totalorder %s1001_s25, %s744_s11  ;;  %p753_p6 = scmp.lt.s32.totalorder %s744_s11, %s744_s11 }
  0x21   : > { %p747_p10 = pnand %p745_p9, %p1022_p13  ;;  %p754_p12 = por %p753_p6, %p752_p2 }
  0x23   : > { %p748_p1 = pneg %p747_p10 }
  0x25   : > { %p755_p0 = pnand %p754_p12, %p748_p1 }
  0x27   : > { %758 = shalt.err (!%p755_p0)
}
  0x28   : > { %s1292_s12 = smov 128   ;;  %s924_s13 = smov 8  }
  0x29   : > { %666 = dma.hbm_to_vmem [thread:$0]  (!%p1008_p11), %s1287_s1, 2048, %s1001_s25, [#allocation6], %s1292_s12, %s1292_s12, %s924_s13  }
  0x2a   : > { %s759_s29 = scalar_lea.hbm %s1288_s2, 128 }
  0x2b   : > { %p760_p1 = scmp.ne.s32.totalorder %s1288_s2, %s759_s29  ;;  %p766_p10 = scmp.lt.u32.totalorder %s759_s29, %s1288_s2 }
  0x2d   : > { %p762_p2 = pnand %p760_p1, %p1022_p13 }
  0x2f   : > { %p763_p6 = pneg %p762_p2 }
  0x31   : > { %p768_p3 = pnand %p766_p10, %p763_p6 }
  0x33   : > { %771 = shalt.err (!%p768_p3)
}
  0x34   : > { %s772_s25 = scalar_lea.vmem %s1012_s28, 128  ;;  %p780_p12 = scmp.lt.s32.totalorder %s1012_s28, %s1012_s28 }
  0x35   : > { %p773_p5 = scmp.ne.s32.totalorder %s1012_s28, %s772_s25  ;;  %p781_p0 = scmp.lt.s32.totalorder %s772_s25, %s772_s25 }
  0x37   : > { %p775_p7 = pnand %p773_p5, %p1022_p13  ;;  %p782_p1 = por %p781_p0, %p780_p12 }
  0x39   : > { %p776_p9 = pneg %p775_p7 }
  0x3b   : > { %p783_p2 = pnand %p782_p1, %p776_p9 }
  0x3d   : > { %786 = shalt.err (!%p783_p2)
}
  0x3e   : > { %s925_s9 = smov 64   ;;  %s926_s10 = smov 4  }
  0x3f   : > { %669 = dma.hbm_to_vmem [thread:$0]  (!%p1008_p11), %s1288_s2, 128, %s1012_s28, [#allocation6], %s925_s9, %s925_s9, %s926_s10  }
  0x40   : > { %s927_s20 = smov [#allocation8]   ;;  %s1070_s27 = sadd.s32 1, %s919_s18  }
  0x41   : > { %s181_s24 = sshll.u32 %s927_s20, 4  ;;  %s787_s5 = scalar_lea.hbm %s1289_s3, 16  ;;  %s182_s24 = int_to_ptr.vmem [resolvable:$true] %s181_s24 }
  0x42   : > { %p788_p6 = scmp.ne.s32.totalorder %s1289_s3, %s787_s5  ;;  %p794_p5 = scmp.lt.u32.totalorder %s787_s5, %s1289_s3 }
  0x44   : > { %p790_p10 = pnand %p788_p6, %p1022_p13 }
  0x46   : > { %p791_p3 = pneg %p790_p10 }
  0x48   : > { %p796_p7 = pnand %p794_p5, %p791_p3 }
  0x4a   : > { %799 = shalt.err (!%p796_p7)
}
  0x4b   : > { %s800_s28 = scalar_lea.vmem %s182_s24, 16  ;;  %s807_s9 = scalar_lea.vmem %s182_s24, 32 }
  0x4c   : > { %p801_p9 = scmp.ne.s32.totalorder %s182_s24, %s800_s28  ;;  %p808_p1 = scmp.lt.s32.totalorder %s182_s24, %s182_s24 }
  0x4d   : > { %p809_p2 = scmp.lt.s32.totalorder %s807_s9, %s800_s28 }
  0x4e   : > { %p803_p12 = pnand %p801_p9, %p1022_p13 }
  0x4f   : > { %p810_p4 = por %p809_p2, %p808_p1 }
  0x50   : > { %p804_p0 = pneg %p803_p12 }
  0x52   : > { %p811_p8 = pnand %p810_p4, %p804_p0 }
  0x54   : > { %814 = shalt.err (!%p811_p8)
}
  0x55   : > { %672 = dma.hbm_to_vmem [thread:$0]  (!%p1008_p11), %s1289_s3, 16, %s182_s24, [#allocation9]  }
  0x56   : > { %s26_s8 = ssub.s32 %s919_s18, %s1070_s27  ;;  %s29_s12 = sadd.s32 1, %s915_s17 }
  0x57   : > { %p27_p4 = scmp.eq.s32.totalorder %s26_s8, 0  ;;  %p36_p8 = scmp.ne.s32.totalorder %s915_s17, %s911_s16 }
  0x58   : > { %p37_p13 = scmp.eq.s32.totalorder %s919_s18, 0  ;;  %p684_p6 = scmp.lt.s32.totalorder %s919_s18, 2 }
  0x59   : > { %s1098_s26 = scalar_select %p27_p4, %s915_s17, %s29_s12  }
  0x5a   : > { %p38_p10 = por %p37_p13, %p36_p8  ;;  %p1300_p3 = scmp.eq.s32.totalorder %s978_s19, 1 }
  0x5b   : > { %s192_s20 = sand.u32 1, %s915_s17   ;;  %s616_s29 = sshll.u32 %s919_s18, 11 }
  0x5c   : > { %p1102_p5 = por %p1300_p3, %p36_p8  ;;  %s592_s30 = sshll.u32 %s192_s20, 7 }
  0x5d   : > { %s1111_s24 = scalar_lea.hbm %s1286_s0, %s616_s29  ;;  %s196_s7 = scalar_lea.vmem [#allocation2], %s592_s30 }
  0x5e   : > { %s203_s25 = sshll.u32 %s196_s7, 4  ;;  %p1113_p11 = pnand %p684_p6, %p38_p10  ;;  %s1117_s25 = int_to_ptr.vmem [resolvable:$true] %s203_s25 }
  0x5f   : > { %s1119_s9 = scalar_lea.sflag [#allocation3], %s192_s20  ;;  %s815_s10 = scalar_lea.hbm %s1111_s24, 2048 }
  0x60   : > { %p816_p7 = scmp.ne.s32.totalorder %s1111_s24, %s815_s10  ;;  %p817_p9 = pneg %p1113_p11 }
  0x61   : > { %s820_s12 = scalar_lea.hbm %s1286_s0, 4096  ;;  %p821_p1 = scmp.lt.u32.totalorder %s1111_s24, %s1286_s0 }
  0x62   : > { %p818_p12 = pnand %p817_p9, %p816_p7  ;;  %p822_p2 = scmp.lt.u32.totalorder %s820_s12, %s815_s10 }
  0x63   : > { %p824_p8 = scmp.lt.u32.totalorder %s815_s10, %s1111_s24 }
  0x64   : > { %p819_p0 = pneg %p818_p12  ;;  %p823_p4 = por %p822_p2, %p821_p1 }
  0x66   : > { %p825_p13 = por %p824_p8, %p823_p4 }
  0x68   : > { %p826_p6 = pnand %p825_p13, %p819_p0 }
  0x6a   : > { %829 = shalt.err (!%p826_p6)
}
  0x6b   : > { %s830_s20 = scalar_lea.vmem %s1117_s25, 2048  ;;  %s928_s5 = smov [#allocation2]  }
  0x6c   : > { %p831_p10 = scmp.ne.s32.totalorder %s1117_s25, %s830_s20  ;;  %s835_s6 = sshll.u32 %s928_s5, 4  ;;  %s836_s6 = int_to_ptr.vmem [resolvable:$false] %s835_s6 }
  0x6d   : > { %s837_s7 = scalar_lea.vmem %s836_s6, 4096  ;;  %p838_p12 = scmp.lt.s32.totalorder %s1117_s25, %s836_s6 }
  0x6e   : > { %p833_p3 = pnand %p831_p10, %p817_p9  ;;  %p839_p1 = scmp.lt.s32.totalorder %s837_s7, %s830_s20 }
  0x70   : > { %p834_p7 = pneg %p833_p3  ;;  %p840_p2 = por %p839_p1, %p838_p12 }
  0x72   : > { %p841_p4 = pnand %p840_p2, %p834_p7 }
  0x74   : > { %844 = shalt.err (!%p841_p4)
}
  0x75   : > { %s1303_s10 = smov 128   ;;  %p1304_p9 = scmp.ne.s32.totalorder %s1297_s23, 0 }
  0x76   : > { %676 = dma.hbm_to_vmem [thread:$0]  (!%p1113_p11), %s1111_s24, 2048, %s1117_s25, %s1119_s9, %s1303_s10, %s1303_s10, %s924_s13  }
  0x77   : > { %215 = sbr.rel (%p1304_p9) target bundleno = 382 (0x17e), region = 36  ;;  %s1153_s11 = sand.u32 (!%p1304_p9), 1, %s911_s16  }
  0x78   : > { %s596_s8 = sshll.u32 (!%p1304_p9), %s1153_s11, 7  ;;  %s218_s12 = scalar_lea.sflag (!%p1304_p9), [#allocation3], %s1153_s11 }
  0x79   : > { %s1159_s28 = scalar_lea.vmem (!%p1304_p9), [#allocation2], %s596_s8  ;;  %p1305_p0 = scmp.ne.s32.totalorder (!%p1304_p9), %s1295_s21, 0 }
  0x7e   : > { %890 = dma.done.wait (%p1305_p0), %s218_s12, 2048  }
  0x7f   : > { %892 = vsyncadd (%p1305_p0), %s218_s12, 4294965248  ;;  %p1306_p11 = scmp.eq.s32.totalorder %s978_s19, 0 }
  0x81   : > { %894 = dma.done.wait (%p1306_p11), [#allocation6], 2176   ;;  %p1307_p8 = pmov %p1306_p11 }
  0x83   : > { %896 = vsyncadd (%p1307_p8), [#allocation6], 4294965120  ;;  %p1308_p13 = pmov %p1307_p8 }
  0x84   : > { %p1309_p6 = pmov %p1307_p8 }
  0x85   : > { %898 = dma.done.wait (%p1308_p13), [#allocation9], 16  }
  0x86   : > { %900 = vsyncadd (%p1309_p6), [#allocation9], 4294967280  ;;  %v730_v0 = vld [vmem:[#allocation7] sm:$0xff]   ;;  %v262_v2 = vld [vmem:[%s1159_s28 + $0x8] sm:$0xff]  ;;  %vm300_vm0 = vcmask 130048   ;;  %s1209_s21 = scalar_lea.vmem [#allocation10], %s596_s8 }
  0x87   : > { %v261_v1 = vld [vmem:[%s1159_s28] sm:$0xff]  ;;  %627 = vmatprep.subr.bf16.mxu0 %v730_v0  ;;  %645 = vmatprep.subr.bf16.mxu1 %v730_v0  ;;  %v270_v5 = vld [vmem:[%s1159_s28 + $0x48] sm:$0xff]  ;;  %v263_v6 = vld [vmem:[%s1159_s28 + $0x10] sm:$0xff]  ;;  %s617_s23 = sshll.u32 %s978_s19, 11  ;;  %s484_s13 = sshll.u32 %s1209_s21, 4  ;;  %s1236_s13 = int_to_ptr.vmem [resolvable:$true] %s484_s13 }
  0x88   : > { %v269_v3 = vld [vmem:[%s1159_s28 + $0x40] sm:$0xff]  ;;  %v277_v4 = vpack.c.bf16 %v262_v2, %v261_v1  ;;  %v264_v7 = vld [vmem:[%s1159_s28 + $0x18] sm:$0xff]  ;;  %628 = vmatpush3.bf16.msra.mxu0 %v730_v0  ;;  %646 = vmatpush3.bf16.msra.mxu1 %v730_v0  ;;  %v271_v10 = vld [vmem:[%s1159_s28 + $0x50] sm:$0xff]  ;;  %s1234_s25 = scalar_lea.hbm %s1290_s4, %s617_s23  ;;  %s471_s9 = scalar_lea.sflag [#allocation4], %s1153_s11 }
  0x89   : > { %v281_v8 = vpack.c.bf16 %v270_v5, %v269_v3  ;;  %v278_v9 = vpack.c.bf16 %v264_v7, %v263_v6  ;;  %v272_v11 = vld [vmem:[%s1159_s28 + $0x58] sm:$0xff]  ;;  %v265_v12 = vld [vmem:[%s1159_s28 + $0x20] sm:$0xff]  ;;  %v266_v14 = vld [vmem:[%s1159_s28 + $0x28] sm:$0xff]  ;;  %s845_s29 = scalar_lea.vmem %s1236_s13, 2048  ;;  %s929_s30 = smov [#allocation10]  }
  0x8a   : > { %629 = vmatprep.mubr.msk.bf16.mxu0 %vm300_vm0, %v277_v4  ;;  %v282_v13 = vpack.c.bf16 %v272_v11, %v271_v10  ;;  %v273_v15 = vld [vmem:[%s1159_s28 + $0x60] sm:$0xff]  ;;  %v274_v16 = vld [vmem:[%s1159_s28 + $0x68] sm:$0xff]  ;;  %v279_v17 = vpack.c.bf16 %v266_v14, %v265_v12  ;;  %v267_v19 = vld [vmem:[%s1159_s28 + $0x30] sm:$0xff]  ;;  %p846_p10 = scmp.ne.s32.totalorder %s1236_s13, %s845_s29  ;;  %s849_s20 = sshll.u32 %s929_s30, 4  ;;  %s850_s20 = int_to_ptr.vmem [resolvable:$false] %s849_s20 }
  0x8b   : > { %637 = vmatprep.mubr.msk.bf16.mxu1 %vm300_vm0, %v281_v8  ;;  %v283_v18 = vpack.c.bf16 %v274_v16, %v273_v15  ;;  %630 = vmatmul.mubr.msk.bf16.vlgmr.msra.gmra.mrb[0].mxu0 %vm300_vm0, %v278_v9  ;;  %v268_v20 = vld [vmem:[%s1159_s28 + $0x38] sm:$0xff]  ;;  %v275_v21 = vld [vmem:[%s1159_s28 + $0x70] sm:$0xff]  ;;  %v1197_v25 = vld [vmem:[#allocation8] ss:$0 sm:$0xff]  ;;  %s851_s5 = scalar_lea.vmem %s850_s20, 4096  ;;  %p852_p12 = scmp.lt.s32.totalorder %s1236_s13, %s850_s20 }
  0x8c   : > { %638 = vmatmul.mubr.msk.bf16.vlgmr.msra.gmra.mrb[0].mxu1 %vm300_vm0, %v282_v13  ;;  %633 = vmatprep.mubr.msk.bf16.mxu0 %vm300_vm0, %v279_v17  ;;  %v276_v22 = vld [vmem:[%s1159_s28 + $0x78] sm:$0xff]  ;;  %v280_v23 = vpack.c.bf16 %v268_v20, %v267_v19  ;;  %v424_v27 = vld [vmem:[#allocation5 + $0x10] sm:$0xff]  ;;  %v422_v33 = vld [vmem:[#allocation5] sm:$0xff]  ;;  %p847_p3 = pnand %p846_p10, %p1102_p5  ;;  %p853_p1 = scmp.lt.s32.totalorder %s851_s5, %s845_s29 }
  0x8d   : > { %641 = vmatprep.mubr.msk.bf16.mxu1 %vm300_vm0, %v283_v18  ;;  %v284_v24 = vpack.c.bf16 %v276_v22, %v275_v21  ;;  %v432_v29 = vld [vmem:[#allocation5 + $0x50] sm:$0xff]  ;;  %v430_v35 = vld [vmem:[#allocation5 + $0x40] sm:$0xff]  ;;  %v425_v39 = vld [vmem:[#allocation5 + $0x18] sm:$0xff] }
  0x8e   : > { %v433_v41 = vld [vmem:[#allocation5 + $0x58] sm:$0xff]  ;;  %v423_v47 = vld [vmem:[#allocation5 + $0x8] sm:$0xff]  ;;  %v428_v59 = vld [vmem:[#allocation5 + $0x30] sm:$0xff]  ;;  %p848_p7 = pneg %p847_p3  ;;  %p854_p2 = por %p853_p1, %p852_p12 }
  0x8f   : > { %v431_v49 = vld [vmem:[#allocation5 + $0x48] sm:$0xff]  ;;  %v436_v61 = vld [vmem:[#allocation5 + $0x70] sm:$0xff]  ;;  %v426_v1 = vld [vmem:[#allocation5 + $0x20] sm:$0xff] }
  0x90   : > { %v434_v3 = vld [vmem:[#allocation5 + $0x60] sm:$0xff]  ;;  %v429_v7 = vld [vmem:[#allocation5 + $0x38] sm:$0xff]  ;;  %v427_v15 = vld [vmem:[#allocation5 + $0x28] sm:$0xff]  ;;  %p855_p4 = pnand %p854_p2, %p848_p7 }
  0x91   : > { %v437_v9 = vld [vmem:[#allocation5 + $0x78] sm:$0xff]  ;;  %v435_v17 = vld [vmem:[#allocation5 + $0x68] sm:$0xff] }
  0x93   : > { %634 = vmatmul.mubr.msk.bf16.gmra.mrb[4].mxu0 %vm300_vm0, %v280_v23 }
  0x94   : > { %642 = vmatmul.mubr.msk.bf16.gmra.mrb[4].mxu1 %vm300_vm0, %v284_v24 }
 0x15e   : > { %v631_v26 = vpop.f32.mrb[0].mxu0 }
 0x15f   : > { %v639_v28 = vpop.f32.mrb[0].mxu1  ;;  %v368_v30 = vadd.f32 %v631_v26, %v1197_v25  ;;  %v359_v32 = vpop.f32.mrb[1].mxu0 }
 0x160   : > { %v400_v31 = vadd.f32 %v639_v28, %v1197_v25  ;;  %v391_v34 = vpop.f32.mrb[1].mxu1  ;;  %v360_v36 = vadd.f32 %v1197_v25, %v359_v32  ;;  %v632_v38 = vpop.f32.mrb[2].mxu0 }
 0x161   : > { %v392_v37 = vadd.f32 %v1197_v25, %v391_v34  ;;  %v640_v40 = vpop.f32.mrb[2].mxu1  ;;  %v440_v42 = vadd.f32 %v424_v27, %v368_v30  ;;  %v371_v44 = vadd.f32 %v632_v38, %v1197_v25  ;;  %v362_v46 = vpop.f32.mrb[3].mxu0 }
 0x162   : > { %v448_v43 = vadd.f32 %v432_v29, %v400_v31  ;;  %v403_v45 = vadd.f32 %v640_v40, %v1197_v25  ;;  %v394_v48 = vpop.f32.mrb[3].mxu1  ;;  %v438_v50 = vadd.f32 %v422_v33, %v360_v36  ;;  %v363_v52 = vadd.f32 %v1197_v25, %v362_v46 }
 0x163   : > { %v446_v51 = vadd.f32 %v430_v35, %v392_v37  ;;  %v395_v53 = vadd.f32 %v1197_v25, %v394_v48  ;;  %456 = vst [vmem:[%s1209_s21 + $0x10] sm:$0xff] %v440_v42  ;;  %v441_v54 = vadd.f32 %v425_v39, %v371_v44 }
 0x164   : > { %464 = vst [vmem:[%s1209_s21 + $0x50] sm:$0xff] %v448_v43  ;;  %v449_v55 = vadd.f32 %v433_v41, %v403_v45  ;;  %454 = vst [vmem:[%s1209_s21] sm:$0xff] %v438_v50  ;;  %v439_v56 = vadd.f32 %v423_v47, %v363_v52 }
 0x165   : > { %462 = vst [vmem:[%s1209_s21 + $0x40] sm:$0xff] %v446_v51  ;;  %v447_v57 = vadd.f32 %v431_v49, %v395_v53  ;;  %457 = vst [vmem:[%s1209_s21 + $0x18] sm:$0xff] %v441_v54 }
 0x166   : > { %465 = vst [vmem:[%s1209_s21 + $0x58] sm:$0xff] %v449_v55  ;;  %455 = vst [vmem:[%s1209_s21 + $0x8] sm:$0xff] %v439_v56  ;;  %v635_v58 = vpop.f32.mrb[4].mxu0 }
 0x167   : > { %463 = vst [vmem:[%s1209_s21 + $0x48] sm:$0xff] %v447_v57  ;;  %v643_v60 = vpop.f32.mrb[4].mxu1  ;;  %v384_v62 = vadd.f32 %v635_v58, %v1197_v25  ;;  %v375_v0 = vpop.f32.mrb[5].mxu0 }
 0x168   : > { %v416_v63 = vadd.f32 %v643_v60, %v1197_v25  ;;  %v407_v2 = vpop.f32.mrb[5].mxu1  ;;  %v376_v4 = vadd.f32 %v1197_v25, %v375_v0  ;;  %v636_v6 = vpop.f32.mrb[6].mxu0 }
 0x169   : > { %v408_v5 = vadd.f32 %v1197_v25, %v407_v2  ;;  %v644_v8 = vpop.f32.mrb[6].mxu1  ;;  %v444_v10 = vadd.f32 %v428_v59, %v384_v62  ;;  %v387_v12 = vadd.f32 %v636_v6, %v1197_v25  ;;  %v378_v14 = vpop.f32.mrb[7].mxu0 }
 0x16a   : > { %v452_v11 = vadd.f32 %v436_v61, %v416_v63  ;;  %v419_v13 = vadd.f32 %v644_v8, %v1197_v25  ;;  %v410_v16 = vpop.f32.mrb[7].mxu1  ;;  %v442_v18 = vadd.f32 %v426_v1, %v376_v4  ;;  %v379_v20 = vadd.f32 %v1197_v25, %v378_v14 }
 0x16b   : > { %v450_v19 = vadd.f32 %v434_v3, %v408_v5  ;;  %v411_v21 = vadd.f32 %v1197_v25, %v410_v16  ;;  %460 = vst [vmem:[%s1209_s21 + $0x30] sm:$0xff] %v444_v10  ;;  %v445_v22 = vadd.f32 %v429_v7, %v387_v12 }
 0x16c   : > { %468 = vst [vmem:[%s1209_s21 + $0x70] sm:$0xff] %v452_v11  ;;  %v453_v23 = vadd.f32 %v437_v9, %v419_v13  ;;  %458 = vst [vmem:[%s1209_s21 + $0x20] sm:$0xff] %v442_v18  ;;  %v443_v24 = vadd.f32 %v427_v15, %v379_v20 }
 0x16d   : > { %466 = vst [vmem:[%s1209_s21 + $0x60] sm:$0xff] %v450_v19  ;;  %v451_v26 = vadd.f32 %v435_v17, %v411_v21  ;;  %461 = vst [vmem:[%s1209_s21 + $0x38] sm:$0xff] %v445_v22 }
 0x16e   : > { %469 = vst [vmem:[%s1209_s21 + $0x78] sm:$0xff] %v453_v23  ;;  %459 = vst [vmem:[%s1209_s21 + $0x28] sm:$0xff] %v443_v24 }
 0x16f   : > { %467 = vst [vmem:[%s1209_s21 + $0x68] sm:$0xff] %v451_v26 }
 0x170   : > { %858 = shalt.err (!%p855_p4)
}
 0x171   : > { %s859_s6 = scalar_lea.hbm %s1234_s25, 2048  ;;  %s863_s8 = scalar_lea.hbm %s1290_s4, 4096 }
 0x172   : > { %p860_p9 = scmp.ne.s32.totalorder %s1234_s25, %s859_s6  ;;  %p864_p8 = scmp.lt.u32.totalorder %s1234_s25, %s1290_s4 }
 0x173   : > { %p865_p13 = scmp.lt.u32.totalorder %s863_s8, %s859_s6  ;;  %p867_p10 = scmp.lt.u32.totalorder %s859_s6, %s1234_s25 }
 0x174   : > { %p861_p0 = pnand %p860_p9, %p1102_p5 }
 0x175   : > { %p866_p6 = por %p865_p13, %p864_p8 }
 0x176   : > { %p862_p11 = pneg %p861_p0 }
 0x177   : > { %p868_p3 = por %p867_p10, %p866_p6 }
 0x179   : > { %p869_p7 = pnand %p868_p3, %p862_p11 }
 0x17b   : > { %872 = shalt.err (!%p869_p7)
}
 0x17c   : > { %s930_s21 = smov 128   ;;  %s931_s23 = smov 8  }
 0x17d   : > { %661 = dma.vmem_to_hbm [thread:$0]  (%p1102_p5), %s1236_s13, 2048, %s1234_s25, %s471_s9, %s930_s21, %s930_s21, %s931_s23  }
 0x17e PF: > { %s499_s19 = sand.u32 1, %s907_s15   ;;  %p1310_p12 = scmp.ne.s32.totalorder %s1296_s22, 0 }
 0x17f   : > { %p1311_p1 = scmp.ge.s32.totalorder %s919_s18, 2  ;;  %s500_s24 = scalar_lea.sflag [#allocation4], %s499_s19 }
 0x181   : > { %p678_p2 = pnand %p1311_p1, %p1310_p12 }
 0x183   : > { %902 = dma.done.wait (!%p678_p2), %s500_s24, 2048  }
 0x184   : > { %904 = vsyncadd (!%p678_p2), %s500_s24, 4294965248  ;;  %p19_p4 = scmp.ge.s32.totalorder %s1070_s27, 4   ;;  %s1312_s15 = smov %s911_s16 }
 0x185   : > { %s1313_s16 = smov %s915_s17  ;;  %s1314_s17 = smov %s1098_s26 }
 0x186   : > { %s1315_s18 = smov %s1070_s27  ;;  %21 = sbr.rel (!%p19_p4) target bundleno = 7 (0x7), region = 93 }
 0x18d   :  { %505 = vsyncpa [#allocation3], 1 }
 0x18e   :  { %507 = vsyncpa [#allocation3 + $0x1], 1 }
 0x18f   :  { %508 = vsyncpa [#allocation6], 1 }
 0x190   :  { %509 = vsyncpa [#allocation9], 1 }
 0x191   :  { %510 = vsyncpa [#allocation4], 1 }
 0x192   :  { %512 = vsyncpa [#allocation4 + $0x1], 1 }

// kernel: _lambda_.7
= control target key start
LH: loop header
LB: loop body
LE: loop exit
PB: predicated region body
PF: predicated region fallthrough
CT: control target
= control target key end

     0   :  { %10 = vsyncpa [#allocation3], 0  ;;  %s1682_s0 = inlined_call_operand.hbm [shape: f32[256,128], index: 0, kind: input, shape index: {}]   ;;  %s1683_s1 = inlined_call_operand.hbm [shape: f32[1,128], index: 1, kind: input, shape index: {}]   ;;  %s1684_s2 = inlined_call_operand.hbm [shape: f32[1,128], index: 2, kind: input, shape index: {}]   ;;  %s1685_s3 = inlined_call_operand.hbm [shape: bf16[128,128], index: 3, kind: input, shape index: {}]   ;;  %s1686_s4 = inlined_call_operand.hbm [shape: f32[1,128], index: 4, kind: input, shape index: {}]   ;;  %s1687_s5 = inlined_call_operand.hbm [shape: f32[256,128], index: 5, kind: output, shape index: {}]  }
   0x1   :  { %11 = vsyncpa [#allocation6], 0 }
   0x2   :  { %12 = vsyncpa [#allocation9], 0 }
   0x3   :  { %13 = vsyncpa [#allocation4], 0  ;;  %s1167_s18 = smov [#allocation5]   ;;  %s1168_s20 = smov [#allocation8]  }
   0x4   :  { %s32_s19 = sshll.u32 %s1167_s18, 4  ;;  %s51_s21 = sshll.u32 %s1168_s20, 4  ;;  %s33_s19 = int_to_ptr.vmem [resolvable:$true] %s32_s19  ;;  %s1207_s21 = int_to_ptr.vmem [resolvable:$true] %s51_s21 }
   0x5   :  { %s1027_s24 = scalar_lea.hbm %s1683_s1, 16 }
   0x6   :  { %p1028_p0 = scmp.ne.s32.totalorder %s1683_s1, %s1027_s24  ;;  %p1031_p1 = scmp.lt.u32.totalorder %s1027_s24, %s1683_s1 }
   0x8   :  { %p1033_p2 = pnand %p1031_p1, %p1028_p0 }
   0xa   :  { %1036 = shalt.err (!%p1033_p2)
}
   0xb   :  { %s1037_s29 = scalar_lea.vmem %s33_s19, 16  ;;  %s1041_s30 = scalar_lea.vmem %s33_s19, 32 }
   0xc   :  { %p1038_p3 = scmp.ne.s32.totalorder %s33_s19, %s1037_s29  ;;  %p1042_p4 = scmp.lt.s32.totalorder %s33_s19, %s33_s19 }
   0xd   :  { %p1043_p5 = scmp.lt.s32.totalorder %s1041_s30, %s1037_s29 }
   0xf   :  { %p1044_p6 = por %p1043_p5, %p1042_p4 }
  0x11   :  { %p1045_p7 = pnand %p1044_p6, %p1038_p3 }
  0x13   :  { %1048 = shalt.err (!%p1045_p7)
}
  0x14   :  { %35 = dma.hbm_to_vmem [thread:$0]  %s1683_s1, 16, %s33_s19, [#allocation6]  }
  0x15   :  { %s1049_s10 = scalar_lea.hbm %s1685_s3, 1024 }
  0x16   :  { %p1050_p8 = scmp.ne.s32.totalorder %s1685_s3, %s1049_s10  ;;  %p1053_p9 = scmp.lt.u32.totalorder %s1049_s10, %s1685_s3 }
  0x18   :  { %p1055_p10 = pnand %p1053_p9, %p1050_p8 }
  0x1a   :  { %1058 = shalt.err (!%p1055_p10)
}
  0x1b   :  { %s1059_s15 = scalar_lea.vmem %s1207_s21, 1024  ;;  %p1064_p12 = scmp.lt.s32.totalorder %s1207_s21, %s1207_s21 }
  0x1c   :  { %p1060_p11 = scmp.ne.s32.totalorder %s1207_s21, %s1059_s15  ;;  %p1065_p13 = scmp.lt.s32.totalorder %s1059_s15, %s1059_s15 }
  0x1e   :  { %p1066_p0 = por %p1065_p13, %p1064_p12 }
  0x20   :  { %p1067_p1 = pnand %p1066_p0, %p1060_p11 }
  0x22   :  { %1070 = shalt.err (!%p1067_p1)
}
  0x23   :  { %s1169_s1 = smov 64   ;;  %s1170_s16 = smov 4  }
  0x24   :  { %57 = dma.hbm_to_vmem [thread:$0]  %s1685_s3, 1024, %s1207_s21, [#allocation9], %s1169_s1, %s1169_s1, %s1170_s16  }
  0x25   :  { %s1171_s19 = smov [#allocation2]   ;;  %s1071_s24 = scalar_lea.hbm %s1682_s0, 4096 }
  0x26   :  { %s19_s20 = sshll.u32 %s1171_s19, 4  ;;  %p1072_p2 = scmp.ne.s32.totalorder %s1682_s0, %s1071_s24  ;;  %s20_s20 = int_to_ptr.vmem [resolvable:$true] %s19_s20 }
  0x27   :  { %p1075_p3 = scmp.lt.u32.totalorder %s1071_s24, %s1682_s0 }
  0x29   :  { %p1077_p4 = pnand %p1075_p3, %p1072_p2 }
  0x2b   :  { %1080 = shalt.err (!%p1077_p4)
}
  0x2c   :  { %s1081_s29 = scalar_lea.vmem %s20_s20, 4096  ;;  %p1086_p6 = scmp.lt.s32.totalorder %s20_s20, %s20_s20 }
  0x2d   :  { %p1082_p5 = scmp.ne.s32.totalorder %s20_s20, %s1081_s29  ;;  %p1087_p7 = scmp.lt.s32.totalorder %s1081_s29, %s1081_s29 }
  0x2f   :  { %p1088_p8 = por %p1087_p7, %p1086_p6 }
  0x31   :  { %p1089_p9 = pnand %p1088_p8, %p1082_p5 }
  0x33   :  { %1092 = shalt.err (!%p1089_p9)
}
  0x34   :  { %s1172_s3 = smov 128   ;;  %s1173_s21 = smov 8  }
  0x35   :  { %25 = dma.hbm_to_vmem [thread:$0]  %s1682_s0, 4096, %s20_s20, [#allocation3], %s1172_s3, %s1172_s3, %s1173_s21  }
  0x36   :  { %s1174_s7 = smov [#allocation7]   ;;  %s1175_s9 = smov [#allocation10]  }
  0x37   :  { %s42_s8 = sshll.u32 %s1174_s7, 4  ;;  %s64_s10 = sshll.u32 %s1175_s9, 4  ;;  %s43_s8 = int_to_ptr.vmem [resolvable:$true] %s42_s8  ;;  %s65_s10 = int_to_ptr.vmem [resolvable:$true] %s64_s10 }
  0x38   :  { %s1093_s13 = scalar_lea.hbm %s1684_s2, 16 }
  0x39   :  { %p1094_p10 = scmp.ne.s32.totalorder %s1684_s2, %s1093_s13  ;;  %p1097_p11 = scmp.lt.u32.totalorder %s1093_s13, %s1684_s2 }
  0x3b   :  { %p1099_p12 = pnand %p1097_p11, %p1094_p10 }
  0x3d   :  { %1102 = shalt.err (!%p1099_p12)
}
  0x3e   :  { %s1103_s0 = scalar_lea.vmem %s43_s8, 16  ;;  %s1107_s17 = scalar_lea.vmem %s43_s8, 32 }
  0x3f   :  { %p1104_p13 = scmp.ne.s32.totalorder %s43_s8, %s1103_s0  ;;  %p1108_p0 = scmp.lt.s32.totalorder %s43_s8, %s43_s8 }
  0x40   :  { %p1109_p1 = scmp.lt.s32.totalorder %s1107_s17, %s1103_s0 }
  0x42   :  { %p1110_p2 = por %p1109_p1, %p1108_p0 }
  0x44   :  { %p1111_p3 = pnand %p1110_p2, %p1104_p13 }
  0x46   :  { %1114 = shalt.err (!%p1111_p3)
}
  0x47   :  { %45 = dma.hbm_to_vmem [thread:$0]  %s1684_s2, 16, %s43_s8, [#allocation6]  }
  0x48   :  { %s1115_s23 = scalar_lea.hbm %s1686_s4, 16 }
  0x49   :  { %p1116_p4 = scmp.ne.s32.totalorder %s1686_s4, %s1115_s23  ;;  %p1119_p5 = scmp.lt.u32.totalorder %s1115_s23, %s1686_s4 }
  0x4b   :  { %p1121_p6 = pnand %p1119_p5, %p1116_p4 }
  0x4d   :  { %1124 = shalt.err (!%p1121_p6)
}
  0x4e   :  { %s1125_s28 = scalar_lea.vmem %s65_s10, 16  ;;  %s1129_s29 = scalar_lea.vmem %s65_s10, 32 }
  0x4f   :  { %p1126_p7 = scmp.ne.s32.totalorder %s65_s10, %s1125_s28  ;;  %p1130_p8 = scmp.lt.s32.totalorder %s65_s10, %s65_s10 }
  0x50   :  { %p1131_p9 = scmp.lt.s32.totalorder %s1129_s29, %s1125_s28 }
  0x52   :  { %p1132_p10 = por %p1131_p9, %p1130_p8 }
  0x54   :  { %p1133_p11 = pnand %p1132_p10, %p1126_p7 }
  0x56   :  { %1136 = shalt.err (!%p1133_p11)
}
  0x57   :  { %67 = dma.hbm_to_vmem [thread:$0]  %s1686_s4, 16, %s65_s10, [#allocation9]  }
  0x58   :  { %1159 = dma.done.wait [#allocation3], 4096  }
  0x59   :  { %1160 = vsyncadd [#allocation3], 4294963200 }
  0x5a   :  { %1161 = dma.done.wait [#allocation6], 32  }
  0x5b   :  { %1162 = vsyncadd [#allocation6], 4294967264 }
  0x5c   :  { %1163 = dma.done.wait [#allocation9], 1040  }
  0x5d   :  { %1164 = vsyncadd [#allocation9], 4294966256  ;;  %v1277_v0 = vld [vmem:[#allocation2] sm:$0xff]  ;;  %v1283_v2 = vld [vmem:[#allocation2 + $0x8] sm:$0xff]  ;;  %s1176_s4 = smov [#allocation11]  }
  0x5e   :  { %v1279_v1 = vld [vmem:[#allocation2 + $0x80] sm:$0xff]  ;;  %118 = vadd.xlane.f32.xlu0 %v1277_v0  ;;  %v1285_v3 = vld [vmem:[#allocation2 + $0x88] sm:$0xff]  ;;  %v1289_v4 = vld [vmem:[#allocation2 + $0x10] sm:$0xff]  ;;  %s832_s6 = sshll.u32 %s1176_s4, 4  ;;  %s833_s6 = int_to_ptr.vmem [resolvable:$true] %s832_s6 }
  0x5f   :  { %150 = vadd.xlane.f32.xlu1 %v1279_v1  ;;  %v1291_v5 = vld [vmem:[#allocation2 + $0x18] sm:$0xff]  ;;  %v1295_v6 = vld [vmem:[#allocation2 + $0x90] sm:$0xff]  ;;  %v1299_v8 = vld [vmem:[#allocation2 + $0x20] sm:$0xff]  ;;  %s1137_s7 = scalar_lea.vmem %s833_s6, 4096  ;;  %p1142_p13 = scmp.lt.s32.totalorder %s833_s6, %s833_s6 }
  0x60   :  { %v1297_v7 = vld [vmem:[#allocation2 + $0x98] sm:$0xff]  ;;  %v1301_v9 = vld [vmem:[#allocation2 + $0x28] sm:$0xff]  ;;  %v1307_v10 = vld [vmem:[#allocation2 + $0xa0] sm:$0xff]  ;;  %p1138_p12 = scmp.ne.s32.totalorder %s833_s6, %s1137_s7  ;;  %p1143_p0 = scmp.lt.s32.totalorder %s1137_s7, %s1137_s7 }
  0x61   :  { %v1309_v11 = vld [vmem:[#allocation2 + $0xa8] sm:$0xff]  ;;  %v1313_v12 = vld [vmem:[#allocation2 + $0x30] sm:$0xff]  ;;  %v1315_v13 = vld [vmem:[#allocation2 + $0x38] sm:$0xff] }
  0x62   :  { %120 = vadd.xlane.f32.xlu0 %v1283_v2  ;;  %v1319_v14 = vld [vmem:[#allocation2 + $0xb0] sm:$0xff]  ;;  %v1321_v15 = vld [vmem:[#allocation2 + $0xb8] sm:$0xff]  ;;  %v1325_v16 = vld [vmem:[#allocation2 + $0x40] sm:$0xff]  ;;  %p1144_p1 = por %p1143_p0, %p1142_p13 }
  0x63   :  { %152 = vadd.xlane.f32.xlu1 %v1285_v3  ;;  %v1327_v17 = vld [vmem:[#allocation2 + $0x48] sm:$0xff]  ;;  %v1331_v18 = vld [vmem:[#allocation2 + $0xc0] sm:$0xff]  ;;  %v1337_v20 = vld [vmem:[#allocation2 + $0x50] sm:$0xff] }
  0x64   :  { %v1333_v19 = vld [vmem:[#allocation2 + $0xc8] sm:$0xff]  ;;  %v1339_v21 = vld [vmem:[#allocation2 + $0x58] sm:$0xff]  ;;  %v1343_v22 = vld [vmem:[#allocation2 + $0xd0] sm:$0xff]  ;;  %p1145_p2 = pnand %p1144_p1, %p1138_p12 }
  0x65   :  { %v1345_v23 = vld [vmem:[#allocation2 + $0xd8] sm:$0xff]  ;;  %v1349_v24 = vld [vmem:[#allocation2 + $0x60] sm:$0xff]  ;;  %v1351_v25 = vld [vmem:[#allocation2 + $0x68] sm:$0xff] }
  0x66   :  { %122 = vadd.xlane.f32.xlu0 %v1289_v4  ;;  %v1355_v26 = vld [vmem:[#allocation2 + $0xe0] sm:$0xff]  ;;  %v1357_v27 = vld [vmem:[#allocation2 + $0xe8] sm:$0xff]  ;;  %v1361_v28 = vld [vmem:[#allocation2 + $0x70] sm:$0xff] }
  0x67   :  { %124 = vadd.xlane.f32.xlu1 %v1291_v5  ;;  %v1363_v29 = vld [vmem:[#allocation2 + $0x78] sm:$0xff]  ;;  %v1367_v30 = vld [vmem:[#allocation2 + $0xf0] sm:$0xff] }
  0x68   :  { %v1369_v31 = vld [vmem:[#allocation2 + $0xf8] sm:$0xff] }
  0x6a   :  { %154 = vadd.xlane.f32.xlu0 %v1295_v6 }
  0x6b   :  { %156 = vadd.xlane.f32.xlu1 %v1297_v7 }
  0x6e   :  { %126 = vadd.xlane.f32.xlu0 %v1299_v8 }
  0x6f   :  { %128 = vadd.xlane.f32.xlu1 %v1301_v9 }
  0x72   :  { %158 = vadd.xlane.f32.xlu0 %v1307_v10 }
  0x73   :  { %160 = vadd.xlane.f32.xlu1 %v1309_v11 }
  0x76   :  { %130 = vadd.xlane.f32.xlu0 %v1313_v12 }
  0x77   :  { %132 = vadd.xlane.f32.xlu1 %v1315_v13 }
  0x7a   :  { %162 = vadd.xlane.f32.xlu0 %v1319_v14 }
  0x7b   :  { %164 = vadd.xlane.f32.xlu1 %v1321_v15 }
  0x7e   :  { %134 = vadd.xlane.f32.xlu0 %v1325_v16 }
  0x7f   :  { %136 = vadd.xlane.f32.xlu1 %v1327_v17 }
  0x82   :  { %166 = vadd.xlane.f32.xlu0 %v1331_v18 }
  0x83   :  { %168 = vadd.xlane.f32.xlu1 %v1333_v19 }
  0x86   :  { %138 = vadd.xlane.f32.xlu0 %v1337_v20 }
  0x87   :  { %140 = vadd.xlane.f32.xlu1 %v1339_v21 }
  0x8a   :  { %170 = vadd.xlane.f32.xlu0 %v1343_v22 }
  0x8b   :  { %172 = vadd.xlane.f32.xlu1 %v1345_v23 }
  0x8e   :  { %142 = vadd.xlane.f32.xlu0 %v1349_v24 }
  0x8f   :  { %144 = vadd.xlane.f32.xlu1 %v1351_v25 }
  0x92   :  { %174 = vadd.xlane.f32.xlu0 %v1355_v26 }
  0x93   :  { %176 = vadd.xlane.f32.xlu1 %v1357_v27 }
  0x96   :  { %146 = vadd.xlane.f32.xlu0 %v1361_v28 }
  0x97   :  { %148 = vadd.xlane.f32.xlu1 %v1363_v29 }
  0x9a   :  { %178 = vadd.xlane.f32.xlu0 %v1367_v30 }
  0x9b   :  { %180 = vadd.xlane.f32.xlu1 %v1369_v31 }
  0xeb   :  { %v119_v32 = vpop.xlane.xlu0 %118 }
  0xec   :  { %v151_v33 = vpop.xlane.xlu1 %150  ;;  %v183_v34 = vmul.f32 0.0078125, %v119_v32 }
  0xed   :  { %v199_v35 = vmul.f32 0.0078125, %v151_v33 }
  0xee   :  { %v1374_v36 = vsub.f32 %v1277_v0, %v183_v34 }
  0xef   :  { %v1377_v37 = vsub.f32 %v1279_v1, %v199_v35  ;;  %v121_v38 = vpop.xlane.xlu0 %120  ;;  %v955_v35 = vld [vmem:[#allocation8] sm:$0xff]  }
  0xf0   :  { %v153_v39 = vpop.xlane.xlu1 %152  ;;  %v184_v40 = vmul.f32 0.0078125, %v121_v38  ;;  %v247_v41 = vmul.f32 %v1374_v36, %v1374_v36  ;;  %881 = vmatprep.subr.bf16.mxu0 %v955_v35  ;;  %929 = vmatprep.subr.bf16.mxu1 %v955_v35 }
  0xf1   :  { %v200_v42 = vmul.f32 0.0078125, %v153_v39  ;;  %v263_v45 = vmul.f32 %v1377_v37, %v1377_v37  ;;  %882 = vmatpush3.bf16.msra.mxu0 %v955_v35  ;;  %937 = vmatpush3.bf16.msra.mxu1 %v955_v35 }
  0xf2   :  { %v1382_v43 = vsub.f32 %v1283_v2, %v184_v40  ;;  %279 = vadd.xlane.f32.xlu0 %v247_v41 }
  0xf3   :  { %v1385_v44 = vsub.f32 %v1285_v3, %v200_v42  ;;  %v123_v46 = vpop.xlane.xlu0 %122 }
  0xf4   :  { %v125_v47 = vpop.xlane.xlu1 %124  ;;  %v185_v48 = vmul.f32 0.0078125, %v123_v46  ;;  %v248_v49 = vmul.f32 %v1382_v43, %v1382_v43 }
  0xf5   :  { %v186_v50 = vmul.f32 0.0078125, %v125_v47  ;;  %v264_v53 = vmul.f32 %v1385_v44, %v1385_v44  ;;  %v956_v47 = vld [vmem:[#allocation8 + $0x8] sm:$0xff]  }
  0xf6   :  { %v1392_v51 = vsub.f32 %v1289_v4, %v185_v48  ;;  %311 = vadd.xlane.f32.xlu0 %v263_v45  ;;  %281 = vadd.xlane.f32.xlu1 %v248_v49 }
  0xf7   :  { %v1395_v52 = vsub.f32 %v1291_v5, %v186_v50  ;;  %v155_v54 = vpop.xlane.xlu0 %154  ;;  %883 = vmatprep.subr.bf16.mxu0 %v956_v47  ;;  %930 = vmatprep.subr.bf16.mxu1 %v956_v47 }
  0xf8   :  { %v157_v55 = vpop.xlane.xlu1 %156  ;;  %v201_v56 = vmul.f32 0.0078125, %v155_v54  ;;  %v249_v57 = vmul.f32 %v1392_v51, %v1392_v51  ;;  %884 = vmatpush3.bf16.msra.mxu0 %v956_v47  ;;  %938 = vmatpush3.bf16.msra.mxu1 %v956_v47 }
  0xf9   :  { %v202_v58 = vmul.f32 0.0078125, %v157_v55  ;;  %v250_v61 = vmul.f32 %v1395_v52, %v1395_v52 }
  0xfa   :  { %v1402_v59 = vsub.f32 %v1295_v6, %v201_v56  ;;  %313 = vadd.xlane.f32.xlu1 %v264_v53  ;;  %283 = vadd.xlane.f32.xlu0 %v249_v57  ;;  %v957_v56 = vld [vmem:[#allocation8 + $0x10] sm:$0xff]  }
  0xfb   :  { %v1405_v60 = vsub.f32 %v1297_v7, %v202_v58  ;;  %v127_v62 = vpop.xlane.xlu0 %126  ;;  %885 = vmatprep.subr.bf16.mxu0 %v957_v56  ;;  %931 = vmatprep.subr.bf16.mxu1 %v957_v56 }
  0xfc   :  { %v129_v63 = vpop.xlane.xlu1 %128  ;;  %v187_v0 = vmul.f32 0.0078125, %v127_v62  ;;  %v265_v1 = vmul.f32 %v1402_v59, %v1402_v59  ;;  %886 = vmatpush3.bf16.msra.mxu0 %v957_v56  ;;  %939 = vmatpush3.bf16.msra.mxu1 %v957_v56 }
  0xfd   :  { %v188_v2 = vmul.f32 0.0078125, %v129_v63  ;;  %v266_v5 = vmul.f32 %v1405_v60, %v1405_v60 }
  0xfe   :  { %v1412_v3 = vsub.f32 %v1299_v8, %v187_v0  ;;  %285 = vadd.xlane.f32.xlu1 %v250_v61  ;;  %315 = vadd.xlane.f32.xlu0 %v265_v1  ;;  %v958_v1 = vld [vmem:[#allocation8 + $0x18] sm:$0xff]  }
  0xff   :  { %v1415_v4 = vsub.f32 %v1301_v9, %v188_v2  ;;  %v159_v6 = vpop.xlane.xlu0 %158  ;;  %887 = vmatprep.subr.bf16.mxu0 %v958_v1  ;;  %932 = vmatprep.subr.bf16.mxu1 %v958_v1 }
 0x100   :  { %v161_v7 = vpop.xlane.xlu1 %160  ;;  %v203_v32 = vmul.f32 0.0078125, %v159_v6  ;;  %v251_v33 = vmul.f32 %v1412_v3, %v1412_v3  ;;  %888 = vmatpush3.bf16.msra.mxu0 %v958_v1  ;;  %940 = vmatpush3.bf16.msra.mxu1 %v958_v1 }
 0x101   :  { %v204_v34 = vmul.f32 0.0078125, %v161_v7  ;;  %v252_v9 = vmul.f32 %v1415_v4, %v1415_v4 }
 0x102   :  { %v1422_v38 = vsub.f32 %v1307_v10, %v203_v32  ;;  %317 = vadd.xlane.f32.xlu1 %v266_v5  ;;  %287 = vadd.xlane.f32.xlu0 %v251_v33 }
 0x103   :  { %v1425_v8 = vsub.f32 %v1309_v11, %v204_v34  ;;  %v131_v39 = vpop.xlane.xlu0 %130  ;;  %v959_v34 = vld [vmem:[#allocation8 + $0x20] sm:$0xff]  }
 0x104   :  { %v133_v40 = vpop.xlane.xlu1 %132  ;;  %v189_v41 = vmul.f32 0.0078125, %v131_v39  ;;  %v267_v42 = vmul.f32 %v1422_v38, %v1422_v38  ;;  %889 = vmatprep.subr.bf16.mxu0 %v959_v34  ;;  %933 = vmatprep.subr.bf16.mxu1 %v959_v34 }
 0x105   :  { %v190_v45 = vmul.f32 0.0078125, %v133_v40  ;;  %v268_v46 = vmul.f32 %v1425_v8, %v1425_v8  ;;  %890 = vmatpush3.bf16.msra.mxu0 %v959_v34  ;;  %941 = vmatpush3.bf16.msra.mxu1 %v959_v34 }
 0x106   :  { %v1432_v10 = vsub.f32 %v1313_v12, %v189_v41  ;;  %289 = vadd.xlane.f32.xlu1 %v252_v9  ;;  %319 = vadd.xlane.f32.xlu0 %v267_v42 }
 0x107   :  { %v1435_v11 = vsub.f32 %v1315_v13, %v190_v45  ;;  %v163_v48 = vpop.xlane.xlu0 %162  ;;  %v960_v45 = vld [vmem:[#allocation8 + $0x28] sm:$0xff]  }
 0x108   :  { %v165_v49 = vpop.xlane.xlu1 %164  ;;  %v205_v50 = vmul.f32 0.0078125, %v163_v48  ;;  %v253_v53 = vmul.f32 %v1432_v10, %v1432_v10  ;;  %891 = vmatprep.subr.bf16.mxu0 %v960_v45  ;;  %934 = vmatprep.subr.bf16.mxu1 %v960_v45 }
 0x109   :  { %v206_v54 = vmul.f32 0.0078125, %v165_v49  ;;  %v254_v55 = vmul.f32 %v1435_v11, %v1435_v11  ;;  %892 = vmatpush3.bf16.msra.mxu0 %v960_v45  ;;  %942 = vmatpush3.bf16.msra.mxu1 %v960_v45 }
 0x10a   :  { %v1442_v12 = vsub.f32 %v1319_v14, %v205_v50  ;;  %321 = vadd.xlane.f32.xlu1 %v268_v46  ;;  %291 = vadd.xlane.f32.xlu0 %v253_v53 }
 0x10b   :  { %v1445_v13 = vsub.f32 %v1321_v15, %v206_v54  ;;  %v135_v57 = vpop.xlane.xlu0 %134  ;;  %v961_v54 = vld [vmem:[#allocation8 + $0x30] sm:$0xff]  }
 0x10c   :  { %v137_v58 = vpop.xlane.xlu1 %136  ;;  %v191_v61 = vmul.f32 0.0078125, %v135_v57  ;;  %v269_v62 = vmul.f32 %v1442_v12, %v1442_v12  ;;  %893 = vmatprep.subr.bf16.mxu0 %v961_v54  ;;  %935 = vmatprep.subr.bf16.mxu1 %v961_v54 }
 0x10d   :  { %v192_v63 = vmul.f32 0.0078125, %v137_v58  ;;  %v270_v0 = vmul.f32 %v1445_v13, %v1445_v13  ;;  %894 = vmatpush3.bf16.msra.mxu0 %v961_v54  ;;  %943 = vmatpush3.bf16.msra.mxu1 %v961_v54 }
 0x10e   :  { %v1452_v14 = vsub.f32 %v1325_v16, %v191_v61  ;;  %293 = vadd.xlane.f32.xlu1 %v254_v55  ;;  %323 = vadd.xlane.f32.xlu0 %v269_v62 }
 0x10f   :  { %v1455_v15 = vsub.f32 %v1327_v17, %v192_v63  ;;  %v167_v2 = vpop.xlane.xlu0 %166  ;;  %v962_v63 = vld [vmem:[#allocation8 + $0x38] sm:$0xff]  }
 0x110   :  { %v169_v5 = vpop.xlane.xlu1 %168  ;;  %v207_v6 = vmul.f32 0.0078125, %v167_v2  ;;  %v255_v7 = vmul.f32 %v1452_v14, %v1452_v14  ;;  %895 = vmatprep.subr.bf16.mxu0 %v962_v63  ;;  %936 = vmatprep.subr.bf16.mxu1 %v962_v63 }
 0x111   :  { %v208_v32 = vmul.f32 0.0078125, %v169_v5  ;;  %v256_v33 = vmul.f32 %v1455_v15, %v1455_v15  ;;  %896 = vmatpush3.bf16.msra.mxu0 %v962_v63  ;;  %944 = vmatpush3.bf16.msra.mxu1 %v962_v63 }
 0x112   :  { %v1462_v16 = vsub.f32 %v1331_v18, %v207_v6  ;;  %325 = vadd.xlane.f32.xlu1 %v270_v0  ;;  %295 = vadd.xlane.f32.xlu0 %v255_v7 }
 0x113   :  { %v1465_v17 = vsub.f32 %v1333_v19, %v208_v32  ;;  %v139_v35 = vpop.xlane.xlu0 %138 }
 0x114   :  { %v141_v9 = vpop.xlane.xlu1 %140  ;;  %v193_v39 = vmul.f32 0.0078125, %v139_v35  ;;  %v271_v40 = vmul.f32 %v1462_v16, %v1462_v16 }
 0x115   :  { %v194_v41 = vmul.f32 0.0078125, %v141_v9  ;;  %v272_v42 = vmul.f32 %v1465_v17, %v1465_v17 }
 0x116   :  { %v1472_v18 = vsub.f32 %v1337_v20, %v193_v39  ;;  %297 = vadd.xlane.f32.xlu1 %v256_v33  ;;  %327 = vadd.xlane.f32.xlu0 %v271_v40 }
 0x117   :  { %v1475_v19 = vsub.f32 %v1339_v21, %v194_v41  ;;  %v171_v46 = vpop.xlane.xlu0 %170 }
 0x118   :  { %v173_v47 = vpop.xlane.xlu1 %172  ;;  %v209_v48 = vmul.f32 0.0078125, %v171_v46  ;;  %v257_v49 = vmul.f32 %v1472_v18, %v1472_v18 }
 0x119   :  { %v210_v50 = vmul.f32 0.0078125, %v173_v47  ;;  %v258_v53 = vmul.f32 %v1475_v19, %v1475_v19 }
 0x11a   :  { %v1482_v20 = vsub.f32 %v1343_v22, %v209_v48  ;;  %329 = vadd.xlane.f32.xlu1 %v272_v42  ;;  %299 = vadd.xlane.f32.xlu0 %v257_v49 }
 0x11b   :  { %v1485_v21 = vsub.f32 %v1345_v23, %v210_v50  ;;  %v143_v55 = vpop.xlane.xlu0 %142 }
 0x11c   :  { %v145_v56 = vpop.xlane.xlu1 %144  ;;  %v195_v57 = vmul.f32 0.0078125, %v143_v55  ;;  %v273_v58 = vmul.f32 %v1482_v20, %v1482_v20 }
 0x11d   :  { %v196_v61 = vmul.f32 0.0078125, %v145_v56  ;;  %v274_v62 = vmul.f32 %v1485_v21, %v1485_v21 }
 0x11e   :  { %v1492_v22 = vsub.f32 %v1349_v24, %v195_v57  ;;  %301 = vadd.xlane.f32.xlu1 %v258_v53  ;;  %331 = vadd.xlane.f32.xlu0 %v273_v58 }
 0x11f   :  { %v1495_v23 = vsub.f32 %v1351_v25, %v196_v61  ;;  %v175_v0 = vpop.xlane.xlu0 %174 }
 0x120   :  { %v177_v1 = vpop.xlane.xlu1 %176  ;;  %v211_v2 = vmul.f32 0.0078125, %v175_v0  ;;  %v259_v5 = vmul.f32 %v1492_v22, %v1492_v22 }
 0x121   :  { %v212_v6 = vmul.f32 0.0078125, %v177_v1  ;;  %v260_v7 = vmul.f32 %v1495_v23, %v1495_v23 }
 0x122   :  { %v1502_v24 = vsub.f32 %v1355_v26, %v211_v2  ;;  %333 = vadd.xlane.f32.xlu1 %v274_v62  ;;  %303 = vadd.xlane.f32.xlu0 %v259_v5 }
 0x123   :  { %v1505_v25 = vsub.f32 %v1357_v27, %v212_v6  ;;  %v147_v32 = vpop.xlane.xlu0 %146 }
 0x124   :  { %v149_v33 = vpop.xlane.xlu1 %148  ;;  %v197_v34 = vmul.f32 0.0078125, %v147_v32  ;;  %v275_v35 = vmul.f32 %v1502_v24, %v1502_v24 }
 0x125   :  { %v198_v9 = vmul.f32 0.0078125, %v149_v33  ;;  %v276_v27 = vmul.f32 %v1505_v25, %v1505_v25 }
 0x126   :  { %v1512_v39 = vsub.f32 %v1361_v28, %v197_v34  ;;  %305 = vadd.xlane.f32.xlu1 %v260_v7  ;;  %335 = vadd.xlane.f32.xlu0 %v275_v35 }
 0x127   :  { %v1515_v26 = vsub.f32 %v1363_v29, %v198_v9  ;;  %v179_v40 = vpop.xlane.xlu0 %178 }
 0x128   :  { %v181_v41 = vpop.xlane.xlu1 %180  ;;  %v213_v42 = vmul.f32 0.0078125, %v179_v40  ;;  %v261_v45 = vmul.f32 %v1512_v39, %v1512_v39 }
 0x129   :  { %v214_v46 = vmul.f32 0.0078125, %v181_v41  ;;  %v262_v29 = vmul.f32 %v1515_v26, %v1515_v26 }
 0x12a   :  { %v1522_v47 = vsub.f32 %v1367_v30, %v213_v42  ;;  %337 = vadd.xlane.f32.xlu1 %v276_v27  ;;  %307 = vadd.xlane.f32.xlu0 %v261_v45  ;;  %v1534_v45 = vld [vmem:[#allocation5] ss:$0 sm:$0xff] }
 0x12b   :  { %v1525_v28 = vsub.f32 %v1369_v31, %v214_v46 }
 0x12c   :  { %v277_v48 = vmul.f32 %v1522_v47, %v1522_v47 }
 0x12d   :  { %v278_v49 = vmul.f32 %v1525_v28, %v1525_v28 }
 0x12e   :  { %309 = vadd.xlane.f32.xlu1 %v262_v29  ;;  %339 = vadd.xlane.f32.xlu0 %v277_v48 }
 0x132   :  { %341 = vadd.xlane.f32.xlu1 %v278_v49 }
 0x17f   :  { %v280_v50 = vpop.xlane.xlu0 %279 }
 0x180   :  { %v343_v30 = vmul.f32 0.0078125, %v280_v50 }
 0x182   :  { %v375_v53 = vadd.f32 1e-06, %v343_v30 }
 0x183   :  { %v282_v54 = vpop.xlane.xlu1 %281  ;;  %v312_v55 = vpop.xlane.xlu0 %311 }
 0x184   :  { %963 = vrsqrt.f32 %v375_v53  ;;  %v344_v31 = vmul.f32 0.0078125, %v282_v54  ;;  %v359_v56 = vmul.f32 0.0078125, %v312_v55 }
 0x186   :  { %v376_v57 = vadd.f32 1e-06, %v344_v31  ;;  %v391_v58 = vadd.f32 1e-06, %v359_v56 }
 0x187   :  { %v314_v61 = vpop.xlane.xlu1 %313  ;;  %v284_v62 = vpop.xlane.xlu0 %283 }
 0x188   :  { %965 = vrsqrt.f32 %v376_v57  ;;  %v360_v63 = vmul.f32 0.0078125, %v314_v61  ;;  %v345_v0 = vmul.f32 0.0078125, %v284_v62 }
 0x189   :  { %967 = vrsqrt.f32 %v391_v58 }
 0x18a   :  { %v392_v1 = vadd.f32 1e-06, %v360_v63  ;;  %v377_v2 = vadd.f32 1e-06, %v345_v0 }
 0x18b   :  { %v286_v5 = vpop.xlane.xlu1 %285  ;;  %v316_v6 = vpop.xlane.xlu0 %315 }
 0x18c   :  { %969 = vrsqrt.f32 %v392_v1  ;;  %v346_v7 = vmul.f32 0.0078125, %v286_v5  ;;  %v361_v32 = vmul.f32 0.0078125, %v316_v6 }
 0x18d   :  { %971 = vrsqrt.f32 %v377_v2 }
 0x18e   :  { %v964_v33 = vpop.eup %963  ;;  %v378_v34 = vadd.f32 1e-06, %v346_v7  ;;  %v393_v35 = vadd.f32 1e-06, %v361_v32 }
 0x18f   :  { %v318_v9 = vpop.xlane.xlu1 %317  ;;  %v288_v27 = vpop.xlane.xlu0 %287  ;;  %v439_v40 = vmul.f32 %v964_v33, %v1374_v36  ;;  %v1538_v36 = vld [vmem:[#allocation7] ss:$0 sm:$0xff] }
 0x190   :  { %973 = vrsqrt.f32 %v378_v34  ;;  %v362_v41 = vmul.f32 0.0078125, %v318_v9  ;;  %v347_v42 = vmul.f32 0.0078125, %v288_v27 }
 0x191   :  { %975 = vrsqrt.f32 %v393_v35  ;;  %v477_v54 = vmul.f32 %v1534_v45, %v439_v40 }
 0x192   :  { %v966_v46 = vpop.eup %965  ;;  %v394_v29 = vadd.f32 1e-06, %v362_v41  ;;  %v379_v48 = vadd.f32 1e-06, %v347_v42 }
 0x193   :  { %v968_v49 = vpop.eup %967  ;;  %v290_v50 = vpop.xlane.xlu1 %289  ;;  %v440_v53 = vmul.f32 %v966_v46, %v1382_v43  ;;  %v515_v43 = vadd.f32 %v1538_v36, %v477_v54 }
 0x194   :  { %v320_v30 = vpop.xlane.xlu0 %319  ;;  %977 = vrsqrt.f32 %v394_v29  ;;  %v348_v55 = vmul.f32 0.0078125, %v290_v50  ;;  %v455_v56 = vmul.f32 %v968_v49, %v1377_v37 }
 0x195   :  { %v363_v31 = vmul.f32 0.0078125, %v320_v30  ;;  %979 = vrsqrt.f32 %v379_v48  ;;  %v478_v57 = vmul.f32 %v1534_v45, %v440_v53 }
 0x196   :  { %v970_v58 = vpop.eup %969  ;;  %v380_v61 = vadd.f32 1e-06, %v348_v55  ;;  %v493_v6 = vmul.f32 %v1534_v45, %v455_v56 }
 0x197   :  { %v395_v62 = vadd.f32 1e-06, %v363_v31  ;;  %v972_v63 = vpop.eup %971  ;;  %v322_v0 = vpop.xlane.xlu1 %321  ;;  %v516_v2 = vadd.f32 %v1538_v36, %v478_v57  ;;  %v456_v5 = vmul.f32 %v970_v58, %v1385_v44 }
 0x198   :  { %v292_v1 = vpop.xlane.xlu0 %291  ;;  %981 = vrsqrt.f32 %v380_v61  ;;  %v364_v7 = vmul.f32 0.0078125, %v322_v0  ;;  %v441_v34 = vmul.f32 %v972_v63, %v1392_v51  ;;  %v531_v44 = vadd.f32 %v1538_v36, %v493_v6 }
 0x199   :  { %v349_v37 = vmul.f32 0.0078125, %v292_v1  ;;  %983 = vrsqrt.f32 %v395_v62  ;;  %v547_v32 = vpack.c.bf16 %v516_v2, %v515_v43  ;;  %v494_v33 = vmul.f32 %v1534_v45, %v456_v5 }
 0x19a   :  { %v974_v35 = vpop.eup %973  ;;  %v396_v9 = vadd.f32 1e-06, %v364_v7  ;;  %v479_v48 = vmul.f32 %v1534_v45, %v441_v34 }
 0x19b   :  { %v381_v27 = vadd.f32 1e-06, %v349_v37  ;;  %v976_v40 = vpop.eup %975  ;;  %v294_v41 = vpop.xlane.xlu1 %293  ;;  %897 = vmatprep.mubr.bf16.mxu0 %v547_v32  ;;  %v532_v46 = vadd.f32 %v1538_v36, %v494_v33  ;;  %v442_v29 = vmul.f32 %v974_v35, %v1395_v52 }
 0x19c   :  { %v324_v42 = vpop.xlane.xlu0 %323  ;;  %985 = vrsqrt.f32 %v396_v9  ;;  %v350_v49 = vmul.f32 0.0078125, %v294_v41  ;;  %v457_v51 = vmul.f32 %v976_v40, %v1402_v59  ;;  %v517_v52 = vadd.f32 %v1538_v36, %v479_v48 }
 0x19d   :  { %v365_v50 = vmul.f32 0.0078125, %v324_v42  ;;  %987 = vrsqrt.f32 %v381_v27  ;;  %v555_v30 = vpack.c.bf16 %v532_v46, %v531_v44  ;;  %v480_v53 = vmul.f32 %v1534_v45, %v442_v29 }
 0x19e   :  { %v978_v54 = vpop.eup %977  ;;  %v382_v55 = vadd.f32 1e-06, %v350_v49  ;;  %v495_v63 = vmul.f32 %v1534_v45, %v457_v51 }
 0x19f   :  { %v397_v31 = vadd.f32 1e-06, %v365_v50  ;;  %v980_v56 = vpop.eup %979  ;;  %v326_v57 = vpop.xlane.xlu1 %325  ;;  %913 = vmatprep.mubr.bf16.mxu1 %v555_v30  ;;  %v518_v61 = vadd.f32 %v1538_v36, %v480_v53  ;;  %v458_v62 = vmul.f32 %v978_v54, %v1405_v60 }
 0x1a0   :  { %v296_v58 = vpop.xlane.xlu0 %295  ;;  %989 = vrsqrt.f32 %v382_v55  ;;  %v366_v59 = vmul.f32 0.0078125, %v326_v57  ;;  %v443_v2 = vmul.f32 %v980_v56, %v1412_v3  ;;  %v533_v60 = vadd.f32 %v1538_v36, %v495_v63 }
 0x1a1   :  { %v351_v0 = vmul.f32 0.0078125, %v296_v58  ;;  %991 = vrsqrt.f32 %v397_v31  ;;  %v548_v1 = vpack.c.bf16 %v518_v61, %v517_v52  ;;  %v496_v43 = vmul.f32 %v1534_v45, %v458_v62 }
 0x1a2   :  { %v982_v5 = vpop.eup %981  ;;  %v398_v6 = vadd.f32 1e-06, %v366_v59  ;;  %v481_v9 = vmul.f32 %v1534_v45, %v443_v2 }
 0x1a3   :  { %v383_v7 = vadd.f32 1e-06, %v351_v0  ;;  %v984_v37 = vpop.eup %983  ;;  %v298_v32 = vpop.xlane.xlu1 %297  ;;  %898 = vmatmul.mubr.bf16.vlgmr.msra.gmra.mrb[0].mxu0 %v548_v1  ;;  %v534_v34 = vadd.f32 %v1538_v36, %v496_v43  ;;  %v444_v35 = vmul.f32 %v982_v5, %v1415_v4 }
 0x1a4   :  { %v328_v33 = vpop.xlane.xlu0 %327  ;;  %993 = vrsqrt.f32 %v398_v6  ;;  %v352_v27 = vmul.f32 0.0078125, %v298_v32  ;;  %v459_v3 = vmul.f32 %v984_v37, %v1422_v38  ;;  %v519_v4 = vadd.f32 %v1538_v36, %v481_v9 }
 0x1a5   :  { %v367_v40 = vmul.f32 0.0078125, %v328_v33  ;;  %995 = vrsqrt.f32 %v383_v7  ;;  %v556_v41 = vpack.c.bf16 %v534_v34, %v533_v60  ;;  %v482_v42 = vmul.f32 %v1534_v45, %v444_v35 }
 0x1a6   :  { %v986_v44 = vpop.eup %985  ;;  %v384_v46 = vadd.f32 1e-06, %v352_v27  ;;  %v497_v53 = vmul.f32 %v1534_v45, %v459_v3 }
 0x1a7   :  { %v399_v29 = vadd.f32 1e-06, %v367_v40  ;;  %v988_v48 = vpop.eup %987  ;;  %v330_v49 = vpop.xlane.xlu1 %329  ;;  %914 = vmatmul.mubr.bf16.vlgmr.msra.gmra.mrb[0].mxu1 %v556_v41  ;;  %v520_v51 = vadd.f32 %v1538_v36, %v482_v42  ;;  %v460_v30 = vmul.f32 %v986_v44, %v1425_v8 }
 0x1a8   :  { %v300_v50 = vpop.xlane.xlu0 %299  ;;  %997 = vrsqrt.f32 %v384_v46  ;;  %v368_v38 = vmul.f32 0.0078125, %v330_v49  ;;  %v445_v56 = vmul.f32 %v988_v48, %v1432_v10  ;;  %v535_v8 = vadd.f32 %v1538_v36, %v497_v53 }
 0x1a9   :  { %v353_v54 = vmul.f32 0.0078125, %v300_v50  ;;  %999 = vrsqrt.f32 %v399_v29  ;;  %v549_v55 = vpack.c.bf16 %v520_v51, %v519_v4  ;;  %v498_v31 = vmul.f32 %v1534_v45, %v460_v30 }
 0x1aa   :  { %v990_v57 = vpop.eup %989  ;;  %v400_v58 = vadd.f32 1e-06, %v368_v38  ;;  %v483_v1 = vmul.f32 %v1534_v45, %v445_v56 }
 0x1ab   :  { %v385_v52 = vadd.f32 1e-06, %v353_v54  ;;  %v992_v61 = vpop.eup %991  ;;  %v302_v62 = vpop.xlane.xlu1 %301  ;;  %901 = vmatprep.mubr.bf16.mxu0 %v549_v55  ;;  %v536_v59 = vadd.f32 %v1538_v36, %v498_v31  ;;  %v446_v0 = vmul.f32 %v990_v57, %v1435_v11 }
 0x1ac   :  { %v332_v63 = vpop.xlane.xlu0 %331  ;;  %1001 = vrsqrt.f32 %v400_v58  ;;  %v354_v43 = vmul.f32 0.0078125, %v302_v62  ;;  %v461_v10 = vmul.f32 %v992_v61, %v1442_v12  ;;  %v521_v11 = vadd.f32 %v1538_v36, %v483_v1 }
 0x1ad   :  { %v369_v2 = vmul.f32 0.0078125, %v332_v63  ;;  %1003 = vrsqrt.f32 %v385_v52  ;;  %v557_v5 = vpack.c.bf16 %v536_v59, %v535_v8  ;;  %v484_v6 = vmul.f32 %v1534_v45, %v446_v0 }
 0x1ae   :  { %v994_v7 = vpop.eup %993  ;;  %v386_v37 = vadd.f32 1e-06, %v354_v43  ;;  %v499_v27 = vmul.f32 %v1534_v45, %v461_v10 }
 0x1af   :  { %v401_v32 = vadd.f32 1e-06, %v369_v2  ;;  %v996_v33 = vpop.eup %995  ;;  %v334_v60 = vpop.xlane.xlu1 %333  ;;  %917 = vmatprep.mubr.bf16.mxu1 %v557_v5  ;;  %v522_v35 = vadd.f32 %v1538_v36, %v484_v6  ;;  %v462_v9 = vmul.f32 %v994_v7, %v1445_v13 }
 0x1b0   :  { %v304_v34 = vpop.xlane.xlu0 %303  ;;  %1005 = vrsqrt.f32 %v386_v37  ;;  %v370_v12 = vmul.f32 0.0078125, %v334_v60  ;;  %v447_v42 = vmul.f32 %v996_v33, %v1452_v14  ;;  %v537_v13 = vadd.f32 %v1538_v36, %v499_v27 }
 0x1b1   :  { %v355_v40 = vmul.f32 0.0078125, %v304_v34  ;;  %1007 = vrsqrt.f32 %v401_v32  ;;  %v550_v3 = vpack.c.bf16 %v522_v35, %v521_v11  ;;  %v500_v41 = vmul.f32 %v1534_v45, %v462_v9 }
 0x1b2   :  { %v998_v44 = vpop.eup %997  ;;  %v402_v46 = vadd.f32 1e-06, %v370_v12  ;;  %v485_v30 = vmul.f32 %v1534_v45, %v447_v42 }
 0x1b3   :  { %v387_v29 = vadd.f32 1e-06, %v355_v40  ;;  %v1000_v48 = vpop.eup %999  ;;  %v306_v49 = vpop.xlane.xlu1 %305  ;;  %902 = vmatmul.mubr.bf16.gmra.mrb[4].mxu0 %v550_v3  ;;  %v538_v4 = vadd.f32 %v1538_v36, %v500_v41  ;;  %v448_v51 = vmul.f32 %v998_v44, %v1455_v15 }
 0x1b4   :  { %v336_v50 = vpop.xlane.xlu0 %335  ;;  %1009 = vrsqrt.f32 %v402_v46  ;;  %v356_v53 = vmul.f32 0.0078125, %v306_v49  ;;  %v463_v14 = vmul.f32 %v1000_v48, %v1462_v16  ;;  %v523_v15 = vadd.f32 %v1538_v36, %v485_v30 }
 0x1b5   :  { %v371_v38 = vmul.f32 0.0078125, %v336_v50  ;;  %1011 = vrsqrt.f32 %v387_v29  ;;  %v558_v54 = vpack.c.bf16 %v538_v4, %v537_v13  ;;  %v486_v55 = vmul.f32 %v1534_v45, %v448_v51 }
 0x1b6   :  { %v1002_v31 = vpop.eup %1001  ;;  %v388_v56 = vadd.f32 1e-06, %v356_v53  ;;  %v501_v8 = vmul.f32 %v1534_v45, %v463_v14 }
 0x1b7   :  { %v403_v57 = vadd.f32 1e-06, %v371_v38  ;;  %v1004_v58 = vpop.eup %1003  ;;  %v338_v52 = vpop.xlane.xlu1 %337  ;;  %918 = vmatmul.mubr.bf16.gmra.mrb[4].mxu1 %v558_v54  ;;  %v524_v62 = vadd.f32 %v1538_v36, %v486_v55  ;;  %v464_v63 = vmul.f32 %v1002_v31, %v1465_v17 }
 0x1b8   :  { %v308_v61 = vpop.xlane.xlu0 %307  ;;  %1013 = vrsqrt.f32 %v388_v56  ;;  %v372_v16 = vmul.f32 0.0078125, %v338_v52  ;;  %v449_v43 = vmul.f32 %v1004_v58, %v1472_v18  ;;  %v539_v17 = vadd.f32 %v1538_v36, %v501_v8 }
 0x1b9   :  { %v357_v59 = vmul.f32 0.0078125, %v308_v61  ;;  %1015 = vrsqrt.f32 %v403_v57  ;;  %v551_v0 = vpack.c.bf16 %v524_v62, %v523_v15  ;;  %v502_v1 = vmul.f32 %v1534_v45, %v464_v63 }
 0x1ba   :  { %v1006_v2 = vpop.eup %1005  ;;  %v404_v10 = vadd.f32 1e-06, %v372_v16  ;;  %v487_v60 = vmul.f32 %v1534_v45, %v449_v43 }
 0x1bb   :  { %v389_v5 = vadd.f32 1e-06, %v357_v59  ;;  %v1008_v6 = vpop.eup %1007  ;;  %v310_v7 = vpop.xlane.xlu1 %309  ;;  %905 = vmatprep.mubr.bf16.mxu0 %v551_v0  ;;  %v540_v32 = vadd.f32 %v1538_v36, %v502_v1  ;;  %v450_v33 = vmul.f32 %v1006_v2, %v1475_v19 }
 0x1bc   :  { %v340_v37 = vpop.xlane.xlu0 %339  ;;  %1017 = vrsqrt.f32 %v404_v10  ;;  %v358_v34 = vmul.f32 0.0078125, %v310_v7  ;;  %v465_v18 = vmul.f32 %v1008_v6, %v1482_v20  ;;  %v525_v42 = vadd.f32 %v1538_v36, %v487_v60 }
 0x1bd   :  { %v373_v11 = vmul.f32 0.0078125, %v340_v37  ;;  %1019 = vrsqrt.f32 %v389_v5  ;;  %v559_v35 = vpack.c.bf16 %v540_v32, %v539_v17  ;;  %v488_v9 = vmul.f32 %v1534_v45, %v450_v33  ;;  %v1633_v37 = vld [vmem:[#allocation10] ss:$0 sm:$0xff] }
 0x1be   :  { %v1010_v27 = vpop.eup %1009  ;;  %v390_v12 = vadd.f32 1e-06, %v358_v34  ;;  %v503_v46 = vmul.f32 %v1534_v45, %v465_v18 }
 0x1bf   :  { %v405_v40 = vadd.f32 1e-06, %v373_v11  ;;  %v1012_v3 = vpop.eup %1011  ;;  %v342_v41 = vpop.xlane.xlu1 %341  ;;  %921 = vmatprep.mubr.bf16.mxu1 %v559_v35  ;;  %v526_v19 = vadd.f32 %v1538_v36, %v488_v9  ;;  %v466_v44 = vmul.f32 %v1010_v27, %v1485_v21 }
 0x1c0   :  { %1021 = vrsqrt.f32 %v390_v12  ;;  %v374_v20 = vmul.f32 0.0078125, %v342_v41  ;;  %v451_v29 = vmul.f32 %v1012_v3, %v1492_v22  ;;  %v541_v51 = vadd.f32 %v1538_v36, %v503_v46 }
 0x1c1   :  { %1023 = vrsqrt.f32 %v405_v40  ;;  %v552_v48 = vpack.c.bf16 %v526_v19, %v525_v42  ;;  %v504_v49 = vmul.f32 %v1534_v45, %v466_v44 }
 0x1c2   :  { %v1014_v50 = vpop.eup %1013  ;;  %v406_v13 = vadd.f32 1e-06, %v374_v20  ;;  %v489_v53 = vmul.f32 %v1534_v45, %v451_v29 }
 0x1c3   :  { %v1016_v4 = vpop.eup %1015  ;;  %906 = vmatmul.mubr.bf16.gmra.mrb[8].mxu0 %v552_v48  ;;  %v542_v30 = vadd.f32 %v1538_v36, %v504_v49  ;;  %v452_v21 = vmul.f32 %v1014_v50, %v1495_v23 }
 0x1c4   :  { %1025 = vrsqrt.f32 %v406_v13  ;;  %v467_v38 = vmul.f32 %v1016_v4, %v1502_v24  ;;  %v527_v31 = vadd.f32 %v1538_v36, %v489_v53 }
 0x1c5   :  { %v560_v22 = vpack.c.bf16 %v542_v30, %v541_v51  ;;  %v490_v14 = vmul.f32 %v1534_v45, %v452_v21 }
 0x1c6   :  { %v1018_v54 = vpop.eup %1017  ;;  %v505_v58 = vmul.f32 %v1534_v45, %v467_v38 }
 0x1c7   :  { %v1020_v55 = vpop.eup %1019  ;;  %922 = vmatmul.mubr.bf16.gmra.mrb[8].mxu1 %v560_v22  ;;  %v528_v56 = vadd.f32 %v1538_v36, %v490_v14  ;;  %v468_v57 = vmul.f32 %v1018_v54, %v1505_v25 }
 0x1c8   :  { %v453_v23 = vmul.f32 %v1020_v55, %v1512_v39  ;;  %v543_v62 = vadd.f32 %v1538_v36, %v505_v58 }
 0x1c9   :  { %v553_v52 = vpack.c.bf16 %v528_v56, %v527_v31  ;;  %v506_v61 = vmul.f32 %v1534_v45, %v468_v57 }
 0x1ca   :  { %v1022_v24 = vpop.eup %1021  ;;  %v491_v16 = vmul.f32 %v1534_v45, %v453_v23 }
 0x1cb   :  { %v1024_v15 = vpop.eup %1023  ;;  %909 = vmatprep.mubr.bf16.mxu0 %v553_v52  ;;  %v544_v63 = vadd.f32 %v1538_v36, %v506_v61  ;;  %v454_v8 = vmul.f32 %v1022_v24, %v1515_v26 }
 0x1cc   :  { %v469_v25 = vmul.f32 %v1024_v15, %v1522_v47  ;;  %v529_v1 = vadd.f32 %v1538_v36, %v491_v16 }
 0x1cd   :  { %v561_v59 = vpack.c.bf16 %v544_v63, %v543_v62  ;;  %v492_v0 = vmul.f32 %v1534_v45, %v454_v8 }
 0x1ce   :  { %v1026_v39 = vpop.eup %1025  ;;  %v507_v10 = vmul.f32 %v1534_v45, %v469_v25 }
 0x1cf   :  { %925 = vmatprep.mubr.bf16.mxu1 %v561_v59  ;;  %v530_v43 = vadd.f32 %v1538_v36, %v492_v0  ;;  %v470_v2 = vmul.f32 %v1026_v39, %v1525_v28 }
 0x1d0   :  { %v545_v6 = vadd.f32 %v1538_v36, %v507_v10 }
 0x1d1   :  { %v554_v5 = vpack.c.bf16 %v530_v43, %v529_v1  ;;  %v508_v26 = vmul.f32 %v1534_v45, %v470_v2 }
 0x1d3   :  { %910 = vmatmul.mubr.bf16.gmra.mrb[12].mxu0 %v554_v5  ;;  %v546_v47 = vadd.f32 %v1538_v36, %v508_v26 }
 0x1d5   :  { %v562_v7 = vpack.c.bf16 %v546_v47, %v545_v6 }
 0x1d7   :  { %926 = vmatmul.mubr.bf16.gmra.mrb[12].mxu1 %v562_v7 }
 0x276   :  { %v899_v17 = vpop.f32.mrb[0].mxu0 }
 0x277   :  { %v677_v32 = vadd.f32 %v899_v17, %v1633_v37  ;;  %v668_v33 = vpop.f32.mrb[1].mxu0 }
 0x278   :  { %v669_v28 = vadd.f32 %v1633_v37, %v668_v33  ;;  %v900_v60 = vpop.f32.mrb[2].mxu0 }
 0x279   :  { %797 = vst [vmem:[#allocation11 + $0x10] sm:$0xff] %v677_v32  ;;  %v680_v34 = vadd.f32 %v900_v60, %v1633_v37  ;;  %v671_v45 = vpop.f32.mrb[3].mxu0 }
 0x27a   :  { %795 = vst [vmem:[#allocation11] sm:$0xff] %v669_v28  ;;  %v672_v11 = vadd.f32 %v1633_v37, %v671_v45  ;;  %v915_v18 = vpop.f32.mrb[0].mxu1 }
 0x27b   :  { %798 = vst [vmem:[#allocation11 + $0x18] sm:$0xff] %v680_v34  ;;  %v741_v36 = vadd.f32 %v915_v18, %v1633_v37  ;;  %v732_v35 = vpop.f32.mrb[1].mxu1 }
 0x27c   :  { %796 = vst [vmem:[#allocation11 + $0x8] sm:$0xff] %v672_v11  ;;  %v733_v9 = vadd.f32 %v1633_v37, %v732_v35  ;;  %v916_v27 = vpop.f32.mrb[2].mxu1 }
 0x27d   :  { %813 = vst [vmem:[#allocation11 + $0x90] sm:$0xff] %v741_v36  ;;  %v744_v12 = vadd.f32 %v916_v27, %v1633_v37  ;;  %v735_v40 = vpop.f32.mrb[3].mxu1 }
 0x27e   :  { %811 = vst [vmem:[#allocation11 + $0x80] sm:$0xff] %v733_v9  ;;  %v736_v3 = vadd.f32 %v1633_v37, %v735_v40 }
 0x27f   :  { %814 = vst [vmem:[#allocation11 + $0x98] sm:$0xff] %v744_v12 }
 0x280   :  { %812 = vst [vmem:[#allocation11 + $0x88] sm:$0xff] %v736_v3 }
 0x286   :  { %v903_v41 = vpop.f32.mrb[4].mxu0 }
 0x287   :  { %v693_v42 = vadd.f32 %v903_v41, %v1633_v37  ;;  %v684_v19 = vpop.f32.mrb[5].mxu0 }
 0x288   :  { %v685_v44 = vadd.f32 %v1633_v37, %v684_v19  ;;  %v904_v46 = vpop.f32.mrb[6].mxu0 }
 0x289   :  { %801 = vst [vmem:[#allocation11 + $0x30] sm:$0xff] %v693_v42  ;;  %v696_v20 = vadd.f32 %v904_v46, %v1633_v37  ;;  %v687_v29 = vpop.f32.mrb[7].mxu0 }
 0x28a   :  { %799 = vst [vmem:[#allocation11 + $0x20] sm:$0xff] %v685_v44  ;;  %v688_v48 = vadd.f32 %v1633_v37, %v687_v29  ;;  %v919_v49 = vpop.f32.mrb[4].mxu1 }
 0x28b   :  { %802 = vst [vmem:[#allocation11 + $0x38] sm:$0xff] %v696_v20  ;;  %v757_v50 = vadd.f32 %v919_v49, %v1633_v37  ;;  %v748_v13 = vpop.f32.mrb[5].mxu1 }
 0x28c   :  { %800 = vst [vmem:[#allocation11 + $0x28] sm:$0xff] %v688_v48  ;;  %v749_v4 = vadd.f32 %v1633_v37, %v748_v13  ;;  %v920_v51 = vpop.f32.mrb[6].mxu1 }
 0x28d   :  { %817 = vst [vmem:[#allocation11 + $0xb0] sm:$0xff] %v757_v50  ;;  %v760_v30 = vadd.f32 %v920_v51, %v1633_v37  ;;  %v751_v21 = vpop.f32.mrb[7].mxu1 }
 0x28e   :  { %815 = vst [vmem:[#allocation11 + $0xa0] sm:$0xff] %v749_v4  ;;  %v752_v53 = vadd.f32 %v1633_v37, %v751_v21 }
 0x28f   :  { %818 = vst [vmem:[#allocation11 + $0xb8] sm:$0xff] %v760_v30 }
 0x290   :  { %816 = vst [vmem:[#allocation11 + $0xa8] sm:$0xff] %v752_v53 }
 0x296   :  { %v907_v38 = vpop.f32.mrb[8].mxu0 }
 0x297   :  { %v709_v22 = vadd.f32 %v907_v38, %v1633_v37  ;;  %v700_v14 = vpop.f32.mrb[9].mxu0 }
 0x298   :  { %v701_v54 = vadd.f32 %v1633_v37, %v700_v14  ;;  %v908_v55 = vpop.f32.mrb[10].mxu0 }
 0x299   :  { %805 = vst [vmem:[#allocation11 + $0x50] sm:$0xff] %v709_v22  ;;  %v712_v31 = vadd.f32 %v908_v55, %v1633_v37  ;;  %v703_v56 = vpop.f32.mrb[11].mxu0 }
 0x29a   :  { %803 = vst [vmem:[#allocation11 + $0x40] sm:$0xff] %v701_v54  ;;  %v704_v57 = vadd.f32 %v1633_v37, %v703_v56  ;;  %v923_v58 = vpop.f32.mrb[8].mxu1 }
 0x29b   :  { %806 = vst [vmem:[#allocation11 + $0x58] sm:$0xff] %v712_v31  ;;  %v773_v23 = vadd.f32 %v923_v58, %v1633_v37  ;;  %v764_v52 = vpop.f32.mrb[9].mxu1 }
 0x29c   :  { %804 = vst [vmem:[#allocation11 + $0x48] sm:$0xff] %v704_v57  ;;  %v765_v61 = vadd.f32 %v1633_v37, %v764_v52  ;;  %v924_v24 = vpop.f32.mrb[10].mxu1 }
 0x29d   :  { %821 = vst [vmem:[#allocation11 + $0xd0] sm:$0xff] %v773_v23  ;;  %v776_v15 = vadd.f32 %v924_v24, %v1633_v37  ;;  %v767_v62 = vpop.f32.mrb[11].mxu1 }
 0x29e   :  { %819 = vst [vmem:[#allocation11 + $0xc0] sm:$0xff] %v765_v61  ;;  %v768_v63 = vadd.f32 %v1633_v37, %v767_v62 }
 0x29f   :  { %822 = vst [vmem:[#allocation11 + $0xd8] sm:$0xff] %v776_v15 }
 0x2a0   :  { %820 = vst [vmem:[#allocation11 + $0xc8] sm:$0xff] %v768_v63 }
 0x2a6   :  { %v911_v8 = vpop.f32.mrb[12].mxu0 }
 0x2a7   :  { %v725_v16 = vadd.f32 %v911_v8, %v1633_v37  ;;  %v716_v25 = vpop.f32.mrb[13].mxu0 }
 0x2a8   :  { %v717_v59 = vadd.f32 %v1633_v37, %v716_v25  ;;  %v912_v0 = vpop.f32.mrb[14].mxu0 }
 0x2a9   :  { %809 = vst [vmem:[#allocation11 + $0x70] sm:$0xff] %v725_v16  ;;  %v728_v39 = vadd.f32 %v912_v0, %v1633_v37  ;;  %v719_v1 = vpop.f32.mrb[15].mxu0 }
 0x2aa   :  { %807 = vst [vmem:[#allocation11 + $0x60] sm:$0xff] %v717_v59  ;;  %v720_v43 = vadd.f32 %v1633_v37, %v719_v1  ;;  %v927_v2 = vpop.f32.mrb[12].mxu1 }
 0x2ab   :  { %810 = vst [vmem:[#allocation11 + $0x78] sm:$0xff] %v728_v39  ;;  %v789_v10 = vadd.f32 %v927_v2, %v1633_v37  ;;  %v780_v5 = vpop.f32.mrb[13].mxu1 }
 0x2ac   :  { %808 = vst [vmem:[#allocation11 + $0x68] sm:$0xff] %v720_v43  ;;  %v781_v26 = vadd.f32 %v1633_v37, %v780_v5  ;;  %v928_v6 = vpop.f32.mrb[14].mxu1 }
 0x2ad   :  { %825 = vst [vmem:[#allocation11 + $0xf0] sm:$0xff] %v789_v10  ;;  %v792_v47 = vadd.f32 %v928_v6, %v1633_v37  ;;  %v783_v7 = vpop.f32.mrb[15].mxu1 }
 0x2ae   :  { %823 = vst [vmem:[#allocation11 + $0xe0] sm:$0xff] %v781_v26  ;;  %v784_v17 = vadd.f32 %v1633_v37, %v783_v7 }
 0x2af   :  { %826 = vst [vmem:[#allocation11 + $0xf8] sm:$0xff] %v792_v47 }
 0x2b0   :  { %824 = vst [vmem:[#allocation11 + $0xe8] sm:$0xff] %v784_v17 }
 0x2b1   :  { %1148 = shalt.err (!%p1145_p2)
}
 0x2b2   :  { %s1149_s10 = scalar_lea.hbm %s1687_s5, 4096 }
 0x2b3   :  { %p1150_p3 = scmp.ne.s32.totalorder %s1687_s5, %s1149_s10  ;;  %p1153_p4 = scmp.lt.u32.totalorder %s1149_s10, %s1687_s5 }
 0x2b5   :  { %p1155_p5 = pnand %p1153_p4, %p1150_p3 }
 0x2b7   :  { %1158 = shalt.err (!%p1155_p5)
}
 0x2b8   :  { %838 = dma.vmem_to_hbm [thread:$0]  %s833_s6, 4096, %s1687_s5, [#allocation4], %s1172_s3, %s1172_s3, %s1173_s21  }
 0x2b9   :  { %1165 = dma.done.wait [#allocation4], 4096  }
 0x2ba   :  { %1166 = vsyncadd [#allocation4], 4294963200 }
 0x2bb   :  { %842 = vsyncpa [#allocation3], 1 }
 0x2bc   :  { %843 = vsyncpa [#allocation6], 1 }
 0x2bd   :  { %844 = vsyncpa [#allocation9], 1 }
 0x2be   :  { %845 = vsyncpa [#allocation4], 1 }

// kernel: _lambda_.5
= control target key start
LH: loop header
LB: loop body
LE: loop exit
PB: predicated region body
PF: predicated region fallthrough
CT: control target
= control target key end

     0   :  { %s8479_s0 = inlined_call_operand.hbm [shape: f32[2,128,128], index: 0, kind: input, shape index: {}]   ;;  %s8480_s1 = inlined_call_operand.hbm [shape: f32[1,128], index: 1, kind: input, shape index: {}]   ;;  %s8481_s2 = inlined_call_operand.hbm [shape: f32[1,128], index: 2, kind: input, shape index: {}]   ;;  %s8482_s3 = inlined_call_operand.hbm [shape: bf16[128,384], index: 3, kind: input, shape index: {}]   ;;  %s8483_s4 = inlined_call_operand.hbm [shape: f32[1,384], index: 4, kind: input, shape index: {}]   ;;  %s8484_s5 = inlined_call_operand.hbm [shape: bf16[128,128], index: 5, kind: input, shape index: {}]   ;;  %s8485_s6 = inlined_call_operand.hbm [shape: f32[1,128], index: 6, kind: input, shape index: {}]   ;;  %s8486_s7 = inlined_call_operand.hbm [shape: f32[1,128], index: 7, kind: input, shape index: {}]   ;;  %s8487_s8 = inlined_call_operand.hbm [shape: f32[1,128], index: 8, kind: input, shape index: {}]   ;;  %s8488_s9 = inlined_call_operand.hbm [shape: bf16[128,512], index: 9, kind: input, shape index: {}]   ;;  %s8489_s10 = inlined_call_operand.hbm [shape: f32[1,512], index: 10, kind: input, shape index: {}]   ;;  %s8490_s11 = inlined_call_operand.hbm [shape: bf16[512,128], index: 11, kind: input, shape index: {}]   ;;  %s8491_s12 = inlined_call_operand.hbm [shape: f32[1,128], index: 12, kind: input, shape index: {}]   ;;  %s8492_s13 = inlined_call_operand.hbm [shape: f32[2,128,128], index: 13, kind: output, shape index: {}]  }
   0x1   :  { %8555 = sst [smem:[#allocation79_spill]] %s8479_s0 }
   0x2   :  { %8556 = sst [smem:[#allocation80_spill]] %s8480_s1 }
   0x3   :  { %8557 = sst [smem:[#allocation81_spill]] %s8482_s3 }
   0x4   :  { %8558 = sst [smem:[#allocation82_spill]] %s8492_s13 }
   0x5   :  { %18 = vsyncpa [#allocation3], 0 }
   0x6   :  { %20 = vsyncpa [#allocation3 + $0x1], 0 }
   0x7   :  { %21 = vsyncpa [#allocation6], 0 }
   0x8   :  { %22 = vsyncpa [#allocation9], 0 }
   0x9   :  { %23 = vsyncpa [#allocation12], 0 }
   0xa   :  { %24 = vsyncpa [#allocation15], 0 }
   0xb   :  { %25 = vsyncpa [#allocation18], 0 }
   0xc   :  { %26 = vsyncpa [#allocation21], 0 }
   0xd   :  { %27 = vsyncpa [#allocation4], 0 }
   0xe   :  { %29 = vsyncpa [#allocation4 + $0x1], 0  ;;  %s6236_s25 = smov 0   ;;  %s6238_s26 = smov 0  }
   0xf   :  { %s6240_s27 = smov 0   ;;  %s6242_s28 = smov 0  }
  0x10 LB: > { %8559 = sst [smem:[#allocation32_spill]] %s6126_s25  ;;  %s6140_s29 = smov [#allocation5]   ;;  %s6138_s28 = sphi %s6242_s28, %s8707_s28   ;;  %s6134_s27 = sphi %s6240_s27, %s8706_s27   ;;  %s6130_s26 = sphi %s6238_s26, %s8705_s26   ;;  %s6126_s25 = sphi %s6236_s25, %s8704_s25  }
  0x11   : > { %s357_s30 = sshll.u32 %s6140_s29, 4  ;;  %s6257_s14 = sadd.s32 4294967295, %s6138_s28   ;;  %s6262_s30 = int_to_ptr.vmem [resolvable:$true] %s357_s30 }
  0x12   : > { %8560 = sst [smem:[#allocation33_spill]] %s6257_s14  ;;  %p4402_p0 = scmp.ge.s32.totalorder %s6138_s28, 1 }
  0x13   : > { %p8499_p1 = scmp.eq.s32.totalorder %s6257_s14, 0  ;;  %p344_p2 = scmp.lt.s32.totalorder %s6138_s28, 3 }
  0x14   : > { %s6141_s16 = smov [#allocation8]   ;;  %s6142_s19 = smov [#allocation11]  }
  0x15   : > { %p6264_p3 = pnand %p4402_p0, %p344_p2  ;;  %s378_s17 = sshll.u32 %s6141_s16, 4  ;;  %s6271_s17 = int_to_ptr.vmem [resolvable:$true] %s378_s17 }
  0x16   : > { %s402_s20 = sshll.u32 %s6142_s19, 4  ;;  %s8564_s1 = sld [smem:[#allocation80_spill]]  ;;  %s6279_s20 = int_to_ptr.vmem [resolvable:$true] %s402_s20 }
  0x17   : > { %s8561_s15 = scalar_select %p6264_p3, 1, 0 }
  0x18   : > { %p5059_p5 = pneg %p6264_p3 }
  0x19   : > { %8562 = sst [smem:[#allocation34_spill]] %s8561_s15 }
  0x1a   : > { %p6275_p6 = pnand %p5059_p5, %p8499_p1 }
  0x1c   : > { %s5682_s23 = scalar_lea.hbm %s8564_s1, 16  ;;  %p6289_p8 = pneg %p6275_p6 }
  0x1d   : > { %p5683_p7 = scmp.ne.s32.totalorder %s8564_s1, %s5682_s23  ;;  %p5689_p11 = scmp.lt.u32.totalorder %s5682_s23, %s8564_s1 }
  0x1f   : > { %p5685_p9 = pnand %p6289_p8, %p5683_p7 }
  0x21   : > { %p5686_p10 = pneg %p5685_p9 }
  0x23   : > { %p5691_p12 = pnand %p5689_p11, %p5686_p10 }
  0x25   : > { %5694 = shalt.err (!%p5691_p12)
}
  0x26   : > { %s5695_s21 = scalar_lea.vmem %s6262_s30, 16  ;;  %s5702_s22 = scalar_lea.vmem %s6262_s30, 32 }
  0x27   : > { %p5696_p13 = scmp.ne.s32.totalorder %s6262_s30, %s5695_s21  ;;  %p5703_p5 = scmp.lt.s32.totalorder %s6262_s30, %s6262_s30 }
  0x28   : > { %p5704_p7 = scmp.lt.s32.totalorder %s5702_s22, %s5695_s21 }
  0x29   : > { %p5698_p0 = pnand %p5696_p13, %p6289_p8 }
  0x2a   : > { %p5705_p9 = por %p5704_p7, %p5703_p5 }
  0x2b   : > { %p5699_p2 = pneg %p5698_p0 }
  0x2d   : > { %p5706_p4 = pnand %p5705_p9, %p5699_p2 }
  0x2f   : > { %5709 = shalt.err (!%p5706_p4)
}
  0x30   : > { %5062 = dma.hbm_to_vmem [thread:$0]  (!%p6275_p6), %s8564_s1, 16, %s6262_s30, [#allocation6]  }
  0x31   : > { %s8566_s3 = sld [smem:[#allocation81_spill]] }
  0x37   : > { %s5710_s19 = scalar_lea.hbm %s8566_s3, 3072 }
  0x38   : > { %p5711_p10 = scmp.ne.s32.totalorder %s8566_s3, %s5710_s19  ;;  %p5717_p4 = scmp.lt.u32.totalorder %s5710_s19, %s8566_s3 }
  0x3a   : > { %p5713_p11 = pnand %p5711_p10, %p6289_p8 }
  0x3c   : > { %p5714_p12 = pneg %p5713_p11 }
  0x3e   : > { %p5719_p13 = pnand %p5717_p4, %p5714_p12 }
  0x40   : > { %5722 = shalt.err (!%p5719_p13)
}
  0x41   : > { %s5723_s30 = scalar_lea.vmem %s6271_s17, 3072  ;;  %p5731_p7 = scmp.lt.s32.totalorder %s6271_s17, %s6271_s17 }
  0x42   : > { %p5724_p0 = scmp.ne.s32.totalorder %s6271_s17, %s5723_s30  ;;  %p5732_p9 = scmp.lt.s32.totalorder %s5723_s30, %s5723_s30 }
  0x44   : > { %p5726_p2 = pnand %p5724_p0, %p6289_p8  ;;  %p5733_p10 = por %p5732_p9, %p5731_p7 }
  0x46   : > { %p5727_p5 = pneg %p5726_p2 }
  0x48   : > { %p5734_p11 = pnand %p5733_p10, %p5727_p5 }
  0x4a   : > { %5737 = shalt.err (!%p5734_p11)
}
  0x4b   : > { %s6143_s0 = smov 192   ;;  %s6144_s15 = smov 12  }
  0x4c   : > { %5068 = dma.hbm_to_vmem [thread:$0]  (!%p6275_p6), %s8566_s3, 3072, %s6271_s17, [#allocation9], %s6143_s0, %s6143_s0, %s6144_s15  }
  0x4d   : > { %s5738_s19 = scalar_lea.hbm %s8484_s5, 1024 }
  0x4e   : > { %p5739_p12 = scmp.ne.s32.totalorder %s8484_s5, %s5738_s19  ;;  %p5745_p0 = scmp.lt.u32.totalorder %s5738_s19, %s8484_s5 }
  0x50   : > { %p5741_p4 = pnand %p5739_p12, %p6289_p8 }
  0x52   : > { %p5742_p13 = pneg %p5741_p4 }
  0x54   : > { %p5747_p2 = pnand %p5745_p0, %p5742_p13 }
  0x56   : > { %5750 = shalt.err (!%p5747_p2)
}
  0x57   : > { %s5751_s17 = scalar_lea.vmem %s6279_s20, 1024  ;;  %p5759_p10 = scmp.lt.s32.totalorder %s6279_s20, %s6279_s20 }
  0x58   : > { %p5752_p5 = scmp.ne.s32.totalorder %s6279_s20, %s5751_s17  ;;  %p5760_p11 = scmp.lt.s32.totalorder %s5751_s17, %s5751_s17 }
  0x5a   : > { %p5754_p7 = pnand %p5752_p5, %p6289_p8  ;;  %p5761_p12 = por %p5760_p11, %p5759_p10 }
  0x5c   : > { %p5755_p9 = pneg %p5754_p7 }
  0x5e   : > { %p5762_p4 = pnand %p5761_p12, %p5755_p9 }
  0x60   : > { %5765 = shalt.err (!%p5762_p4)
}
  0x61   : > { %s8501_s0 = smov 64   ;;  %s8502_s1 = smov 4  }
  0x62   : > { %5074 = dma.hbm_to_vmem [thread:$0]  (!%p6275_p6), %s8484_s5, 1024, %s6279_s20, [#allocation12], %s8501_s0, %s8501_s0, %s8502_s1  }
  0x63   : > { %s6147_s23 = smov [#allocation14]   ;;  %s6148_s29 = smov [#allocation17]  }
  0x64   : > { %s427_s24 = sshll.u32 %s6147_s23, 4  ;;  %s448_s19 = sshll.u32 %s6148_s29, 4  ;;  %s428_s24 = int_to_ptr.vmem [resolvable:$true] %s427_s24  ;;  %s449_s19 = int_to_ptr.vmem [resolvable:$true] %s448_s19 }
  0x65   : > { %s5766_s30 = scalar_lea.hbm %s8486_s7, 16 }
  0x66   : > { %p5767_p13 = scmp.ne.s32.totalorder %s8486_s7, %s5766_s30  ;;  %p5773_p5 = scmp.lt.u32.totalorder %s5766_s30, %s8486_s7 }
  0x68   : > { %p5769_p0 = pnand %p5767_p13, %p6289_p8 }
  0x6a   : > { %p5770_p2 = pneg %p5769_p0 }
  0x6c   : > { %p5775_p7 = pnand %p5773_p5, %p5770_p2 }
  0x6e   : > { %5778 = shalt.err (!%p5775_p7)
}
  0x6f   : > { %s5779_s20 = scalar_lea.vmem %s428_s24, 16  ;;  %s5786_s15 = scalar_lea.vmem %s428_s24, 32 }
  0x70   : > { %p5780_p9 = scmp.ne.s32.totalorder %s428_s24, %s5779_s20  ;;  %p5787_p12 = scmp.lt.s32.totalorder %s428_s24, %s428_s24 }
  0x71   : > { %p5788_p4 = scmp.lt.s32.totalorder %s5786_s15, %s5779_s20 }
  0x72   : > { %p5782_p10 = pnand %p5780_p9, %p6289_p8 }
  0x73   : > { %p5789_p1 = por %p5788_p4, %p5787_p12 }
  0x74   : > { %p5783_p11 = pneg %p5782_p10 }
  0x76   : > { %p5790_p3 = pnand %p5789_p1, %p5783_p11 }
  0x78   : > { %5793 = shalt.err (!%p5790_p3)
}
  0x79   : > { %5080 = dma.hbm_to_vmem [thread:$0]  (!%p6275_p6), %s8486_s7, 16, %s428_s24, [#allocation15]  }
  0x7a   : > { %s5794_s23 = scalar_lea.hbm %s8488_s9, 4096 }
  0x7b   : > { %p5795_p13 = scmp.ne.s32.totalorder %s8488_s9, %s5794_s23  ;;  %p5801_p3 = scmp.lt.u32.totalorder %s5794_s23, %s8488_s9 }
  0x7d   : > { %p5797_p0 = pnand %p5795_p13, %p6289_p8 }
  0x7f   : > { %p5798_p1 = pneg %p5797_p0 }
  0x81   : > { %p5803_p2 = pnand %p5801_p3, %p5798_p1 }
  0x83   : > { %5806 = shalt.err (!%p5803_p2)
}
  0x84   : > { %s5807_s17 = scalar_lea.vmem %s449_s19, 4096  ;;  %p5815_p10 = scmp.lt.s32.totalorder %s449_s19, %s449_s19 }
  0x85   : > { %p5808_p5 = scmp.ne.s32.totalorder %s449_s19, %s5807_s17  ;;  %p5816_p11 = scmp.lt.s32.totalorder %s5807_s17, %s5807_s17 }
  0x87   : > { %p5810_p7 = pnand %p5808_p5, %p6289_p8  ;;  %p5817_p12 = por %p5816_p11, %p5815_p10 }
  0x89   : > { %p5811_p9 = pneg %p5810_p7 }
  0x8b   : > { %p5818_p4 = pnand %p5817_p12, %p5811_p9 }
  0x8d   : > { %5821 = shalt.err (!%p5818_p4)
}
  0x8e   : > { %s6149_s24 = smov 256   ;;  %s6150_s20 = smov 16  }
  0x8f   : > { %5086 = dma.hbm_to_vmem [thread:$0]  (!%p6275_p6), %s8488_s9, 4096, %s449_s19, [#allocation18], %s6149_s24, %s6149_s24, %s6150_s20  }
  0x90   : > { %s6151_s13 = smov [#allocation20]   ;;  %s6152_s14 = smov [#allocation7]  }
  0x91   : > { %s472_s25 = sshll.u32 %s6151_s13, 4  ;;  %s368_s23 = sshll.u32 %s6152_s14, 4  ;;  %s473_s25 = int_to_ptr.vmem [resolvable:$true] %s472_s25  ;;  %s369_s23 = int_to_ptr.vmem [resolvable:$true] %s368_s23 }
  0x92   : > { %s5822_s22 = scalar_lea.hbm %s8490_s11, 4096 }
  0x93   : > { %p5823_p13 = scmp.ne.s32.totalorder %s8490_s11, %s5822_s22  ;;  %p5829_p3 = scmp.lt.u32.totalorder %s5822_s22, %s8490_s11 }
  0x95   : > { %p5825_p0 = pnand %p5823_p13, %p6289_p8 }
  0x97   : > { %p5826_p1 = pneg %p5825_p0 }
  0x99   : > { %p5831_p2 = pnand %p5829_p3, %p5826_p1 }
  0x9b   : > { %5834 = shalt.err (!%p5831_p2)
}
  0x9c   : > { %s5835_s19 = scalar_lea.vmem %s473_s25, 4096  ;;  %p5843_p10 = scmp.lt.s32.totalorder %s473_s25, %s473_s25 }
  0x9d   : > { %p5836_p5 = scmp.ne.s32.totalorder %s473_s25, %s5835_s19  ;;  %p5844_p11 = scmp.lt.s32.totalorder %s5835_s19, %s5835_s19 }
  0x9f   : > { %p5838_p7 = pnand %p5836_p5, %p6289_p8  ;;  %p5845_p12 = por %p5844_p11, %p5843_p10 }
  0xa1   : > { %p5839_p9 = pneg %p5838_p7 }
  0xa3   : > { %p5846_p4 = pnand %p5845_p12, %p5839_p9 }
  0xa5   : > { %5849 = shalt.err (!%p5846_p4)
}
  0xa6   : > { %s8567_s24 = smov 4   ;;  %s8568_s20 = smov 64  }
  0xa7   : > { %5092 = dma.hbm_to_vmem [thread:$0]  (!%p6275_p6), %s8490_s11, 4096, %s473_s25, [#allocation21], %s8568_s20, %s8568_s20, %s8567_s24  }
  0xa8   : > { %s5850_s13 = scalar_lea.hbm %s8481_s2, 16 }
  0xa9   : > { %p5851_p13 = scmp.ne.s32.totalorder %s8481_s2, %s5850_s13  ;;  %p5857_p3 = scmp.lt.u32.totalorder %s5850_s13, %s8481_s2 }
  0xab   : > { %p5853_p0 = pnand %p5851_p13, %p6289_p8 }
  0xad   : > { %p5854_p1 = pneg %p5853_p0 }
  0xaf   : > { %p5859_p2 = pnand %p5857_p3, %p5854_p1 }
  0xb1   : > { %5862 = shalt.err (!%p5859_p2)
}
  0xb2   : > { %s5863_s30 = scalar_lea.vmem %s369_s23, 16  ;;  %s5870_s25 = scalar_lea.vmem %s369_s23, 32 }
  0xb3   : > { %p5864_p5 = scmp.ne.s32.totalorder %s369_s23, %s5863_s30  ;;  %p5871_p10 = scmp.lt.s32.totalorder %s369_s23, %s369_s23 }
  0xb4   : > { %p5872_p11 = scmp.lt.s32.totalorder %s5870_s25, %s5863_s30 }
  0xb5   : > { %p5866_p7 = pnand %p5864_p5, %p6289_p8 }
  0xb6   : > { %p5873_p12 = por %p5872_p11, %p5871_p10 }
  0xb7   : > { %p5867_p9 = pneg %p5866_p7 }
  0xb9   : > { %p5874_p4 = pnand %p5873_p12, %p5867_p9 }
  0xbb   : > { %5877 = shalt.err (!%p5874_p4)
}
  0xbc   : > { %5065 = dma.hbm_to_vmem [thread:$0]  (!%p6275_p6), %s8481_s2, 16, %s369_s23, [#allocation6]  }
  0xbd   : > { %s6153_s24 = smov [#allocation10]   ;;  %s6154_s0 = smov [#allocation13]  }
  0xbe   : > { %s392_s20 = sshll.u32 %s6153_s24, 4  ;;  %s416_s1 = sshll.u32 %s6154_s0, 4  ;;  %s393_s20 = int_to_ptr.vmem [resolvable:$true] %s392_s20  ;;  %s417_s1 = int_to_ptr.vmem [resolvable:$true] %s416_s1 }
  0xbf   : > { %s5878_s13 = scalar_lea.hbm %s8483_s4, 48 }
  0xc0   : > { %p5879_p13 = scmp.ne.s32.totalorder %s8483_s4, %s5878_s13  ;;  %p5885_p3 = scmp.lt.u32.totalorder %s5878_s13, %s8483_s4 }
  0xc2   : > { %p5881_p0 = pnand %p5879_p13, %p6289_p8 }
  0xc4   : > { %p5882_p1 = pneg %p5881_p0 }
  0xc6   : > { %p5887_p2 = pnand %p5885_p3, %p5882_p1 }
  0xc8   : > { %5890 = shalt.err (!%p5887_p2)
}
  0xc9   : > { %s5891_s23 = scalar_lea.vmem %s393_s20, 48  ;;  %s5898_s30 = scalar_lea.vmem %s393_s20, 64 }
  0xca   : > { %p5892_p5 = scmp.ne.s32.totalorder %s393_s20, %s5891_s23  ;;  %p5899_p10 = scmp.lt.s32.totalorder %s393_s20, %s393_s20 }
  0xcb   : > { %p5900_p11 = scmp.lt.s32.totalorder %s5898_s30, %s5891_s23 }
  0xcc   : > { %p5894_p7 = pnand %p5892_p5, %p6289_p8 }
  0xcd   : > { %p5901_p12 = por %p5900_p11, %p5899_p10 }
  0xce   : > { %p5895_p9 = pneg %p5894_p7 }
  0xd0   : > { %p5902_p4 = pnand %p5901_p12, %p5895_p9 }
  0xd2   : > { %5905 = shalt.err (!%p5902_p4)
}
  0xd3   : > { %5071 = dma.hbm_to_vmem [thread:$0]  (!%p6275_p6), %s8483_s4, 48, %s393_s20, [#allocation9]  }
  0xd4   : > { %s5906_s0 = scalar_lea.hbm %s8485_s6, 16 }
  0xd5   : > { %p5907_p13 = scmp.ne.s32.totalorder %s8485_s6, %s5906_s0  ;;  %p5913_p3 = scmp.lt.u32.totalorder %s5906_s0, %s8485_s6 }
  0xd7   : > { %p5909_p0 = pnand %p5907_p13, %p6289_p8 }
  0xd9   : > { %p5910_p1 = pneg %p5909_p0 }
  0xdb   : > { %p5915_p2 = pnand %p5913_p3, %p5910_p1 }
  0xdd   : > { %5918 = shalt.err (!%p5915_p2)
}
  0xde   : > { %s5919_s29 = scalar_lea.vmem %s417_s1, 16  ;;  %s5926_s20 = scalar_lea.vmem %s417_s1, 32 }
  0xdf   : > { %p5920_p5 = scmp.ne.s32.totalorder %s417_s1, %s5919_s29  ;;  %p5927_p10 = scmp.lt.s32.totalorder %s417_s1, %s417_s1 }
  0xe0   : > { %p5928_p11 = scmp.lt.s32.totalorder %s5926_s20, %s5919_s29 }
  0xe1   : > { %p5922_p7 = pnand %p5920_p5, %p6289_p8 }
  0xe2   : > { %p5929_p12 = por %p5928_p11, %p5927_p10 }
  0xe3   : > { %p5923_p9 = pneg %p5922_p7 }
  0xe5   : > { %p5930_p4 = pnand %p5929_p12, %p5923_p9 }
  0xe7   : > { %5933 = shalt.err (!%p5930_p4)
}
  0xe8   : > { %5077 = dma.hbm_to_vmem [thread:$0]  (!%p6275_p6), %s8485_s6, 16, %s417_s1, [#allocation12]  }
  0xe9   : > { %s6155_s23 = smov [#allocation16]   ;;  %s6156_s25 = smov [#allocation19]  }
  0xea   : > { %s438_s30 = sshll.u32 %s6155_s23, 4  ;;  %s462_s17 = sshll.u32 %s6156_s25, 4  ;;  %s439_s30 = int_to_ptr.vmem [resolvable:$true] %s438_s30  ;;  %s463_s17 = int_to_ptr.vmem [resolvable:$true] %s462_s17 }
  0xeb   : > { %s5934_s0 = scalar_lea.hbm %s8487_s8, 16 }
  0xec   : > { %p5935_p13 = scmp.ne.s32.totalorder %s8487_s8, %s5934_s0  ;;  %p5941_p3 = scmp.lt.u32.totalorder %s5934_s0, %s8487_s8 }
  0xee   : > { %p5937_p0 = pnand %p5935_p13, %p6289_p8 }
  0xf0   : > { %p5938_p1 = pneg %p5937_p0 }
  0xf2   : > { %p5943_p2 = pnand %p5941_p3, %p5938_p1 }
  0xf4   : > { %5946 = shalt.err (!%p5943_p2)
}
  0xf5   : > { %s5947_s1 = scalar_lea.vmem %s439_s30, 16  ;;  %s5954_s29 = scalar_lea.vmem %s439_s30, 32 }
  0xf6   : > { %p5948_p5 = scmp.ne.s32.totalorder %s439_s30, %s5947_s1  ;;  %p5955_p10 = scmp.lt.s32.totalorder %s439_s30, %s439_s30 }
  0xf7   : > { %p5956_p11 = scmp.lt.s32.totalorder %s5954_s29, %s5947_s1 }
  0xf8   : > { %p5950_p7 = pnand %p5948_p5, %p6289_p8 }
  0xf9   : > { %p5957_p12 = por %p5956_p11, %p5955_p10 }
  0xfa   : > { %p5951_p9 = pneg %p5950_p7 }
  0xfc   : > { %p5958_p4 = pnand %p5957_p12, %p5951_p9 }
  0xfe   : > { %5961 = shalt.err (!%p5958_p4)
}
  0xff   : > { %5083 = dma.hbm_to_vmem [thread:$0]  (!%p6275_p6), %s8487_s8, 16, %s439_s30, [#allocation15]  }
 0x100   : > { %s5962_s25 = scalar_lea.hbm %s8489_s10, 64 }
 0x101   : > { %p5963_p13 = scmp.ne.s32.totalorder %s8489_s10, %s5962_s25  ;;  %p5969_p3 = scmp.lt.u32.totalorder %s5962_s25, %s8489_s10 }
 0x103   : > { %p5965_p0 = pnand %p5963_p13, %p6289_p8 }
 0x105   : > { %p5966_p1 = pneg %p5965_p0 }
 0x107   : > { %p5971_p2 = pnand %p5969_p3, %p5966_p1 }
 0x109   : > { %5974 = shalt.err (!%p5971_p2)
}
 0x10a   : > { %s5975_s3 = scalar_lea.vmem %s463_s17, 64  ;;  %p5983_p10 = scmp.lt.s32.totalorder %s463_s17, %s463_s17 }
 0x10b   : > { %p5976_p5 = scmp.ne.s32.totalorder %s463_s17, %s5975_s3  ;;  %p5984_p11 = scmp.lt.s32.totalorder %s5975_s3, %s5975_s3 }
 0x10d   : > { %p5978_p7 = pnand %p5976_p5, %p6289_p8  ;;  %p5985_p12 = por %p5984_p11, %p5983_p10 }
 0x10f   : > { %p5979_p9 = pneg %p5978_p7 }
 0x111   : > { %p5986_p4 = pnand %p5985_p12, %p5979_p9 }
 0x113   : > { %5989 = shalt.err (!%p5986_p4)
}
 0x114   : > { %5089 = dma.hbm_to_vmem [thread:$0]  (!%p6275_p6), %s8489_s10, 64, %s463_s17, [#allocation18]  }
 0x115   : > { %s6157_s14 = smov [#allocation22]   ;;  %s5990_s21 = scalar_lea.hbm %s8491_s12, 16 }
 0x116   : > { %s486_s1 = sshll.u32 %s6157_s14, 4  ;;  %p5991_p13 = scmp.ne.s32.totalorder %s8491_s12, %s5990_s21  ;;  %s487_s1 = int_to_ptr.vmem [resolvable:$true] %s486_s1 }
 0x117   : > { %p5997_p3 = scmp.lt.u32.totalorder %s5990_s21, %s8491_s12 }
 0x118   : > { %p5993_p0 = pnand %p5991_p13, %p6289_p8 }
 0x11a   : > { %p5994_p1 = pneg %p5993_p0 }
 0x11c   : > { %p5999_p2 = pnand %p5997_p3, %p5994_p1 }
 0x11e   : > { %6002 = shalt.err (!%p5999_p2)
}
 0x11f   : > { %s6003_s17 = scalar_lea.vmem %s487_s1, 16  ;;  %s6010_s24 = scalar_lea.vmem %s487_s1, 32 }
 0x120   : > { %p6004_p5 = scmp.ne.s32.totalorder %s487_s1, %s6003_s17  ;;  %p6011_p10 = scmp.lt.s32.totalorder %s487_s1, %s487_s1 }
 0x121   : > { %p6012_p11 = scmp.lt.s32.totalorder %s6010_s24, %s6003_s17 }
 0x122   : > { %p6006_p7 = pnand %p6004_p5, %p6289_p8 }
 0x123   : > { %p6013_p12 = por %p6012_p11, %p6011_p10 }
 0x124   : > { %p6007_p9 = pneg %p6006_p7 }
 0x126   : > { %p6014_p4 = pnand %p6013_p12, %p6007_p9 }
 0x128   : > { %6017 = shalt.err (!%p6014_p4)
}
 0x129   : > { %s8569_s16 = sld [smem:[#allocation32_spill]]  ;;  %s8570_s3 = sld [smem:[#allocation33_spill]] }
 0x12a   : > { %5095 = dma.hbm_to_vmem [thread:$0]  (!%p6275_p6), %s8491_s12, 16, %s487_s1, [#allocation21]  }
 0x12b   : > { %s4401_s30 = sadd.s32 4294967294, %s6138_s28   ;;  %s6527_s18 = sadd.s32 1, %s6138_s28  }
 0x12c   : > { %s39_s13 = ssub.s32 %s6138_s28, %s6527_s18  ;;  %s42_s14 = sadd.s32 1, %s6134_s27 }
 0x12d   : > { %p40_p8 = scmp.eq.s32.totalorder %s39_s13, 0  ;;  %p49_p13 = scmp.ne.s32.totalorder %s6134_s27, %s6130_s26 }
 0x12e   : > { %p50_p0 = scmp.eq.s32.totalorder %s6138_s28, 0  ;;  %p337_p7 = scmp.eq.s32.totalorder %s4401_s30, 1 }
 0x12f   : > { %p55_p1 = scmp.ne.s32.totalorder %s6130_s26, %s8569_s16  ;;  %p8572_p2 = scmp.eq.s32.totalorder %s8570_s3, 0 }
 0x130   : > { %s6538_s29 = scalar_select %p40_p8, %s6134_s27, %s42_s14  }
 0x131   : > { %p6540_p3 = por %p50_p0, %p49_p13  ;;  %p6546_p6 = por %p8572_p2, %p55_p1 }
 0x132   : > { %p331_p5 = scmp.eq.s32.totalorder %s8570_s3, 1  ;;  %p5116_p9 = scmp.lt.s32.totalorder %s6138_s28, 2 }
 0x133   : > { %s497_s21 = sand.u32 1, %s6134_s27   ;;  %p6557_p11 = por %p337_p7, %p55_p1 }
 0x134   : > { %p6553_p10 = por %p331_p5, %p49_p13  ;;  %s4416_s25 = sshll.u32 %s497_s21, 7 }
 0x135   : > { %s8575_s23 = scalar_select %p6557_p11, 1, 0 }
 0x136   : > { %s8574_s22 = scalar_select %p6553_p10, 1, 0 }
 0x137   : > { %s4557_s19 = sshll.u32 %s6138_s28, 11  ;;  %s8576_s0 = sld [smem:[#allocation79_spill]] }
 0x138   : > { %s501_s16 = scalar_lea.vmem [#allocation2], %s4416_s25  ;;  %p6571_p12 = pnand %p5116_p9, %p6540_p3 }
 0x139   : > { %s508_s3 = sshll.u32 %s501_s16, 4  ;;  %s6575_s13 = scalar_lea.sflag [#allocation3], %s497_s21  ;;  %s6567_s3 = int_to_ptr.vmem [resolvable:$true] %s508_s3 }
 0x13a   : > { %p6020_p8 = pneg %p6571_p12 }
 0x13d   : > { %s6565_s15 = scalar_lea.hbm %s8576_s0, %s4557_s19  ;;  %s6023_s20 = scalar_lea.hbm %s8576_s0, 4096 }
 0x13e   : > { %s6018_s14 = scalar_lea.hbm %s6565_s15, 2048  ;;  %p6024_p1 = scmp.lt.u32.totalorder %s6565_s15, %s8576_s0 }
 0x13f   : > { %p6019_p4 = scmp.ne.s32.totalorder %s6565_s15, %s6018_s14  ;;  %p6025_p3 = scmp.lt.u32.totalorder %s6023_s20, %s6018_s14 }
 0x140   : > { %p6027_p5 = scmp.lt.u32.totalorder %s6018_s14, %s6565_s15 }
 0x141   : > { %p6021_p13 = pnand %p6020_p8, %p6019_p4  ;;  %p6026_p2 = por %p6025_p3, %p6024_p1 }
 0x143   : > { %p6022_p0 = pneg %p6021_p13  ;;  %p6028_p7 = por %p6027_p5, %p6026_p2 }
 0x145   : > { %p6029_p9 = pnand %p6028_p7, %p6022_p0 }
 0x147   : > { %6032 = shalt.err (!%p6029_p9)
}
 0x148   : > { %s6033_s21 = scalar_lea.vmem %s6567_s3, 2048  ;;  %s6158_s16 = smov [#allocation2]  }
 0x149   : > { %p6034_p4 = scmp.ne.s32.totalorder %s6567_s3, %s6033_s21  ;;  %s6038_s25 = sshll.u32 %s6158_s16, 4  ;;  %s6039_s25 = int_to_ptr.vmem [resolvable:$false] %s6038_s25 }
 0x14a   : > { %s6040_s19 = scalar_lea.vmem %s6039_s25, 4096  ;;  %p6041_p10 = scmp.lt.s32.totalorder %s6567_s3, %s6039_s25 }
 0x14b   : > { %p6036_p13 = pnand %p6034_p4, %p6020_p8  ;;  %p6042_p1 = scmp.lt.s32.totalorder %s6040_s19, %s6033_s21 }
 0x14d   : > { %p6037_p11 = pneg %p6036_p13  ;;  %p6043_p3 = por %p6042_p1, %p6041_p10 }
 0x14f   : > { %p6044_p2 = pnand %p6043_p3, %p6037_p11 }
 0x151   : > { %6047 = shalt.err (!%p6044_p2)
}
 0x152   : > { %s6159_s14 = smov 128   ;;  %s6160_s20 = smov 8  }
 0x153   : > { %5099 = dma.hbm_to_vmem [thread:$0]  (!%p6571_p12), %s6565_s15, 2048, %s6567_s3, %s6575_s13, %s6159_s14, %s6159_s14, %s6160_s20  }
 0x154   : > { %s8578_s17 = sld [smem:[#allocation34_spill]] }
 0x15a   : > { %p8579_p8 = scmp.ne.s32.totalorder %s8578_s17, 0 }
 0x15c   : > { %520 = sbr.rel (%p8579_p8) target bundleno = 3351 (0xd17), region = 72 }
 0x163   : > { %s6606_s24 = sand.u32 1, %s6130_s26  }
 0x164   : > { %s4420_s21 = sshll.u32 %s6606_s24, 7  ;;  %s523_s16 = scalar_lea.sflag [#allocation3], %s6606_s24 }
 0x165   : > { %s6612_s25 = scalar_lea.vmem [#allocation2], %s4420_s21 }
 0x166   : > { %6093 = dma.done.wait (%p6546_p6), %s523_s16, 2048  }
 0x167   : > { %6095 = vsyncadd (%p6546_p6), %s523_s16, 4294965248  ;;  %s8580_s15 = sld [smem:[#allocation33_spill]] }
 0x16d   : > { %p8581_p10 = scmp.eq.s32.totalorder %s8580_s15, 0 }
 0x16f   : > { %6097 = dma.done.wait (%p8581_p10), [#allocation6], 32   ;;  %p8582_p11 = pmov %p8581_p10 }
 0x170   : > { %p8583_p12 = pmov %p8581_p10 }
 0x171   : > { %6099 = vsyncadd (%p8582_p11), [#allocation6], 4294967264 }
 0x172   : > { %6101 = dma.done.wait (%p8583_p12), [#allocation9], 3120   ;;  %p8584_p0 = pmov %p8581_p10 }
 0x174   : > { %6103 = vsyncadd (%p8584_p0), [#allocation9], 4294964176  ;;  %p8585_p5 = pmov %p8584_p0 }
 0x175   : > { %p8586_p7 = pmov %p8584_p0 }
 0x176   : > { %6105 = dma.done.wait (%p8585_p5), [#allocation12], 1040  }
 0x177   : > { %6107 = vsyncadd (%p8586_p7), [#allocation12], 4294966256  ;;  %p8587_p6 = pmov %p8584_p0 }
 0x178   : > { %p8588_p9 = pmov %p8584_p0 }
 0x179   : > { %6109 = dma.done.wait (%p8587_p6), [#allocation15], 32  }
 0x17a   : > { %6111 = vsyncadd (%p8588_p9), [#allocation15], 4294967264  ;;  %p8589_p4 = pmov %p8584_p0 }
 0x17b   : > { %p8590_p13 = pmov %p8584_p0 }
 0x17c   : > { %6113 = dma.done.wait (%p8589_p4), [#allocation18], 4160  }
 0x17d   : > { %6115 = vsyncadd (%p8590_p13), [#allocation18], 4294963136  ;;  %p8591_p1 = pmov %p8584_p0 }
 0x17e   : > { %p8592_p3 = pmov %p8584_p0 }
 0x17f   : > { %6117 = dma.done.wait (%p8591_p1), [#allocation21], 4112  }
 0x180   : > { %6119 = vsyncadd (%p8592_p3), [#allocation21], 4294963184  ;;  %v618_v0 = vld [vmem:[%s6612_s25] sm:$0xff]  ;;  %v620_v1 = vld [vmem:[%s6612_s25 + $0x10] sm:$0xff]  ;;  %vm1276_vm0 = vcmask 523264   ;;  %s6162_s1 = smov 64  }
 0x181   : > { %636 = vadd.xlane.f32.xlu0 %v618_v0  ;;  %640 = vadd.xlane.f32.xlu1 %v620_v1  ;;  %v619_v2 = vld [vmem:[%s6612_s25 + $0x8] sm:$0xff]  ;;  %v621_v3 = vld [vmem:[%s6612_s25 + $0x18] sm:$0xff]  ;;  %v622_v4 = vld [vmem:[%s6612_s25 + $0x20] sm:$0xff]  ;;  %s8381_s3 = scalar_lea.vmem [#allocation23], %s4420_s21  ;;  %s4558_s30 = sshll.u32 %s8580_s15, 11 }
 0x182   : > { %v623_v5 = vld [vmem:[%s6612_s25 + $0x28] sm:$0xff]  ;;  %v6649_v6 = vld [vmem:[%s6612_s25 + $0x30] sm:$0xff]  ;;  %v6652_v7 = vld [vmem:[%s6612_s25 + $0x38] sm:$0xff]  ;;  %s4214_s13 = sshll.u32 %s8381_s3, 4  ;;  %s8698_s20 = sld [smem:[#allocation82_spill]]  ;;  %s8432_s13 = int_to_ptr.vmem [resolvable:$true] %s4214_s13 }
 0x183   : > { %v6655_v8 = vld [vmem:[%s6612_s25 + $0x40] sm:$0xff]  ;;  %v6658_v9 = vld [vmem:[%s6612_s25 + $0x48] sm:$0xff]  ;;  %v6663_v10 = vld [vmem:[%s6612_s25 + $0x50] sm:$0xff]  ;;  %s4201_s21 = scalar_lea.sflag [#allocation4], %s6606_s24  ;;  %s6048_s16 = scalar_lea.vmem %s8432_s13, 2048 }
 0x184   : > { %v6666_v11 = vld [vmem:[%s6612_s25 + $0x58] sm:$0xff]  ;;  %v6671_v12 = vld [vmem:[%s6612_s25 + $0x60] sm:$0xff]  ;;  %v6674_v13 = vld [vmem:[%s6612_s25 + $0x68] sm:$0xff]  ;;  %p6049_p2 = scmp.ne.s32.totalorder %s8432_s13, %s6048_s16  ;;  %p8700_p8 = scmp.ne.s32.totalorder %s8574_s22, 0 }
 0x185   : > { %638 = vadd.xlane.f32.xlu0 %v619_v2  ;;  %642 = vadd.xlane.f32.xlu1 %v621_v3  ;;  %v6679_v14 = vld [vmem:[%s6612_s25 + $0x70] sm:$0xff]  ;;  %v6682_v15 = vld [vmem:[%s6612_s25 + $0x78] sm:$0xff]  ;;  %v5229_v18 = vld [vmem:[#allocation8 + $0x1c] ss:$12 sps:$4 sm:$0xff]  }
 0x186   : > { %v5226_v16 = vld [vmem:[#allocation8 + $0x4] ss:$12 sps:$4 sm:$0xff]   ;;  %v5228_v17 = vld [vmem:[#allocation8] ss:$12 sps:$4 sm:$0xff]   ;;  %v5231_v19 = vld [vmem:[#allocation8 + $0x8] ss:$12 sps:$4 sm:$0xff]   ;;  %p6050_p10 = pnand %p6049_p2, %p8700_p8 }
 0x187   : > { %1042 = vmatprep.subr.bf16.mxu0 %v5226_v16  ;;  %4783 = vmatprep.subr.bf16.mxu1 %v5231_v19  ;;  %v5232_v58 = vld [vmem:[#allocation8 + $0x18] ss:$12 sps:$4 sm:$0xff]  }
 0x188   : > { %1043 = vmatpush1.bf16.msra.mxu0 %v5228_v17  ;;  %4784 = vmatpush3.bf16.msra.mxu1 %v5231_v19  ;;  %v5239_v19 = vld [vmem:[#allocation8 + $0x38] ss:$12 sps:$4 sm:$0xff]   ;;  %s8430_s17 = scalar_lea.hbm %s8698_s20, %s4558_s30  ;;  %p6051_p11 = pneg %p6050_p10 }
 0x189   : > { %644 = vadd.xlane.f32.xlu0 %v622_v4  ;;  %646 = vadd.xlane.f32.xlu1 %v623_v5 }
 0x18a   : > { %1044 = vmatprep.subr.bf16.mxu0 %v5229_v18  ;;  %v5237_v18 = vld [vmem:[#allocation8 + $0x4c] ss:$12 sps:$4 sm:$0xff]  }
 0x18c   : > { %1045 = vmatpush1.bf16.msra.mxu0 %v5232_v58 }
 0x18d   : > { %648 = vadd.xlane.f32.xlu0 %v6649_v6  ;;  %650 = vadd.xlane.f32.xlu1 %v6652_v7 }
 0x191   : > { %652 = vadd.xlane.f32.xlu0 %v6655_v8  ;;  %654 = vadd.xlane.f32.xlu1 %v6658_v9 }
 0x195   : > { %656 = vadd.xlane.f32.xlu0 %v6663_v10  ;;  %658 = vadd.xlane.f32.xlu1 %v6666_v11 }
 0x199   : > { %660 = vadd.xlane.f32.xlu0 %v6671_v12  ;;  %662 = vadd.xlane.f32.xlu1 %v6674_v13 }
 0x19d   : > { %664 = vadd.xlane.f32.xlu0 %v6679_v14  ;;  %666 = vadd.xlane.f32.xlu1 %v6682_v15 }
 0x20e   : > { %v637_v20 = vpop.xlane.xlu0 %636  ;;  %v641_v21 = vpop.xlane.xlu1 %640 }
 0x20f   : > { %v669_v22 = vmul.f32 0.0078125, %v637_v20  ;;  %v671_v23 = vmul.f32 0.0078125, %v641_v21 }
 0x211   : > { %v6688_v24 = vsub.f32 %v618_v0, %v669_v22  ;;  %v6690_v25 = vsub.f32 %v620_v1, %v671_v23  ;;  %v5233_v0 = vld [vmem:[#allocation8 + $0x34] ss:$12 sps:$4 sm:$0xff]  }
 0x212   : > { %v639_v26 = vpop.xlane.xlu0 %638  ;;  %v643_v27 = vpop.xlane.xlu1 %642  ;;  %v5235_v1 = vld [vmem:[#allocation8 + $0x20] ss:$12 sps:$4 sm:$0xff]   ;;  %1046 = vmatprep.subr.bf16.mxu0 %v5233_v0  ;;  %v5240_v22 = vld [vmem:[#allocation8 + $0x48] ss:$12 sps:$4 sm:$0xff]  }
 0x213   : > { %v670_v28 = vmul.f32 0.0078125, %v639_v26  ;;  %v701_v29 = vmul.f32 %v6688_v24, %v6688_v24  ;;  %v672_v30 = vmul.f32 0.0078125, %v643_v27  ;;  %v703_v31 = vmul.f32 %v6690_v25, %v6690_v25  ;;  %4785 = vmatprep.subr.bf16.mxu1 %v5235_v1 }
 0x214   : > { %4786 = vmatpush3.bf16.msra.mxu1 %v5235_v1 }
 0x215   : > { %717 = vadd.xlane.f32.xlu0 %v701_v29  ;;  %v6696_v32 = vsub.f32 %v619_v2, %v670_v28  ;;  %v6698_v33 = vsub.f32 %v621_v3, %v672_v30  ;;  %4787 = vmatprep.subr.bf16.mxu1 %v5239_v19  ;;  %v5241_v29 = vld [vmem:[#allocation8 + $0x64] ss:$12 sps:$4 sm:$0xff]  }
 0x216   : > { %v645_v34 = vpop.xlane.xlu0 %644  ;;  %v647_v35 = vpop.xlane.xlu1 %646  ;;  %v5243_v30 = vld [vmem:[#allocation8 + $0x50] ss:$12 sps:$4 sm:$0xff]  }
 0x217   : > { %v673_v36 = vmul.f32 0.0078125, %v645_v34  ;;  %v702_v37 = vmul.f32 %v6696_v32, %v6696_v32  ;;  %v674_v38 = vmul.f32 0.0078125, %v647_v35  ;;  %v704_v39 = vmul.f32 %v6698_v33, %v6698_v33 }
 0x218   : > { %4788 = vmatpush3.bf16.msra.mxu1 %v5239_v19 }
 0x219   : > { %721 = vadd.xlane.f32.xlu0 %v703_v31  ;;  %719 = vadd.xlane.f32.xlu1 %v702_v37  ;;  %v6704_v40 = vsub.f32 %v622_v4, %v673_v36  ;;  %v6706_v41 = vsub.f32 %v623_v5, %v674_v38  ;;  %v5244_v31 = vld [vmem:[#allocation8 + $0x60] ss:$12 sps:$4 sm:$0xff]   ;;  %v5247_v36 = vld [vmem:[#allocation8 + $0x68] ss:$12 sps:$4 sm:$0xff]   ;;  %v5248_v37 = vld [vmem:[#allocation8 + $0x78] ss:$12 sps:$4 sm:$0xff]  }
 0x21a   : > { %v649_v42 = vpop.xlane.xlu0 %648  ;;  %v651_v43 = vpop.xlane.xlu1 %650  ;;  %4789 = vmatprep.subr.bf16.mxu1 %v5243_v30  ;;  %v5251_v38 = vld [vmem:[#allocation8 + $0x80] ss:$12 sps:$4 sm:$0xff]  }
 0x21b   : > { %v675_v44 = vmul.f32 0.0078125, %v649_v42  ;;  %v705_v45 = vmul.f32 %v6704_v40, %v6704_v40  ;;  %v676_v46 = vmul.f32 0.0078125, %v651_v43  ;;  %v706_v47 = vmul.f32 %v6706_v41, %v6706_v41  ;;  %v5253_v42 = vld [vmem:[#allocation8 + $0xac] ss:$12 sps:$4 sm:$0xff]  }
 0x21c   : > { %4790 = vmatpush3.bf16.msra.mxu1 %v5243_v30  ;;  %v5255_v43 = vld [vmem:[#allocation8 + $0x98] ss:$12 sps:$4 sm:$0xff]  }
 0x21d   : > { %723 = vadd.xlane.f32.xlu1 %v704_v39  ;;  %725 = vadd.xlane.f32.xlu0 %v705_v45  ;;  %v6713_v48 = vsub.f32 %v6649_v6, %v675_v44  ;;  %v6716_v49 = vsub.f32 %v6652_v7, %v676_v46  ;;  %v5236_v7 = vld [vmem:[#allocation8 + $0x30] ss:$12 sps:$4 sm:$0xff]   ;;  %v5256_v44 = vld [vmem:[#allocation8 + $0xa8] ss:$12 sps:$4 sm:$0xff]   ;;  %v6161_v46 = vmov 0  }
 0x21e   : > { %v653_v50 = vpop.xlane.xlu0 %652  ;;  %v655_v51 = vpop.xlane.xlu1 %654  ;;  %1047 = vmatpush1.bf16.msra.mxu0 %v5236_v7  ;;  %4791 = vmatprep.subr.bf16.mxu1 %v5247_v36  ;;  %v5252_v39 = vld [vmem:[#allocation8 + $0x90] ss:$12 sps:$4 sm:$0xff]  }
 0x21f   : > { %v677_v52 = vmul.f32 0.0078125, %v653_v50  ;;  %v707_v53 = vmul.f32 %v6713_v48, %v6713_v48  ;;  %v678_v54 = vmul.f32 0.0078125, %v655_v51  ;;  %v708_v55 = vmul.f32 %v6716_v49, %v6716_v49  ;;  %1048 = vmatprep.subr.bf16.mxu0 %v5237_v18  ;;  %v5257_v45 = vld [vmem:[#allocation8 + $0xb0] ss:$12 sps:$4 sm:$0xff]   ;;  %1074 = vmatprep.mubr.bf16.mxu0 %v6161_v46 }
 0x220   : > { %4792 = vmatpush3.bf16.msra.mxu1 %v5247_v36 }
 0x221   : > { %727 = vadd.xlane.f32.xlu1 %v706_v47  ;;  %729 = vadd.xlane.f32.xlu0 %v707_v53  ;;  %v6723_v56 = vsub.f32 %v6655_v8, %v677_v52  ;;  %v6726_v57 = vsub.f32 %v6658_v9, %v678_v54 }
 0x222   : > { %v657_v59 = vpop.xlane.xlu0 %656  ;;  %v659_v60 = vpop.xlane.xlu1 %658  ;;  %1049 = vmatpush1.bf16.msra.mxu0 %v5240_v22  ;;  %4793 = vmatprep.subr.bf16.mxu1 %v5251_v38  ;;  %v6764_v22 = vld [vmem:[#allocation5] ss:$0 sm:$0xff] }
 0x223   : > { %v679_v61 = vmul.f32 0.0078125, %v657_v59  ;;  %v709_v62 = vmul.f32 %v6723_v56, %v6723_v56  ;;  %v680_v63 = vmul.f32 0.0078125, %v659_v60  ;;  %v710_v2 = vmul.f32 %v6726_v57, %v6726_v57  ;;  %1050 = vmatprep.subr.bf16.mxu0 %v5241_v29 }
 0x224   : > { %4794 = vmatpush3.bf16.msra.mxu1 %v5251_v38 }
 0x225   : > { %731 = vadd.xlane.f32.xlu1 %v708_v55  ;;  %733 = vadd.xlane.f32.xlu0 %v709_v62  ;;  %v6733_v3 = vsub.f32 %v6663_v10, %v679_v61  ;;  %v6736_v4 = vsub.f32 %v6666_v11, %v680_v63 }
 0x226   : > { %v661_v5 = vpop.xlane.xlu0 %660  ;;  %v663_v6 = vpop.xlane.xlu1 %662  ;;  %1051 = vmatpush1.bf16.msra.mxu0 %v5244_v31  ;;  %4795 = vmatprep.subr.bf16.mxu1 %v5255_v43 }
 0x227   : > { %v681_v8 = vmul.f32 0.0078125, %v661_v5  ;;  %v711_v9 = vmul.f32 %v6733_v3, %v6733_v3  ;;  %v682_v16 = vmul.f32 0.0078125, %v663_v6  ;;  %v712_v10 = vmul.f32 %v6736_v4, %v6736_v4 }
 0x228   : > { %4796 = vmatpush3.bf16.msra.mxu1 %v5255_v43 }
 0x229   : > { %735 = vadd.xlane.f32.xlu1 %v710_v2  ;;  %737 = vadd.xlane.f32.xlu0 %v711_v9  ;;  %v6743_v11 = vsub.f32 %v6671_v12, %v681_v8  ;;  %v6746_v17 = vsub.f32 %v6674_v13, %v682_v16 }
 0x22a   : > { %v665_v20 = vpop.xlane.xlu0 %664  ;;  %v667_v21 = vpop.xlane.xlu1 %666  ;;  %4797 = vmatprep.subr.bf16.mxu1 %v5257_v45 }
 0x22b   : > { %v683_v23 = vmul.f32 0.0078125, %v665_v20  ;;  %v713_v26 = vmul.f32 %v6743_v11, %v6743_v11  ;;  %v684_v27 = vmul.f32 0.0078125, %v667_v21  ;;  %v714_v12 = vmul.f32 %v6746_v17, %v6746_v17 }
 0x22c   : > { %4798 = vmatpush3.bf16.msra.mxu1 %v5257_v45 }
 0x22d   : > { %739 = vadd.xlane.f32.xlu1 %v712_v10  ;;  %741 = vadd.xlane.f32.xlu0 %v713_v26  ;;  %v6753_v13 = vsub.f32 %v6679_v14, %v683_v23  ;;  %v6756_v28 = vsub.f32 %v6682_v15, %v684_v27  ;;  %v5245_v14 = vld [vmem:[#allocation8 + $0x7c] ss:$12 sps:$4 sm:$0xff]   ;;  %v5249_v15 = vld [vmem:[#allocation8 + $0x94] ss:$12 sps:$4 sm:$0xff]  }
 0x22e   : > { %1052 = vmatprep.subr.bf16.mxu0 %v5245_v14 }
 0x22f   : > { %v715_v34 = vmul.f32 %v6753_v13, %v6753_v13  ;;  %v716_v35 = vmul.f32 %v6756_v28, %v6756_v28  ;;  %1053 = vmatpush1.bf16.msra.mxu0 %v5248_v37 }
 0x230   : > { %1054 = vmatprep.subr.bf16.mxu0 %v5249_v15 }
 0x231   : > { %743 = vadd.xlane.f32.xlu1 %v714_v12  ;;  %745 = vadd.xlane.f32.xlu0 %v715_v34 }
 0x233   : > { %1055 = vmatpush1.bf16.msra.mxu0 %v5252_v39 }
 0x234   : > { %1056 = vmatprep.subr.bf16.mxu0 %v5253_v42 }
 0x235   : > { %747 = vadd.xlane.f32.xlu1 %v716_v35 }
 0x237   : > { %1057 = vmatpush1.bf16.msra.mxu0 %v5256_v44 }
 0x2a2   : > { %v718_v47 = vpop.xlane.xlu0 %717 }
 0x2a3   : > { %v749_v50 = vmul.f32 0.0078125, %v718_v47 }
 0x2a5   : > { %v765_v51 = vadd.f32 1e-06, %v749_v50 }
 0x2a6   : > { %v720_v52 = vpop.xlane.xlu1 %719  ;;  %v722_v53 = vpop.xlane.xlu0 %721 }
 0x2a7   : > { %5346 = vrsqrt.f32 %v765_v51  ;;  %v750_v54 = vmul.f32 0.0078125, %v720_v52  ;;  %v751_v55 = vmul.f32 0.0078125, %v722_v53 }
 0x2a9   : > { %v766_v58 = vadd.f32 1e-06, %v750_v54  ;;  %v767_v59 = vadd.f32 1e-06, %v751_v55 }
 0x2aa   : > { %v724_v60 = vpop.xlane.xlu1 %723  ;;  %v726_v61 = vpop.xlane.xlu0 %725 }
 0x2ab   : > { %5348 = vrsqrt.f32 %v766_v58  ;;  %v752_v62 = vmul.f32 0.0078125, %v724_v60  ;;  %v753_v63 = vmul.f32 0.0078125, %v726_v61 }
 0x2ac   : > { %5350 = vrsqrt.f32 %v767_v59 }
 0x2ad   : > { %v768_v0 = vadd.f32 1e-06, %v752_v62  ;;  %v769_v1 = vadd.f32 1e-06, %v753_v63 }
 0x2ae   : > { %v728_v2 = vpop.xlane.xlu1 %727  ;;  %v730_v5 = vpop.xlane.xlu0 %729 }
 0x2af   : > { %5352 = vrsqrt.f32 %v768_v0  ;;  %v754_v6 = vmul.f32 0.0078125, %v728_v2  ;;  %v755_v7 = vmul.f32 0.0078125, %v730_v5 }
 0x2b0   : > { %5354 = vrsqrt.f32 %v769_v1 }
 0x2b1   : > { %v5347_v8 = vpop.eup %5346  ;;  %v770_v9 = vadd.f32 1e-06, %v754_v6  ;;  %v771_v16 = vadd.f32 1e-06, %v755_v7 }
 0x2b2   : > { %v732_v10 = vpop.xlane.xlu1 %731  ;;  %v734_v18 = vpop.xlane.xlu0 %733  ;;  %v797_v19 = vmul.f32 %v5347_v8, %v6688_v24  ;;  %v6768_v24 = vld [vmem:[#allocation7] ss:$0 sm:$0xff] }
 0x2b3   : > { %5356 = vrsqrt.f32 %v770_v9  ;;  %v756_v20 = vmul.f32 0.0078125, %v732_v10  ;;  %v757_v21 = vmul.f32 0.0078125, %v734_v18 }
 0x2b4   : > { %5358 = vrsqrt.f32 %v771_v16  ;;  %v819_v34 = vmul.f32 %v6764_v22, %v797_v19 }
 0x2b5   : > { %v5349_v23 = vpop.eup %5348  ;;  %v772_v26 = vadd.f32 1e-06, %v756_v20  ;;  %v773_v27 = vadd.f32 1e-06, %v757_v21 }
 0x2b6   : > { %v5351_v12 = vpop.eup %5350  ;;  %v736_v29 = vpop.xlane.xlu1 %735  ;;  %v798_v31 = vmul.f32 %v5349_v23, %v6696_v32  ;;  %v841_v45 = vadd.f32 %v6768_v24, %v819_v34 }
 0x2b7   : > { %v738_v30 = vpop.xlane.xlu0 %737  ;;  %5360 = vrsqrt.f32 %v772_v26  ;;  %v758_v35 = vmul.f32 0.0078125, %v736_v29  ;;  %v799_v36 = vmul.f32 %v5351_v12, %v6690_v25 }
 0x2b8   : > { %v759_v14 = vmul.f32 0.0078125, %v738_v30  ;;  %5362 = vrsqrt.f32 %v773_v27  ;;  %v820_v37 = vmul.f32 %v6764_v22, %v798_v31 }
 0x2b9   : > { %v5353_v15 = vpop.eup %5352  ;;  %v774_v38 = vadd.f32 1e-06, %v758_v35  ;;  %v821_v42 = vmul.f32 %v6764_v22, %v799_v36 }
 0x2ba   : > { %v775_v39 = vadd.f32 1e-06, %v759_v14  ;;  %v5355_v43 = vpop.eup %5354  ;;  %v740_v44 = vpop.xlane.xlu1 %739  ;;  %v842_v47 = vadd.f32 %v6768_v24, %v820_v37  ;;  %v800_v50 = vmul.f32 %v5353_v15, %v6698_v33 }
 0x2bb   : > { %v742_v32 = vpop.xlane.xlu0 %741  ;;  %5364 = vrsqrt.f32 %v774_v38  ;;  %v760_v51 = vmul.f32 0.0078125, %v740_v44  ;;  %v801_v54 = vmul.f32 %v5355_v43, %v6704_v40  ;;  %v843_v60 = vadd.f32 %v6768_v24, %v821_v42 }
 0x2bc   : > { %v761_v25 = vmul.f32 0.0078125, %v742_v32  ;;  %5366 = vrsqrt.f32 %v775_v39  ;;  %v857_v52 = vpack.c.bf16 %v842_v47, %v841_v45  ;;  %v822_v53 = vmul.f32 %v6764_v22, %v800_v50 }
 0x2bd   : > { %v5357_v55 = vpop.eup %5356  ;;  %v776_v58 = vadd.f32 1e-06, %v760_v51  ;;  %v823_v1 = vmul.f32 %v6764_v22, %v801_v54 }
 0x2be   : > { %v777_v59 = vadd.f32 1e-06, %v761_v25  ;;  %v5359_v61 = vpop.eup %5358  ;;  %v744_v62 = vpop.xlane.xlu1 %743  ;;  %1075 = vmatmul.mubr.bf16.vlgmr.msra.gmra.mrb[0].mxu0 %v857_v52  ;;  %4799 = vmatprep.mubr.bf16.mxu1 %v857_v52  ;;  %v844_v33 = vadd.f32 %v6768_v24, %v822_v53  ;;  %v802_v0 = vmul.f32 %v5357_v55, %v6706_v41 }
 0x2bf   : > { %v746_v63 = vpop.xlane.xlu0 %745  ;;  %5368 = vrsqrt.f32 %v776_v58  ;;  %v762_v2 = vmul.f32 0.0078125, %v744_v62  ;;  %1084 = vmatprep.mubr.bf16.mxu0 %v6161_v46  ;;  %v803_v40 = vmul.f32 %v5359_v61, %v6713_v48  ;;  %v845_v19 = vadd.f32 %v6768_v24, %v823_v1 }
 0x2c0   : > { %v763_v5 = vmul.f32 0.0078125, %v746_v63  ;;  %5370 = vrsqrt.f32 %v777_v59  ;;  %v858_v6 = vpack.c.bf16 %v844_v33, %v843_v60  ;;  %v824_v7 = vmul.f32 %v6764_v22, %v802_v0 }
 0x2c1   : > { %v5361_v8 = vpop.eup %5360  ;;  %v778_v9 = vadd.f32 1e-06, %v762_v2  ;;  %v825_v10 = vmul.f32 %v6764_v22, %v803_v40 }
 0x2c2   : > { %v779_v16 = vadd.f32 1e-06, %v763_v5  ;;  %v5363_v18 = vpop.eup %5362  ;;  %v748_v41 = vpop.xlane.xlu1 %747  ;;  %4800 = vmatmul.mubr.bf16.vlgmr.msra.gmra.mrb[0].mxu1 %v858_v6  ;;  %v846_v20 = vadd.f32 %v6768_v24, %v824_v7  ;;  %v804_v21 = vmul.f32 %v5361_v8, %v6716_v49 }
 0x2c3   : > { %5372 = vrsqrt.f32 %v778_v9  ;;  %v764_v48 = vmul.f32 0.0078125, %v748_v41  ;;  %v805_v23 = vmul.f32 %v5363_v18, %v6723_v56  ;;  %v847_v30 = vadd.f32 %v6768_v24, %v825_v10 }
 0x2c4   : > { %5374 = vrsqrt.f32 %v779_v16  ;;  %v859_v26 = vpack.c.bf16 %v846_v20, %v845_v19  ;;  %v826_v27 = vmul.f32 %v6764_v22, %v804_v21 }
 0x2c5   : > { %v5365_v12 = vpop.eup %5364  ;;  %v780_v29 = vadd.f32 1e-06, %v764_v48  ;;  %v827_v49 = vmul.f32 %v6764_v22, %v805_v23 }
 0x2c6   : > { %v5367_v31 = vpop.eup %5366  ;;  %1085 = vmatmul.mubr.bf16.gmra.mrb[4].mxu0 %v858_v6  ;;  %4803 = vmatprep.mubr.bf16.mxu1 %v859_v26  ;;  %v848_v34 = vadd.f32 %v6768_v24, %v826_v27  ;;  %v806_v35 = vmul.f32 %v5365_v12, %v6726_v57 }
 0x2c7   : > { %5376 = vrsqrt.f32 %v780_v29  ;;  %1094 = vmatprep.mubr.bf16.mxu0 %v6161_v46  ;;  %v807_v56 = vmul.f32 %v5367_v31, %v6733_v3  ;;  %v849_v39 = vadd.f32 %v6768_v24, %v827_v49 }
 0x2c8   : > { %v860_v14 = vpack.c.bf16 %v848_v34, %v847_v30  ;;  %v828_v36 = vmul.f32 %v6764_v22, %v806_v35 }
 0x2c9   : > { %v5369_v37 = vpop.eup %5368  ;;  %v829_v15 = vmul.f32 %v6764_v22, %v807_v56 }
 0x2ca   : > { %v5371_v38 = vpop.eup %5370  ;;  %4804 = vmatmul.mubr.bf16.gmra.mrb[4].mxu1 %v860_v14  ;;  %v850_v42 = vadd.f32 %v6768_v24, %v828_v36  ;;  %v808_v57 = vmul.f32 %v5369_v37, %v6736_v4 }
 0x2cb   : > { %v809_v43 = vmul.f32 %v5371_v38, %v6743_v11  ;;  %v851_v45 = vadd.f32 %v6768_v24, %v829_v15 }
 0x2cc   : > { %v861_v44 = vpack.c.bf16 %v850_v42, %v849_v39  ;;  %v830_v32 = vmul.f32 %v6764_v22, %v808_v57 }
 0x2cd   : > { %v5373_v3 = vpop.eup %5372  ;;  %v831_v25 = vmul.f32 %v6764_v22, %v809_v43 }
 0x2ce   : > { %v5375_v47 = vpop.eup %5374  ;;  %1095 = vmatmul.mubr.bf16.gmra.mrb[8].mxu0 %v859_v26  ;;  %4807 = vmatprep.mubr.bf16.mxu1 %v861_v44  ;;  %v852_v50 = vadd.f32 %v6768_v24, %v830_v32  ;;  %v810_v51 = vmul.f32 %v5373_v3, %v6746_v17 }
 0x2cf   : > { %1104 = vmatprep.mubr.bf16.mxu0 %v6161_v46  ;;  %v811_v4 = vmul.f32 %v5375_v47, %v6753_v13  ;;  %v853_v54 = vadd.f32 %v6768_v24, %v831_v25 }
 0x2d0   : > { %v862_v11 = vpack.c.bf16 %v852_v50, %v851_v45  ;;  %v832_v52 = vmul.f32 %v6764_v22, %v810_v51 }
 0x2d1   : > { %v5377_v53 = vpop.eup %5376  ;;  %v833_v59 = vmul.f32 %v6764_v22, %v811_v4 }
 0x2d2   : > { %4808 = vmatmul.mubr.bf16.gmra.mrb[8].mxu1 %v862_v11  ;;  %v854_v55 = vadd.f32 %v6768_v24, %v832_v52  ;;  %v812_v58 = vmul.f32 %v5377_v53, %v6756_v28  ;;  %v899_v28 = vlaneseq }
 0x2d3   : > { %v855_v13 = vadd.f32 %v6768_v24, %v833_v59 }
 0x2d4   : > { %v863_v17 = vpack.c.bf16 %v854_v55, %v853_v54  ;;  %v834_v60 = vmul.f32 %v6764_v22, %v812_v58  ;;  %v6822_v22 = vshrl.u32 %v899_v28, 7 }
 0x2d6   : > { %1105 = vmatmul.mubr.bf16.gmra.mrb[12].mxu0 %v860_v14  ;;  %4811 = vmatprep.mubr.bf16.mxu1 %v863_v17  ;;  %v856_v61 = vadd.f32 %v6768_v24, %v834_v60  ;;  %v901_v63 = vsub.s32 0, %v6822_v22  ;;  %v897_v24 = vld [vmem:[#allocation10] sm:$0x7]  ;;  %v905_v33 = vsub.s32 1, %v6822_v22  ;;  %v909_v1 = vsub.s32 2, %v6822_v22 }
 0x2d7   : > { %1114 = vmatprep.mubr.bf16.mxu0 %v6161_v46 }
 0x2d8   : > { %v864_v62 = vpack.c.bf16 %v856_v61, %v855_v13  ;;  %v6828_v0 = vrot.slane %v897_v24, %v901_v63  ;;  %v6833_v5 = vrot.slane %v897_v24, %v905_v33  ;;  %v6839_v16 = vrot.slane %v897_v24, %v909_v1 }
 0x2da   : > { %4812 = vmatmul.mubr.bf16.gmra.mrb[12].mxu1 %v864_v62 }
 0x2de   : > { %1115 = vmatmul.mubr.bf16.gmra.mrb[16].mxu0 %v861_v44 }
 0x2df   : > { %1124 = vmatprep.mubr.bf16.mxu0 %v6161_v46 }
 0x2e6   : > { %1125 = vmatmul.mubr.bf16.gmra.mrb[20].mxu0 %v862_v11 }
 0x2e7   : > { %1134 = vmatprep.mubr.bf16.mxu0 %v6161_v46 }
 0x2ee   : > { %1135 = vmatmul.mubr.bf16.gmra.mrb[24].mxu0 %v863_v17 }
 0x2ef   : > { %1144 = vmatprep.mubr.bf16.mxu0 %v6161_v46 }
 0x2f6   : > { %1145 = vmatmul.mubr.bf16.gmra.mrb[28].mxu0 %v864_v62 }
 0x391   : > { %v1076_v2 = vpop.f32.mrb[0].mxu0 }
 0x392   : > { %v1078_v40 = vpop.f32.mrb[1].mxu0  ;;  %v1077_v7 = vadd.f32 %v1076_v2, %v6828_v0 }
 0x393   : > { %v1080_v6 = vpop.f32.mrb[2].mxu0  ;;  %v1079_v10 = vadd.f32 %v1078_v40, %v6833_v5 }
 0x394   : > { %v1081_v8 = vadd.f32 %v1080_v6, %v6828_v0  ;;  %v1082_v9 = vpop.f32.mrb[3].mxu0 }
 0x395   : > { %v1083_v18 = vadd.f32 %v1082_v9, %v6833_v5  ;;  %v4801_v41 = vpop.f32.mrb[0].mxu1 }
 0x396   : > { %v6843_v19 = vpack.c.bf16 %v1081_v8, %v1077_v7  ;;  %v1189_v20 = vpop.f32.mrb[1].mxu1  ;;  %v1198_v23 = vadd.f32 %v4801_v41, %v6839_v16 }
 0x397   : > { %v1260_v21 = vpack.c.bf16 %v1083_v18, %v1079_v10  ;;  %v4802_v48 = vpop.f32.mrb[2].mxu1  ;;  %v1190_v12 = vadd.f32 %v1189_v20, %v6839_v16 }
 0x398   : > { %v1201_v26 = vadd.f32 %v4802_v48, %v6839_v16  ;;  %v1192_v27 = vpop.f32.mrb[3].mxu1  ;;  %4831 = vmatprep.mubr.msk.bf16.mxu0 %vm1276_vm0, %v6843_v19 }
 0x399   : > { %v1193_v29 = vadd.f32 %v1192_v27, %v6839_v16  ;;  %1703 = vrot.lane.b32.xlu0 %v1260_v21, %s6162_s1  ;;  %v1086_v30 = vpop.f32.mrb[4].mxu0  ;;  %4991 = vmatprep.subr.msk.bf16.mxu0 %vm1276_vm0, %v1260_v21  ;;  %v1302_v31 = vsel %vm1276_vm0, %v1260_v21, 0 }
 0x39a   : > { %v6854_v34 = vpack.c.bf16 %v1201_v26, %v1198_v23  ;;  %v1087_v35 = vadd.f32 %v1086_v30, %v6828_v0  ;;  %v1088_v49 = vpop.f32.mrb[5].mxu0  ;;  %4816 = vmatpush3.bf16.xpose.msra.mxu0 %v1302_v31 }
 0x39b   : > { %v6857_v56 = vpack.c.bf16 %v1193_v29, %v1190_v12  ;;  %v1090_v14 = vpop.f32.mrb[6].mxu0  ;;  %v1089_v15 = vadd.f32 %v1088_v49, %v6833_v5 }
 0x39c   : > { %v1091_v36 = vadd.f32 %v1090_v14, %v6828_v0  ;;  %v1092_v37 = vpop.f32.mrb[7].mxu0 }
 0x39d   : > { %v1093_v38 = vadd.f32 %v1092_v37, %v6833_v5  ;;  %v4805_v39 = vpop.f32.mrb[4].mxu1  ;;  %4847 = vmatprep.subr.bf16.mxu1 %v6857_v56 }
 0x39e   : > { %v6863_v42 = vpack.c.bf16 %v1091_v36, %v1087_v35  ;;  %v1205_v57 = vpop.f32.mrb[5].mxu1  ;;  %4848 = vmatpush3.bf16.msra.mxu1 %v6857_v56  ;;  %v1214_v32 = vadd.f32 %v4805_v39, %v6839_v16 }
 0x39f   : > { %v1261_v43 = vpack.c.bf16 %v1093_v38, %v1089_v15  ;;  %v4806_v44 = vpop.f32.mrb[6].mxu1  ;;  %4849 = vmatprep.subr.bf16.mxu1 %v6854_v34  ;;  %v1206_v47 = vadd.f32 %v1205_v57, %v6839_v16 }
 0x3a0   : > { %v1217_v3 = vadd.f32 %v4806_v44, %v6839_v16  ;;  %v1208_v45 = vpop.f32.mrb[7].mxu1 }
 0x3a1   : > { %v1209_v50 = vadd.f32 %v1208_v45, %v6839_v16  ;;  %1705 = vrot.lane.b32.xlu1 %v1261_v43, %s6162_s1  ;;  %v1096_v51 = vpop.f32.mrb[8].mxu0  ;;  %4992 = vmatprep.subr.msk.bf16.mxu0 %vm1276_vm0, %v1261_v43  ;;  %v1305_v25 = vsel %vm1276_vm0, %v1261_v43, 0 }
 0x3a2   : > { %v6874_v4 = vpack.c.bf16 %v1217_v3, %v1214_v32  ;;  %v1097_v11 = vadd.f32 %v1096_v51, %v6828_v0  ;;  %v1098_v52 = vpop.f32.mrb[9].mxu0  ;;  %4818 = vmatpush3.bf16.xpose.msra.mxu0 %v1305_v25  ;;  %4850 = vmatpush3.bf16.msra.mxu1 %v6854_v34 }
 0x3a3   : > { %v6878_v53 = vpack.c.bf16 %v1209_v50, %v1206_v47  ;;  %v1100_v54 = vpop.f32.mrb[10].mxu0  ;;  %v1099_v59 = vadd.f32 %v1098_v52, %v6833_v5 }
 0x3a4   : > { %v1101_v55 = vadd.f32 %v1100_v54, %v6828_v0  ;;  %v1102_v58 = vpop.f32.mrb[11].mxu0 }
 0x3a5   : > { %v1103_v17 = vadd.f32 %v1102_v58, %v6833_v5  ;;  %v4809_v60 = vpop.f32.mrb[8].mxu1  ;;  %4851 = vmatprep.subr.bf16.mxu1 %v6878_v53 }
 0x3a6   : > { %v6884_v13 = vpack.c.bf16 %v1101_v55, %v1097_v11  ;;  %v1221_v61 = vpop.f32.mrb[9].mxu1  ;;  %4852 = vmatpush3.bf16.msra.mxu1 %v6878_v53  ;;  %v1230_v24 = vadd.f32 %v4809_v60, %v6839_v16 }
 0x3a7   : > { %v1262_v62 = vpack.c.bf16 %v1103_v17, %v1099_v59  ;;  %v4810_v28 = vpop.f32.mrb[10].mxu1  ;;  %4853 = vmatprep.subr.bf16.mxu1 %v6874_v4  ;;  %v1222_v6 = vadd.f32 %v1221_v61, %v6839_v16 }
 0x3a8   : > { %v1233_v2 = vadd.f32 %v4810_v28, %v6839_v16  ;;  %v1224_v40 = vpop.f32.mrb[11].mxu1 }
 0x3a9   : > { %v1225_v7 = vadd.f32 %v1224_v40, %v6839_v16  ;;  %1707 = vrot.lane.b32.xlu0 %v1262_v62, %s6162_s1  ;;  %v1106_v8 = vpop.f32.mrb[12].mxu0  ;;  %4993 = vmatprep.subr.msk.bf16.mxu0 %vm1276_vm0, %v1262_v62  ;;  %v1308_v9 = vsel %vm1276_vm0, %v1262_v62, 0 }
 0x3aa   : > { %v6895_v10 = vpack.c.bf16 %v1233_v2, %v1230_v24  ;;  %v1107_v18 = vadd.f32 %v1106_v8, %v6828_v0  ;;  %v1108_v41 = vpop.f32.mrb[13].mxu0  ;;  %4820 = vmatpush3.bf16.xpose.msra.mxu0 %v1308_v9  ;;  %4854 = vmatpush3.bf16.msra.mxu1 %v6874_v4 }
 0x3ab   : > { %v6899_v20 = vpack.c.bf16 %v1225_v7, %v1222_v6  ;;  %v1110_v21 = vpop.f32.mrb[14].mxu0  ;;  %v1109_v26 = vadd.f32 %v1108_v41, %v6833_v5 }
 0x3ac   : > { %v1111_v48 = vadd.f32 %v1110_v21, %v6828_v0  ;;  %v1112_v23 = vpop.f32.mrb[15].mxu0 }
 0x3ad   : > { %v1113_v27 = vadd.f32 %v1112_v23, %v6833_v5  ;;  %v4813_v12 = vpop.f32.mrb[12].mxu1  ;;  %4855 = vmatprep.subr.bf16.mxu1 %v6899_v20 }
 0x3ae   : > { %v6905_v29 = vpack.c.bf16 %v1111_v48, %v1107_v18  ;;  %v1237_v30 = vpop.f32.mrb[13].mxu1  ;;  %4856 = vmatpush3.bf16.msra.mxu1 %v6899_v20  ;;  %v1246_v49 = vadd.f32 %v4813_v12, %v6839_v16 }
 0x3af   : > { %v6908_v31 = vpack.c.bf16 %v1113_v27, %v1109_v26  ;;  %v4814_v35 = vpop.f32.mrb[14].mxu1  ;;  %4857 = vmatprep.subr.bf16.mxu1 %v6895_v10  ;;  %v1238_v37 = vadd.f32 %v1237_v30, %v6839_v16 }
 0x3b0   : > { %v1249_v14 = vadd.f32 %v4814_v35, %v6839_v16  ;;  %v1240_v36 = vpop.f32.mrb[15].mxu1 }
 0x3b1   : > { %v1241_v15 = vadd.f32 %v1240_v36, %v6839_v16  ;;  %v1116_v38 = vpop.f32.mrb[16].mxu0  ;;  %4994 = vmatprep.subr.msk.bf16.mxu0 %vm1276_vm0, %v6908_v31  ;;  %v1311_v39 = vsel %vm1276_vm0, %v6908_v31, 0 }
 0x3b2   : > { %v6919_v57 = vpack.c.bf16 %v1249_v14, %v1246_v49  ;;  %v1117_v43 = vadd.f32 %v1116_v38, %v6828_v0  ;;  %v1118_v44 = vpop.f32.mrb[17].mxu0  ;;  %4822 = vmatpush3.bf16.xpose.msra.mxu0 %v1311_v39  ;;  %4858 = vmatpush3.bf16.msra.mxu1 %v6895_v10 }
 0x3b3   : > { %v6923_v32 = vpack.c.bf16 %v1241_v15, %v1238_v37  ;;  %v1120_v3 = vpop.f32.mrb[18].mxu0  ;;  %v1119_v47 = vadd.f32 %v1118_v44, %v6833_v5 }
 0x3b4   : > { %v1121_v16 = vadd.f32 %v1120_v3, %v6828_v0  ;;  %v1122_v45 = vpop.f32.mrb[19].mxu0 }
 0x3b5   : > { %v1123_v50 = vadd.f32 %v1122_v45, %v6833_v5  ;;  %4859 = vmatprep.subr.bf16.mxu1 %v6923_v32 }
 0x3b6   : > { %v6929_v51 = vpack.c.bf16 %v1121_v16, %v1117_v43  ;;  %4860 = vmatpush3.bf16.msra.mxu1 %v6923_v32 }
 0x3b7   : > { %v6932_v25 = vpack.c.bf16 %v1123_v50, %v1119_v47  ;;  %4861 = vmatprep.subr.bf16.mxu1 %v6919_v57 }
 0x3b9   : > { %v1126_v11 = vpop.f32.mrb[20].mxu0  ;;  %4995 = vmatprep.subr.msk.bf16.mxu0 %vm1276_vm0, %v6932_v25  ;;  %v1314_v52 = vsel %vm1276_vm0, %v6932_v25, 0 }
 0x3ba   : > { %v1127_v54 = vadd.f32 %v1126_v11, %v6828_v0  ;;  %v1128_v55 = vpop.f32.mrb[21].mxu0  ;;  %4824 = vmatpush3.bf16.xpose.msra.mxu0 %v1314_v52  ;;  %4862 = vmatpush3.bf16.msra.mxu1 %v6919_v57 }
 0x3bb   : > { %v1130_v58 = vpop.f32.mrb[22].mxu0  ;;  %v1129_v60 = vadd.f32 %v1128_v55, %v6833_v5 }
 0x3bc   : > { %v1131_v59 = vadd.f32 %v1130_v58, %v6828_v0  ;;  %v1132_v17 = vpop.f32.mrb[23].mxu0 }
 0x3bd   : > { %v1133_v61 = vadd.f32 %v1132_v17, %v6833_v5 }
 0x3be   : > { %v6944_v62 = vpack.c.bf16 %v1131_v59, %v1127_v54 }
 0x3bf   : > { %v6946_v28 = vpack.c.bf16 %v1133_v61, %v1129_v60 }
 0x3c1   : > { %v1136_v24 = vpop.f32.mrb[24].mxu0  ;;  %4996 = vmatprep.subr.msk.bf16.mxu0 %vm1276_vm0, %v6946_v28  ;;  %v1317_v2 = vsel %vm1276_vm0, %v6946_v28, 0 }
 0x3c2   : > { %v1137_v40 = vadd.f32 %v1136_v24, %v6828_v0  ;;  %v1138_v6 = vpop.f32.mrb[25].mxu0  ;;  %4826 = vmatpush3.bf16.xpose.msra.mxu0 %v1317_v2 }
 0x3c3   : > { %v1140_v7 = vpop.f32.mrb[26].mxu0  ;;  %v1139_v18 = vadd.f32 %v1138_v6, %v6833_v5 }
 0x3c4   : > { %v1141_v8 = vadd.f32 %v1140_v7, %v6828_v0  ;;  %v1142_v9 = vpop.f32.mrb[27].mxu0 }
 0x3c5   : > { %v1143_v41 = vadd.f32 %v1142_v9, %v6833_v5 }
 0x3c6   : > { %v6956_v21 = vpack.c.bf16 %v1141_v8, %v1137_v40 }
 0x3c7   : > { %v1266_v48 = vpack.c.bf16 %v1143_v41, %v1139_v18 }
 0x3c9   : > { %v1146_v23 = vpop.f32.mrb[28].mxu0  ;;  %4997 = vmatprep.subr.msk.bf16.mxu0 %vm1276_vm0, %v1266_v48  ;;  %v1320_v26 = vsel %vm1276_vm0, %v1266_v48, 0 }
 0x3ca   : > { %v1147_v27 = vadd.f32 %v1146_v23, %v6828_v0  ;;  %v1148_v12 = vpop.f32.mrb[29].mxu0  ;;  %4828 = vmatpush3.bf16.xpose.msra.mxu0 %v1320_v26 }
 0x3cb   : > { %v1150_v30 = vpop.f32.mrb[30].mxu0  ;;  %v1149_v14 = vadd.f32 %v1148_v12, %v6833_v5 }
 0x3cc   : > { %v1151_v35 = vadd.f32 %v1150_v30, %v6828_v0  ;;  %v1152_v49 = vpop.f32.mrb[31].mxu0 }
 0x3cd   : > { %v1153_v36 = vadd.f32 %v1152_v49, %v6833_v5 }
 0x3ce   : > { %v1259_v37 = vpack.c.bf16 %v1151_v35, %v1147_v27 }
 0x3cf   : > { %v1267_v15 = vpack.c.bf16 %v1153_v36, %v1149_v14 }
 0x3d1   : > { %4998 = vmatprep.subr.msk.bf16.mxu0 %vm1276_vm0, %v1267_v15  ;;  %v1323_v38 = vsel %vm1276_vm0, %v1267_v15, 0 }
 0x3d2   : > { %4830 = vmatpush3.bf16.xpose.msra.mxu0 %v1323_v38 }
 0x3d9   : > { %4832 = vmatmul.mubr.msk.bf16.vlgmr.msra.gmra.mrb[32].mxu0 %vm1276_vm0, %v6863_v42 }
 0x3da   : > { %4835 = vmatprep.mubr.msk.bf16.mxu0 %vm1276_vm0, %v6884_v13 }
 0x3e1   : > { %4836 = vmatmul.mubr.msk.bf16.gmra.mrb[36].mxu0 %vm1276_vm0, %v6905_v29 }
 0x3e2   : > { %4839 = vmatprep.mubr.msk.bf16.mxu0 %vm1276_vm0, %v6929_v51 }
 0x3e9   : > { %4840 = vmatmul.mubr.msk.bf16.gmra.mrb[40].mxu0 %vm1276_vm0, %v6944_v62 }
 0x3ea   : > { %4843 = vmatprep.mubr.msk.bf16.mxu0 %vm1276_vm0, %v6956_v21 }
 0x3f1   : > { %4844 = vmatmul.mubr.msk.bf16.gmra.mrb[44].mxu0 %vm1276_vm0, %v1259_v37 }
 0x40b   : > { %v6979_v0 = vpop.permute.xlu0 %1703 }
 0x40c   : > { %4999 = vmatprep.subr.msk.bf16.mxu1 %vm1276_vm0, %v6979_v0  ;;  %v1744_v7 = vsel %vm1276_vm0, %v6979_v0, 0 }
 0x4ac   : > { %v4833_v5 = vpop.f32.mrb[32].mxu0 }
 0x4ad   : > { %1426 = vmax.xlane.f32.xlu0 %v4833_v5  ;;  %v1359_v39 = vpop.f32.mrb[33].mxu0 }
 0x4ae   : > { %v4834_v43 = vpop.f32.mrb[34].mxu0 }
 0x4af   : > { %1428 = vmax.xlane.f32.xlu1 %v4834_v43  ;;  %v1362_v44 = vpop.f32.mrb[35].mxu0 }
 0x4b1   : > { %1422 = vmax.xlane.f32.xlu0 %v1359_v39 }
 0x4b3   : > { %1424 = vmax.xlane.f32.xlu1 %v1362_v44 }
 0x4b4   : > { %v6983_v3 = vpop.f32.mrb[36].mxu0 }
 0x4b5   : > { %v6985_v16 = vpop.f32.mrb[37].mxu0 }
 0x4b6   : > { %v6987_v45 = vpop.f32.mrb[38].mxu0 }
 0x4b7   : > { %v6989_v47 = vpop.f32.mrb[39].mxu0 }
 0x4bc   : > { %v6991_v50 = vpop.f32.mrb[40].mxu0 }
 0x4bd   : > { %v6993_v11 = vpop.f32.mrb[41].mxu0 }
 0x4be   : > { %v6995_v52 = vpop.f32.mrb[42].mxu0 }
 0x4bf   : > { %v6997_v54 = vpop.f32.mrb[43].mxu0 }
 0x4c4   : > { %1709 = vrot.lane.b32.xlu1 %v6908_v31, %s6162_s1  ;;  %v7001_v55 = vpop.f32.mrb[44].mxu0 }
 0x4c5   : > { %v7003_v58 = vpop.f32.mrb[45].mxu0 }
 0x4c6   : > { %v7005_v59 = vpop.f32.mrb[46].mxu0 }
 0x4c7   : > { %1711 = vrot.lane.b32.xlu0 %v6932_v25, %s6162_s1  ;;  %v7009_v17 = vpop.f32.mrb[47].mxu0 }
 0x4e6   : > { %1434 = vmax.xlane.f32.xlu0 %v6983_v3 }
 0x4e8   : > { %1430 = vmax.xlane.f32.xlu1 %v6985_v16 }
 0x4ea   : > { %1438 = vmax.xlane.f32.xlu0 %v6993_v11 }
 0x4ec   : > { %1436 = vmax.xlane.f32.xlu1 %v6987_v45 }
 0x4ee   : > { %1440 = vmax.xlane.f32.xlu0 %v6997_v54 }
 0x4f0   : > { %1432 = vmax.xlane.f32.xlu1 %v6989_v47 }
 0x4f2   : > { %1450 = vmax.xlane.f32.xlu0 %v7001_v55 }
 0x4f4   : > { %1442 = vmax.xlane.f32.xlu1 %v6991_v50 }
 0x4f8   : > { %1444 = vmax.xlane.f32.xlu1 %v6995_v52 }
 0x4fc   : > { %1446 = vmax.xlane.f32.xlu1 %v7003_v58 }
 0x500   : > { %1452 = vmax.xlane.f32.xlu1 %v7005_v59 }
 0x504   : > { %1448 = vmax.xlane.f32.xlu1 %v7009_v17 }
 0x508   : > { %1715 = vrot.lane.b32.xlu0 %v1266_v48, %s6162_s1 }
 0x50c   : > { %1717 = vrot.lane.b32.xlu0 %v1267_v15, %s6162_s1 }
 0x510   : > { %1679 = vrot.lane.b32.xlu0 %v6843_v19, %s6162_s1  ;;  %v1708_v19 = vpop.permute.xlu0 %1707 }
 0x511   : > { %v1750_v9 = vsel %vm1276_vm0, %v1708_v19, 0 }
 0x514   : > { %1683 = vrot.lane.b32.xlu0 %v6884_v13, %s6162_s1 }
 0x515   : > { %1713 = vrot.lane.b32.xlu1 %v6946_v28, %s6162_s1 }
 0x518   : > { %1687 = vrot.lane.b32.xlu0 %v6929_v51, %s6162_s1 }
 0x519   : > { %1681 = vrot.lane.b32.xlu1 %v6863_v42, %s6162_s1  ;;  %v1706_v42 = vpop.permute.xlu1 %1705 }
 0x51a   : > { %v1747_v8 = vsel %vm1276_vm0, %v1706_v42, 0 }
 0x51c   : > { %1691 = vrot.lane.b32.xlu0 %v6956_v21, %s6162_s1 }
 0x51d   : > { %1685 = vrot.lane.b32.xlu1 %v6905_v29, %s6162_s1 }
 0x520   : > { %2008 = vrot.lane.b32.xlu0 %v6857_v56, %s6162_s1 }
 0x521   : > { %1689 = vrot.lane.b32.xlu1 %v6944_v62, %s6162_s1 }
 0x524   : > { %2012 = vrot.lane.b32.xlu0 %v6878_v53, %s6162_s1 }
 0x525   : > { %1693 = vrot.lane.b32.xlu1 %v1259_v37, %s6162_s1 }
 0x528   : > { %2014 = vrot.lane.b32.xlu0 %v6874_v4, %s6162_s1 }
 0x529   : > { %2010 = vrot.lane.b32.xlu1 %v6854_v34, %s6162_s1 }
 0x52c   : > { %2016 = vrot.lane.b32.xlu0 %v6899_v20, %s6162_s1 }
 0x53a   : > { %v1427_v56 = vpop.xlane.xlu0 %1426 }
 0x53b   : > { %v1456_v31 = vsub.f32 %v4833_v5, %v1427_v56 }
 0x53c   : > { %v1429_v13 = vpop.xlane.xlu1 %1428 }
 0x53d   : > { %v1457_v29 = vsub.f32 %v4834_v43, %v1429_v13  ;;  %v1474_v28 = vmul.f32 1.442695, %v1456_v31 }
 0x53e   : > { %v1423_v51 = vpop.xlane.xlu0 %1422 }
 0x53f   : > { %v1476_v25 = vmul.f32 1.442695, %v1457_v29  ;;  %v1454_v53 = vsub.f32 %v1359_v39, %v1423_v51 }
 0x540   : > { %v1425_v60 = vpop.xlane.xlu1 %1424 }
 0x541   : > { %v1470_v61 = vmul.f32 1.442695, %v1454_v53  ;;  %v1455_v62 = vsub.f32 %v1362_v44, %v1425_v60  ;;  %5378 = vpow2.f32 %v1476_v25 }
 0x542   : > { %v1712_v21 = vpop.permute.xlu0 %1711 }
 0x543   : > { %v1472_v4 = vmul.f32 1.442695, %v1455_v62  ;;  %5380 = vpow2.f32 %v1470_v61  ;;  %v1756_v48 = vsel %vm1276_vm0, %v1712_v21, 0 }
 0x544   : > { %v1710_v18 = vpop.permute.xlu1 %1709 }
 0x545   : > { %5382 = vpow2.f32 %v1472_v4  ;;  %v1753_v41 = vsel %vm1276_vm0, %v1710_v18, 0 }
 0x546   : > { %5384 = vpow2.f32 %v1474_v28 }
 0x54b   : > { %v7052_v34 = vpop.eup %5378 }
 0x54d   : > { %v7054_v20 = vpop.eup %5380 }
 0x54f   : > { %v7056_v24 = vpop.eup %5382 }
 0x550   : > { %v7058_v2 = vpop.eup %5384  ;;  %v1550_v40 = vpack.c.bf16 %v7056_v24, %v7054_v20 }
 0x551   : > { %v1551_v6 = vpack.c.bf16 %v7052_v34, %v7058_v2 }
 0x552   : > { %4863 = vmatprep.mubr.bf16.mxu1 %v1550_v40 }
 0x553   : > { %4864 = vmatmul.mubr.bf16.vlgmr.msra.gmra.mrb[16].mxu1 %v1551_v6 }
 0x554   : > { %4880 = vmatpush3.bf16.xpose.msra.mxu1 %v1744_v7 }
 0x555   : > { %5000 = vmatprep.subr.msk.bf16.mxu1 %vm1276_vm0, %v1706_v42 }
 0x55c   : > { %4882 = vmatpush3.bf16.xpose.msra.mxu1 %v1747_v8 }
 0x55d   : > { %5001 = vmatprep.subr.msk.bf16.mxu1 %vm1276_vm0, %v1708_v19 }
 0x564   : > { %4884 = vmatpush3.bf16.xpose.msra.mxu1 %v1750_v9 }
 0x565   : > { %5002 = vmatprep.subr.msk.bf16.mxu1 %vm1276_vm0, %v1710_v18 }
 0x56c   : > { %4886 = vmatpush3.bf16.xpose.msra.mxu1 %v1753_v41 }
 0x56d   : > { %5003 = vmatprep.subr.msk.bf16.mxu1 %vm1276_vm0, %v1712_v21 }
 0x573   : > { %v1435_v23 = vpop.xlane.xlu0 %1434 }
 0x574   : > { %4888 = vmatpush3.bf16.xpose.msra.mxu1 %v1756_v48  ;;  %v1460_v49 = vsub.f32 %v6983_v3, %v1435_v23 }
 0x575   : > { %v1431_v26 = vpop.xlane.xlu1 %1430 }
 0x576   : > { %v1458_v27 = vsub.f32 %v6985_v16, %v1431_v26  ;;  %v1482_v43 = vmul.f32 1.442695, %v1460_v49 }
 0x577   : > { %v1439_v12 = vpop.xlane.xlu0 %1438 }
 0x578   : > { %v1478_v14 = vmul.f32 1.442695, %v1458_v27  ;;  %v1462_v37 = vsub.f32 %v6993_v11, %v1439_v12 }
 0x579   : > { %v1437_v30 = vpop.xlane.xlu1 %1436 }
 0x57a   : > { %v1461_v35 = vsub.f32 %v6987_v45, %v1437_v30  ;;  %5386 = vpow2.f32 %v1478_v14  ;;  %v1486_v16 = vmul.f32 1.442695, %v1462_v37 }
 0x57b   : > { %v1441_v36 = vpop.xlane.xlu0 %1440 }
 0x57c   : > { %v1484_v15 = vmul.f32 1.442695, %v1461_v35  ;;  %v1463_v38 = vsub.f32 %v6997_v54, %v1441_v36 }
 0x57d   : > { %v1433_v0 = vpop.xlane.xlu1 %1432 }
 0x57e   : > { %v1488_v5 = vmul.f32 1.442695, %v1463_v38  ;;  %v1459_v39 = vsub.f32 %v6989_v47, %v1433_v0  ;;  %5388 = vpow2.f32 %v1484_v15 }
 0x57f   : > { %v1451_v44 = vpop.xlane.xlu0 %1450 }
 0x580   : > { %v1480_v19 = vmul.f32 1.442695, %v1459_v39  ;;  %5390 = vpow2.f32 %v1488_v5  ;;  %v1468_v6 = vsub.f32 %v7001_v55, %v1451_v44 }
 0x581   : > { %v1443_v45 = vpop.xlane.xlu1 %1442 }
 0x582   : > { %5392 = vpow2.f32 %v1480_v19  ;;  %v1464_v3 = vsub.f32 %v6991_v50, %v1443_v45 }
 0x583   : > { %5394 = vpow2.f32 %v1482_v43  ;;  %v1716_v11 = vpop.permute.xlu0 %1715 }
 0x584   : > { %5396 = vpow2.f32 %v1486_v16  ;;  %v1490_v42 = vmul.f32 1.442695, %v1464_v3  ;;  %v7084_v29 = vpop.eup %5386  ;;  %v1762_v36 = vsel %vm1276_vm0, %v1716_v11, 0 }
 0x585   : > { %v1445_v54 = vpop.xlane.xlu1 %1444 }
 0x586   : > { %v1465_v56 = vsub.f32 %v6995_v52, %v1445_v54  ;;  %5398 = vpow2.f32 %v1490_v42 }
 0x587   : > { %v7082_v13 = vpop.permute.xlu0 %1717 }
 0x588   : > { %v1492_v47 = vmul.f32 1.442695, %v1465_v56  ;;  %v7086_v51 = vpop.eup %5388  ;;  %v1765_v44 = vsel %vm1276_vm0, %v7082_v13, 0 }
 0x589   : > { %v1447_v31 = vpop.xlane.xlu1 %1446 }
 0x58a   : > { %5400 = vpow2.f32 %v1492_v47  ;;  %v7088_v25 = vpop.eup %5390  ;;  %v1466_v60 = vsub.f32 %v7003_v58, %v1447_v31 }
 0x58b   : > { %v1680_v50 = vpop.permute.xlu0 %1679 }
 0x58c   : > { %v7090_v53 = vpop.eup %5392  ;;  %v1494_v8 = vmul.f32 1.442695, %v1466_v60 }
 0x58d   : > { %v7093_v61 = vpop.eup %5394  ;;  %v1453_v52 = vpop.xlane.xlu1 %1452  ;;  %v1552_v62 = vpack.c.bf16 %v7090_v53, %v7084_v29 }
 0x58e   : > { %v7097_v28 = vpop.eup %5396  ;;  %v1469_v4 = vsub.f32 %v7005_v59, %v1453_v52  ;;  %v1553_v40 = vpack.c.bf16 %v7086_v51, %v7093_v61  ;;  %v1498_v59 = vmul.f32 1.442695, %v1468_v6  ;;  %5402 = vpow2.f32 %v1494_v8 }
 0x58f   : > { %4867 = vmatprep.mubr.bf16.mxu1 %v1552_v62  ;;  %v1684_v7 = vpop.permute.xlu0 %1683  ;;  %v1554_v58 = vpack.c.bf16 %v7088_v25, %v7097_v28 }
 0x590   : > { %4868 = vmatmul.mubr.bf16.gmra.mrb[20].mxu1 %v1553_v40  ;;  %v1500_v9 = vmul.f32 1.442695, %v1469_v4  ;;  %v7106_v21 = vpop.eup %5398 }
 0x591   : > { %v1449_v18 = vpop.xlane.xlu1 %1448  ;;  %4871 = vmatprep.mubr.bf16.mxu1 %v1554_v58 }
 0x592   : > { %v1467_v41 = vsub.f32 %v7009_v17, %v1449_v18  ;;  %5404 = vpow2.f32 %v1500_v9 }
 0x593   : > { %v1688_v48 = vpop.permute.xlu0 %1687 }
 0x594   : > { %v7108_v23 = vpop.eup %5400  ;;  %v1496_v55 = vmul.f32 1.442695, %v1467_v41 }
 0x595   : > { %v1714_v26 = vpop.permute.xlu1 %1713  ;;  %v1555_v27 = vpack.c.bf16 %v7108_v23, %v7106_v21 }
 0x596   : > { %5406 = vpow2.f32 %v1496_v55  ;;  %5004 = vmatprep.subr.msk.bf16.mxu1 %vm1276_vm0, %v1714_v26  ;;  %v1759_v12 = vsel %vm1276_vm0, %v1714_v26, 0 }
 0x597   : > { %5408 = vpow2.f32 %v1498_v59  ;;  %4890 = vmatpush3.bf16.xpose.msra.mxu1 %v1759_v12  ;;  %v1692_v17 = vpop.permute.xlu0 %1691 }
 0x598   : > { %4872 = vmatmul.mubr.bf16.gmra.mrb[24].mxu1 %v1555_v27  ;;  %5005 = vmatprep.subr.msk.bf16.mxu1 %vm1276_vm0, %v1716_v11  ;;  %v7115_v14 = vpop.eup %5402 }
 0x599   : > { %v1682_v30 = vpop.permute.xlu1 %1681 }
 0x59b   : > { %v2009_v35 = vpop.permute.xlu0 %2008 }
 0x59c   : > { %4911 = vmatprep.subr.bf16.mxu0 %v2009_v35  ;;  %v7118_v37 = vpop.eup %5404 }
 0x59d   : > { %v1686_v49 = vpop.permute.xlu1 %1685  ;;  %4912 = vmatpush3.bf16.msra.mxu0 %v2009_v35 }
 0x59f   : > { %4892 = vmatpush3.bf16.xpose.msra.mxu1 %v1762_v36  ;;  %v2013_v16 = vpop.permute.xlu0 %2012 }
 0x5a0   : > { %v7120_v15 = vpop.eup %5406  ;;  %5006 = vmatprep.subr.msk.bf16.mxu1 %vm1276_vm0, %v7082_v13 }
 0x5a1   : > { %v7124_v38 = vpop.eup %5408  ;;  %v1690_v0 = vpop.permute.xlu1 %1689  ;;  %v1556_v5 = vpack.c.bf16 %v7120_v15, %v7115_v14 }
 0x5a2   : > { %v1557_v39 = vpack.c.bf16 %v7118_v37, %v7124_v38 }
 0x5a3   : > { %4875 = vmatprep.mubr.bf16.mxu1 %v1556_v5  ;;  %v2015_v45 = vpop.permute.xlu0 %2014 }
 0x5a4   : > { %4876 = vmatmul.mubr.bf16.gmra.mrb[28].mxu1 %v1557_v39 }
 0x5a5   : > { %v1694_v43 = vpop.permute.xlu1 %1693  ;;  %4895 = vmatprep.mubr.msk.bf16.mxu1 %vm1276_vm0, %v1680_v50 }
 0x5a7   : > { %4894 = vmatpush3.bf16.xpose.msra.mxu1 %v1765_v44  ;;  %v2017_v3 = vpop.permute.xlu0 %2016 }
 0x5a9   : > { %v2011_v19 = vpop.permute.xlu1 %2010 }
 0x5aa   : > { %4913 = vmatprep.subr.bf16.mxu0 %v2011_v19 }
 0x5ab   : > { %4914 = vmatpush3.bf16.msra.mxu0 %v2011_v19 }
 0x5ac   : > { %4915 = vmatprep.subr.bf16.mxu0 %v2013_v16 }
 0x5ae   : > { %4896 = vmatmul.mubr.msk.bf16.vlgmr.msra.gmra.mrb[32].mxu1 %vm1276_vm0, %v1682_v30 }
 0x5af   : > { %4899 = vmatprep.mubr.msk.bf16.mxu1 %vm1276_vm0, %v1684_v7  ;;  %4916 = vmatpush3.bf16.msra.mxu0 %v2013_v16 }
 0x5b0   : > { %4917 = vmatprep.subr.bf16.mxu0 %v2015_v45 }
 0x5b3   : > { %4918 = vmatpush3.bf16.msra.mxu0 %v2015_v45 }
 0x5b4   : > { %4919 = vmatprep.subr.bf16.mxu0 %v2017_v3 }
 0x5b6   : > { %4900 = vmatmul.mubr.msk.bf16.gmra.mrb[36].mxu1 %vm1276_vm0, %v1686_v49 }
 0x5b7   : > { %4903 = vmatprep.mubr.msk.bf16.mxu1 %vm1276_vm0, %v1688_v48  ;;  %4920 = vmatpush3.bf16.msra.mxu0 %v2017_v3 }
 0x5be   : > { %4904 = vmatmul.mubr.msk.bf16.gmra.mrb[40].mxu1 %vm1276_vm0, %v1690_v0 }
 0x5bf   : > { %4907 = vmatprep.mubr.msk.bf16.mxu1 %vm1276_vm0, %v1692_v17 }
 0x5c6   : > { %4908 = vmatmul.mubr.msk.bf16.gmra.mrb[44].mxu1 %vm1276_vm0, %v1694_v43 }
 0x5c7   : > { %2909 = vmatprep.mubr.bf16.mxu1 %v6161_v46 }
 0x626   : > { %v7141_v11 = vpop.f32.mrb[16].mxu1 }
 0x627   : > { %v7143_v42 = vpop.f32.mrb[17].mxu1 }
 0x628   : > { %v7145_v54 = vpop.f32.mrb[18].mxu1 }
 0x629   : > { %v7147_v56 = vpop.f32.mrb[19].mxu1 }
 0x663   : > { %v7149_v13 = vpop.f32.mrb[20].mxu1 }
 0x664   : > { %v7151_v47 = vpop.f32.mrb[21].mxu1 }
 0x665   : > { %v7153_v31 = vpop.f32.mrb[22].mxu1 }
 0x666   : > { %v7155_v50 = vpop.f32.mrb[23].mxu1 }
 0x66b   : > { %v7157_v60 = vpop.f32.mrb[24].mxu1 }
 0x66c   : > { %v7159_v52 = vpop.f32.mrb[25].mxu1 }
 0x66d   : > { %v7161_v62 = vpop.f32.mrb[26].mxu1 }
 0x66e   : > { %v7163_v4 = vpop.f32.mrb[27].mxu1 }
 0x677   : > { %v7165_v40 = vpop.f32.mrb[28].mxu1 }
 0x678   : > { %v7167_v6 = vpop.f32.mrb[29].mxu1 }
 0x679   : > { %v7169_v7 = vpop.f32.mrb[30].mxu1 }
 0x67a   : > { %v7171_v58 = vpop.f32.mrb[31].mxu1 }
 0x681   : > { %v4897_v8 = vpop.f32.mrb[32].mxu1 }
 0x682   : > { %1868 = vmax.xlane.f32.xlu1 %v4897_v8  ;;  %v1801_v9 = vpop.f32.mrb[33].mxu1 }
 0x683   : > { %1864 = vmax.xlane.f32.xlu0 %v1801_v9  ;;  %v4898_v18 = vpop.f32.mrb[34].mxu1 }
 0x684   : > { %v1804_v41 = vpop.f32.mrb[35].mxu1 }
 0x686   : > { %1870 = vmax.xlane.f32.xlu1 %v4898_v18 }
 0x689   : > { %v4901_v59 = vpop.f32.mrb[36].mxu1 }
 0x68a   : > { %1866 = vmax.xlane.f32.xlu1 %v1804_v41  ;;  %v7173_v48 = vpop.f32.mrb[37].mxu1 }
 0x68b   : > { %1872 = vmax.xlane.f32.xlu0 %v7173_v48  ;;  %v4902_v55 = vpop.f32.mrb[38].mxu1 }
 0x68c   : > { %v7176_v26 = vpop.f32.mrb[39].mxu1 }
 0x68e   : > { %1876 = vmax.xlane.f32.xlu1 %v4901_v59 }
 0x691   : > { %v7178_v27 = vpop.f32.mrb[40].mxu1 }
 0x692   : > { %1878 = vmax.xlane.f32.xlu1 %v4902_v55  ;;  %v7180_v12 = vpop.f32.mrb[41].mxu1 }
 0x693   : > { %v7182_v17 = vpop.f32.mrb[42].mxu1 }
 0x694   : > { %v7184_v30 = vpop.f32.mrb[43].mxu1 }
 0x696   : > { %1874 = vmax.xlane.f32.xlu1 %v7176_v26 }
 0x699   : > { %v7187_v35 = vpop.f32.mrb[44].mxu1 }
 0x69a   : > { %v7189_v49 = vpop.f32.mrb[45].mxu1 }
 0x69b   : > { %v7191_v36 = vpop.f32.mrb[46].mxu1 }
 0x69c   : > { %v7193_v0 = vpop.f32.mrb[47].mxu1 }
 0x6a1   : > { %2020 = vrot.lane.b32.xlu0 %v6923_v32, %s6162_s1 }
 0x6a5   : > { %2022 = vrot.lane.b32.xlu0 %v6919_v57, %s6162_s1 }
 0x6a7   : > { %2018 = vrot.lane.b32.xlu1 %v6895_v10, %s6162_s1 }
 0x6c4   : > { %1880 = vmax.xlane.f32.xlu0 %v7180_v12 }
 0x6c8   : > { %1884 = vmax.xlane.f32.xlu0 %v7178_v27 }
 0x6cb   : > { %1882 = vmax.xlane.f32.xlu1 %v7184_v30 }
 0x6cc   : > { %1886 = vmax.xlane.f32.xlu0 %v7182_v17 }
 0x6cf   : > { %1890 = vmax.xlane.f32.xlu1 %v7193_v0 }
 0x6d0   : > { %1888 = vmax.xlane.f32.xlu0 %v7189_v49 }
 0x6d3   : > { %1894 = vmax.xlane.f32.xlu1 %v7191_v36 }
 0x6d4   : > { %1892 = vmax.xlane.f32.xlu0 %v7187_v35 }
 0x6d7   : > { %1504 = vadd.xlane.f32.xlu1 %v7056_v24 }
 0x6d8   : > { %1502 = vadd.xlane.f32.xlu0 %v7054_v20 }
 0x6db   : > { %1508 = vadd.xlane.f32.xlu1 %v7052_v34 }
 0x6dc   : > { %1506 = vadd.xlane.f32.xlu0 %v7058_v2 }
 0x6df   : > { %1512 = vadd.xlane.f32.xlu1 %v7090_v53 }
 0x6e0   : > { %1510 = vadd.xlane.f32.xlu0 %v7084_v29 }
 0x6e3   : > { %1516 = vadd.xlane.f32.xlu1 %v7086_v51 }
 0x6e4   : > { %1514 = vadd.xlane.f32.xlu0 %v7093_v61 }
 0x6e7   : > { %1518 = vadd.xlane.f32.xlu1 %v7097_v28 }
 0x6e8   : > { %1520 = vadd.xlane.f32.xlu0 %v7088_v25 }
 0x6eb   : > { %1524 = vadd.xlane.f32.xlu1 %v7108_v23 }
 0x70f   : > { %v1869_v10 = vpop.xlane.xlu1 %1868 }
 0x710   : > { %v1898_v57 = vsub.f32 %v4897_v8, %v1869_v10  ;;  %v1865_v32 = vpop.xlane.xlu0 %1864 }
 0x711   : > { %v1896_v34 = vsub.f32 %v1801_v9, %v1865_v32 }
 0x712   : > { %v1916_v20 = vmul.f32 1.442695, %v1898_v57 }
 0x713   : > { %v1912_v24 = vmul.f32 1.442695, %v1896_v34  ;;  %v1871_v2 = vpop.xlane.xlu1 %1870 }
 0x714   : > { %5410 = vpow2.f32 %v1916_v20  ;;  %v1899_v53 = vsub.f32 %v4898_v18, %v1871_v2 }
 0x715   : > { %5412 = vpow2.f32 %v1912_v24 }
 0x716   : > { %v1918_v29 = vmul.f32 1.442695, %v1899_v53 }
 0x717   : > { %v1867_v51 = vpop.xlane.xlu1 %1866 }
 0x718   : > { %5414 = vpow2.f32 %v1918_v29  ;;  %v1897_v61 = vsub.f32 %v1804_v41, %v1867_v51  ;;  %v1873_v25 = vpop.xlane.xlu0 %1872 }
 0x719   : > { %v1900_v43 = vsub.f32 %v7173_v48, %v1873_v25 }
 0x71a   : > { %v1914_v5 = vmul.f32 1.442695, %v1897_v61 }
 0x71b   : > { %v1877_v28 = vpop.xlane.xlu1 %1876  ;;  %v1920_v9 = vmul.f32 1.442695, %v1900_v43 }
 0x71c   : > { %5416 = vpow2.f32 %v1914_v5  ;;  %v1902_v39 = vsub.f32 %v4901_v59, %v1877_v28  ;;  %v2021_v48 = vpop.permute.xlu0 %2020 }
 0x71e   : > { %v5411_v23 = vpop.eup %5410  ;;  %v1924_v44 = vmul.f32 1.442695, %v1902_v39 }
 0x71f   : > { %v1879_v16 = vpop.xlane.xlu1 %1878  ;;  %1948 = vadd.xlane.f32.xlu0 %v5411_v23  ;;  %v5413_v45 = vpop.eup %5412 }
 0x720   : > { %v1903_v19 = vsub.f32 %v4902_v55, %v1879_v16  ;;  %5418 = vpow2.f32 %v1924_v44 }
 0x722   : > { %v5415_v3 = vpop.eup %5414  ;;  %v1926_v8 = vmul.f32 1.442695, %v1903_v19 }
 0x723   : > { %v1875_v18 = vpop.xlane.xlu1 %1874  ;;  %1950 = vadd.xlane.f32.xlu1 %v5415_v3  ;;  %1944 = vadd.xlane.f32.xlu0 %v5413_v45  ;;  %v1993_v41 = vpack.c.bf16 %v5415_v3, %v5411_v23 }
 0x724   : > { %5420 = vpow2.f32 %v1926_v8  ;;  %v1901_v10 = vsub.f32 %v7176_v26, %v1875_v18  ;;  %v2023_v26 = vpop.permute.xlu0 %2022 }
 0x725   : > { %5422 = vpow2.f32 %v1920_v9 }
 0x726   : > { %v5417_v59 = vpop.eup %5416  ;;  %v1922_v57 = vmul.f32 1.442695, %v1901_v10 }
 0x727   : > { %v2019_v32 = vpop.permute.xlu1 %2018  ;;  %1946 = vadd.xlane.f32.xlu1 %v5417_v59  ;;  %1522 = vadd.xlane.f32.xlu0 %v7106_v21  ;;  %v1992_v55 = vpack.c.bf16 %v5417_v59, %v5413_v45 }
 0x728   : > { %5424 = vpow2.f32 %v1922_v57  ;;  %4921 = vmatprep.subr.bf16.mxu0 %v2019_v32 }
 0x729   : > { %4922 = vmatpush3.bf16.msra.mxu0 %v2019_v32  ;;  %4927 = vmatprep.mubr.bf16.mxu0 %v1992_v55 }
 0x72a   : > { %4923 = vmatprep.subr.bf16.mxu0 %v2021_v48  ;;  %v5419_v34 = vpop.eup %5418 }
 0x72b   : > { %1526 = vadd.xlane.f32.xlu1 %v7115_v14  ;;  %1528 = vadd.xlane.f32.xlu0 %v7120_v15 }
 0x72d   : > { %4924 = vmatpush3.bf16.msra.mxu0 %v2021_v48 }
 0x72e   : > { %v5421_v20 = vpop.eup %5420  ;;  %4925 = vmatprep.subr.bf16.mxu0 %v2023_v26 }
 0x72f   : > { %1958 = vadd.xlane.f32.xlu1 %v5421_v20  ;;  %1956 = vadd.xlane.f32.xlu0 %v5419_v34  ;;  %v1995_v24 = vpack.c.bf16 %v5421_v20, %v5419_v34  ;;  %v5423_v2 = vpop.eup %5422 }
 0x731   : > { %4926 = vmatpush3.bf16.msra.mxu0 %v2023_v26 }
 0x732   : > { %v5425_v21 = vpop.eup %5424 }
 0x733   : > { %1954 = vadd.xlane.f32.xlu1 %v5425_v21  ;;  %1952 = vadd.xlane.f32.xlu0 %v5423_v2  ;;  %v1994_v53 = vpack.c.bf16 %v5425_v21, %v5423_v2 }
 0x734   : > { %4928 = vmatmul.mubr.bf16.vlgmr.msra.gmra.mrb[48].mxu0 %v1993_v41 }
 0x735   : > { %4931 = vmatprep.mubr.bf16.mxu0 %v1994_v53 }
 0x73c   : > { %4932 = vmatmul.mubr.bf16.gmra.mrb[52].mxu0 %v1995_v24 }
 0x751   : > { %v1881_v14 = vpop.xlane.xlu0 %1880 }
 0x752   : > { %v1904_v15 = vsub.f32 %v7180_v12, %v1881_v14 }
 0x754   : > { %v1928_v61 = vmul.f32 1.442695, %v1904_v15 }
 0x755   : > { %v1885_v29 = vpop.xlane.xlu0 %1884 }
 0x756   : > { %v1906_v51 = vsub.f32 %v7178_v27, %v1885_v29 }
 0x758   : > { %v1932_v5 = vmul.f32 1.442695, %v1906_v51  ;;  %v1883_v28 = vpop.xlane.xlu1 %1882 }
 0x759   : > { %v1905_v25 = vsub.f32 %v7184_v30, %v1883_v28  ;;  %v1887_v39 = vpop.xlane.xlu0 %1886 }
 0x75a   : > { %5426 = vpow2.f32 %v1932_v5  ;;  %v1907_v23 = vsub.f32 %v7182_v17, %v1887_v39 }
 0x75b   : > { %v1930_v43 = vmul.f32 1.442695, %v1905_v25  ;;  %5428 = vpow2.f32 %v1928_v61 }
 0x75c   : > { %v1934_v44 = vmul.f32 1.442695, %v1907_v23  ;;  %v1891_v16 = vpop.xlane.xlu1 %1890 }
 0x75d   : > { %5430 = vpow2.f32 %v1930_v43  ;;  %v1909_v19 = vsub.f32 %v7193_v0, %v1891_v16  ;;  %v1889_v12 = vpop.xlane.xlu0 %1888 }
 0x75e   : > { %5432 = vpow2.f32 %v1934_v44  ;;  %v1908_v27 = vsub.f32 %v7189_v49, %v1889_v12 }
 0x75f   : > { %v1938_v45 = vmul.f32 1.442695, %v1909_v19 }
 0x760   : > { %v1936_v3 = vmul.f32 1.442695, %v1908_v27  ;;  %v1895_v8 = vpop.xlane.xlu1 %1894 }
 0x761   : > { %5434 = vpow2.f32 %v1938_v45  ;;  %v1911_v30 = vsub.f32 %v7191_v36, %v1895_v8  ;;  %v1893_v9 = vpop.xlane.xlu0 %1892 }
 0x762   : > { %5436 = vpow2.f32 %v1936_v3  ;;  %v1910_v17 = vsub.f32 %v7187_v35, %v1893_v9 }
 0x763   : > { %v1942_v18 = vmul.f32 1.442695, %v1911_v30 }
 0x764   : > { %v5427_v41 = vpop.eup %5426  ;;  %v1940_v10 = vmul.f32 1.442695, %v1910_v17  ;;  %v1505_v59 = vpop.xlane.xlu1 %1504 }
 0x765   : > { %5438 = vpow2.f32 %v1942_v18  ;;  %1964 = vadd.xlane.f32.xlu0 %v5427_v41  ;;  %v1503_v0 = vpop.xlane.xlu0 %1502  ;;  %v5429_v57 = vpop.eup %5428 }
 0x766   : > { %5440 = vpow2.f32 %v1940_v10 }
 0x767   : > { %v5431_v49 = vpop.eup %5430  ;;  %5442 = vrcp.f32 %v1505_v59 }
 0x768   : > { %v5433_v48 = vpop.eup %5432  ;;  %5444 = vrcp.f32 %v1503_v0  ;;  %v1509_v32 = vpop.xlane.xlu1 %1508  ;;  %v1996_v55 = vpack.c.bf16 %v5431_v49, %v5429_v57 }
 0x769   : > { %5446 = vrcp.f32 %v1509_v32  ;;  %1960 = vadd.xlane.f32.xlu0 %v5429_v57  ;;  %1966 = vadd.xlane.f32.xlu1 %v5433_v48  ;;  %v1507_v36 = vpop.xlane.xlu0 %1506  ;;  %v1997_v35 = vpack.c.bf16 %v5433_v48, %v5427_v41  ;;  %v5258_v32 = vld [vmem:[#allocation11] sm:$0xff]  }
 0x76a   : > { %5448 = vrcp.f32 %v1507_v36  ;;  %4935 = vmatprep.mubr.bf16.mxu0 %v1996_v55  ;;  %v5259_v55 = vld [vmem:[#allocation11 + $0x8] sm:$0xff]   ;;  %4943 = vmatprep.subr.bf16.mxu0 %v5258_v32  ;;  %v5260_v36 = vld [vmem:[#allocation11 + $0x10] sm:$0xff]  }
 0x76b   : > { %v5435_v34 = vpop.eup %5434  ;;  %4936 = vmatmul.mubr.bf16.gmra.mrb[56].mxu0 %v1997_v35  ;;  %v5261_v35 = vld [vmem:[#allocation11 + $0x18] sm:$0xff]  }
 0x76c   : > { %v5437_v26 = vpop.eup %5436  ;;  %v1513_v20 = vpop.xlane.xlu1 %1512  ;;  %4944 = vmatpush3.bf16.msra.mxu0 %v5258_v32 }
 0x76d   : > { %5450 = vrcp.f32 %v1513_v20  ;;  %1962 = vadd.xlane.f32.xlu1 %v5431_v49  ;;  %v1511_v24 = vpop.xlane.xlu0 %1510  ;;  %v1998_v2 = vpack.c.bf16 %v5435_v34, %v5437_v26  ;;  %4945 = vmatprep.subr.bf16.mxu0 %v5259_v55 }
 0x76e   : > { %5452 = vrcp.f32 %v1511_v24  ;;  %v5265_v24 = vld [vmem:[#allocation11 + $0x38] sm:$0xff]  }
 0x76f   : > { %v5439_v21 = vpop.eup %5438  ;;  %4939 = vmatprep.mubr.bf16.mxu0 %v1998_v2 }
 0x770   : > { %v5441_v53 = vpop.eup %5440  ;;  %v1517_v14 = vpop.xlane.xlu1 %1516  ;;  %4946 = vmatpush3.bf16.msra.mxu0 %v5259_v55 }
 0x771   : > { %v5443_v15 = vpop.eup %5442  ;;  %5454 = vrcp.f32 %v1517_v14  ;;  %1974 = vadd.xlane.f32.xlu1 %v5439_v21  ;;  %1972 = vadd.xlane.f32.xlu0 %v5441_v53  ;;  %v1515_v29 = vpop.xlane.xlu0 %1514  ;;  %v1999_v51 = vpack.c.bf16 %v5439_v21, %v5441_v53 }
 0x772   : > { %v5445_v61 = vpop.eup %5444  ;;  %5456 = vrcp.f32 %v1515_v29  ;;  %v7234_v5 = vmul.f32 %v5443_v15, %v7147_v56  ;;  %4947 = vmatprep.subr.bf16.mxu0 %v5260_v36 }
 0x773   : > { %v5447_v28 = vpop.eup %5446  ;;  %4940 = vmatmul.mubr.bf16.gmra.mrb[60].mxu0 %v1999_v51  ;;  %v7237_v25 = vmul.f32 %v5445_v61, %v7143_v42 }
 0x774   : > { %v5449_v39 = vpop.eup %5448  ;;  %v1519_v23 = vpop.xlane.xlu1 %1518  ;;  %v7240_v43 = vmul.f32 %v5447_v28, %v7145_v54  ;;  %4948 = vmatpush3.bf16.msra.mxu0 %v5260_v36 }
 0x775   : > { %5458 = vrcp.f32 %v1519_v23  ;;  %1970 = vadd.xlane.f32.xlu1 %v5435_v34  ;;  %1968 = vadd.xlane.f32.xlu0 %v5437_v26  ;;  %v1521_v44 = vpop.xlane.xlu0 %1520  ;;  %v7243_v16 = vmul.f32 %v5449_v39, %v7141_v11  ;;  %v5263_v34 = vld [vmem:[#allocation11 + $0x28] sm:$0xff]  }
 0x776   : > { %5460 = vrcp.f32 %v1521_v44  ;;  %4949 = vmatprep.subr.bf16.mxu0 %v5261_v35 }
 0x777   : > { %v5451_v56 = vpop.eup %5450 }
 0x778   : > { %v5453_v19 = vpop.eup %5452  ;;  %v1525_v12 = vpop.xlane.xlu1 %1524  ;;  %v7246_v27 = vmul.f32 %v5451_v56, %v7155_v50  ;;  %4950 = vmatpush3.bf16.msra.mxu0 %v5261_v35 }
 0x779   : > { %5462 = vrcp.f32 %v1525_v12  ;;  %v7249_v42 = vmul.f32 %v5453_v19, %v7151_v47 }
 0x77b   : > { %v5455_v54 = vpop.eup %5454 }
 0x77c   : > { %v5457_v45 = vpop.eup %5456  ;;  %v7252_v3 = vmul.f32 %v5455_v54, %v7153_v31 }
 0x77d   : > { %v7255_v8 = vmul.f32 %v5457_v45, %v7149_v13 }
 0x77f   : > { %v5459_v11 = vpop.eup %5458 }
 0x780   : > { %v5461_v30 = vpop.eup %5460  ;;  %v7258_v9 = vmul.f32 %v5459_v11, %v7159_v52 }
 0x781   : > { %v7261_v50 = vmul.f32 %v5461_v30, %v7163_v4 }
 0x783   : > { %v5463_v17 = vpop.eup %5462 }
 0x784   : > { %v7264_v47 = vmul.f32 %v5463_v17, %v7161_v62 }
 0x7ac   : > { %v1949_v18 = vpop.xlane.xlu0 %1948 }
 0x7b0   : > { %v1951_v41 = vpop.xlane.xlu1 %1950  ;;  %v1945_v10 = vpop.xlane.xlu0 %1944 }
 0x7b4   : > { %v1947_v31 = vpop.xlane.xlu1 %1946  ;;  %v1523_v59 = vpop.xlane.xlu0 %1522 }
 0x7b5   : > { %5464 = vrcp.f32 %v1523_v59 }
 0x7b8   : > { %v1527_v13 = vpop.xlane.xlu1 %1526  ;;  %v1529_v0 = vpop.xlane.xlu0 %1528 }
 0x7b9   : > { %5466 = vrcp.f32 %v1527_v13 }
 0x7ba   : > { %5468 = vrcp.f32 %v1529_v0 }
 0x7bb   : > { %5470 = vrcp.f32 %v1949_v18 }
 0x7bc   : > { %5472 = vrcp.f32 %v1951_v41  ;;  %v1957_v26 = vpop.xlane.xlu0 %1956 }
 0x7bd   : > { %5474 = vrcp.f32 %v1945_v10 }
 0x7be   : > { %5476 = vrcp.f32 %v1947_v31 }
 0x7bf   : > { %v5465_v57 = vpop.eup %5464 }
 0x7c0   : > { %v7267_v52 = vmul.f32 %v5465_v57, %v7157_v60  ;;  %v5262_v60 = vld [vmem:[#allocation11 + $0x20] sm:$0xff]   ;;  %v1953_v2 = vpop.xlane.xlu0 %1952 }
 0x7c1   : > { %4951 = vmatprep.subr.bf16.mxu0 %v5262_v60 }
 0x7c2   : > { %4952 = vmatpush3.bf16.msra.mxu0 %v5262_v60 }
 0x7c3   : > { %v5467_v4 = vpop.eup %5466  ;;  %4953 = vmatprep.subr.bf16.mxu0 %v5263_v34 }
 0x7c4   : > { %v5469_v49 = vpop.eup %5468  ;;  %v7270_v48 = vmul.f32 %v5467_v4, %v7167_v6  ;;  %v5264_v6 = vld [vmem:[#allocation11 + $0x30] sm:$0xff]  }
 0x7c5   : > { %v7273_v62 = vmul.f32 %v5469_v49, %v7171_v58  ;;  %v1959_v58 = vpop.xlane.xlu1 %1958  ;;  %v5471_v21 = vpop.eup %5470 }
 0x7c6   : > { %4954 = vmatpush3.bf16.msra.mxu0 %v5263_v34  ;;  %5478 = vrcp.f32 %v1959_v58  ;;  %v5473_v14 = vpop.eup %5472 }
 0x7c7   : > { %4955 = vmatprep.subr.bf16.mxu0 %v5264_v6  ;;  %5480 = vrcp.f32 %v1957_v26  ;;  %v5475_v29 = vpop.eup %5474 }
 0x7c8   : > { %v5477_v61 = vpop.eup %5476 }
 0x7c9   : > { %v1955_v20 = vpop.xlane.xlu1 %1954 }
 0x7ca   : > { %4956 = vmatpush3.bf16.msra.mxu0 %v5264_v6  ;;  %5482 = vrcp.f32 %v1955_v20 }
 0x7cb   : > { %4957 = vmatprep.subr.bf16.mxu0 %v5265_v24  ;;  %5484 = vrcp.f32 %v1953_v2 }
 0x7ce   : > { %4958 = vmatpush3.bf16.msra.mxu0 %v5265_v24 }
 0x7d0   : > { %v5479_v54 = vpop.eup %5478 }
 0x7d1   : > { %v5481_v11 = vpop.eup %5480 }
 0x7d4   : > { %v5483_v17 = vpop.eup %5482 }
 0x7d5   : > { %v5485_v41 = vpop.eup %5484 }
 0x7f2   : > { %v1965_v32 = vpop.xlane.xlu0 %1964 }
 0x7f3   : > { %5486 = vrcp.f32 %v1965_v32 }
 0x7f6   : > { %v1967_v49 = vpop.xlane.xlu1 %1966  ;;  %v1961_v36 = vpop.xlane.xlu0 %1960 }
 0x7f7   : > { %5488 = vrcp.f32 %v1967_v49 }
 0x7f8   : > { %5490 = vrcp.f32 %v1961_v36 }
 0x7fa   : > { %v1963_v55 = vpop.xlane.xlu1 %1962 }
 0x7fb   : > { %5492 = vrcp.f32 %v1963_v55 }
 0x7fd   : > { %v5487_v58 = vpop.eup %5486 }
 0x7fe   : > { %v1975_v35 = vpop.xlane.xlu1 %1974  ;;  %v1973_v60 = vpop.xlane.xlu0 %1972 }
 0x7ff   : > { %5494 = vrcp.f32 %v1975_v35 }
 0x800   : > { %5496 = vrcp.f32 %v1973_v60 }
 0x801   : > { %v5489_v20 = vpop.eup %5488 }
 0x802   : > { %v1971_v34 = vpop.xlane.xlu1 %1970  ;;  %v1969_v6 = vpop.xlane.xlu0 %1968 }
 0x803   : > { %5498 = vrcp.f32 %v1971_v34  ;;  %v5491_v2 = vpop.eup %5490 }
 0x804   : > { %5500 = vrcp.f32 %v1969_v6 }
 0x807   : > { %v4929_v53 = vpop.f32.mrb[48].mxu0 }
 0x808   : > { %v2066_v15 = vpop.f32.mrb[49].mxu0  ;;  %v2131_v28 = vmul.f32 %v5471_v21, %v4929_v53  ;;  %v5493_v53 = vpop.eup %5492 }
 0x809   : > { %v4930_v51 = vpop.f32.mrb[50].mxu0  ;;  %v2129_v44 = vmul.f32 %v5475_v29, %v2066_v15 }
 0x80a   : > { %v2132_v39 = vmul.f32 %v5473_v14, %v4930_v51  ;;  %v2069_v23 = vpop.f32.mrb[51].mxu0 }
 0x80b   : > { %v2130_v56 = vmul.f32 %v5477_v61, %v2069_v23 }
 0x80c   : > { %v5186_v19 = vpack.i.bf16 %v2132_v39, %v2131_v28  ;;  %v5495_v28 = vpop.eup %5494 }
 0x80d   : > { %v5191_v12 = vpack.i.bf16 %v2130_v56, %v2129_v44  ;;  %v5497_v23 = vpop.eup %5496 }
 0x80e   : > { %5187 = vrot.lane.b32.xlu1 %v5186_v19, %s6162_s1  ;;  %v5499_v56 = vpop.eup %5498 }
 0x80f   : > { %v4933_v45 = vpop.f32.mrb[52].mxu0  ;;  %5192 = vrot.lane.b32.xlu0 %v5191_v12, %s6162_s1  ;;  %v5501_v12 = vpop.eup %5500 }
 0x810   : > { %v2082_v30 = vpop.f32.mrb[53].mxu0  ;;  %v2135_v10 = vmul.f32 %v5481_v11, %v4933_v45 }
 0x811   : > { %v4934_v18 = vpop.f32.mrb[54].mxu0  ;;  %v2133_v13 = vmul.f32 %v5485_v41, %v2082_v30 }
 0x812   : > { %v2136_v31 = vmul.f32 %v5479_v54, %v4934_v18  ;;  %v2085_v59 = vpop.f32.mrb[55].mxu0 }
 0x813   : > { %v2134_v0 = vmul.f32 %v5483_v17, %v2085_v59 }
 0x814   : > { %v5196_v57 = vpack.i.bf16 %v2136_v31, %v2135_v10 }
 0x815   : > { %v5201_v4 = vpack.i.bf16 %v2134_v0, %v2133_v13 }
 0x816   : > { %5197 = vrot.lane.b32.xlu1 %v5196_v57, %s6162_s1 }
 0x817   : > { %5202 = vrot.lane.b32.xlu0 %v5201_v4, %s6162_s1 }
 0x836   : > { %1530 = vadd.xlane.f32.xlu0 %v7124_v38 }
 0x83a   : > { %1532 = vadd.xlane.f32.xlu1 %v7118_v37 }
 0x83e   : > { %v4937_v26 = vpop.f32.mrb[56].mxu0 }
 0x83f   : > { %v2098_v24 = vpop.f32.mrb[57].mxu0  ;;  %v2139_v14 = vmul.f32 %v5487_v58, %v4937_v26 }
 0x840   : > { %v4938_v21 = vpop.f32.mrb[58].mxu0  ;;  %v2137_v38 = vmul.f32 %v5491_v2, %v2098_v24 }
 0x841   : > { %v2140_v15 = vmul.f32 %v5489_v20, %v4938_v21  ;;  %v2101_v29 = vpop.f32.mrb[59].mxu0 }
 0x842   : > { %v2138_v51 = vmul.f32 %v5493_v53, %v2101_v29 }
 0x843   : > { %v5211_v61 = vpack.i.bf16 %v2140_v15, %v2139_v14 }
 0x844   : > { %v5206_v37 = vpack.i.bf16 %v2138_v51, %v2137_v38 }
 0x846   : > { %v4941_v39 = vpop.f32.mrb[60].mxu0 }
 0x847   : > { %v2114_v44 = vpop.f32.mrb[61].mxu0  ;;  %v2143_v54 = vmul.f32 %v5497_v23, %v4941_v39 }
 0x848   : > { %v4942_v19 = vpop.f32.mrb[62].mxu0  ;;  %v2141_v30 = vmul.f32 %v5501_v12, %v2114_v44 }
 0x849   : > { %v2144_v45 = vmul.f32 %v5495_v28, %v4942_v19  ;;  %v2117_v11 = vpop.f32.mrb[63].mxu0 }
 0x84a   : > { %v2142_v17 = vmul.f32 %v5499_v56, %v2117_v11 }
 0x84b   : > { %v5221_v18 = vpack.i.bf16 %v2144_v45, %v2143_v54  ;;  %5212 = vrot.lane.b32.xlu1 %v5211_v61, %s6162_s1 }
 0x84c   : > { %v5216_v41 = vpack.i.bf16 %v2142_v17, %v2141_v30  ;;  %5207 = vrot.lane.b32.xlu0 %v5206_v37, %s6162_s1 }
 0x84f   : > { %5217 = vrot.lane.b32.xlu1 %v5216_v41, %s6162_s1  ;;  %v5666_v41 = vld [vmem:[%s6612_s25] sm:$0xff] }
 0x853   : > { %5222 = vrot.lane.b32.xlu1 %v5221_v18, %s6162_s1  ;;  %v7318_v18 = vld [vmem:[#allocation13] ss:$0 sm:$0xff] }
 0x880   : > { %v5188_v10 = vpop.permute.xlu1 %5187 }
 0x881   : > { %v5190_v31 = vunpack.i.h.bf16 %v5188_v10  ;;  %v5189_v59 = vunpack.i.l.bf16 %v5188_v10  ;;  %v5193_v13 = vpop.permute.xlu0 %5192 }
 0x882   : > { %v5195_v0 = vunpack.i.h.bf16 %v5193_v13  ;;  %v5194_v57 = vunpack.i.l.bf16 %v5193_v13 }
 0x883   : > { %v2212_v4 = vsel %vm1276_vm0, %v7240_v43, %v5190_v31  ;;  %v2211_v49 = vsel %vm1276_vm0, %v7243_v16, %v5189_v59 }
 0x884   : > { %v2226_v32 = vpack.c.bf16 %v2212_v4, %v2211_v49  ;;  %v2209_v55 = vsel %vm1276_vm0, %v7237_v25, %v5194_v57  ;;  %v2210_v36 = vsel %vm1276_vm0, %v7234_v5, %v5195_v0  ;;  %v5668_v57 = vld [vmem:[%s6612_s25 + $0x8] sm:$0xff] }
 0x885   : > { %v2225_v35 = vpack.c.bf16 %v2210_v36, %v2209_v55  ;;  %v5669_v55 = vld [vmem:[%s6612_s25 + $0x18] sm:$0xff] }
 0x887   : > { %4959 = vmatprep.mubr.bf16.mxu0 %v2225_v35 }
 0x888   : > { %v5198_v60 = vpop.permute.xlu1 %5197  ;;  %4960 = vmatmul.mubr.bf16.vlgmr.msra.gmra.mrb[64].mxu0 %v2226_v32 }
 0x889   : > { %v5200_v34 = vunpack.i.h.bf16 %v5198_v60  ;;  %v5199_v6 = vunpack.i.l.bf16 %v5198_v60  ;;  %v5203_v58 = vpop.permute.xlu0 %5202 }
 0x88a   : > { %v5205_v26 = vunpack.i.h.bf16 %v5203_v58  ;;  %v5204_v20 = vunpack.i.l.bf16 %v5203_v58 }
 0x88b   : > { %v2215_v43 = vsel %vm1276_vm0, %v7255_v8, %v5199_v6  ;;  %v2216_v16 = vsel %vm1276_vm0, %v7252_v3, %v5200_v34 }
 0x88c   : > { %v2213_v25 = vsel %vm1276_vm0, %v7249_v42, %v5204_v20  ;;  %v2214_v5 = vsel %vm1276_vm0, %v7246_v27, %v5205_v26  ;;  %v2228_v24 = vpack.c.bf16 %v2216_v16, %v2215_v43  ;;  %v5670_v26 = vld [vmem:[%s6612_s25 + $0x20] sm:$0xff]  ;;  %v5671_v43 = vld [vmem:[%s6612_s25 + $0x28] sm:$0xff] }
 0x88d   : > { %v2227_v2 = vpack.c.bf16 %v2214_v5, %v2213_v25  ;;  %v5672_v25 = vld [vmem:[%s6612_s25 + $0x38] sm:$0xff] }
 0x88f   : > { %4963 = vmatprep.mubr.bf16.mxu0 %v2227_v2  ;;  %v5673_v2 = vld [vmem:[%s6612_s25 + $0x30] sm:$0xff] }
 0x890   : > { %4964 = vmatmul.mubr.bf16.gmra.mrb[68].mxu0 %v2228_v24 }
 0x8c3   : > { %v1531_v21 = vpop.xlane.xlu0 %1530 }
 0x8c4   : > { %5502 = vrcp.f32 %v1531_v21 }
 0x8c7   : > { %v1533_v53 = vpop.xlane.xlu1 %1532  ;;  %v5208_v14 = vpop.permute.xlu0 %5207 }
 0x8c8   : > { %5504 = vrcp.f32 %v1533_v53  ;;  %v5210_v15 = vunpack.i.h.bf16 %v5208_v14  ;;  %v5209_v8 = vunpack.i.l.bf16 %v5208_v14 }
 0x8ca   : > { %v2217_v3 = vsel %vm1276_vm0, %v7258_v9, %v5209_v8  ;;  %v2218_v42 = vsel %vm1276_vm0, %v7261_v50, %v5210_v15 }
 0x8cb   : > { %v5213_v29 = vpop.permute.xlu1 %5212  ;;  %v2229_v38 = vpack.c.bf16 %v2218_v42, %v2217_v3  ;;  %v5674_v42 = vld [vmem:[%s6612_s25 + $0x40] sm:$0xff] }
 0x8cc   : > { %v5215_v27 = vunpack.i.h.bf16 %v5213_v29  ;;  %v5214_v51 = vunpack.i.l.bf16 %v5213_v29 }
 0x8cd   : > { %4967 = vmatprep.mubr.bf16.mxu0 %v2229_v38 }
 0x8ce   : > { %v2219_v61 = vsel %vm1276_vm0, %v7267_v52, %v5214_v51  ;;  %v2220_v37 = vsel %vm1276_vm0, %v7264_v47, %v5215_v27  ;;  %v5503_v56 = vpop.eup %5502  ;;  %v5675_v51 = vld [vmem:[%s6612_s25 + $0x50] sm:$0xff] }
 0x8cf   : > { %v5218_v28 = vpop.permute.xlu1 %5217  ;;  %v2230_v39 = vpack.c.bf16 %v2220_v37, %v2219_v61  ;;  %v1669_v11 = vmul.f32 %v5503_v56, %v7165_v40  ;;  %v5667_v40 = vld [vmem:[%s6612_s25 + $0x10] sm:$0xff] }
 0x8d0   : > { %v5220_v23 = vunpack.i.h.bf16 %v5218_v28  ;;  %v5219_v44 = vunpack.i.l.bf16 %v5218_v28  ;;  %v5676_v28 = vld [vmem:[%s6612_s25 + $0x48] sm:$0xff] }
 0x8d1   : > { %4968 = vmatmul.mubr.bf16.gmra.mrb[72].mxu0 %v2230_v39 }
 0x8d2   : > { %v5505_v9 = vpop.eup %5504  ;;  %v2221_v50 = vsel %vm1276_vm0, %v7270_v48, %v5219_v44  ;;  %v2222_v19 = vsel %vm1276_vm0, %v7273_v62, %v5220_v23  ;;  %v5677_v23 = vld [vmem:[%s6612_s25 + $0x58] sm:$0xff] }
 0x8d3   : > { %v5223_v12 = vpop.permute.xlu1 %5222  ;;  %v2231_v54 = vpack.c.bf16 %v2222_v19, %v2221_v50  ;;  %v1670_v52 = vmul.f32 %v5505_v9, %v7169_v7 }
 0x8d4   : > { %v5225_v45 = vunpack.i.h.bf16 %v5223_v12  ;;  %v5224_v47 = vunpack.i.l.bf16 %v5223_v12 }
 0x8d5   : > { %4971 = vmatprep.mubr.bf16.mxu0 %v2231_v54  ;;  %v5678_v54 = vld [vmem:[%s6612_s25 + $0x60] sm:$0xff] }
 0x8d6   : > { %v2223_v30 = vsel %vm1276_vm0, %v1669_v11, %v5224_v47  ;;  %v2224_v17 = vsel %vm1276_vm0, %v1670_v52, %v5225_v45  ;;  %v5679_v11 = vld [vmem:[%s6612_s25 + $0x70] sm:$0xff] }
 0x8d7   : > { %v2232_v48 = vpack.c.bf16 %v2224_v17, %v2223_v30 }
 0x8d9   : > { %4972 = vmatmul.mubr.bf16.gmra.mrb[76].mxu0 %v2232_v48  ;;  %v5680_v48 = vld [vmem:[%s6612_s25 + $0x68] sm:$0xff] }
 0x8da   : > { %3022 = vmatprep.mubr.bf16.mxu0 %v6161_v46 }
 0x95b   : > { %v4961_v62 = vpop.f32.mrb[64].mxu0 }
 0x95c   : > { %v2331_v7 = vpop.f32.mrb[65].mxu0  ;;  %v2396_v13 = vadd.f32 %v5667_v40, %v4961_v62  ;;  %v5266_v40 = vld [vmem:[#allocation17] ss:$16 sps:$4 sm:$0xff]  }
 0x95d   : > { %v2394_v10 = vadd.f32 %v5666_v41, %v2331_v7  ;;  %v4962_v31 = vpop.f32.mrb[66].mxu0  ;;  %v5681_v7 = vld [vmem:[%s6612_s25 + $0x78] sm:$0xff]  ;;  %s6163_s25 = smov [#allocation23]  }
 0x95e   : > { %v2334_v59 = vpop.f32.mrb[67].mxu0  ;;  %v7331_v32 = vadd.f32 %v7318_v18, %v2396_v13  ;;  %v2397_v36 = vadd.f32 %v5669_v55, %v4962_v31  ;;  %v5268_v13 = vld [vmem:[#allocation17 + $0x4] ss:$16 sps:$4 sm:$0xff]   ;;  %s6052_s15 = sshll.u32 %s6163_s25, 4  ;;  %s6053_s15 = int_to_ptr.vmem [resolvable:$false] %s6052_s15 }
 0x95f   : > { %v7323_v0 = vadd.f32 %v7318_v18, %v2394_v10  ;;  %v2395_v4 = vadd.f32 %v5668_v57, %v2334_v59  ;;  %v5269_v57 = vld [vmem:[#allocation17 + $0x8] ss:$16 sps:$4 sm:$0xff]   ;;  %v5274_v55 = vld [vmem:[#allocation17 + $0x24] ss:$16 sps:$4 sm:$0xff]   ;;  %2877 = vmatprep.subr.bf16.mxu1 %v5268_v13  ;;  %s6054_s1 = scalar_lea.vmem %s6053_s15, 4096  ;;  %p6055_p12 = scmp.lt.s32.totalorder %s8432_s13, %s6053_s15 }
 0x960   : > { %8595 = vst [vmem:[#allocation37_spill] sm:$0xff] %v7331_v32  ;;  %v7337_v58 = vadd.f32 %v7318_v18, %v2397_v36  ;;  %v5277_v36 = vld [vmem:[#allocation17 + $0x2c] ss:$16 sps:$4 sm:$0xff]   ;;  %2878 = vmatpush1.bf16.msra.mxu1 %v5266_v40  ;;  %v5281_v40 = vld [vmem:[#allocation17 + $0x48] ss:$16 sps:$4 sm:$0xff]   ;;  %p6056_p0 = scmp.lt.s32.totalorder %s6054_s1, %s6048_s16 }
 0x961   : > { %8593 = vst [vmem:[#allocation35_spill] sm:$0xff] %v7323_v0  ;;  %v7327_v49 = vadd.f32 %v7318_v18, %v2395_v4  ;;  %2435 = vadd.xlane.f32.xlu0 %v7323_v0  ;;  %v5271_v4 = vld [vmem:[#allocation17 + $0xc] ss:$16 sps:$4 sm:$0xff]   ;;  %2879 = vmatprep.subr.bf16.mxu1 %v5274_v55  ;;  %v5286_v13 = vld [vmem:[#allocation17 + $0x64] ss:$16 sps:$4 sm:$0xff]  }
 0x962   : > { %8596 = vst [vmem:[#allocation38_spill] sm:$0xff] %v7337_v58  ;;  %2990 = vmatprep.subr.bf16.mxu0 %v5271_v4  ;;  %v5284_v4 = vld [vmem:[#allocation17 + $0x60] ss:$16 sps:$4 sm:$0xff]   ;;  %v5287_v55 = vld [vmem:[#allocation17 + $0x68] ss:$16 sps:$4 sm:$0xff]   ;;  %p6057_p5 = por %p6056_p0, %p6055_p12 }
 0x963   : > { %8594 = vst [vmem:[#allocation36_spill] sm:$0xff] %v7327_v49  ;;  %2437 = vadd.xlane.f32.xlu1 %v7327_v49  ;;  %v4965_v35 = vpop.f32.mrb[68].mxu0  ;;  %2991 = vmatpush1.bf16.msra.mxu0 %v5269_v57  ;;  %v5289_v57 = vld [vmem:[#allocation17 + $0x6c] ss:$16 sps:$4 sm:$0xff]  }
 0x964   : > { %v2347_v60 = vpop.f32.mrb[69].mxu0  ;;  %v2400_v21 = vadd.f32 %v5673_v2, %v4965_v35  ;;  %v5272_v35 = vld [vmem:[#allocation17 + $0x20] ss:$16 sps:$4 sm:$0xff]   ;;  %2992 = vmatprep.subr.bf16.mxu0 %v5277_v36  ;;  %v5292_v36 = vld [vmem:[#allocation17 + $0x84] ss:$16 sps:$4 sm:$0xff]   ;;  %p6058_p7 = pnand %p6057_p5, %p6051_p11 }
 0x965   : > { %2439 = vadd.xlane.f32.xlu0 %v7331_v32  ;;  %v4966_v34 = vpop.f32.mrb[70].mxu0  ;;  %v2398_v20 = vadd.f32 %v5670_v26, %v2347_v60  ;;  %v5275_v60 = vld [vmem:[#allocation17 + $0x28] ss:$16 sps:$4 sm:$0xff]   ;;  %2880 = vmatpush1.bf16.msra.mxu1 %v5272_v35  ;;  %v5295_v35 = vld [vmem:[#allocation17 + $0x8c] ss:$16 sps:$4 sm:$0xff]  }
 0x966   : > { %v2350_v6 = vpop.f32.mrb[71].mxu0  ;;  %v2401_v5 = vadd.f32 %v5672_v25, %v4966_v34  ;;  %v7356_v15 = vadd.f32 %v7318_v18, %v2400_v21 }
 0x967   : > { %v2399_v16 = vadd.f32 %v5671_v43, %v2350_v6  ;;  %v7348_v53 = vadd.f32 %v7318_v18, %v2398_v20  ;;  %2993 = vmatpush1.bf16.msra.mxu0 %v5275_v60  ;;  %v5290_v60 = vld [vmem:[#allocation17 + $0x80] ss:$16 sps:$4 sm:$0xff]  }
 0x968   : > { %v7352_v14 = vadd.f32 %v7318_v18, %v2401_v5  ;;  %8600 = vst [vmem:[#allocation42_spill] sm:$0xff] %v7356_v15 }
 0x969   : > { %v7343_v24 = vadd.f32 %v7318_v18, %v2399_v16  ;;  %2441 = vadd.xlane.f32.xlu0 %v7337_v58  ;;  %8598 = vst [vmem:[#allocation40_spill] sm:$0xff] %v7348_v53 }
 0x96a   : > { %8599 = vst [vmem:[#allocation41_spill] sm:$0xff] %v7352_v14 }
 0x96b   : > { %8597 = vst [vmem:[#allocation39_spill] sm:$0xff] %v7343_v24  ;;  %2445 = vadd.xlane.f32.xlu1 %v7343_v24 }
 0x96d   : > { %2443 = vadd.xlane.f32.xlu0 %v7348_v53 }
 0x96f   : > { %2449 = vadd.xlane.f32.xlu1 %v7352_v14 }
 0x971   : > { %2447 = vadd.xlane.f32.xlu0 %v7356_v15 }
 0x9a4   : > { %v4969_v8 = vpop.f32.mrb[72].mxu0 }
 0x9a5   : > { %v2363_v3 = vpop.f32.mrb[73].mxu0  ;;  %v2404_v61 = vadd.f32 %v5675_v51, %v4969_v8 }
 0x9a6   : > { %v2402_v29 = vadd.f32 %v5674_v42, %v2363_v3  ;;  %v4970_v38 = vpop.f32.mrb[74].mxu0 }
 0x9a7   : > { %v2366_v27 = vpop.f32.mrb[75].mxu0  ;;  %v2405_v44 = vadd.f32 %v5677_v23, %v4970_v38  ;;  %v7372_v9 = vadd.f32 %v7318_v18, %v2404_v61 }
 0x9a8   : > { %v7363_v37 = vadd.f32 %v7318_v18, %v2402_v29  ;;  %v2403_v39 = vadd.f32 %v5676_v28, %v2366_v27 }
 0x9a9   : > { %8603 = vst [vmem:[#allocation45_spill] sm:$0xff] %v7372_v9  ;;  %v7376_v12 = vadd.f32 %v7318_v18, %v2405_v44 }
 0x9aa   : > { %8601 = vst [vmem:[#allocation43_spill] sm:$0xff] %v7363_v37  ;;  %v7368_v56 = vadd.f32 %v7318_v18, %v2403_v39  ;;  %2451 = vadd.xlane.f32.xlu0 %v7363_v37 }
 0x9ab   : > { %8604 = vst [vmem:[#allocation46_spill] sm:$0xff] %v7376_v12 }
 0x9ac   : > { %8602 = vst [vmem:[#allocation44_spill] sm:$0xff] %v7368_v56  ;;  %2453 = vadd.xlane.f32.xlu1 %v7368_v56  ;;  %v4973_v50 = vpop.f32.mrb[76].mxu0 }
 0x9ad   : > { %v2379_v19 = vpop.f32.mrb[77].mxu0  ;;  %v2408_v30 = vadd.f32 %v5679_v11, %v4973_v50 }
 0x9ae   : > { %v2406_v52 = vadd.f32 %v5678_v54, %v2379_v19  ;;  %2455 = vadd.xlane.f32.xlu0 %v7372_v9  ;;  %v4974_v45 = vpop.f32.mrb[78].mxu0 }
 0x9af   : > { %v2382_v47 = vpop.f32.mrb[79].mxu0  ;;  %v2409_v41 = vadd.f32 %v5681_v7, %v4974_v45  ;;  %v7392_v31 = vadd.f32 %v7318_v18, %v2408_v30  ;;  %v5283_v7 = vld [vmem:[#allocation17 + $0x4c] ss:$16 sps:$4 sm:$0xff]  }
 0x9b0   : > { %v7382_v17 = vadd.f32 %v7318_v18, %v2406_v52  ;;  %v2407_v62 = vadd.f32 %v5680_v48, %v2382_v47  ;;  %2457 = vadd.xlane.f32.xlu1 %v7376_v12  ;;  %2994 = vmatprep.subr.bf16.mxu0 %v5283_v7 }
 0x9b1   : > { %8607 = vst [vmem:[#allocation49_spill] sm:$0xff] %v7392_v31  ;;  %v7396_v59 = vadd.f32 %v7318_v18, %v2409_v41  ;;  %v5278_v41 = vld [vmem:[#allocation17 + $0x40] ss:$16 sps:$4 sm:$0xff]   ;;  %2995 = vmatpush1.bf16.msra.mxu0 %v5281_v40 }
 0x9b2   : > { %8605 = vst [vmem:[#allocation47_spill] sm:$0xff] %v7382_v17  ;;  %v7388_v10 = vadd.f32 %v7318_v18, %v2407_v62  ;;  %2459 = vadd.xlane.f32.xlu0 %v7382_v17  ;;  %v5280_v62 = vld [vmem:[#allocation17 + $0x44] ss:$16 sps:$4 sm:$0xff]   ;;  %2996 = vmatprep.subr.bf16.mxu0 %v5289_v57 }
 0x9b3   : > { %8608 = vst [vmem:[#allocation50_spill] sm:$0xff] %v7396_v59  ;;  %2881 = vmatprep.subr.bf16.mxu1 %v5280_v62 }
 0x9b4   : > { %8606 = vst [vmem:[#allocation48_spill] sm:$0xff] %v7388_v10  ;;  %2461 = vadd.xlane.f32.xlu1 %v7388_v10  ;;  %2882 = vmatpush1.bf16.msra.mxu1 %v5278_v41 }
 0x9b5   : > { %2883 = vmatprep.subr.bf16.mxu1 %v5286_v13  ;;  %2997 = vmatpush1.bf16.msra.mxu0 %v5287_v55 }
 0x9b6   : > { %2463 = vadd.xlane.f32.xlu0 %v7392_v31  ;;  %2998 = vmatprep.subr.bf16.mxu0 %v5295_v35 }
 0x9b8   : > { %2465 = vadd.xlane.f32.xlu1 %v7396_v59  ;;  %2884 = vmatpush1.bf16.msra.mxu1 %v5284_v4 }
 0x9b9   : > { %2885 = vmatprep.subr.bf16.mxu1 %v5292_v36 }
 0x9bc   : > { %2886 = vmatpush1.bf16.msra.mxu1 %v5290_v60 }
 0x9ee   : > { %v2436_v18 = vpop.xlane.xlu0 %2435 }
 0x9ef   : > { %v2467_v34 = vmul.f32 0.0078125, %v2436_v18  ;;  %v5293_v18 = vld [vmem:[#allocation17 + $0x88] ss:$16 sps:$4 sm:$0xff]  }
 0x9f0   : > { %v2438_v6 = vpop.xlane.xlu1 %2437  ;;  %2999 = vmatpush1.bf16.msra.mxu0 %v5293_v18 }
 0x9f1   : > { %v7401_v26 = vsub.f32 %v7323_v0, %v2467_v34  ;;  %v2468_v20 = vmul.f32 0.0078125, %v2438_v6  ;;  %v5298_v34 = vld [vmem:[#allocation17 + $0xa4] ss:$16 sps:$4 sm:$0xff]   ;;  %v5301_v6 = vld [vmem:[#allocation17 + $0xac] ss:$16 sps:$4 sm:$0xff]  }
 0x9f2   : > { %v2440_v43 = vpop.xlane.xlu0 %2439  ;;  %2887 = vmatprep.subr.bf16.mxu1 %v5298_v34  ;;  %3000 = vmatprep.subr.bf16.mxu0 %v5301_v6 }
 0x9f3   : > { %v7404_v16 = vsub.f32 %v7327_v49, %v2468_v20  ;;  %v2469_v25 = vmul.f32 0.0078125, %v2440_v43  ;;  %v2499_v5 = vmul.f32 %v7401_v26, %v7401_v26  ;;  %v5296_v20 = vld [vmem:[#allocation17 + $0xa0] ss:$16 sps:$4 sm:$0xff]   ;;  %v5299_v43 = vld [vmem:[#allocation17 + $0xa8] ss:$16 sps:$4 sm:$0xff]  }
 0x9f4   : > { %2888 = vmatpush1.bf16.msra.mxu1 %v5296_v20  ;;  %3001 = vmatpush1.bf16.msra.mxu0 %v5299_v43 }
 0x9f5   : > { %v7409_v2 = vsub.f32 %v7331_v32, %v2469_v25  ;;  %2515 = vadd.xlane.f32.xlu0 %v2499_v5  ;;  %v2500_v21 = vmul.f32 %v7404_v16, %v7404_v16  ;;  %v5304_v25 = vld [vmem:[#allocation17 + $0xc4] ss:$16 sps:$4 sm:$0xff]   ;;  %v5307_v5 = vld [vmem:[#allocation17 + $0xcc] ss:$16 sps:$4 sm:$0xff]  }
 0x9f6   : > { %v2442_v8 = vpop.xlane.xlu0 %2441  ;;  %2889 = vmatprep.subr.bf16.mxu1 %v5304_v25  ;;  %3002 = vmatprep.subr.bf16.mxu0 %v5307_v5 }
 0x9f7   : > { %v2470_v3 = vmul.f32 0.0078125, %v2442_v8  ;;  %2517 = vadd.xlane.f32.xlu1 %v2500_v21  ;;  %v2501_v42 = vmul.f32 %v7409_v2, %v7409_v2  ;;  %v5302_v21 = vld [vmem:[#allocation17 + $0xc0] ss:$16 sps:$4 sm:$0xff]   ;;  %v5305_v8 = vld [vmem:[#allocation17 + $0xc8] ss:$16 sps:$4 sm:$0xff]  }
 0x9f8   : > { %v2446_v29 = vpop.xlane.xlu1 %2445  ;;  %2890 = vmatpush1.bf16.msra.mxu1 %v5302_v21  ;;  %3003 = vmatpush1.bf16.msra.mxu0 %v5305_v8 }
 0x9f9   : > { %v7416_v38 = vsub.f32 %v7337_v58, %v2470_v3  ;;  %v2472_v27 = vmul.f32 0.0078125, %v2446_v29  ;;  %2519 = vadd.xlane.f32.xlu0 %v2501_v42  ;;  %v5308_v3 = vld [vmem:[#allocation17 + $0xe0] ss:$16 sps:$4 sm:$0xff]   ;;  %v5310_v42 = vld [vmem:[#allocation17 + $0xe4] ss:$16 sps:$4 sm:$0xff]  }
 0x9fa   : > { %v2444_v51 = vpop.xlane.xlu0 %2443  ;;  %v5311_v29 = vld [vmem:[#allocation17 + $0xe8] ss:$16 sps:$4 sm:$0xff]   ;;  %2891 = vmatprep.subr.bf16.mxu1 %v5310_v42 }
 0x9fb   : > { %v7419_v61 = vsub.f32 %v7343_v24, %v2472_v27  ;;  %v2471_v28 = vmul.f32 0.0078125, %v2444_v51  ;;  %v2502_v39 = vmul.f32 %v7416_v38, %v7416_v38  ;;  %v5313_v27 = vld [vmem:[#allocation17 + $0xec] ss:$16 sps:$4 sm:$0xff]  }
 0x9fc   : > { %v2450_v23 = vpop.xlane.xlu1 %2449  ;;  %3004 = vmatprep.subr.bf16.mxu0 %v5313_v27  ;;  %2892 = vmatpush1.bf16.msra.mxu1 %v5308_v3 }
 0x9fd   : > { %v7424_v44 = vsub.f32 %v7348_v53, %v2471_v28  ;;  %v2474_v50 = vmul.f32 0.0078125, %v2450_v23  ;;  %2521 = vadd.xlane.f32.xlu1 %v2502_v39  ;;  %v2504_v47 = vmul.f32 %v7419_v61, %v7419_v61  ;;  %3005 = vmatpush1.bf16.msra.mxu0 %v5311_v29 }
 0x9fe   : > { %v2448_v19 = vpop.xlane.xlu0 %2447 }
 0x9ff   : > { %v7427_v54 = vsub.f32 %v7352_v14, %v2474_v50  ;;  %v2473_v52 = vmul.f32 0.0078125, %v2448_v19  ;;  %v2503_v45 = vmul.f32 %v7424_v44, %v7424_v44 }
 0xa01   : > { %v7434_v11 = vsub.f32 %v7356_v15, %v2473_v52  ;;  %2523 = vadd.xlane.f32.xlu0 %v2503_v45  ;;  %2525 = vadd.xlane.f32.xlu1 %v2504_v47  ;;  %v2506_v48 = vmul.f32 %v7427_v54, %v7427_v54 }
 0xa03   : > { %v2505_v30 = vmul.f32 %v7434_v11, %v7434_v11 }
 0xa05   : > { %2527 = vadd.xlane.f32.xlu0 %v2505_v30  ;;  %2529 = vadd.xlane.f32.xlu1 %v2506_v48 }
 0xa37   : > { %v2452_v51 = vpop.xlane.xlu0 %2451 }
 0xa38   : > { %v2475_v28 = vmul.f32 0.0078125, %v2452_v51 }
 0xa39   : > { %v2454_v39 = vpop.xlane.xlu1 %2453 }
 0xa3a   : > { %v7441_v23 = vsub.f32 %v7363_v37, %v2475_v28  ;;  %v2476_v50 = vmul.f32 0.0078125, %v2454_v39 }
 0xa3b   : > { %v2456_v19 = vpop.xlane.xlu0 %2455 }
 0xa3c   : > { %v7444_v52 = vsub.f32 %v7368_v56, %v2476_v50  ;;  %v2477_v45 = vmul.f32 0.0078125, %v2456_v19  ;;  %v2507_v47 = vmul.f32 %v7441_v23, %v7441_v23 }
 0xa3d   : > { %v2458_v30 = vpop.xlane.xlu1 %2457 }
 0xa3e   : > { %v7449_v48 = vsub.f32 %v7372_v9, %v2477_v45  ;;  %v2478_v62 = vmul.f32 0.0078125, %v2458_v30  ;;  %2531 = vadd.xlane.f32.xlu0 %v2507_v47  ;;  %v2508_v7 = vmul.f32 %v7444_v52, %v7444_v52 }
 0xa3f   : > { %v2460_v41 = vpop.xlane.xlu0 %2459 }
 0xa40   : > { %v7454_v40 = vsub.f32 %v7376_v12, %v2478_v62  ;;  %v2479_v13 = vmul.f32 0.0078125, %v2460_v41  ;;  %2533 = vadd.xlane.f32.xlu1 %v2508_v7  ;;  %v2509_v57 = vmul.f32 %v7449_v48, %v7449_v48 }
 0xa41   : > { %v2462_v4 = vpop.xlane.xlu1 %2461 }
 0xa42   : > { %v7459_v55 = vsub.f32 %v7382_v17, %v2479_v13  ;;  %v2480_v36 = vmul.f32 0.0078125, %v2462_v4  ;;  %2535 = vadd.xlane.f32.xlu0 %v2509_v57  ;;  %v2510_v35 = vmul.f32 %v7454_v40, %v7454_v40 }
 0xa43   : > { %v2464_v60 = vpop.xlane.xlu0 %2463 }
 0xa44   : > { %v7464_v18 = vsub.f32 %v7388_v10, %v2480_v36  ;;  %v2481_v34 = vmul.f32 0.0078125, %v2464_v60  ;;  %2537 = vadd.xlane.f32.xlu1 %v2510_v35  ;;  %v2511_v6 = vmul.f32 %v7459_v55, %v7459_v55  ;;  %v7480_v36 = vld [vmem:[#allocation14] ss:$0 sm:$0xff] }
 0xa45   : > { %v2466_v20 = vpop.xlane.xlu1 %2465 }
 0xa46   : > { %v7469_v43 = vsub.f32 %v7392_v31, %v2481_v34  ;;  %v2482_v25 = vmul.f32 0.0078125, %v2466_v20  ;;  %2539 = vadd.xlane.f32.xlu0 %v2511_v6  ;;  %v2512_v5 = vmul.f32 %v7464_v18, %v7464_v18 }
 0xa48   : > { %v7474_v21 = vsub.f32 %v7396_v59, %v2482_v25  ;;  %2541 = vadd.xlane.f32.xlu1 %v2512_v5  ;;  %v2513_v8 = vmul.f32 %v7469_v43, %v7469_v43 }
 0xa4a   : > { %2543 = vadd.xlane.f32.xlu0 %v2513_v8  ;;  %v2514_v3 = vmul.f32 %v7474_v21, %v7474_v21 }
 0xa4c   : > { %2545 = vadd.xlane.f32.xlu1 %v2514_v3 }
 0xa82   : > { %v2516_v42 = vpop.xlane.xlu0 %2515 }
 0xa83   : > { %v2547_v29 = vmul.f32 0.0078125, %v2516_v42 }
 0xa84   : > { %v2518_v27 = vpop.xlane.xlu1 %2517 }
 0xa85   : > { %v2563_v51 = vadd.f32 1e-06, %v2547_v29  ;;  %v2548_v28 = vmul.f32 0.0078125, %v2518_v27 }
 0xa86   : > { %v2520_v39 = vpop.xlane.xlu0 %2519 }
 0xa87   : > { %5506 = vrsqrt.f32 %v2563_v51  ;;  %v2564_v50 = vadd.f32 1e-06, %v2548_v28  ;;  %v2549_v19 = vmul.f32 0.0078125, %v2520_v39  ;;  %v7485_v28 = vld [vmem:[#allocation16] ss:$0 sm:$0xff] }
 0xa89   : > { %5508 = vrsqrt.f32 %v2564_v50  ;;  %v2565_v45 = vadd.f32 1e-06, %v2549_v19 }
 0xa8a   : > { %v2522_v47 = vpop.xlane.xlu1 %2521 }
 0xa8b   : > { %5510 = vrsqrt.f32 %v2565_v45  ;;  %v2550_v30 = vmul.f32 0.0078125, %v2522_v47 }
 0xa8d   : > { %v2566_v62 = vadd.f32 1e-06, %v2550_v30 }
 0xa8e   : > { %v2524_v7 = vpop.xlane.xlu0 %2523  ;;  %v2526_v41 = vpop.xlane.xlu1 %2525 }
 0xa8f   : > { %5512 = vrsqrt.f32 %v2566_v62  ;;  %v2551_v13 = vmul.f32 0.0078125, %v2524_v7  ;;  %v2552_v57 = vmul.f32 0.0078125, %v2526_v41 }
 0xa91   : > { %v5507_v4 = vpop.eup %5506  ;;  %v2567_v35 = vadd.f32 1e-06, %v2551_v13  ;;  %v2568_v60 = vadd.f32 1e-06, %v2552_v57 }
 0xa92   : > { %v2595_v34 = vmul.f32 %v5507_v4, %v7401_v26  ;;  %v2528_v6 = vpop.xlane.xlu0 %2527  ;;  %v2530_v20 = vpop.xlane.xlu1 %2529 }
 0xa93   : > { %v5509_v25 = vpop.eup %5508  ;;  %5514 = vrsqrt.f32 %v2567_v35  ;;  %v2553_v5 = vmul.f32 0.0078125, %v2528_v6  ;;  %v2554_v8 = vmul.f32 0.0078125, %v2530_v20 }
 0xa94   : > { %v2617_v3 = vmul.f32 %v7480_v36, %v2595_v34  ;;  %v2596_v42 = vmul.f32 %v5509_v25, %v7404_v16  ;;  %5516 = vrsqrt.f32 %v2568_v60 }
 0xa95   : > { %v5511_v29 = vpop.eup %5510  ;;  %v2569_v27 = vadd.f32 1e-06, %v2553_v5  ;;  %v2570_v51 = vadd.f32 1e-06, %v2554_v8 }
 0xa96   : > { %v2618_v39 = vmul.f32 %v7480_v36, %v2596_v42  ;;  %v2639_v26 = vadd.f32 %v7485_v28, %v2617_v3  ;;  %v2597_v19 = vmul.f32 %v5511_v29, %v7409_v2 }
 0xa97   : > { %5518 = vrsqrt.f32 %v2569_v27 }
 0xa98   : > { %v2640_v50 = vadd.f32 %v7485_v28, %v2618_v39  ;;  %5520 = vrsqrt.f32 %v2570_v51  ;;  %v2619_v30 = vmul.f32 %v7480_v36, %v2597_v19 }
 0xa99   : > { %v5513_v45 = vpop.eup %5512 }
 0xa9a   : > { %v2655_v47 = vpack.c.bf16 %v2640_v50, %v2639_v26  ;;  %v2598_v16 = vmul.f32 %v5513_v45, %v7416_v38  ;;  %v2641_v38 = vadd.f32 %v7485_v28, %v2619_v30 }
 0xa9c   : > { %2910 = vmatmul.mubr.bf16.vlgmr.msra.gmra.mrb[48].mxu1 %v2655_v47  ;;  %3023 = vmatmul.mubr.bf16.vlgmr.msra.gmra.mrb[80].mxu0 %v2655_v47  ;;  %v2620_v62 = vmul.f32 %v7480_v36, %v2598_v16 }
 0xa9d   : > { %v5515_v7 = vpop.eup %5514  ;;  %2919 = vmatprep.mubr.bf16.mxu1 %v6161_v46  ;;  %3032 = vmatprep.mubr.bf16.mxu0 %v6161_v46 }
 0xa9e   : > { %v5517_v41 = vpop.eup %5516  ;;  %v2642_v13 = vadd.f32 %v7485_v28, %v2620_v62  ;;  %v2599_v2 = vmul.f32 %v5515_v7, %v7424_v44 }
 0xa9f   : > { %v2600_v57 = vmul.f32 %v5517_v41, %v7419_v61 }
 0xaa0   : > { %v2656_v35 = vpack.c.bf16 %v2642_v13, %v2641_v38  ;;  %v2621_v60 = vmul.f32 %v7480_v36, %v2599_v2 }
 0xaa1   : > { %v5519_v4 = vpop.eup %5518  ;;  %v2622_v34 = vmul.f32 %v7480_v36, %v2600_v57 }
 0xaa2   : > { %v5521_v6 = vpop.eup %5520  ;;  %v2643_v20 = vadd.f32 %v7485_v28, %v2621_v60  ;;  %v2601_v61 = vmul.f32 %v5519_v4, %v7434_v11 }
 0xaa3   : > { %v2644_v44 = vadd.f32 %v7485_v28, %v2622_v34  ;;  %v2602_v25 = vmul.f32 %v5521_v6, %v7427_v54 }
 0xaa4   : > { %2920 = vmatmul.mubr.bf16.gmra.mrb[52].mxu1 %v2656_v35  ;;  %3033 = vmatmul.mubr.bf16.gmra.mrb[84].mxu0 %v2656_v35  ;;  %v2623_v8 = vmul.f32 %v7480_v36, %v2601_v61 }
 0xaa5   : > { %2929 = vmatprep.mubr.bf16.mxu1 %v6161_v46  ;;  %3042 = vmatprep.mubr.bf16.mxu0 %v6161_v46  ;;  %v2657_v5 = vpack.c.bf16 %v2644_v44, %v2643_v20  ;;  %v2624_v3 = vmul.f32 %v7480_v36, %v2602_v25 }
 0xaa6   : > { %v2645_v42 = vadd.f32 %v7485_v28, %v2623_v8 }
 0xaa7   : > { %v2646_v29 = vadd.f32 %v7485_v28, %v2624_v3 }
 0xaa9   : > { %v2658_v27 = vpack.c.bf16 %v2646_v29, %v2645_v42 }
 0xaac   : > { %2930 = vmatmul.mubr.bf16.gmra.mrb[56].mxu1 %v2657_v5  ;;  %3043 = vmatmul.mubr.bf16.gmra.mrb[88].mxu0 %v2657_v5 }
 0xaad   : > { %2939 = vmatprep.mubr.bf16.mxu1 %v6161_v46  ;;  %3052 = vmatprep.mubr.bf16.mxu0 %v6161_v46 }
 0xab4   : > { %2940 = vmatmul.mubr.bf16.gmra.mrb[60].mxu1 %v2658_v27  ;;  %3053 = vmatmul.mubr.bf16.gmra.mrb[92].mxu0 %v2658_v27 }
 0xab5   : > { %2949 = vmatprep.mubr.bf16.mxu1 %v6161_v46  ;;  %3062 = vmatprep.mubr.bf16.mxu0 %v6161_v46 }
 0xacb   : > { %v2532_v54 = vpop.xlane.xlu0 %2531 }
 0xacc   : > { %v2555_v11 = vmul.f32 0.0078125, %v2532_v54 }
 0xacd   : > { %v2534_v51 = vpop.xlane.xlu1 %2533 }
 0xace   : > { %v2571_v39 = vadd.f32 1e-06, %v2555_v11  ;;  %v2556_v26 = vmul.f32 0.0078125, %v2534_v51 }
 0xacf   : > { %v2536_v50 = vpop.xlane.xlu0 %2535 }
 0xad0   : > { %5522 = vrsqrt.f32 %v2571_v39  ;;  %v2572_v19 = vadd.f32 1e-06, %v2556_v26  ;;  %v2557_v45 = vmul.f32 0.0078125, %v2536_v50 }
 0xad1   : > { %v2538_v47 = vpop.xlane.xlu1 %2537 }
 0xad2   : > { %5524 = vrsqrt.f32 %v2572_v19  ;;  %v2573_v16 = vadd.f32 1e-06, %v2557_v45  ;;  %v2558_v30 = vmul.f32 0.0078125, %v2538_v47 }
 0xad3   : > { %v2540_v62 = vpop.xlane.xlu0 %2539 }
 0xad4   : > { %5526 = vrsqrt.f32 %v2573_v16  ;;  %v2574_v7 = vadd.f32 1e-06, %v2558_v30  ;;  %v2559_v41 = vmul.f32 0.0078125, %v2540_v62 }
 0xad5   : > { %v2542_v13 = vpop.xlane.xlu1 %2541 }
 0xad6   : > { %5528 = vrsqrt.f32 %v2574_v7  ;;  %v2560_v2 = vmul.f32 0.0078125, %v2542_v13  ;;  %v2575_v57 = vadd.f32 1e-06, %v2559_v41 }
 0xad7   : > { %v2544_v4 = vpop.xlane.xlu0 %2543 }
 0xad8   : > { %v2576_v38 = vadd.f32 1e-06, %v2560_v2  ;;  %v2561_v44 = vmul.f32 0.0078125, %v2544_v4  ;;  %v5314_v2 = vld [vmem:[#allocation20 + $0x40] sm:$0xff]  }
 0xad9   : > { %v2546_v35 = vpop.xlane.xlu1 %2545  ;;  %4655 = vmatprep.subr.bf16.mxu1 %v5314_v2 }
 0xada   : > { %v5523_v60 = vpop.eup %5522  ;;  %5530 = vrsqrt.f32 %v2576_v38  ;;  %v2562_v34 = vmul.f32 0.0078125, %v2546_v35  ;;  %v2577_v29 = vadd.f32 1e-06, %v2561_v44  ;;  %v5316_v35 = vld [vmem:[#allocation20] sm:$0xff]   ;;  %v7553_v44 = vld [vmem:[#allocation20 + $0x88] sm:$0xff]  }
 0xadb   : > { %v2603_v6 = vmul.f32 %v5523_v60, %v7441_v23  ;;  %5532 = vrsqrt.f32 %v2575_v57  ;;  %v7540_v57 = vld [vmem:[#allocation20 + $0xc0] sm:$0xff]   ;;  %4656 = vmatpush3.bf16.msra.mxu1 %v5316_v35  ;;  %8611 = vst [vmem:[#allocation53_spill] sm:$0xff] %v7553_v44 }
 0xadc   : > { %v5525_v20 = vpop.eup %5524  ;;  %v2578_v8 = vadd.f32 1e-06, %v2562_v34  ;;  %4719 = vmatprep.subr.bf16.mxu0 %v7540_v57  ;;  %v7544_v60 = vld [vmem:[#allocation20 + $0x80] sm:$0xff]   ;;  %v7549_v34 = vld [vmem:[#allocation20 + $0xc8] sm:$0xff]  }
 0xadd   : > { %v2604_v61 = vmul.f32 %v5525_v20, %v7444_v52  ;;  %v2625_v25 = vmul.f32 %v7480_v36, %v2603_v6  ;;  %8609 = vst [vmem:[#allocation51_spill] sm:$0xff] %v7544_v60  ;;  %8610 = vst [vmem:[#allocation52_spill] sm:$0xff] %v7549_v34  ;;  %4720 = vmatpush3.bf16.msra.mxu0 %v7544_v60  ;;  %v5320_v20 = vld [vmem:[#allocation20 + $0x8] sm:$0xff]  }
 0xade   : > { %v5527_v5 = vpop.eup %5526  ;;  %5534 = vrsqrt.f32 %v2578_v8  ;;  %4721 = vmatprep.subr.bf16.mxu0 %v7549_v34  ;;  %v7561_v8 = vld [vmem:[#allocation20 + $0x90] sm:$0xff]  }
 0xadf   : > { %v2626_v3 = vmul.f32 %v7480_v36, %v2604_v61  ;;  %v2647_v27 = vadd.f32 %v7485_v28, %v2625_v25  ;;  %v2605_v11 = vmul.f32 %v5527_v5, %v7449_v48  ;;  %5536 = vrsqrt.f32 %v2577_v29  ;;  %v7558_v25 = vld [vmem:[#allocation20 + $0xd0] sm:$0xff]   ;;  %8613 = vst [vmem:[#allocation55_spill] sm:$0xff] %v7561_v8  ;;  %v7566_v29 = vld [vmem:[#allocation20 + $0x98] sm:$0xff]  }
 0xae0   : > { %v5529_v42 = vpop.eup %5528  ;;  %8612 = vst [vmem:[#allocation54_spill] sm:$0xff] %v7558_v25  ;;  %v5324_v5 = vld [vmem:[#allocation20 + $0x10] sm:$0xff]   ;;  %8615 = vst [vmem:[#allocation57_spill] sm:$0xff] %v7566_v29 }
 0xae1   : > { %v2648_v54 = vadd.f32 %v7485_v28, %v2626_v3  ;;  %v2606_v23 = vmul.f32 %v5529_v42, %v7454_v40  ;;  %v2627_v26 = vmul.f32 %v7480_v36, %v2605_v11  ;;  %4722 = vmatpush3.bf16.msra.mxu0 %v7553_v44  ;;  %v5326_v3 = vld [vmem:[#allocation20 + $0x58] sm:$0xff]   ;;  %v5332_v11 = vld [vmem:[#allocation20 + $0x20] sm:$0xff]  }
 0xae2   : > { %4723 = vmatprep.subr.bf16.mxu0 %v7558_v25  ;;  %v5328_v42 = vld [vmem:[#allocation20 + $0x18] sm:$0xff]  }
 0xae3   : > { %v2659_v51 = vpack.c.bf16 %v2648_v54, %v2647_v27  ;;  %v2628_v52 = vmul.f32 %v7480_v36, %v2606_v23  ;;  %v2649_v40 = vadd.f32 %v7485_v28, %v2627_v26  ;;  %v5330_v27 = vld [vmem:[#allocation20 + $0x60] sm:$0xff]   ;;  %v7578_v26 = vld [vmem:[#allocation20 + $0xa8] sm:$0xff]  }
 0xae4   : > { %v5531_v39 = vpop.eup %5530  ;;  %v7570_v54 = vld [vmem:[#allocation20 + $0xe0] sm:$0xff]   ;;  %8619 = vst [vmem:[#allocation61_spill] sm:$0xff] %v7578_v26 }
 0xae5   : > { %2950 = vmatmul.mubr.bf16.gmra.mrb[64].mxu1 %v2659_v51  ;;  %3063 = vmatmul.mubr.bf16.gmra.mrb[96].mxu0 %v2659_v51  ;;  %v5533_v50 = vpop.eup %5532  ;;  %v2650_v19 = vadd.f32 %v7485_v28, %v2628_v52  ;;  %v2608_v48 = vmul.f32 %v5531_v39, %v7464_v18  ;;  %8616 = vst [vmem:[#allocation58_spill] sm:$0xff] %v7570_v54  ;;  %v7572_v23 = vld [vmem:[#allocation20 + $0xa0] sm:$0xff]   ;;  %v5334_v51 = vld [vmem:[#allocation20 + $0x68] sm:$0xff]  }
 0xae6   : > { %2959 = vmatprep.mubr.bf16.mxu1 %v6161_v46  ;;  %3072 = vmatprep.mubr.bf16.mxu0 %v6161_v46  ;;  %v2607_v45 = vmul.f32 %v5533_v50, %v7459_v55  ;;  %8617 = vst [vmem:[#allocation59_spill] sm:$0xff] %v7572_v23  ;;  %v7576_v52 = vld [vmem:[#allocation20 + $0xe8] sm:$0xff]   ;;  %v5338_v50 = vld [vmem:[#allocation20 + $0x70] sm:$0xff]  }
 0xae7   : > { %v2660_v47 = vpack.c.bf16 %v2650_v19, %v2649_v40  ;;  %v2630_v16 = vmul.f32 %v7480_v36, %v2608_v48  ;;  %4724 = vmatpush3.bf16.msra.mxu0 %v7561_v8  ;;  %8618 = vst [vmem:[#allocation60_spill] sm:$0xff] %v7576_v52  ;;  %v5336_v39 = vld [vmem:[#allocation20 + $0x28] sm:$0xff]   ;;  %v7582_v19 = vld [vmem:[#allocation20 + $0xf0] sm:$0xff]  }
 0xae8   : > { %v5535_v30 = vpop.eup %5534  ;;  %v2629_v62 = vmul.f32 %v7480_v36, %v2607_v45  ;;  %8620 = vst [vmem:[#allocation62_spill] sm:$0xff] %v7582_v19  ;;  %v5340_v48 = vld [vmem:[#allocation20 + $0x30] sm:$0xff]   ;;  %v5342_v45 = vld [vmem:[#allocation20 + $0x78] sm:$0xff]  }
 0xae9   : > { %v5537_v7 = vpop.eup %5536  ;;  %v2652_v41 = vadd.f32 %v7485_v28, %v2630_v16  ;;  %v2610_v18 = vmul.f32 %v5535_v30, %v7474_v21  ;;  %v7584_v40 = vld [vmem:[#allocation20 + $0xb0] sm:$0xff]   ;;  %v5344_v16 = vld [vmem:[#allocation20 + $0x38] sm:$0xff]  }
 0xaea   : > { %v2651_v13 = vadd.f32 %v7485_v28, %v2629_v62  ;;  %v2609_v55 = vmul.f32 %v5537_v7, %v7469_v43  ;;  %v5318_v43 = vld [vmem:[#allocation20 + $0x48] sm:$0xff]   ;;  %8621 = vst [vmem:[#allocation63_spill] sm:$0xff] %v7584_v40  ;;  %v7590_v30 = vld [vmem:[#allocation20 + $0xb8] sm:$0xff]   ;;  %v2711_v7 = vsub.s32 3, %v6822_v22 }
 0xaeb   : > { %v2632_v4 = vmul.f32 %v7480_v36, %v2610_v18  ;;  %4657 = vmatprep.subr.bf16.mxu1 %v5318_v43  ;;  %8623 = vst [vmem:[#allocation65_spill] sm:$0xff] %v7590_v30  ;;  %v2695_v62 = vld [vmem:[#allocation19] sm:$0xf] }
 0xaec   : > { %v2661_v38 = vpack.c.bf16 %v2652_v41, %v2651_v13  ;;  %v2631_v21 = vmul.f32 %v7480_v36, %v2609_v55  ;;  %4658 = vmatpush3.bf16.msra.mxu1 %v5320_v20  ;;  %v7598_v41 = vrot.slane %v2695_v62, %v901_v63  ;;  %v7602_v18 = vrot.slane %v2695_v62, %v909_v1 }
 0xaed   : > { %2960 = vmatmul.mubr.bf16.gmra.mrb[68].mxu1 %v2660_v47  ;;  %3073 = vmatmul.mubr.bf16.gmra.mrb[100].mxu0 %v2660_v47  ;;  %v2654_v6 = vadd.f32 %v7485_v28, %v2632_v4  ;;  %v7588_v47 = vld [vmem:[#allocation20 + $0xf8] sm:$0xff]   ;;  %v7606_v13 = vrot.slane %v2695_v62, %v905_v33  ;;  %v7608_v55 = vrot.slane %v2695_v62, %v2711_v7 }
 0xaee   : > { %2969 = vmatprep.mubr.bf16.mxu1 %v6161_v46  ;;  %3082 = vmatprep.mubr.bf16.mxu0 %v6161_v46  ;;  %v2653_v36 = vadd.f32 %v7485_v28, %v2631_v21  ;;  %v7564_v28 = vld [vmem:[#allocation20 + $0xd8] sm:$0xff]   ;;  %8622 = vst [vmem:[#allocation64_spill] sm:$0xff] %v7588_v47  ;;  %8624 = vst [vmem:[#allocation66_spill] sm:$0xff] %v7598_v41 }
 0xaef   : > { %8614 = vst [vmem:[#allocation56_spill] sm:$0xff] %v7564_v28  ;;  %4725 = vmatprep.subr.bf16.mxu0 %v7564_v28  ;;  %8625 = vst [vmem:[#allocation67_spill] sm:$0xff] %v7602_v18 }
 0xaf0   : > { %v2662_v61 = vpack.c.bf16 %v2654_v6, %v2653_v36  ;;  %4726 = vmatpush3.bf16.msra.mxu0 %v7566_v29  ;;  %8626 = vst [vmem:[#allocation68_spill] sm:$0xff] %v7606_v13  ;;  %8627 = vst [vmem:[#allocation69_spill] sm:$0xff] %v7608_v55 }
 0xaf1   : > { %4727 = vmatprep.subr.bf16.mxu0 %v7570_v54 }
 0xaf4   : > { %4728 = vmatpush3.bf16.msra.mxu0 %v7572_v23 }
 0xaf5   : > { %2970 = vmatmul.mubr.bf16.gmra.mrb[72].mxu1 %v2661_v38  ;;  %3083 = vmatmul.mubr.bf16.gmra.mrb[104].mxu0 %v2661_v38 }
 0xaf6   : > { %2979 = vmatprep.mubr.bf16.mxu1 %v6161_v46  ;;  %3092 = vmatprep.mubr.bf16.mxu0 %v6161_v46  ;;  %v5322_v46 = vld [vmem:[#allocation20 + $0x50] sm:$0xff]  }
 0xaf7   : > { %4659 = vmatprep.subr.bf16.mxu1 %v5322_v46  ;;  %4729 = vmatprep.subr.bf16.mxu0 %v7576_v52 }
 0xaf8   : > { %4660 = vmatpush3.bf16.msra.mxu1 %v5324_v5  ;;  %4730 = vmatpush3.bf16.msra.mxu0 %v7578_v26 }
 0xaf9   : > { %4661 = vmatprep.subr.bf16.mxu1 %v5326_v3  ;;  %4731 = vmatprep.subr.bf16.mxu0 %v7582_v19 }
 0xafc   : > { %4662 = vmatpush3.bf16.msra.mxu1 %v5328_v42  ;;  %4732 = vmatpush3.bf16.msra.mxu0 %v7584_v40 }
 0xafd   : > { %2980 = vmatmul.mubr.bf16.gmra.mrb[76].mxu1 %v2662_v61  ;;  %3093 = vmatmul.mubr.bf16.gmra.mrb[108].mxu0 %v2662_v61 }
 0xafe   : > { %4663 = vmatprep.subr.bf16.mxu1 %v5330_v27  ;;  %4733 = vmatprep.subr.bf16.mxu0 %v7588_v47 }
 0xb00   : > { %4664 = vmatpush3.bf16.msra.mxu1 %v5332_v11  ;;  %4734 = vmatpush3.bf16.msra.mxu0 %v7590_v30 }
 0xb01   : > { %4665 = vmatprep.subr.bf16.mxu1 %v5334_v51 }
 0xb04   : > { %4666 = vmatpush3.bf16.msra.mxu1 %v5336_v39 }
 0xb05   : > { %4667 = vmatprep.subr.bf16.mxu1 %v5338_v50 }
 0xb08   : > { %4668 = vmatpush3.bf16.msra.mxu1 %v5340_v48 }
 0xb09   : > { %4669 = vmatprep.subr.bf16.mxu1 %v5342_v45 }
 0xb0c   : > { %4670 = vmatpush3.bf16.msra.mxu1 %v5344_v16 }
 0xb0d   : > { %4975 = vmatprep.subr.bf16.mxu1 %v7540_v57 }
 0xb6f   : > { %v2911_v2 = vpop.f32.mrb[48].mxu1  ;;  %v3024_v38 = vpop.f32.mrb[80].mxu0 }
 0xb70   : > { %v2912_v57 = vadd.f32 %v2911_v2, %v7598_v41  ;;  %v3025_v4 = vadd.f32 %v3024_v38, %v7602_v18  ;;  %v2913_v35 = vpop.f32.mrb[49].mxu1  ;;  %v3026_v21 = vpop.f32.mrb[81].mxu0 }
 0xb71   : > { %v7613_v63 = vadd.f32 %v2913_v35, %v7606_v13  ;;  %v7616_v1 = vadd.f32 %v3026_v21, %v7608_v55  ;;  %v2915_v43 = vpop.f32.mrb[50].mxu1  ;;  %v3028_v22 = vpop.f32.mrb[82].mxu0 }
 0xb72   : > { %v3167_v33 = vmul.f32 0.044715, %v2912_v57  ;;  %v3169_v6 = vmul.f32 0.044715, %v3025_v4  ;;  %v2916_v36 = vadd.f32 %v2915_v43, %v7598_v41  ;;  %v3029_v61 = vadd.f32 %v3028_v22, %v7602_v18  ;;  %v2917_v46 = vpop.f32.mrb[51].mxu1  ;;  %v3030_v5 = vpop.f32.mrb[83].mxu0 }
 0xb73   : > { %v3168_v20 = vmul.f32 0.044715, %v7613_v63  ;;  %v3170_v27 = vmul.f32 0.044715, %v7616_v1  ;;  %v7623_v11 = vadd.f32 %v2917_v46, %v7606_v13  ;;  %v7626_v45 = vadd.f32 %v3030_v5, %v7608_v55 }
 0xb74   : > { %v3231_v3 = vmul.f32 %v3167_v33, %v2912_v57  ;;  %v3233_v42 = vmul.f32 %v3169_v6, %v3025_v4  ;;  %v3171_v51 = vmul.f32 0.044715, %v2916_v36  ;;  %v3173_v48 = vmul.f32 0.044715, %v3029_v61 }
 0xb75   : > { %v3232_v16 = vmul.f32 %v3168_v20, %v7613_v63  ;;  %v3234_v35 = vmul.f32 %v3170_v27, %v7616_v1  ;;  %v3172_v43 = vmul.f32 0.044715, %v7623_v11 }
 0xb76   : > { %v3295_v39 = vmul.f32 %v3231_v3, %v2912_v57  ;;  %v3297_v50 = vmul.f32 %v3233_v42, %v3025_v4  ;;  %v3235_v62 = vmul.f32 %v3171_v51, %v2916_v36  ;;  %v3237_v21 = vmul.f32 %v3173_v48, %v3029_v61 }
 0xb77   : > { %v2921_v7 = vpop.f32.mrb[52].mxu1  ;;  %v3034_v2 = vpop.f32.mrb[84].mxu0  ;;  %v7637_v51 = vmul.f32 0.5, %v2912_v57  ;;  %v3174_v48 = vmul.f32 0.044715, %v7626_v45  ;;  %v7655_v9 = vmul.f32 %v3234_v35, %v7616_v1 }
 0xb78   : > { %v3359_v38 = vadd.f32 %v3295_v39, %v2912_v57  ;;  %v2923_v22 = vpop.f32.mrb[53].mxu1  ;;  %v3036_v33 = vpop.f32.mrb[85].mxu0  ;;  %v3361_v6 = vadd.f32 %v3297_v50, %v3025_v4  ;;  %v3299_v46 = vmul.f32 %v3235_v62, %v2916_v36  ;;  %v7632_v3 = vadd.f32 %v2921_v7, %v7598_v41 }
 0xb79   : > { %v7635_v5 = vadd.f32 %v3034_v2, %v7602_v18  ;;  %v2925_v20 = vpop.f32.mrb[54].mxu1  ;;  %v3038_v42 = vpop.f32.mrb[86].mxu0  ;;  %v7639_v39 = vmul.f32 0.5, %v3025_v4  ;;  %v3301_v27 = vmul.f32 %v3237_v21, %v3029_v61  ;;  %v7642_v50 = vmul.f32 0.5, %v2916_v36 }
 0xb7a   : > { %v2927_v59 = vpop.f32.mrb[55].mxu1  ;;  %v3040_v31 = vpop.f32.mrb[87].mxu0  ;;  %v3423_v10 = vmul.f32 0.7978846, %v3359_v38  ;;  %v3363_v62 = vadd.f32 %v3299_v46, %v2916_v36  ;;  %v7644_v7 = vmul.f32 0.5, %v3029_v61  ;;  %v7649_v57 = vadd.f32 %v2923_v22, %v7606_v13 }
 0xb7b   : > { %8628 = vst [vmem:[#allocation70_spill] sm:$0xff] %v7635_v5  ;;  %v3365_v17 = vadd.f32 %v3301_v27, %v3029_v61  ;;  %v3175_v2 = vmul.f32 0.044715, %v7632_v3  ;;  %v3177_v12 = vmul.f32 0.044715, %v7635_v5  ;;  %v7652_v21 = vmul.f32 %v3232_v16, %v7613_v63 }
 0xb7c   : > { %v3425_v4 = vmul.f32 0.7978846, %v3361_v6  ;;  %v3236_v38 = vmul.f32 %v3172_v43, %v7623_v11  ;;  %v3238_v36 = vmul.f32 %v3174_v48, %v7626_v45  ;;  %v3176_v61 = vmul.f32 0.044715, %v7649_v57 }
 0xb7d   : > { %v7661_v46 = vadd.f32 %v3036_v33, %v7608_v55  ;;  %v7664_v27 = vadd.f32 %v2925_v20, %v7598_v41  ;;  %5538 = vtanh.f32 %v3423_v10  ;;  %v3427_v22 = vmul.f32 0.7978846, %v3363_v62 }
 0xb7e   : > { %v3429_v6 = vmul.f32 0.7978846, %v3365_v17  ;;  %v7667_v16 = vadd.f32 %v3038_v42, %v7602_v18  ;;  %v3239_v43 = vmul.f32 %v3175_v2, %v7632_v3  ;;  %v3241_v48 = vmul.f32 %v3177_v12, %v7635_v5 }
 0xb7f   : > { %8629 = vst [vmem:[#allocation71_spill] sm:$0xff] %v7664_v27  ;;  %v2931_v35 = vpop.f32.mrb[56].mxu1  ;;  %v3044_v56 = vpop.f32.mrb[88].mxu0  ;;  %v3178_v37 = vmul.f32 0.044715, %v7661_v46  ;;  %v3240_v20 = vmul.f32 %v3176_v61, %v7649_v57  ;;  %v7676_v17 = vadd.f32 %v2927_v59, %v7606_v13  ;;  %v7679_v42 = vadd.f32 %v3040_v31, %v7608_v55 }
 0xb80   : > { %8630 = vst [vmem:[#allocation72_spill] sm:$0xff] %v7667_v16  ;;  %v3179_v33 = vmul.f32 0.044715, %v7664_v27  ;;  %v2933_v14 = vpop.f32.mrb[57].mxu1  ;;  %v3046_v15 = vpop.f32.mrb[89].mxu0  ;;  %5540 = vtanh.f32 %v3425_v4  ;;  %v7682_v12 = vmul.f32 %v3236_v38, %v7623_v11  ;;  %v7685_v24 = vadd.f32 %v2931_v35, %v7598_v41 }
 0xb81   : > { %v3181_v10 = vmul.f32 0.044715, %v7667_v16  ;;  %v2935_v62 = vpop.f32.mrb[58].mxu1  ;;  %v3048_v2 = vpop.f32.mrb[90].mxu0  ;;  %v7688_v53 = vadd.f32 %v3044_v56, %v7602_v18  ;;  %5542 = vtanh.f32 %v3427_v22  ;;  %v7691_v59 = vmul.f32 %v3238_v36, %v7626_v45 }
 0xb82   : > { %v2937_v61 = vpop.f32.mrb[59].mxu1  ;;  %v3050_v58 = vpop.f32.mrb[91].mxu0  ;;  %v3242_v31 = vmul.f32 %v3178_v37, %v7661_v46  ;;  %v3180_v32 = vmul.f32 0.044715, %v7676_v17  ;;  %v7696_v4 = vmul.f32 %v3239_v43, %v7632_v3  ;;  %v3243_v38 = vmul.f32 %v3179_v33, %v7664_v27 }
 0xb83   : > { %v3182_v35 = vmul.f32 0.044715, %v7679_v42  ;;  %v7701_v56 = vadd.f32 %v2933_v14, %v7606_v13  ;;  %5544 = vtanh.f32 %v3429_v6  ;;  %v7704_v22 = vmul.f32 %v3241_v48, %v7635_v5 }
 0xb84   : > { %8631 = vst [vmem:[#allocation73_spill] sm:$0xff] %v7696_v4  ;;  %v7707_v36 = vmul.f32 %v3240_v20, %v7649_v57  ;;  %v3245_v37 = vmul.f32 %v3181_v10, %v7667_v16  ;;  %v3183_v49 = vmul.f32 0.044715, %v7685_v24  ;;  %v3185_v43 = vmul.f32 0.044715, %v7688_v53 }
 0xb85   : > { %8632 = vst [vmem:[#allocation74_spill] sm:$0xff] %v7704_v22  ;;  %v7713_v33 = vadd.f32 %v3046_v15, %v7608_v55  ;;  %v7716_v0 = vadd.f32 %v2935_v62, %v7598_v41  ;;  %v7719_v14 = vmul.f32 %v3242_v31, %v7661_v46  ;;  %v3244_v6 = vmul.f32 %v3180_v32, %v7676_v17 }
 0xb86   : > { %v3184_v48 = vmul.f32 0.044715, %v7701_v56  ;;  %v7724_v20 = vadd.f32 %v3048_v2, %v7602_v18  ;;  %v7727_v47 = vmul.f32 %v3243_v38, %v7664_v27  ;;  %v3246_v15 = vmul.f32 %v3182_v35, %v7679_v42 }
 0xb87   : > { %v2941_v10 = vpop.f32.mrb[60].mxu1  ;;  %v3054_v30 = vpop.f32.mrb[92].mxu0  ;;  %v3186_v62 = vmul.f32 0.044715, %v7713_v33  ;;  %v3187_v40 = vmul.f32 0.044715, %v7716_v0  ;;  %v7736_v2 = vadd.f32 %v2937_v61, %v7606_v13  ;;  %v7739_v52 = vadd.f32 %v3050_v58, %v7608_v55 }
 0xb88   : > { %8633 = vst [vmem:[#allocation75_spill] sm:$0xff] %v7727_v47  ;;  %v2943_v31 = vpop.f32.mrb[61].mxu1  ;;  %v3056_v19 = vpop.f32.mrb[93].mxu0  ;;  %v3189_v32 = vmul.f32 0.044715, %v7724_v20  ;;  %v7742_v38 = vadd.f32 %v2941_v10, %v7598_v41  ;;  %v7745_v54 = vmul.f32 %v3245_v37, %v7667_v16  ;;  %v3247_v29 = vmul.f32 %v3183_v49, %v7685_v24 }
 0xb89   : > { %v7732_v26 = vpop.eup %5538  ;;  %v2945_v35 = vpop.f32.mrb[62].mxu1  ;;  %v3249_v28 = vmul.f32 %v3185_v43, %v7688_v53  ;;  %v7750_v8 = vadd.f32 %v3054_v30, %v7602_v18  ;;  %v7753_v58 = vmul.f32 %v3244_v6, %v7676_v17  ;;  %v3188_v10 = vmul.f32 0.044715, %v7736_v2 }
 0xb8a   : > { %v3058_v23 = vpop.f32.mrb[94].mxu0  ;;  %8634 = vst [vmem:[#allocation76_spill] sm:$0xff] %v7745_v54  ;;  %v2947_v61 = vpop.f32.mrb[63].mxu1  ;;  %v3190_v44 = vmul.f32 0.044715, %v7739_v52  ;;  %v7759_v60 = vmul.f32 %v3246_v15, %v7679_v42  ;;  %v3248_v49 = vmul.f32 %v3184_v48, %v7701_v56  ;;  %v7764_v43 = vadd.f32 %v2943_v31, %v7606_v13 }
 0xb8b   : > { %8635 = vst [vmem:[#allocation77_spill] sm:$0xff] %v7750_v8  ;;  %v3060_v25 = vpop.f32.mrb[95].mxu0  ;;  %v3191_v34 = vmul.f32 0.044715, %v7742_v38  ;;  %v5541_v37 = vpop.eup %5540  ;;  %v3193_v30 = vmul.f32 0.044715, %v7750_v8  ;;  %v3250_v6 = vmul.f32 %v3186_v62, %v7713_v33  ;;  %v3251_v16 = vmul.f32 %v3187_v40, %v7716_v0 }
 0xb8c   : > { %v5543_v54 = vpop.eup %5542  ;;  %v3253_v22 = vmul.f32 %v3189_v32, %v7724_v20  ;;  %v3252_v5 = vmul.f32 %v3188_v10, %v7736_v2  ;;  %v3254_v47 = vmul.f32 %v3190_v44, %v7739_v52  ;;  %v3192_v15 = vmul.f32 0.044715, %v7764_v43 }
 0xb8d   : > { %v7773_v48 = vadd.f32 %v3056_v19, %v7608_v55  ;;  %v7776_v27 = vadd.f32 %v2945_v35, %v7598_v41  ;;  %v5545_v31 = vpop.eup %5544  ;;  %v7779_v4 = vmul.f32 %v3247_v29, %v7685_v24  ;;  %v7782_v40 = vmul.f32 %v3249_v28, %v7688_v53 }
 0xb8e   : > { %v3255_v62 = vmul.f32 %v3191_v34, %v7742_v38  ;;  %v7786_v32 = vadd.f32 %v3058_v23, %v7602_v18  ;;  %v7789_v44 = vmul.f32 %v3248_v49, %v7701_v56  ;;  %v3257_v19 = vmul.f32 %v3193_v30, %v7750_v8 }
 0xb8f   : > { %v3256_v35 = vmul.f32 %v3192_v15, %v7764_v43  ;;  %v3194_v10 = vmul.f32 0.044715, %v7773_v48  ;;  %v7795_v29 = vmul.f32 %v3250_v6, %v7713_v33  ;;  %v7798_v28 = vmul.f32 %v3251_v16, %v7716_v0 }
 0xb90   : > { %v3195_v34 = vmul.f32 0.044715, %v7776_v27  ;;  %v3197_v23 = vmul.f32 0.044715, %v7786_v32  ;;  %v7803_v18 = vmul.f32 %v3253_v22, %v7724_v20  ;;  %v7806_v49 = vmul.f32 %v3252_v5, %v7736_v2 }
 0xb91   : > { %v7809_v30 = vmul.f32 %v3254_v47, %v7739_v52  ;;  %v7812_v15 = vadd.f32 %v2947_v61, %v7606_v13  ;;  %v7815_v6 = vmul.f32 %v3255_v62, %v7742_v38  ;;  %v3258_v16 = vmul.f32 %v3194_v10, %v7773_v48 }
 0xb92   : > { %v7819_v41 = vadd.f32 %v3060_v25, %v7608_v55  ;;  %v3360_v22 = vadd.f32 %v7652_v21, %v7613_v63  ;;  %v7824_v5 = vmul.f32 %v3257_v19, %v7750_v8  ;;  %v7827_v47 = vmul.f32 %v3256_v35, %v7764_v43 }
 0xb93   : > { %v7830_v61 = vmul.f32 0.5, %v7613_v63  ;;  %v3364_v62 = vadd.f32 %v7682_v12, %v7623_v11  ;;  %v3259_v10 = vmul.f32 %v3195_v34, %v7776_v27  ;;  %v3261_v25 = vmul.f32 %v3197_v23, %v7786_v32 }
 0xb94   : > { %8636 = vst [vmem:[#allocation78_spill] sm:$0xff] %v7824_v5  ;;  %v7837_v55 = vmul.f32 0.5, %v7623_v11  ;;  %v3424_v21 = vmul.f32 0.7978846, %v3360_v22  ;;  %v3196_v19 = vmul.f32 0.044715, %v7812_v15  ;;  %v3362_v35 = vadd.f32 %v7655_v9, %v7616_v1 }
 0xb95   : > { %v3428_v13 = vmul.f32 0.7978846, %v3364_v62  ;;  %v3366_v63 = vadd.f32 %v7691_v59, %v7626_v45  ;;  %v7845_v5 = vmul.f32 %v3258_v16, %v7773_v48  ;;  %v3198_v12 = vmul.f32 0.044715, %v7819_v41 }
 0xb96   : > { %5546 = vtanh.f32 %v3424_v21  ;;  %v3551_v34 = vadd.f32 1.0, %v7732_v26  ;;  %v3426_v11 = vmul.f32 0.7978846, %v3362_v35  ;;  %v3555_v22 = vadd.f32 1.0, %v5543_v54 }
 0xb97   : > { %5548 = vtanh.f32 %v3428_v13  ;;  %v3430_v23 = vmul.f32 0.7978846, %v3366_v63  ;;  %v7850_v62 = vmul.f32 %v3259_v10, %v7776_v27  ;;  %v7853_v9 = vmul.f32 0.5, %v7616_v1 }
 0xb98   : > { %v3553_v8 = vadd.f32 1.0, %v5541_v37  ;;  %v3557_v59 = vadd.f32 1.0, %v5545_v31  ;;  %5550 = vtanh.f32 %v3426_v11  ;;  %v7856_v16 = vmul.f32 %v3551_v34, %v7637_v51  ;;  %v8638_v34 = vld [vmem:[#allocation71_spill] sm:$0xff] }
 0xb99   : > { %v7859_v21 = vmul.f32 %v3555_v22, %v7642_v50  ;;  %v3368_v26 = vadd.f32 %v7707_v36, %v7649_v57  ;;  %5552 = vtanh.f32 %v3430_v23  ;;  %v3372_v1 = vadd.f32 %v7753_v58, %v7676_v17  ;;  %v8639_v11 = vld [vmem:[#allocation75_spill] sm:$0xff]  ;;  %v8640_v22 = vld [vmem:[#allocation70_spill] sm:$0xff] }
 0xb9a   : > { %v7864_v54 = vmul.f32 %v3553_v8, %v7639_v39  ;;  %v7867_v13 = vmul.f32 %v3557_v59, %v7644_v7  ;;  %v3260_v37 = vmul.f32 %v3196_v19, %v7812_v15  ;;  %v3262_v51 = vmul.f32 %v3198_v12, %v7819_v41  ;;  %v8637_v19 = vld [vmem:[#allocation73_spill] sm:$0xff]  ;;  %v8641_v59 = vld [vmem:[#allocation74_spill] sm:$0xff] }
 0xb9b   : > { %v3679_v50 = vpack.c.bf16 %v7859_v21, %v7856_v16  ;;  %v3432_v31 = vmul.f32 0.7978846, %v3368_v26  ;;  %v3436_v10 = vmul.f32 0.7978846, %v3372_v1  ;;  %v3370_v8 = vadd.f32 %v7719_v14, %v7661_v46  ;;  %v8642_v1 = vld [vmem:[#allocation72_spill] sm:$0xff] }
 0xb9c   : > { %v3681_v36 = vpack.c.bf16 %v7867_v13, %v7864_v54  ;;  %v3374_v39 = vadd.f32 %v7759_v60, %v7679_v42  ;;  %v7882_v7 = vmul.f32 %v3261_v25, %v7786_v32  ;;  %v3110_v58 = vmul.f32 0.5, %v7626_v45  ;;  %v8646_v13 = vld [vmem:[#allocation53_spill] sm:$0xff] }
 0xb9d   : > { %5554 = vtanh.f32 %v3432_v31  ;;  %v3367_v35 = vadd.f32 %v8637_v19, %v7632_v3  ;;  %v3434_v63 = vmul.f32 0.7978846, %v3370_v8  ;;  %v3371_v23 = vadd.f32 %v8639_v11, %v8638_v34  ;;  %v8643_v31 = vld [vmem:[#allocation76_spill] sm:$0xff] }
 0xb9e   : > { %5556 = vtanh.f32 %v3436_v10  ;;  %v3438_v12 = vmul.f32 0.7978846, %v3374_v39  ;;  %v7890_v14 = vmul.f32 %v3260_v37, %v7812_v15  ;;  %v7893_v60 = vmul.f32 %v3262_v51, %v7819_v41 }
 0xb9f   : > { %v3431_v25 = vmul.f32 0.7978846, %v3367_v35  ;;  %v3369_v45 = vadd.f32 %v8641_v59, %v8640_v22  ;;  %v3112_v21 = vmul.f32 0.5, %v7649_v57  ;;  %5558 = vtanh.f32 %v3434_v63 }
 0xba0   : > { %v5547_v16 = vpop.eup %5546  ;;  %v3435_v26 = vmul.f32 0.7978846, %v3371_v23  ;;  %v3373_v10 = vadd.f32 %v8643_v31, %v8642_v1  ;;  %v3116_v37 = vmul.f32 0.5, %v7676_v17  ;;  %5560 = vtanh.f32 %v3438_v12 }
 0xba1   : > { %v5549_v8 = vpop.eup %5548  ;;  %v3552_v39 = vadd.f32 1.0, %v5547_v16  ;;  %v3433_v19 = vmul.f32 0.7978846, %v3369_v45  ;;  %5562 = vtanh.f32 %v3431_v25  ;;  %v3376_v11 = vadd.f32 %v7789_v44, %v7701_v56 }
 0xba2   : > { %v3556_v51 = vadd.f32 1.0, %v5549_v8  ;;  %v3437_v35 = vmul.f32 0.7978846, %v3373_v10  ;;  %v5551_v59 = vpop.eup %5550  ;;  %v3114_v63 = vmul.f32 0.5, %v7661_v46  ;;  %5564 = vtanh.f32 %v3435_v26 }
 0xba3   : > { %v3616_v57 = vmul.f32 %v3552_v39, %v7830_v61  ;;  %v3380_v23 = vadd.f32 %v7806_v49, %v7736_v2  ;;  %v5553_v16 = vpop.eup %5552  ;;  %v3554_v12 = vadd.f32 1.0, %v5551_v59  ;;  %5566 = vtanh.f32 %v3433_v19 }
 0xba4   : > { %v3620_v17 = vmul.f32 %v3556_v51, %v7837_v55  ;;  %v3440_v45 = vmul.f32 0.7978846, %v3376_v11  ;;  %v3558_v25 = vadd.f32 1.0, %v5553_v16  ;;  %v3118_v31 = vmul.f32 0.5, %v7679_v42 }
 0xba5   : > { %5568 = vtanh.f32 %v3437_v35  ;;  %v3444_v44 = vmul.f32 0.7978846, %v3380_v23  ;;  %v3111_v61 = vmul.f32 0.5, %v7632_v3  ;;  %v3378_v46 = vadd.f32 %v7795_v29, %v7713_v33  ;;  %v8644_v23 = vld [vmem:[#allocation51_spill] sm:$0xff] }
 0xba6   : > { %v3680_v10 = vpack.c.bf16 %v3620_v17, %v3616_v57  ;;  %5570 = vtanh.f32 %v3440_v45  ;;  %v3618_v49 = vmul.f32 %v3554_v12, %v7853_v9  ;;  %v3622_v8 = vmul.f32 %v3558_v25, %v3110_v58 }
 0xba7   : > { %v5555_v26 = vpop.eup %5554  ;;  %5572 = vtanh.f32 %v3444_v44  ;;  %v3382_v55 = vadd.f32 %v7809_v30, %v7739_v52  ;;  %v3115_v19 = vmul.f32 0.5, %v8638_v34  ;;  %v3442_v51 = vmul.f32 0.7978846, %v3378_v46 }
 0xba8   : > { %v5557_v39 = vpop.eup %5556  ;;  %4006 = vmatprep.mubr.bf16.mxu1 %v3680_v10  ;;  %v3560_v42 = vadd.f32 1.0, %v5555_v26  ;;  %v3375_v3 = vadd.f32 %v7779_v4, %v7685_v24  ;;  %v3682_v35 = vpack.c.bf16 %v3622_v8, %v3618_v49  ;;  %v3379_v9 = vadd.f32 %v7798_v28, %v7716_v0 }
 0xba9   : > { %4007 = vmatmul.mubr.bf16.vlgmr.msra.gmra.mrb[80].mxu1 %v3679_v50  ;;  %v3564_v29 = vadd.f32 1.0, %v5557_v39  ;;  %v3446_v11 = vmul.f32 0.7978846, %v3382_v55  ;;  %v5559_v58 = vpop.eup %5558  ;;  %v3113_v30 = vmul.f32 0.5, %v8640_v22  ;;  %5574 = vtanh.f32 %v3442_v51  ;;  %v8645_v50 = vld [vmem:[#allocation52_spill] sm:$0xff] }
 0xbaa   : > { %v3624_v59 = vmul.f32 %v3560_v42, %v3112_v21  ;;  %v3439_v57 = vmul.f32 0.7978846, %v3375_v3  ;;  %4983 = vmatpush3.bf16.msra.mxu1 %v8644_v23  ;;  %v5561_v34 = vpop.eup %5560  ;;  %4103 = vmatprep.mubr.bf16.mxu0 %v3682_v35  ;;  %v3562_v17 = vadd.f32 1.0, %v5559_v58  ;;  %v3443_v4 = vmul.f32 0.7978846, %v3379_v9 }
 0xbab   : > { %v3628_v16 = vmul.f32 %v3564_v29, %v3116_v37  ;;  %5576 = vtanh.f32 %v3446_v11  ;;  %4976 = vmatprep.subr.bf16.mxu1 %v8645_v50  ;;  %v5563_v12 = vpop.eup %5562  ;;  %4104 = vmatmul.mubr.bf16.vlgmr.msra.gmra.mrb[112].mxu0 %v3681_v36  ;;  %v3566_v28 = vadd.f32 1.0, %v5561_v34  ;;  %v3117_v22 = vmul.f32 0.5, %v8642_v1 }
 0xbac   : > { %5578 = vtanh.f32 %v3439_v57  ;;  %v3377_v21 = vadd.f32 %v7782_v40, %v7688_v53  ;;  %v5565_v45 = vpop.eup %5564  ;;  %v3626_v37 = vmul.f32 %v3562_v17, %v3114_v63  ;;  %v3559_v44 = vadd.f32 1.0, %v5563_v12  ;;  %v8647_v63 = vld [vmem:[#allocation54_spill] sm:$0xff]  ;;  %v8649_v57 = vld [vmem:[#allocation56_spill] sm:$0xff] }
 0xbad   : > { %v3684_v25 = vpack.c.bf16 %v3628_v16, %v3624_v59  ;;  %5580 = vtanh.f32 %v3443_v4  ;;  %v5567_v10 = vpop.eup %5566  ;;  %v3630_v46 = vmul.f32 %v3566_v28, %v3118_v31  ;;  %v3563_v26 = vadd.f32 1.0, %v5565_v45  ;;  %v8650_v45 = vld [vmem:[#allocation57_spill] sm:$0xff] }
 0xbae   : > { %v3381_v49 = vadd.f32 %v7803_v18, %v7724_v20  ;;  %v3441_v54 = vmul.f32 0.7978846, %v3377_v21  ;;  %4984 = vmatpush3.bf16.msra.mxu1 %v8646_v13  ;;  %v3623_v1 = vmul.f32 %v3559_v44, %v3111_v61  ;;  %v3561_v8 = vadd.f32 1.0, %v5567_v10 }
 0xbaf   : > { %v5569_v36 = vpop.eup %5568  ;;  %4014 = vmatprep.mubr.bf16.mxu1 %v3684_v25  ;;  %v3120_v40 = vmul.f32 0.5, %v7701_v56  ;;  %v3124_v55 = vmul.f32 0.5, %v7736_v2  ;;  %4977 = vmatprep.subr.bf16.mxu1 %v8647_v63  ;;  %v3686_v42 = vpack.c.bf16 %v3630_v46, %v3626_v37  ;;  %v3627_v31 = vmul.f32 %v3563_v26, %v3115_v19  ;;  %v8648_v2 = vld [vmem:[#allocation55_spill] sm:$0xff]  ;;  %v8651_v26 = vld [vmem:[#allocation58_spill] sm:$0xff] }
 0xbb0   : > { %v5571_v39 = vpop.eup %5570  ;;  %v3565_v51 = vadd.f32 1.0, %v5569_v36  ;;  %v3445_v3 = vmul.f32 0.7978846, %v3381_v49  ;;  %v3625_v18 = vmul.f32 %v3561_v8, %v3113_v30  ;;  %5582 = vtanh.f32 %v3441_v54 }
 0xbb1   : > { %v5573_v35 = vpop.eup %5572  ;;  %v3568_v29 = vadd.f32 1.0, %v5571_v39  ;;  %v3384_v11 = vadd.f32 %v7827_v47, %v7764_v43  ;;  %4111 = vmatprep.mubr.bf16.mxu0 %v3686_v42  ;;  %v3683_v61 = vpack.c.bf16 %v3627_v31, %v3623_v1  ;;  %v3122_v58 = vmul.f32 0.5, %v7713_v33 }
 0xbb2   : > { %v3629_v9 = vmul.f32 %v3565_v51, %v3117_v22  ;;  %v3572_v56 = vadd.f32 1.0, %v5573_v35  ;;  %5584 = vtanh.f32 %v3445_v3  ;;  %4985 = vmatpush3.bf16.msra.mxu1 %v8648_v2  ;;  %v3126_v19 = vmul.f32 0.5, %v7739_v52  ;;  %v8656_v2 = vld [vmem:[#allocation66_spill] sm:$0xff] }
 0xbb3   : > { %v3388_v59 = vadd.f32 %v7890_v14, %v7812_v15  ;;  %v3448_v30 = vmul.f32 0.7978846, %v3384_v11  ;;  %4978 = vmatprep.subr.bf16.mxu1 %v8649_v57  ;;  %v5575_v23 = vpop.eup %5574  ;;  %4015 = vmatmul.mubr.bf16.gmra.mrb[84].mxu1 %v3683_v61  ;;  %v3632_v34 = vmul.f32 %v3568_v29, %v3120_v40  ;;  %v3386_v17 = vadd.f32 %v7845_v5, %v7773_v48  ;;  %v8655_v61 = vld [vmem:[#allocation60_spill] sm:$0xff] }
 0xbb4   : > { %v3685_v47 = vpack.c.bf16 %v3629_v9, %v3625_v18  ;;  %v3636_v16 = vmul.f32 %v3572_v56, %v3124_v55  ;;  %v3570_v50 = vadd.f32 1.0, %v5575_v23  ;;  %v3390_v52 = vadd.f32 %v7893_v60, %v7819_v41  ;;  %v8653_v18 = vld [vmem:[#allocation77_spill] sm:$0xff] }
 0xbb5   : > { %v5577_v4 = vpop.eup %5576  ;;  %v3452_v12 = vmul.f32 0.7978846, %v3388_v59  ;;  %5586 = vtanh.f32 %v3448_v30  ;;  %v3119_v22 = vmul.f32 0.5, %v7685_v24  ;;  %v3450_v21 = vmul.f32 0.7978846, %v3386_v17 }
 0xbb6   : > { %v5579_v33 = vpop.eup %5578  ;;  %4112 = vmatmul.mubr.bf16.gmra.mrb[116].mxu0 %v3685_v47  ;;  %v3688_v14 = vpack.c.bf16 %v3636_v16, %v3632_v34  ;;  %v3574_v28 = vadd.f32 1.0, %v5577_v4  ;;  %4986 = vmatpush3.bf16.msra.mxu1 %v8650_v45  ;;  %v3123_v37 = vmul.f32 0.5, %v7716_v0  ;;  %v3454_v44 = vmul.f32 0.7978846, %v3390_v52  ;;  %v8660_v45 = vld [vmem:[#allocation62_spill] sm:$0xff] }
 0xbb7   : > { %v5581_v25 = vpop.eup %5580  ;;  %v3567_v5 = vadd.f32 1.0, %v5579_v33  ;;  %5588 = vtanh.f32 %v3452_v12  ;;  %4979 = vmatprep.subr.bf16.mxu1 %v8651_v26  ;;  %v3634_v60 = vmul.f32 %v3570_v50, %v3122_v58  ;;  %v3121_v36 = vmul.f32 0.5, %v7688_v53  ;;  %v8652_v53 = vld [vmem:[#allocation59_spill] sm:$0xff]  ;;  %v8658_v50 = vld [vmem:[#allocation68_spill] sm:$0xff] }
 0xbb8   : > { %v2951_v10 = vpop.f32.mrb[64].mxu1  ;;  %v3064_v46 = vpop.f32.mrb[96].mxu0  ;;  %4022 = vmatprep.mubr.bf16.mxu1 %v3688_v14  ;;  %v3638_v49 = vmul.f32 %v3574_v28, %v3126_v19  ;;  %v3571_v54 = vadd.f32 1.0, %v5581_v25  ;;  %5590 = vtanh.f32 %v3450_v21  ;;  %v3383_v0 = vadd.f32 %v7815_v6, %v7742_v38  ;;  %v8657_v19 = vld [vmem:[#allocation67_spill] sm:$0xff]  ;;  %v8659_v14 = vld [vmem:[#allocation61_spill] sm:$0xff] }
 0xbb9   : > { %v2953_v13 = vpop.f32.mrb[65].mxu1  ;;  %v3066_v24 = vpop.f32.mrb[97].mxu0  ;;  %5592 = vtanh.f32 %v3454_v44  ;;  %v3387_v1 = vadd.f32 %v7850_v62, %v7776_v27  ;;  %v3631_v63 = vmul.f32 %v3567_v5, %v3119_v22  ;;  %v3125_v42 = vmul.f32 0.5, %v7724_v20  ;;  %v8654_v62 = vld [vmem:[#allocation78_spill] sm:$0xff] }
 0xbba   : > { %v7956_v8 = vpop.f32.mrb[66].mxu1  ;;  %v7958_v40 = vpop.f32.mrb[98].mxu0  ;;  %v3690_v55 = vpack.c.bf16 %v3638_v49, %v3634_v60  ;;  %v3635_v39 = vmul.f32 %v3571_v54, %v3123_v37  ;;  %4987 = vmatpush3.bf16.msra.mxu1 %v8652_v53  ;;  %v3447_v6 = vmul.f32 0.7978846, %v3383_v0  ;;  %v3385_v29 = vadd.f32 %v8654_v62, %v8653_v18 }
 0xbbb   : > { %v7961_v31 = vpop.f32.mrb[67].mxu1  ;;  %v7963_v51 = vpop.f32.mrb[99].mxu0  ;;  %v3451_v35 = vmul.f32 0.7978846, %v3387_v1  ;;  %v3389_v11 = vadd.f32 %v7882_v7, %v7786_v32  ;;  %4980 = vmatprep.subr.bf16.mxu1 %v8655_v61  ;;  %v7972_v58 = vadd.f32 %v2951_v10, %v8656_v2  ;;  %v7975_v59 = vadd.f32 %v3064_v46, %v8657_v19  ;;  %v8661_v10 = vld [vmem:[#allocation69_spill] sm:$0xff] }
 0xbbc   : > { %v5583_v3 = vpop.eup %5582  ;;  %4119 = vmatprep.mubr.bf16.mxu0 %v3690_v55  ;;  %v3687_v20 = vpack.c.bf16 %v3635_v39, %v3631_v63  ;;  %5594 = vtanh.f32 %v3447_v6  ;;  %v3449_v57 = vmul.f32 0.7978846, %v3385_v29  ;;  %v3128_v7 = vmul.f32 0.5, %v7764_v43  ;;  %v8662_v63 = vld [vmem:[#allocation63_spill] sm:$0xff] }
 0xbbd   : > { %v5585_v9 = vpop.eup %5584  ;;  %v3569_v56 = vadd.f32 1.0, %v5583_v3  ;;  %v3453_v23 = vmul.f32 0.7978846, %v3389_v11  ;;  %v3132_v34 = vmul.f32 0.5, %v7812_v15  ;;  %5596 = vtanh.f32 %v3451_v35  ;;  %v8663_v3 = vld [vmem:[#allocation64_spill] sm:$0xff] }
 0xbbe   : > { %v3573_v30 = vadd.f32 1.0, %v5585_v9  ;;  %4023 = vmatmul.mubr.bf16.gmra.mrb[88].mxu1 %v3687_v20  ;;  %5598 = vtanh.f32 %v3449_v57  ;;  %v3199_v4 = vmul.f32 0.044715, %v7972_v58  ;;  %v7981_v12 = vadd.f32 %v2953_v13, %v8658_v50  ;;  %v8664_v57 = vld [vmem:[#allocation65_spill] sm:$0xff] }
 0xbbf   : > { %v3633_v47 = vmul.f32 %v3569_v56, %v3121_v36  ;;  %v5587_v16 = vpop.eup %5586  ;;  %4988 = vmatpush3.bf16.msra.mxu1 %v8659_v14  ;;  %v3130_v22 = vmul.f32 0.5, %v7773_v48  ;;  %v3134_v43 = vmul.f32 0.5, %v7819_v41  ;;  %5600 = vtanh.f32 %v3453_v23 }
 0xbc0   : > { %v3637_v17 = vmul.f32 %v3573_v30, %v3125_v42  ;;  %v2961_v52 = vpop.f32.mrb[68].mxu1  ;;  %v3074_v33 = vpop.f32.mrb[100].mxu0  ;;  %v3576_v28 = vadd.f32 1.0, %v5587_v16  ;;  %4981 = vmatprep.subr.bf16.mxu1 %v8660_v45  ;;  %v3127_v5 = vmul.f32 0.5, %v7742_v38  ;;  %v3201_v44 = vmul.f32 0.044715, %v7975_v59 }
 0xbc1   : > { %v2963_v15 = vpop.f32.mrb[69].mxu1  ;;  %v7986_v21 = vpop.f32.mrb[101].mxu0  ;;  %v7992_v46 = vadd.f32 %v3066_v24, %v8661_v10  ;;  %v3131_v49 = vmul.f32 0.5, %v7776_v27  ;;  %v3200_v54 = vmul.f32 0.044715, %v7981_v12  ;;  %v3129_v24 = vmul.f32 0.5, %v8653_v18 }
 0xbc2   : > { %v5589_v25 = vpop.eup %5588  ;;  %v3689_v37 = vpack.c.bf16 %v3637_v17, %v3633_v47  ;;  %v7994_v26 = vpop.f32.mrb[70].mxu1  ;;  %v3263_v1 = vmul.f32 %v3199_v4, %v7972_v58  ;;  %v8008_v55 = vadd.f32 %v7956_v8, %v8656_v2  ;;  %v3640_v27 = vmul.f32 %v3576_v28, %v3128_v7 }
 0xbc3   : > { %v7996_v48 = vpop.f32.mrb[102].mxu0  ;;  %v5591_v41 = vpop.eup %5590  ;;  %v3580_v60 = vadd.f32 1.0, %v5589_v25  ;;  %4989 = vmatpush3.bf16.msra.mxu1 %v8662_v63  ;;  %v8013_v53 = vadd.f32 %v7958_v40, %v8657_v19  ;;  %v3133_v6 = vmul.f32 0.5, %v7786_v32  ;;  %v3265_v35 = vmul.f32 %v3201_v44, %v7975_v59 }
 0xbc4   : > { %v8000_v13 = vpop.f32.mrb[71].mxu1  ;;  %v8002_v36 = vpop.f32.mrb[103].mxu0  ;;  %4120 = vmatmul.mubr.bf16.gmra.mrb[120].mxu0 %v3689_v37  ;;  %v3578_v0 = vadd.f32 1.0, %v5591_v41  ;;  %4982 = vmatprep.subr.bf16.mxu1 %v8663_v3  ;;  %v3202_v18 = vmul.f32 0.044715, %v7992_v46  ;;  %v8021_v8 = vadd.f32 %v7961_v31, %v8658_v50  ;;  %v3264_v61 = vmul.f32 %v3200_v54, %v7981_v12 }
 0xbc5   : > { %v5593_v38 = vpop.eup %5592  ;;  %v3644_v39 = vmul.f32 %v3580_v60, %v3132_v34  ;;  %v8025_v40 = vmul.f32 %v3263_v1, %v7972_v58  ;;  %v3203_v20 = vmul.f32 0.044715, %v8008_v55  ;;  %v3205_v32 = vmul.f32 0.044715, %v8013_v53 }
 0xbc6   : > { %v3582_v42 = vadd.f32 1.0, %v5593_v38  ;;  %v3642_v29 = vmul.f32 %v3578_v0, %v3130_v22  ;;  %v5595_v9 = vpop.eup %5594  ;;  %v8031_v56 = vadd.f32 %v7963_v51, %v8661_v10  ;;  %v8035_v34 = vadd.f32 %v2961_v52, %v8656_v2 }
 0xbc7   : > { %v3692_v62 = vpack.c.bf16 %v3644_v39, %v3640_v27  ;;  %4990 = vmatpush3.bf16.msra.mxu1 %v8664_v57  ;;  %v5597_v23 = vpop.eup %5596  ;;  %v3575_v7 = vadd.f32 1.0, %v5595_v9  ;;  %v8038_v16 = vadd.f32 %v3074_v33, %v8657_v19  ;;  %v8043_v28 = vmul.f32 %v3265_v35, %v7975_v59 }
 0xbc8   : > { %v3646_v11 = vmul.f32 %v3582_v42, %v3134_v43  ;;  %v2971_v30 = vpop.f32.mrb[72].mxu1  ;;  %v3084_v31 = vpop.f32.mrb[104].mxu0  ;;  %v3579_v51 = vadd.f32 1.0, %v5597_v23  ;;  %v3204_v22 = vmul.f32 0.044715, %v8021_v8  ;;  %v8047_v43 = vadd.f32 %v2963_v15, %v8658_v50 }
 0xbc9   : > { %4030 = vmatprep.mubr.bf16.mxu1 %v3692_v62  ;;  %8665 = vst [vmem:[#allocation73_spill] sm:$0xff] %v8038_v16  ;;  %v2973_v17 = vpop.f32.mrb[73].mxu1  ;;  %v8040_v4 = vpop.f32.mrb[105].mxu0  ;;  %v8052_v33 = vmul.f32 %v3264_v61, %v7981_v12  ;;  %v3266_v37 = vmul.f32 %v3202_v18, %v7992_v46  ;;  %v3206_v44 = vmul.f32 0.044715, %v8031_v56  ;;  %v3639_v54 = vmul.f32 %v3575_v7, %v3127_v5 }
 0xbca   : > { %v3694_v47 = vpack.c.bf16 %v3646_v11, %v3642_v29  ;;  %v5599_v14 = vpop.eup %5598  ;;  %v8049_v45 = vpop.f32.mrb[74].mxu1  ;;  %v3643_v38 = vmul.f32 %v3579_v51, %v3131_v49  ;;  %v3267_v15 = vmul.f32 %v3203_v20, %v8008_v55  ;;  %v3269_v63 = vmul.f32 %v3205_v32, %v8013_v53 }
 0xbcb   : > { %v5601_v52 = vpop.eup %5600  ;;  %v3577_v25 = vadd.f32 1.0, %v5599_v14  ;;  %v3088_v41 = vpop.f32.mrb[106].mxu0  ;;  %v3207_v27 = vmul.f32 0.044715, %v8035_v34  ;;  %v3209_v39 = vmul.f32 0.044715, %v8038_v16  ;;  %v8062_v42 = vadd.f32 %v7986_v21, %v8661_v10 }
 0xbcc   : > { %4127 = vmatprep.mubr.bf16.mxu0 %v3694_v47  ;;  %v2977_v60 = vpop.f32.mrb[75].mxu1  ;;  %v3581_v0 = vadd.f32 1.0, %v5601_v52  ;;  %v3090_v1 = vpop.f32.mrb[107].mxu0  ;;  %v3691_v3 = vpack.c.bf16 %v3643_v38, %v3639_v54  ;;  %v3208_v5 = vmul.f32 0.044715, %v8047_v43  ;;  %v3268_v49 = vmul.f32 %v3204_v22, %v8021_v8 }
 0xbcd   : > { %v3641_v35 = vmul.f32 %v3577_v25, %v3129_v24  ;;  %v3270_v62 = vmul.f32 %v3206_v44, %v8031_v56  ;;  %v3210_v29 = vmul.f32 0.044715, %v8062_v42  ;;  %v8070_v11 = vadd.f32 %v7994_v26, %v8656_v2 }
 0xbce   : > { %v3645_v18 = vmul.f32 %v3581_v0, %v3133_v6  ;;  %4031 = vmatmul.mubr.bf16.gmra.mrb[92].mxu1 %v3691_v3  ;;  %v8074_v21 = vadd.f32 %v7996_v48, %v8657_v19  ;;  %v8078_v24 = vadd.f32 %v8000_v13, %v8658_v50  ;;  %v8082_v6 = vadd.f32 %v8002_v36, %v8661_v10 }
 0xbcf   : > { %v8085_v32 = vmul.f32 %v3266_v37, %v7992_v46  ;;  %v8088_v26 = vmul.f32 %v3267_v15, %v8008_v55  ;;  %v3271_v57 = vmul.f32 %v3207_v27, %v8035_v34  ;;  %v3273_v48 = vmul.f32 %v3209_v39, %v8038_v16 }
 0xbd0   : > { %v3693_v61 = vpack.c.bf16 %v3645_v18, %v3641_v35  ;;  %v2981_v9 = vpop.f32.mrb[76].mxu1  ;;  %v3094_v20 = vpop.f32.mrb[108].mxu0  ;;  %v3272_v13 = vmul.f32 %v3208_v5, %v8047_v43  ;;  %v3274_v36 = vmul.f32 %v3210_v29, %v8062_v42  ;;  %v3211_v7 = vmul.f32 0.044715, %v8070_v11 }
 0xbd1   : > { %v2983_v23 = vpop.f32.mrb[77].mxu1  ;;  %v3096_v47 = vpop.f32.mrb[109].mxu0  ;;  %v8096_v14 = vadd.f32 %v2971_v30, %v8656_v2  ;;  %v8099_v51 = vmul.f32 %v3269_v63, %v8013_v53  ;;  %v3213_v22 = vmul.f32 0.044715, %v8074_v21  ;;  %v3085_v52 = vadd.f32 %v3084_v31, %v8657_v19 }
 0xbd2   : > { %4128 = vmatmul.mubr.bf16.gmra.mrb[124].mxu0 %v3693_v61  ;;  %v8104_v25 = vadd.f32 %v2973_v17, %v8658_v50  ;;  %v2985_v37 = vpop.f32.mrb[78].mxu1  ;;  %v3098_v44 = vpop.f32.mrb[110].mxu0  ;;  %v8107_v54 = vmul.f32 %v3268_v49, %v8021_v8  ;;  %v8110_v38 = vmul.f32 %v3270_v62, %v8031_v56  ;;  %v3212_v30 = vmul.f32 0.044715, %v8078_v24 }
 0xbd3   : > { %8666 = vst [vmem:[#allocation71_spill] sm:$0xff] %v8096_v14  ;;  %v3214_v0 = vmul.f32 0.044715, %v8082_v6  ;;  %v2987_v15 = vpop.f32.mrb[79].mxu1  ;;  %v3100_v63 = vpop.f32.mrb[111].mxu0  ;;  %v8115_v27 = vmul.f32 %v3271_v57, %v8035_v34  ;;  %v8120_v3 = vmul.f32 %v3273_v48, %v8038_v16  ;;  %v8123_v35 = vmul.f32 %v3272_v13, %v8047_v43 }
 0xbd4   : > { %v3215_v31 = vmul.f32 0.044715, %v8096_v14  ;;  %v3217_v17 = vmul.f32 0.044715, %v3085_v52  ;;  %v3216_v39 = vmul.f32 0.044715, %v8104_v25  ;;  %v8126_v18 = vmul.f32 %v3274_v36, %v8062_v42 }
 0xbd5   : > { %8667 = vst [vmem:[#allocation75_spill] sm:$0xff] %v8120_v3  ;;  %v3275_v5 = vmul.f32 %v3211_v7, %v8070_v11  ;;  %v3277_v49 = vmul.f32 %v3213_v22, %v8074_v21  ;;  %v8132_v29 = vadd.f32 %v8040_v4, %v8661_v10  ;;  %v8136_v61 = vadd.f32 %v8049_v45, %v8656_v2 }
 0xbd6   : > { %v3281_v62 = vmul.f32 %v3217_v17, %v3085_v52  ;;  %v3276_v57 = vmul.f32 %v3212_v30, %v8078_v24  ;;  %v3089_v48 = vadd.f32 %v3088_v41, %v8657_v19  ;;  %v8141_v13 = vadd.f32 %v2977_v60, %v8658_v50 }
 0xbd7   : > { %v8144_v36 = vadd.f32 %v3090_v1, %v8661_v10  ;;  %v3278_v7 = vmul.f32 %v3214_v0, %v8082_v6  ;;  %v3279_v22 = vmul.f32 %v3215_v31, %v8096_v14  ;;  %v3280_v17 = vmul.f32 %v3216_v39, %v8104_v25 }
 0xbd8   : > { %v3345_v4 = vmul.f32 %v3281_v62, %v3085_v52  ;;  %v8150_v45 = vmul.f32 %v3275_v5, %v8070_v11  ;;  %v3218_v30 = vmul.f32 0.044715, %v8132_v29  ;;  %v3221_v3 = vmul.f32 0.044715, %v3089_v48 }
 0xbd9   : > { %v8154_v41 = vadd.f32 %v2981_v9, %v8656_v2  ;;  %v8157_v60 = vmul.f32 %v3277_v49, %v8074_v21  ;;  %v8159_v1 = vmul.f32 0.5, %v3085_v52  ;;  %v3219_v0 = vmul.f32 0.044715, %v8136_v61 }
 0xbda   : > { %8668 = vst [vmem:[#allocation70_spill] sm:$0xff] %v8150_v45  ;;  %v3220_v31 = vmul.f32 0.044715, %v8141_v13  ;;  %v3409_v62 = vadd.f32 %v3345_v4, %v3085_v52  ;;  %v3285_v39 = vmul.f32 %v3221_v3, %v3089_v48  ;;  %v3222_v5 = vmul.f32 0.044715, %v8144_v36 }
 0xbdb   : > { %8669 = vst [vmem:[#allocation74_spill] sm:$0xff] %v8157_v60  ;;  %8670 = vst [vmem:[#allocation72_spill] sm:$0xff] %v8159_v1  ;;  %v8165_v16 = vadd.f32 %v3094_v20, %v8657_v19  ;;  %v8168_v45 = vmul.f32 %v3276_v57, %v8078_v24  ;;  %v8171_v9 = vmul.f32 %v3278_v7, %v8082_v6  ;;  %v3223_v4 = vmul.f32 0.044715, %v8154_v41 }
 0xbdc   : > { %v8174_v49 = vmul.f32 %v3279_v22, %v8096_v14  ;;  %v8177_v1 = vmul.f32 %v3280_v17, %v8104_v25  ;;  %v3282_v52 = vmul.f32 %v3218_v30, %v8132_v29  ;;  %v3349_v3 = vmul.f32 %v3285_v39, %v3089_v48 }
 0xbdd   : > { %v3225_v20 = vmul.f32 0.044715, %v8165_v16  ;;  %v3283_v60 = vmul.f32 %v3219_v0, %v8136_v61  ;;  %v3284_v57 = vmul.f32 %v3220_v31, %v8141_v13  ;;  %v8185_v7 = vadd.f32 %v2983_v23, %v8658_v50 }
 0xbde   : > { %8671 = vst [vmem:[#allocation76_spill] sm:$0xff] %v8174_v49  ;;  %8672 = vst [vmem:[#allocation51_spill] sm:$0xff] %v8177_v1  ;;  %v8188_v22 = vadd.f32 %v3096_v47, %v8661_v10  ;;  %v3473_v49 = vmul.f32 0.7978846, %v3409_v62  ;;  %v3413_v17 = vadd.f32 %v3349_v3, %v3089_v48  ;;  %v3286_v14 = vmul.f32 %v3222_v5, %v8144_v36 }
 0xbdf   : > { %v8192_v30 = vadd.f32 %v2985_v37, %v8656_v2  ;;  %v3224_v39 = vmul.f32 0.044715, %v8185_v7  ;;  %v8197_v0 = vadd.f32 %v3098_v44, %v8657_v19  ;;  %v8200_v23 = vadd.f32 %v2987_v15, %v8658_v50 }
 0xbe0   : > { %v3226_v1 = vmul.f32 0.044715, %v8188_v22  ;;  %v3477_v31 = vmul.f32 0.7978846, %v3413_v17  ;;  %v3287_v47 = vmul.f32 %v3223_v4, %v8154_v41  ;;  %v3289_v62 = vmul.f32 %v3225_v20, %v8165_v16 }
 0xbe1   : > { %v3227_v5 = vmul.f32 0.044715, %v8192_v30  ;;  %v8206_v2 = vmul.f32 %v3282_v52, %v8132_v29  ;;  %v8208_v37 = vmul.f32 0.5, %v3089_v48  ;;  %v3228_v3 = vmul.f32 0.044715, %v8200_v23 }
 0xbe2   : > { %v8212_v19 = vadd.f32 %v3100_v63, %v8661_v10  ;;  %v8215_v50 = vmul.f32 %v3283_v60, %v8136_v61  ;;  %v8218_v44 = vmul.f32 %v3284_v57, %v8141_v13  ;;  %v3288_v15 = vmul.f32 %v3224_v39, %v8185_v7 }
 0xbe3   : > { %v3290_v4 = vmul.f32 %v3226_v1, %v8188_v22  ;;  %5602 = vtanh.f32 %v3473_v49  ;;  %v8223_v52 = vmul.f32 %v3286_v14, %v8144_v36  ;;  %v3291_v48 = vmul.f32 %v3227_v5, %v8192_v30 }
 0xbe4   : > { %v3229_v20 = vmul.f32 0.044715, %v8197_v0  ;;  %5604 = vtanh.f32 %v3477_v31  ;;  %v8228_v10 = vmul.f32 %v3287_v47, %v8154_v41  ;;  %v8231_v63 = vmul.f32 %v3289_v62, %v8165_v16 }
 0xbe5   : > { %v3392_v60 = vadd.f32 %v8052_v33, %v7981_v12  ;;  %v3292_v1 = vmul.f32 %v3228_v3, %v8200_v23  ;;  %v8237_v49 = vmul.f32 0.044715, %v8212_v19  ;;  %v8240_v14 = vmul.f32 0.5, %v7981_v12 }
 0xbe6   : > { %8673 = vst [vmem:[#allocation52_spill] sm:$0xff] %v8231_v63  ;;  %v3396_v57 = vadd.f32 %v8107_v54, %v8021_v8  ;;  %v8245_v17 = vmul.f32 %v3288_v15, %v8185_v7  ;;  %v8248_v39 = vmul.f32 %v3290_v4, %v8188_v22  ;;  %v3394_v33 = vadd.f32 %v8085_v32, %v7992_v46 }
 0xbe7   : > { %v3456_v31 = vmul.f32 0.7978846, %v3392_v60  ;;  %v8253_v47 = vmul.f32 %v3291_v48, %v8192_v30  ;;  %v8256_v62 = vmul.f32 %v3229_v20, %v8197_v0  ;;  %v3398_v54 = vadd.f32 %v8110_v38, %v8031_v56 }
 0xbe8   : > { %v3460_v12 = vmul.f32 0.7978846, %v3396_v57  ;;  %v3458_v5 = vmul.f32 0.7978846, %v3394_v33  ;;  %v3391_v3 = vadd.f32 %v8025_v40, %v7972_v58  ;;  %v3395_v15 = vadd.f32 %v8088_v26, %v8008_v55 }
 0xbe9   : > { %5606 = vtanh.f32 %v3456_v31  ;;  %v8265_v32 = vmul.f32 %v3292_v1, %v8200_v23  ;;  %v3140_v4 = vmul.f32 0.5, %v8021_v8  ;;  %v3462_v48 = vmul.f32 0.7978846, %v3398_v54 }
 0xbea   : > { %5608 = vtanh.f32 %v3460_v12  ;;  %v3455_v20 = vmul.f32 0.7978846, %v3391_v3  ;;  %v3459_v60 = vmul.f32 0.7978846, %v3395_v15  ;;  %v3393_v38 = vadd.f32 %v8043_v28, %v7975_v59  ;;  %v8674_v15 = vld [vmem:[#allocation70_spill] sm:$0xff] }
 0xbeb   : > { %5610 = vtanh.f32 %v3458_v5  ;;  %v3138_v57 = vmul.f32 0.5, %v7992_v46  ;;  %v3142_v40 = vmul.f32 0.5, %v8031_v56  ;;  %v3397_v26 = vadd.f32 %v8099_v51, %v8013_v53 }
 0xbec   : > { %5612 = vtanh.f32 %v3462_v48  ;;  %v3457_v1 = vmul.f32 0.7978846, %v3393_v38  ;;  %v3400_v8 = vadd.f32 %v8123_v35, %v8047_v43  ;;  %v3404_v31 = vadd.f32 %v8168_v45, %v8078_v24 }
 0xbed   : > { %5614 = vtanh.f32 %v3455_v20  ;;  %v8278_v33 = vpop.eup %5602  ;;  %v3135_v28 = vmul.f32 0.5, %v7972_v58  ;;  %v8282_v46 = vmul.f32 0.5, %v8008_v55  ;;  %v3461_v56 = vmul.f32 0.7978846, %v3397_v26  ;;  %v8676_v26 = vld [vmem:[#allocation75_spill] sm:$0xff] }
 0xbee   : > { %5616 = vtanh.f32 %v3459_v60  ;;  %v8284_v12 = vpop.eup %5604  ;;  %v3464_v51 = vmul.f32 0.7978846, %v3400_v8  ;;  %v3468_v54 = vmul.f32 0.7978846, %v3404_v31  ;;  %v3402_v35 = vadd.f32 %v8126_v18, %v8062_v42 }
 0xbef   : > { %5618 = vtanh.f32 %v3457_v1  ;;  %v3137_v5 = vmul.f32 0.5, %v7975_v59  ;;  %v8290_v45 = vmul.f32 0.5, %v8013_v53  ;;  %v3406_v58 = vadd.f32 %v8171_v9, %v8082_v6  ;;  %v8675_v9 = vld [vmem:[#allocation73_spill] sm:$0xff] }
 0xbf0   : > { %5620 = vtanh.f32 %v3461_v56  ;;  %v3466_v55 = vmul.f32 0.7978846, %v3402_v35  ;;  %v3399_v3 = vadd.f32 %v8115_v27, %v8035_v34  ;;  %v3403_v48 = vadd.f32 %v8674_v15, %v8070_v11  ;;  %v8677_v56 = vld [vmem:[#allocation74_spill] sm:$0xff] }
 0xbf1   : > { %5622 = vtanh.f32 %v3464_v51  ;;  %v3144_v20 = vmul.f32 0.5, %v8047_v43  ;;  %v8300_v18 = vmul.f32 0.5, %v8078_v24  ;;  %v3470_v59 = vmul.f32 0.7978846, %v3406_v58 }
 0xbf2   : > { %5624 = vtanh.f32 %v3468_v54  ;;  %v3463_v60 = vmul.f32 0.7978846, %v3399_v3  ;;  %v3467_v38 = vmul.f32 0.7978846, %v3403_v48  ;;  %v3401_v1 = vadd.f32 %v8676_v26, %v8675_v9 }
 0xbf3   : > { %v5607_v53 = vpop.eup %5606  ;;  %5626 = vtanh.f32 %v3466_v55  ;;  %v3146_v27 = vmul.f32 0.5, %v8062_v42  ;;  %v3405_v43 = vadd.f32 %v8677_v56, %v8074_v21  ;;  %v8308_v54 = vmul.f32 0.5, %v8082_v6 }
 0xbf4   : > { %v5609_v8 = vpop.eup %5608  ;;  %v3584_v31 = vadd.f32 1.0, %v5607_v53  ;;  %5628 = vtanh.f32 %v3470_v59  ;;  %v3465_v35 = vmul.f32 0.7978846, %v3401_v1  ;;  %v8678_v59 = vld [vmem:[#allocation51_spill] sm:$0xff]  ;;  %v3412_v6 = vadd.f32 %v8218_v44, %v8141_v13 }
 0xbf5   : > { %v5611_v51 = vpop.eup %5610  ;;  %v3588_v24 = vadd.f32 1.0, %v5609_v8  ;;  %5630 = vtanh.f32 %v3463_v60  ;;  %v3469_v15 = vmul.f32 0.7978846, %v3405_v43  ;;  %v3408_v26 = vadd.f32 %v8678_v59, %v8104_v25 }
 0xbf6   : > { %v5613_v58 = vpop.eup %5612  ;;  %v3648_v55 = vmul.f32 %v3584_v31, %v8240_v14  ;;  %v3586_v3 = vadd.f32 1.0, %v5611_v51  ;;  %5632 = vtanh.f32 %v3467_v38 }
 0xbf7   : > { %v5615_v48 = vpop.eup %5614  ;;  %v3652_v53 = vmul.f32 %v3588_v24, %v3140_v4  ;;  %v3590_v42 = vadd.f32 1.0, %v5613_v58  ;;  %5634 = vtanh.f32 %v3465_v35  ;;  %v3472_v38 = vmul.f32 0.7978846, %v3408_v26 }
 0xbf8   : > { %v5617_v56 = vpop.eup %5616  ;;  %v3650_v8 = vmul.f32 %v3586_v3, %v3138_v57  ;;  %v3583_v63 = vadd.f32 1.0, %v5615_v48  ;;  %5636 = vtanh.f32 %v3469_v15  ;;  %v3143_v24 = vmul.f32 0.5, %v8035_v34 }
 0xbf9   : > { %v5619_v60 = vpop.eup %5618  ;;  %v3696_v1 = vpack.c.bf16 %v3652_v53, %v3648_v55  ;;  %v3654_v14 = vmul.f32 %v3590_v42, %v3142_v40  ;;  %v3587_v31 = vadd.f32 1.0, %v5617_v56  ;;  %v3476_v35 = vmul.f32 0.7978846, %v3412_v6  ;;  %v8679_v53 = vld [vmem:[#allocation71_spill] sm:$0xff]  ;;  %v8680_v42 = vld [vmem:[#allocation76_spill] sm:$0xff] }
 0xbfa   : > { %v5621_v43 = vpop.eup %5620  ;;  %v3647_v51 = vmul.f32 %v3583_v63, %v3135_v28  ;;  %v3585_v4 = vadd.f32 1.0, %v5619_v60  ;;  %5638 = vtanh.f32 %v3472_v38  ;;  %v3147_v40 = vmul.f32 0.5, %v8070_v11 }
 0xbfb   : > { %v5623_v58 = vpop.eup %5622  ;;  %4038 = vmatprep.mubr.bf16.mxu1 %v3696_v1  ;;  %v3698_v59 = vpack.c.bf16 %v3654_v14, %v3650_v8  ;;  %v3651_v57 = vmul.f32 %v3587_v31, %v8282_v46  ;;  %v3589_v3 = vadd.f32 1.0, %v5621_v43  ;;  %5640 = vtanh.f32 %v3476_v35 }
 0xbfc   : > { %v5625_v15 = vpop.eup %5624  ;;  %v3649_v44 = vmul.f32 %v3585_v4, %v3137_v5  ;;  %v3592_v48 = vadd.f32 1.0, %v5623_v58  ;;  %v3407_v26 = vadd.f32 %v8680_v42, %v8679_v53  ;;  %v3145_v6 = vmul.f32 0.5, %v8675_v9 }
 0xbfd   : > { %v5627_v55 = vpop.eup %5626  ;;  %4135 = vmatprep.mubr.bf16.mxu0 %v3698_v59  ;;  %v3695_v63 = vpack.c.bf16 %v3651_v57, %v3647_v51  ;;  %v3653_v28 = vmul.f32 %v3589_v3, %v8290_v45  ;;  %v3596_v34 = vadd.f32 1.0, %v5625_v15  ;;  %v3411_v5 = vadd.f32 %v8215_v50, %v8136_v61 }
 0xbfe   : > { %v5629_v56 = vpop.eup %5628  ;;  %v3656_v8 = vmul.f32 %v3592_v48, %v3144_v20  ;;  %v3594_v46 = vadd.f32 1.0, %v5627_v55  ;;  %v3471_v31 = vmul.f32 0.7978846, %v3407_v26  ;;  %v3149_v51 = vmul.f32 0.5, %v8074_v21 }
 0xbff   : > { %v5631_v60 = vpop.eup %5630  ;;  %4039 = vmatmul.mubr.bf16.gmra.mrb[96].mxu1 %v3695_v63  ;;  %v3697_v11 = vpack.c.bf16 %v3653_v28, %v3649_v44  ;;  %v3660_v1 = vmul.f32 %v3596_v34, %v8300_v18  ;;  %v3598_v14 = vadd.f32 1.0, %v5629_v56  ;;  %v3475_v4 = vmul.f32 0.7978846, %v3411_v5 }
 0xc00   : > { %v5633_v45 = vpop.eup %5632  ;;  %v3658_v38 = vmul.f32 %v3594_v46, %v3146_v27  ;;  %v3591_v43 = vadd.f32 1.0, %v5631_v60  ;;  %5642 = vtanh.f32 %v3471_v31  ;;  %v3416_v18 = vadd.f32 %v8245_v17, %v8185_v7 }
 0xc01   : > { %v5635_v20 = vpop.eup %5634  ;;  %4136 = vmatmul.mubr.bf16.gmra.mrb[128].mxu0 %v3697_v11  ;;  %v3700_v35 = vpack.c.bf16 %v3660_v1, %v3656_v8  ;;  %v3662_v9 = vmul.f32 %v3598_v14, %v8308_v54  ;;  %v3595_v58 = vadd.f32 1.0, %v5633_v45  ;;  %5644 = vtanh.f32 %v3475_v4 }
 0xc02   : > { %v5637_v50 = vpop.eup %5636  ;;  %v3655_v59 = vmul.f32 %v3591_v43, %v3143_v24  ;;  %v3593_v57 = vadd.f32 1.0, %v5635_v20  ;;  %v3420_v21 = vadd.f32 %v8265_v32, %v8200_v23  ;;  %v3294_v44 = vmul.f32 %v8237_v49, %v8212_v19 }
 0xc03   : > { %4046 = vmatprep.mubr.bf16.mxu1 %v3700_v35  ;;  %v3702_v27 = vpack.c.bf16 %v3662_v9, %v3658_v38  ;;  %v3659_v3 = vmul.f32 %v3595_v58, %v3147_v40  ;;  %v3597_v15 = vadd.f32 1.0, %v5637_v50  ;;  %v3152_v48 = vmul.f32 0.5, %v8104_v25  ;;  %v8681_v38 = vld [vmem:[#allocation72_spill] sm:$0xff] }
 0xc04   : > { %v3657_v54 = vmul.f32 %v3593_v57, %v3145_v6  ;;  %v3480_v55 = vmul.f32 0.7978846, %v3416_v18  ;;  %v5639_v24 = vpop.eup %5638  ;;  %v3484_v34 = vmul.f32 0.7978846, %v3420_v21  ;;  %v3415_v17 = vadd.f32 %v8228_v10, %v8154_v41 }
 0xc05   : > { %4143 = vmatprep.mubr.bf16.mxu0 %v3702_v27  ;;  %v3699_v63 = vpack.c.bf16 %v3659_v3, %v3655_v59  ;;  %v3661_v28 = vmul.f32 %v3597_v15, %v3149_v51  ;;  %v5641_v40 = vpop.eup %5640  ;;  %v3156_v42 = vmul.f32 0.5, %v8141_v13  ;;  %v3600_v26 = vadd.f32 1.0, %v5639_v24 }
 0xc06   : > { %5646 = vtanh.f32 %v3480_v55  ;;  %v3419_v49 = vadd.f32 %v8253_v47, %v8192_v30  ;;  %v3604_v25 = vadd.f32 1.0, %v5641_v40  ;;  %v3479_v56 = vmul.f32 0.7978846, %v3415_v17 }
 0xc07   : > { %4047 = vmatmul.mubr.bf16.gmra.mrb[100].mxu1 %v3699_v63  ;;  %v3701_v32 = vpack.c.bf16 %v3661_v28, %v3657_v54  ;;  %5648 = vtanh.f32 %v3484_v34  ;;  %v3358_v8 = vmul.f32 %v3294_v44, %v8212_v19  ;;  %v3664_v46 = vmul.f32 %v3600_v26, %v3152_v48 }
 0xc08   : > { %v3483_v6 = vmul.f32 0.7978846, %v3419_v49  ;;  %v3410_v10 = vadd.f32 %v8206_v2, %v8132_v29  ;;  %v3668_v5 = vmul.f32 %v3604_v25, %v3156_v42  ;;  %5650 = vtanh.f32 %v3479_v56 }
 0xc09   : > { %4144 = vmatmul.mubr.bf16.gmra.mrb[132].mxu0 %v3701_v32  ;;  %v3414_v13 = vadd.f32 %v8223_v52, %v8144_v36  ;;  %v3601_v47 = vadd.f32 1.0, %v8278_v33  ;;  %v3357_v60 = vmul.f32 %v8256_v62, %v8197_v0  ;;  %v3605_v1 = vadd.f32 1.0, %v8284_v12 }
 0xc0a   : > { %5652 = vtanh.f32 %v3483_v6  ;;  %v3474_v11 = vmul.f32 0.7978846, %v3410_v10  ;;  %v5643_v14 = vpop.eup %5642  ;;  %v3704_v31 = vpack.c.bf16 %v3668_v5, %v3664_v46  ;;  %v3151_v45 = vmul.f32 0.5, %v8679_v53 }
 0xc0b   : > { %v3478_v2 = vmul.f32 0.7978846, %v3414_v13  ;;  %v8350_v43 = vmul.f32 %v3601_v47, %v8681_v38  ;;  %v5645_v51 = vpop.eup %5644  ;;  %v3599_v4 = vadd.f32 1.0, %v5643_v14  ;;  %v8353_v52 = vmul.f32 %v3605_v1, %v8208_v37  ;;  %v8682_v37 = vld [vmem:[#allocation52_spill] sm:$0xff] }
 0xc0c   : > { %5654 = vtanh.f32 %v3474_v11  ;;  %v3418_v62 = vadd.f32 %v8248_v39, %v8188_v22  ;;  %4054 = vmatprep.mubr.bf16.mxu1 %v3704_v31  ;;  %v3155_v33 = vmul.f32 0.5, %v8136_v61  ;;  %v3603_v12 = vadd.f32 1.0, %v5645_v51 }
 0xc0d   : > { %5656 = vtanh.f32 %v3478_v2  ;;  %v3422_v53 = vadd.f32 %v3358_v8, %v8212_v19  ;;  %v3663_v20 = vmul.f32 %v3599_v4, %v3151_v45  ;;  %v3705_v35 = vpack.c.bf16 %v8353_v52, %v8350_v43 }
 0xc0e   : > { %v3482_v9 = vmul.f32 0.7978846, %v3418_v62  ;;  %v3667_v58 = vmul.f32 %v3603_v12, %v3155_v33  ;;  %v3417_v59 = vadd.f32 %v8682_v37, %v8165_v16  ;;  %v3421_v57 = vadd.f32 %v3357_v60, %v8197_v0 }
 0xc0f   : > { %v3486_v50 = vmul.f32 0.7978846, %v3422_v53  ;;  %v3160_v15 = vmul.f32 0.5, %v8185_v7  ;;  %v3164_v21 = vmul.f32 0.5, %v8200_v23  ;;  %v3159_v34 = vmul.f32 0.5, %v8154_v41 }
 0xc10   : > { %v5647_v39 = vpop.eup %5646  ;;  %5658 = vtanh.f32 %v3482_v9  ;;  %v3703_v61 = vpack.c.bf16 %v3667_v58, %v3663_v20  ;;  %v3481_v3 = vmul.f32 0.7978846, %v3417_v59  ;;  %v3485_v54 = vmul.f32 0.7978846, %v3421_v57 }
 0xc11   : > { %v5649_v18 = vpop.eup %5648  ;;  %v3608_v27 = vadd.f32 1.0, %v5647_v39  ;;  %5660 = vtanh.f32 %v3486_v50  ;;  %v3163_v17 = vmul.f32 0.5, %v8192_v30  ;;  %v3154_v25 = vmul.f32 0.5, %v8132_v29  ;;  %v8683_v39 = vld [vmem:[#allocation35_spill] sm:$0xff] }
 0xc12   : > { %v3612_v44 = vadd.f32 1.0, %v5649_v18  ;;  %v5651_v48 = vpop.eup %5650  ;;  %4055 = vmatmul.mubr.bf16.gmra.mrb[104].mxu1 %v3703_v61  ;;  %5662 = vtanh.f32 %v3481_v3  ;;  %v3158_v56 = vmul.f32 0.5, %v8144_v36  ;;  %v3162_v47 = vmul.f32 0.5, %v8188_v22 }
 0xc13   : > { %v3672_v24 = vmul.f32 %v3608_v27, %v3160_v15  ;;  %v3607_v28 = vadd.f32 1.0, %v5651_v48  ;;  %5664 = vtanh.f32 %v3485_v54  ;;  %v3166_v60 = vmul.f32 0.5, %v8212_v19  ;;  %v8374_v19 = vld [vmem:[#allocation22] ss:$0 sm:$0xff]  ;;  %v8684_v27 = vld [vmem:[#allocation36_spill] sm:$0xff] }
 0xc14   : > { %v5653_v55 = vpop.eup %5652  ;;  %v3676_v63 = vmul.f32 %v3612_v44, %v3164_v21  ;;  %v3161_v45 = vmul.f32 0.5, %v8165_v16  ;;  %v3165_v2 = vmul.f32 0.5, %v8197_v0 }
 0xc15   : > { %v3611_v40 = vadd.f32 1.0, %v5653_v55  ;;  %v3671_v49 = vmul.f32 %v3607_v28, %v3159_v34 }
 0xc16   : > { %v5655_v42 = vpop.eup %5654  ;;  %v3708_v26 = vpack.c.bf16 %v3676_v63, %v3672_v24 }
 0xc17   : > { %v5657_v7 = vpop.eup %5656  ;;  %v3675_v23 = vmul.f32 %v3611_v40, %v3163_v17  ;;  %v3602_v32 = vadd.f32 1.0, %v5655_v42 }
 0xc18   : > { %4062 = vmatprep.mubr.bf16.mxu1 %v3708_v26  ;;  %v3606_v8 = vadd.f32 1.0, %v5657_v7 }
 0xc19   : > { %v3707_v46 = vpack.c.bf16 %v3675_v23, %v3671_v49  ;;  %v3666_v10 = vmul.f32 %v3602_v32, %v3154_v25  ;;  %v8685_v49 = vld [vmem:[#allocation37_spill] sm:$0xff]  ;;  %v8686_v25 = vld [vmem:[#allocation38_spill] sm:$0xff] }
 0xc1a   : > { %v5659_v6 = vpop.eup %5658  ;;  %v3670_v5 = vmul.f32 %v3606_v8, %v3158_v56 }
 0xc1b   : > { %v5661_v41 = vpop.eup %5660  ;;  %4063 = vmatmul.mubr.bf16.gmra.mrb[108].mxu1 %v3707_v46  ;;  %v3610_v30 = vadd.f32 1.0, %v5659_v6 }
 0xc1c   : > { %v3706_v13 = vpack.c.bf16 %v3670_v5, %v3666_v10  ;;  %v3614_v11 = vadd.f32 1.0, %v5661_v41  ;;  %v5663_v1 = vpop.eup %5662 }
 0xc1d   : > { %v5665_v14 = vpop.eup %5664  ;;  %v3674_v29 = vmul.f32 %v3610_v30, %v3162_v47  ;;  %v3609_v36 = vadd.f32 1.0, %v5663_v1 }
 0xc1e   : > { %4151 = vmatprep.mubr.bf16.mxu1 %v3706_v13  ;;  %v3678_v31 = vmul.f32 %v3614_v11, %v3166_v60  ;;  %v3613_v38 = vadd.f32 1.0, %v5665_v14 }
 0xc1f   : > { %v3673_v51 = vmul.f32 %v3609_v36, %v3161_v45  ;;  %v8687_v36 = vld [vmem:[#allocation40_spill] sm:$0xff] }
 0xc20   : > { %v3710_v43 = vpack.c.bf16 %v3678_v31, %v3674_v29  ;;  %v3677_v4 = vmul.f32 %v3613_v38, %v3165_v2  ;;  %v8688_v38 = vld [vmem:[#allocation39_spill] sm:$0xff] }
 0xc22   : > { %v3709_v52 = vpack.c.bf16 %v3677_v4, %v3673_v51 }
 0xc23   : > { %4152 = vmatmul.mubr.bf16.vlgmr.msra.gmra.mrb[112].mxu1 %v3705_v35 }
 0xc24   : > { %4159 = vmatprep.mubr.bf16.mxu1 %v3710_v43 }
 0xc2b   : > { %4160 = vmatmul.mubr.bf16.gmra.mrb[116].mxu1 %v3709_v52 }
 0xc7c   : > { %v4671_v22 = vpop.f32.mrb[80].mxu1 }
 0xc7d   : > { %v4672_v62 = vpop.f32.mrb[81].mxu1 }
 0xc7e   : > { %v4673_v33 = vadd.f32 %v4672_v62, %v4671_v22  ;;  %v4674_v12 = vpop.f32.mrb[82].mxu1  ;;  %v4735_v53 = vpop.f32.mrb[112].mxu0 }
 0xc7f   : > { %v4675_v20 = vpop.f32.mrb[83].mxu1  ;;  %v4736_v0 = vpop.f32.mrb[113].mxu0 }
 0xc80   : > { %v4009_v16 = vadd.f32 %v4673_v33, %v8374_v19  ;;  %v4676_v9 = vadd.f32 %v4675_v20, %v4674_v12  ;;  %v4737_v58 = vadd.f32 %v4736_v0, %v4735_v53  ;;  %v4738_v50 = vpop.f32.mrb[114].mxu0 }
 0xc81   : > { %v4739_v37 = vpop.f32.mrb[115].mxu0 }
 0xc82   : > { %v4012_v35 = vadd.f32 %v4676_v9, %v8374_v19  ;;  %v4106_v59 = vadd.f32 %v4737_v58, %v4009_v16  ;;  %v4740_v57 = vadd.f32 %v4739_v37, %v4738_v50  ;;  %v8689_v37 = vld [vmem:[#allocation42_spill] sm:$0xff] }
 0xc84   : > { %v4168_v18 = vadd.f32 %v4106_v59, %v8683_v39  ;;  %v4109_v61 = vadd.f32 %v4740_v57, %v4012_v35  ;;  %v8690_v39 = vld [vmem:[#allocation41_spill] sm:$0xff] }
 0xc86   : > { %4184 = vst [vmem:[%s8381_s3] sm:$0xff] %v4168_v18  ;;  %v4169_v3 = vadd.f32 %v4109_v61, %v8684_v27  ;;  %v4677_v15 = vpop.f32.mrb[84].mxu1 }
 0xc87   : > { %v4678_v21 = vpop.f32.mrb[85].mxu1 }
 0xc88   : > { %4185 = vst [vmem:[%s8381_s3 + $0x8] sm:$0xff] %v4169_v3  ;;  %v4679_v54 = vadd.f32 %v4678_v21, %v4677_v15  ;;  %v4680_v48 = vpop.f32.mrb[86].mxu1 }
 0xc89   : > { %v4741_v44 = vpop.f32.mrb[116].mxu0  ;;  %v4681_v24 = vpop.f32.mrb[87].mxu1 }
 0xc8a   : > { %v4742_v55 = vpop.f32.mrb[117].mxu0  ;;  %v4017_v63 = vadd.f32 %v4679_v54, %v8374_v19  ;;  %v4682_v17 = vadd.f32 %v4681_v24, %v4680_v48 }
 0xc8b   : > { %v4743_v28 = vadd.f32 %v4742_v55, %v4741_v44  ;;  %v4744_v34 = vpop.f32.mrb[118].mxu0 }
 0xc8c   : > { %v4745_v40 = vpop.f32.mrb[119].mxu0  ;;  %v4020_v26 = vadd.f32 %v4682_v17, %v8374_v19 }
 0xc8d   : > { %v4114_v42 = vadd.f32 %v4743_v28, %v4017_v63  ;;  %v4746_v7 = vadd.f32 %v4745_v40, %v4744_v34 }
 0xc8f   : > { %v4170_v23 = vadd.f32 %v4114_v42, %v8685_v49  ;;  %v4117_v32 = vadd.f32 %v4746_v7, %v4020_v26  ;;  %v8691_v42 = vld [vmem:[#allocation43_spill] sm:$0xff] }
 0xc91   : > { %4186 = vst [vmem:[%s8381_s3 + $0x10] sm:$0xff] %v4170_v23  ;;  %v4171_v56 = vadd.f32 %v4117_v32, %v8686_v25  ;;  %v4683_v8 = vpop.f32.mrb[88].mxu1  ;;  %v8692_v32 = vld [vmem:[#allocation44_spill] sm:$0xff] }
 0xc92   : > { %v4684_v46 = vpop.f32.mrb[89].mxu1 }
 0xc93   : > { %4187 = vst [vmem:[%s8381_s3 + $0x18] sm:$0xff] %v4171_v56  ;;  %v4685_v6 = vadd.f32 %v4684_v46, %v4683_v8  ;;  %v4686_v10 = vpop.f32.mrb[90].mxu1 }
 0xc94   : > { %v4687_v5 = vpop.f32.mrb[91].mxu1 }
 0xc95   : > { %v4688_v41 = vadd.f32 %v4687_v5, %v4686_v10  ;;  %v4025_v13 = vadd.f32 %v4685_v6, %v8374_v19 }
 0xc97   : > { %v4747_v30 = vpop.f32.mrb[120].mxu0  ;;  %v4028_v1 = vadd.f32 %v4688_v41, %v8374_v19 }
 0xc98   : > { %v4748_v47 = vpop.f32.mrb[121].mxu0 }
 0xc99   : > { %v4749_v60 = vadd.f32 %v4748_v47, %v4747_v30  ;;  %v4750_v11 = vpop.f32.mrb[122].mxu0 }
 0xc9a   : > { %v4751_v14 = vpop.f32.mrb[123].mxu0 }
 0xc9b   : > { %v4122_v29 = vadd.f32 %v4749_v60, %v4025_v13  ;;  %v4752_v31 = vadd.f32 %v4751_v14, %v4750_v11  ;;  %v8693_v14 = vld [vmem:[#allocation45_spill] sm:$0xff] }
 0xc9d   : > { %v4172_v45 = vadd.f32 %v4122_v29, %v8687_v36  ;;  %v4125_v2 = vadd.f32 %v4752_v31, %v4028_v1  ;;  %v8694_v36 = vld [vmem:[#allocation46_spill] sm:$0xff] }
 0xc9f   : > { %4188 = vst [vmem:[%s8381_s3 + $0x20] sm:$0xff] %v4172_v45  ;;  %v4173_v43 = vadd.f32 %v4125_v2, %v8688_v38 }
 0xca1   : > { %4189 = vst [vmem:[%s8381_s3 + $0x28] sm:$0xff] %v4173_v43  ;;  %v4689_v51 = vpop.f32.mrb[92].mxu1 }
 0xca2   : > { %v4690_v4 = vpop.f32.mrb[93].mxu1 }
 0xca3   : > { %v4691_v22 = vadd.f32 %v4690_v4, %v4689_v51  ;;  %v4692_v62 = vpop.f32.mrb[94].mxu1 }
 0xca4   : > { %v4693_v12 = vpop.f32.mrb[95].mxu1 }
 0xca5   : > { %v4753_v52 = vpop.f32.mrb[124].mxu0  ;;  %v4033_v53 = vadd.f32 %v4691_v22, %v8374_v19  ;;  %v4694_v0 = vadd.f32 %v4693_v12, %v4692_v62 }
 0xca6   : > { %v4754_v33 = vpop.f32.mrb[125].mxu0 }
 0xca7   : > { %v4755_v20 = vadd.f32 %v4754_v33, %v4753_v52  ;;  %v4756_v16 = vpop.f32.mrb[126].mxu0  ;;  %v4036_v50 = vadd.f32 %v4694_v0, %v8374_v19 }
 0xca8   : > { %v4757_v9 = vpop.f32.mrb[127].mxu0 }
 0xca9   : > { %v4130_v58 = vadd.f32 %v4755_v20, %v4033_v53  ;;  %v4758_v35 = vadd.f32 %v4757_v9, %v4756_v16 }
 0xcab   : > { %v4174_v59 = vadd.f32 %v4130_v58, %v8689_v37  ;;  %v4133_v57 = vadd.f32 %v4758_v35, %v4036_v50 }
 0xcad   : > { %4190 = vst [vmem:[%s8381_s3 + $0x30] sm:$0xff] %v4174_v59  ;;  %v4175_v18 = vadd.f32 %v4133_v57, %v8690_v39  ;;  %v8695_v39 = vld [vmem:[#allocation47_spill] sm:$0xff] }
 0xcaf   : > { %4191 = vst [vmem:[%s8381_s3 + $0x38] sm:$0xff] %v4175_v18 }
 0xcd2   : > { %v4695_v61 = vpop.f32.mrb[96].mxu1 }
 0xcd3   : > { %v4696_v27 = vpop.f32.mrb[97].mxu1 }
 0xcd4   : > { %v4759_v3 = vpop.f32.mrb[128].mxu0  ;;  %v4697_v15 = vadd.f32 %v4696_v27, %v4695_v61  ;;  %v4698_v21 = vpop.f32.mrb[98].mxu1  ;;  %v8696_v27 = vld [vmem:[#allocation48_spill] sm:$0xff] }
 0xcd5   : > { %v4760_v44 = vpop.f32.mrb[129].mxu0  ;;  %v4699_v54 = vpop.f32.mrb[99].mxu1 }
 0xcd6   : > { %v4041_v48 = vadd.f32 %v4697_v15, %v8374_v19  ;;  %v4761_v55 = vadd.f32 %v4760_v44, %v4759_v3  ;;  %v4762_v24 = vpop.f32.mrb[130].mxu0  ;;  %v4700_v63 = vadd.f32 %v4699_v54, %v4698_v21 }
 0xcd7   : > { %v4763_v28 = vpop.f32.mrb[131].mxu0 }
 0xcd8   : > { %v4138_v34 = vadd.f32 %v4761_v55, %v4041_v48  ;;  %v4044_v17 = vadd.f32 %v4700_v63, %v8374_v19  ;;  %v4764_v40 = vadd.f32 %v4763_v28, %v4762_v24 }
 0xcda   : > { %v4176_v26 = vadd.f32 %v4138_v34, %v8691_v42  ;;  %v4141_v7 = vadd.f32 %v4764_v40, %v4044_v17  ;;  %v4701_v49 = vpop.f32.mrb[100].mxu1  ;;  %v8697_v34 = vld [vmem:[#allocation49_spill] sm:$0xff]  ;;  %v8699_v42 = vld [vmem:[#allocation50_spill] sm:$0xff] }
 0xcdb   : > { %v4702_v23 = vpop.f32.mrb[101].mxu1 }
 0xcdc   : > { %4192 = vst [vmem:[%s8381_s3 + $0x40] sm:$0xff] %v4176_v26  ;;  %v4177_v25 = vadd.f32 %v4141_v7, %v8692_v32  ;;  %v4765_v56 = vpop.f32.mrb[132].mxu0  ;;  %v4703_v8 = vadd.f32 %v4702_v23, %v4701_v49  ;;  %v4704_v46 = vpop.f32.mrb[102].mxu1 }
 0xcdd   : > { %v4766_v6 = vpop.f32.mrb[133].mxu0  ;;  %v4705_v10 = vpop.f32.mrb[103].mxu1 }
 0xcde   : > { %4193 = vst [vmem:[%s8381_s3 + $0x48] sm:$0xff] %v4177_v25  ;;  %v4049_v5 = vadd.f32 %v4703_v8, %v8374_v19  ;;  %v4767_v41 = vadd.f32 %v4766_v6, %v4765_v56  ;;  %v4768_v30 = vpop.f32.mrb[134].mxu0  ;;  %v4706_v13 = vadd.f32 %v4705_v10, %v4704_v46 }
 0xcdf   : > { %v4769_v47 = vpop.f32.mrb[135].mxu0 }
 0xce0   : > { %v4146_v60 = vadd.f32 %v4767_v41, %v4049_v5  ;;  %v4052_v11 = vadd.f32 %v4706_v13, %v8374_v19  ;;  %v4770_v1 = vadd.f32 %v4769_v47, %v4768_v30 }
 0xce2   : > { %v4178_v29 = vadd.f32 %v4146_v60, %v8693_v14  ;;  %v4149_v31 = vadd.f32 %v4770_v1, %v4052_v11 }
 0xce4   : > { %4194 = vst [vmem:[%s8381_s3 + $0x50] sm:$0xff] %v4178_v29  ;;  %v4179_v45 = vadd.f32 %v4149_v31, %v8694_v36 }
 0xce5   : > { %v4707_v2 = vpop.f32.mrb[104].mxu1 }
 0xce6   : > { %4195 = vst [vmem:[%s8381_s3 + $0x58] sm:$0xff] %v4179_v45  ;;  %v4708_v38 = vpop.f32.mrb[105].mxu1 }
 0xce7   : > { %v4709_v43 = vadd.f32 %v4708_v38, %v4707_v2  ;;  %v4710_v51 = vpop.f32.mrb[106].mxu1 }
 0xce8   : > { %v4711_v4 = vpop.f32.mrb[107].mxu1 }
 0xce9   : > { %v4712_v52 = vadd.f32 %v4711_v4, %v4710_v51  ;;  %v4057_v9 = vadd.f32 %v4709_v43, %v8374_v19 }
 0xceb   : > { %v4060_v37 = vadd.f32 %v4712_v52, %v8374_v19 }
 0xcee   : > { %v4713_v22 = vpop.f32.mrb[108].mxu1 }
 0xcef   : > { %v4714_v62 = vpop.f32.mrb[109].mxu1 }
 0xcf0   : > { %v4715_v33 = vadd.f32 %v4714_v62, %v4713_v22  ;;  %v4716_v12 = vpop.f32.mrb[110].mxu1 }
 0xcf1   : > { %v4717_v53 = vpop.f32.mrb[111].mxu1 }
 0xcf2   : > { %v4718_v20 = vadd.f32 %v4717_v53, %v4716_v12  ;;  %v4065_v44 = vadd.f32 %v4715_v33, %v8374_v19 }
 0xcf4   : > { %v4068_v24 = vadd.f32 %v4718_v20, %v8374_v19 }
 0xcf6   : > { %v4771_v16 = vpop.f32.mrb[112].mxu1 }
 0xcf7   : > { %v4772_v0 = vpop.f32.mrb[113].mxu1 }
 0xcf8   : > { %v4773_v58 = vadd.f32 %v4772_v0, %v4771_v16  ;;  %v4774_v50 = vpop.f32.mrb[114].mxu1 }
 0xcf9   : > { %v4775_v35 = vpop.f32.mrb[115].mxu1 }
 0xcfa   : > { %v4154_v59 = vadd.f32 %v4773_v58, %v4057_v9  ;;  %v4776_v57 = vadd.f32 %v4775_v35, %v4774_v50 }
 0xcfc   : > { %v4180_v18 = vadd.f32 %v4154_v59, %v8695_v39  ;;  %v4157_v61 = vadd.f32 %v4776_v57, %v4060_v37 }
 0xcfe   : > { %4196 = vst [vmem:[%s8381_s3 + $0x60] sm:$0xff] %v4180_v18  ;;  %v4181_v3 = vadd.f32 %v4157_v61, %v8696_v27  ;;  %v4777_v15 = vpop.f32.mrb[116].mxu1 }
 0xcff   : > { %v4778_v21 = vpop.f32.mrb[117].mxu1 }
 0xd00   : > { %4197 = vst [vmem:[%s8381_s3 + $0x68] sm:$0xff] %v4181_v3  ;;  %v4779_v54 = vadd.f32 %v4778_v21, %v4777_v15  ;;  %v4780_v48 = vpop.f32.mrb[118].mxu1 }
 0xd01   : > { %v4781_v55 = vpop.f32.mrb[119].mxu1 }
 0xd02   : > { %v4162_v63 = vadd.f32 %v4779_v54, %v4065_v44  ;;  %v4782_v28 = vadd.f32 %v4781_v55, %v4780_v48 }
 0xd04   : > { %v4182_v17 = vadd.f32 %v4162_v63, %v8697_v34  ;;  %v4165_v40 = vadd.f32 %v4782_v28, %v4068_v24 }
 0xd06   : > { %4198 = vst [vmem:[%s8381_s3 + $0x70] sm:$0xff] %v4182_v17  ;;  %v4183_v19 = vadd.f32 %v4165_v40, %v8699_v42 }
 0xd08   : > { %4199 = vst [vmem:[%s8381_s3 + $0x78] sm:$0xff] %v4183_v19 }
 0xd09   : > { %6061 = shalt.err (!%p6058_p7)
}
 0xd0a   : > { %s6062_s3 = scalar_lea.hbm %s8430_s17, 2048  ;;  %s6066_s14 = scalar_lea.hbm %s8698_s20, 4096 }
 0xd0b   : > { %p6063_p6 = scmp.ne.s32.totalorder %s8430_s17, %s6062_s3  ;;  %p6067_p13 = scmp.lt.u32.totalorder %s8430_s17, %s8698_s20 }
 0xd0c   : > { %p6068_p1 = scmp.lt.u32.totalorder %s6066_s14, %s6062_s3  ;;  %p6070_p2 = scmp.lt.u32.totalorder %s6062_s3, %s8430_s17 }
 0xd0d   : > { %p6064_p9 = pnand %p6063_p6, %p8700_p8 }
 0xd0e   : > { %p6069_p3 = por %p6068_p1, %p6067_p13 }
 0xd0f   : > { %p6065_p4 = pneg %p6064_p9 }
 0xd10   : > { %p6071_p10 = por %p6070_p2, %p6069_p3 }
 0xd12   : > { %p6072_p11 = pnand %p6071_p10, %p6065_p4 }
 0xd14   : > { %6075 = shalt.err (!%p6072_p11)
}
 0xd15   : > { %s6164_s16 = smov 128   ;;  %s6165_s1 = smov 8  }
 0xd16   : > { %5057 = dma.vmem_to_hbm [thread:$0]  (%p8700_p8), %s8432_s13, 2048, %s8430_s17, %s4201_s21, %s6164_s16, %s6164_s16, %s6165_s1  }
 0xd17 PF: > { %s8701_s30 = sld [smem:[#allocation32_spill]]  ;;  %p8702_p12 = scmp.ne.s32.totalorder %s8575_s23, 0 }
 0xd18   : > { %p8703_p0 = scmp.ge.s32.totalorder %s6138_s28, 2 }
 0xd1a   : > { %p5101_p5 = pnand %p8703_p0, %p8702_p12 }
 0xd1d   : > { %s4229_s19 = sand.u32 1, %s8701_s30  }
 0xd1e   : > { %s4230_s3 = scalar_lea.sflag [#allocation4], %s4229_s19 }
 0xd1f   : > { %6121 = dma.done.wait (!%p5101_p5), %s4230_s3, 2048  }
 0xd20   : > { %6123 = vsyncadd (!%p5101_p5), %s4230_s3, 4294965248  ;;  %p32_p7 = scmp.ge.s32.totalorder %s6527_s18, 4   ;;  %s8704_s25 = smov %s6130_s26 }
 0xd21   : > { %s8705_s26 = smov %s6134_s27  ;;  %s8706_s27 = smov %s6538_s29 }
 0xd22   : > { %s8707_s28 = smov %s6527_s18  ;;  %34 = sbr.rel (!%p32_p7) target bundleno = 16 (0x10), region = 165 }
 0xd29   :  { %4235 = vsyncpa [#allocation3], 1 }
 0xd2a   :  { %4237 = vsyncpa [#allocation3 + $0x1], 1 }
 0xd2b   :  { %4238 = vsyncpa [#allocation6], 1 }
 0xd2c   :  { %4239 = vsyncpa [#allocation9], 1 }
 0xd2d   :  { %4240 = vsyncpa [#allocation12], 1 }
 0xd2e   :  { %4241 = vsyncpa [#allocation15], 1 }
 0xd2f   :  { %4242 = vsyncpa [#allocation18], 1 }
 0xd30   :  { %4243 = vsyncpa [#allocation21], 1 }
 0xd31   :  { %4244 = vsyncpa [#allocation4], 1 }
 0xd32   :  { %4246 = vsyncpa [#allocation4 + $0x1], 1 }

</bundles_post_ra>
